<compile_context>
chip_gen: v5e
topology: v5e:2x2
jax: 0.10.0
libtpu: 0.0.40
codegen_flags: <defaults>
</compile_context>

<pallas_src>
import functools

import jax
import jax.numpy as jnp
from jax import lax
from jax.experimental import pallas as pl
from jax.experimental.pallas import tpu as pltpu

_EPS = 1e-5


# ----------------------------- in-kernel helpers -----------------------------

def _phase_decompose(a, s):
    """a: (H, W, C).  Returns {(r, c): ph} with ph[i, j] == a[r + i*s, c + j*s].

    Done once per conv so each 3x3 tap is a plain contiguous slice afterwards."""
    if s == 1:
        return {(0, 0): a}
    H, W, C = a.shape
    phases = {}
    for r in range(s):
        nr = (H - r) // s
        rows = a[r:r + nr * s].reshape(nr, s, W, C)[:, 0]
        for c in range(s):
            nc = (W - c) // s
            phases[(r, c)] = rows[:, c:c + nc * s].reshape(nr, nc, s, C)[:, :, 0, :]
    return phases


def _phase_decompose_nb(a, s):
    """a: (nb, H, W, C) -> phase dict of (nb, ...) arrays (identity for s == 1)."""
    if s == 1:
        return {(0, 0): a}
    nb = a.shape[0]
    per_img = [_phase_decompose(a[n], s) for n in range(nb)]
    return {key: jnp.stack([p[key] for p in per_img], axis=0) for key in per_img[0]}


def _tap(phases, s, r0, c0, nh, nw):
    """value[:, r0 + i*s, c0 + j*s, :] for i < nh, j < nw."""
    ph = phases[(r0 % s, c0 % s)]
    return ph[:, r0 // s:r0 // s + nh, c0 // s:c0 // s + nw, :]


def _zero_halo(ref, h_int, w_int):
    """Zero everything outside the interior rows [1, 1+h_int) x cols [1, 1+w_int)
    of the (nb, Hp, Wp, C) pad scratch.  The interior is fully overwritten by the
    caller every grid step, so only these narrow stripes need zeroing."""
    nb, Hp, Wp, C = ref.shape
    dt = ref.dtype
    ref[:, 0:1, :, :] = jnp.zeros((nb, 1, Wp, C), dt)
    if Hp > 1 + h_int:
        ref[:, 1 + h_int:Hp, :, :] = jnp.zeros((nb, Hp - 1 - h_int, Wp, C), dt)
    ref[:, 1:1 + h_int, 0:1, :] = jnp.zeros((nb, h_int, 1, C), dt)
    if Wp > 1 + w_int:
        ref[:, 1:1 + h_int, 1 + w_int:Wp, :] = jnp.zeros((nb, h_int, Wp - 1 - w_int, C), dt)


# ------------------------------ fused block kernel ----------------------------

def _basic_block_kernel(x_ref, s1_ref, b1_ref, s2_ref, b2_ref, w1_ref, w2_ref,
                        *rest, stride, equal_in_out, Ho, Wo, K):
    if equal_in_out:
        wsc_ref = None
        o_ref, pad1_ref, pad2_ref = rest
    else:
        wsc_ref, o_ref, pad1_ref, pad2_ref = rest

    nb, H, W, Cin = x_ref.shape
    Cout = w2_ref.shape[-1]
    M = nb * Ho * Wo

    x = x_ref[...].astype(jnp.float32)                      # (nb, H, W, Cin)

    # ---- BN1 + ReLU (folded running stats), f32 on the VPU -------------------
    act1 = jnp.maximum(x * s1_ref[0] + b1_ref[0], 0.0)

    # ---- zero-pad act1 into the mxu-dtype VMEM scratch (halo stays on-chip) ---
    _zero_halo(pad1_ref, H, W)
    pad1_ref[:, 1:1 + H, 1:1 + W, :] = act1.astype(pad1_ref.dtype)

    # Stride-phase decomposition once per conv; every tap is then a plain slice.
    ph1 = _phase_decompose_nb(pad1_ref[...], stride)

    # ---- conv1: 9 per-tap MXU matmuls chained into one f32 accumulator -------
    h = jnp.zeros((M, Cout), jnp.float32)
    for t in range(K * K):
        kh, kw = divmod(t, K)
        tap = _tap(ph1, stride, kh, kw, Ho, Wo).reshape(M, Cin)
        h = h + jnp.dot(tap, w1_ref[t], preferred_element_type=jnp.float32)

    # ---- residual branch (never touches HBM) ----------------------------------
    if equal_in_out:
        res = x.reshape(M, Cin)                 # identity shortcut: pre-activation x (f32)
    else:
        # 1x1 stride-s shortcut conv on act1: act1[::s, ::s] == padded[1::s, 1::s]
        a_dec = _tap(ph1, stride, 1, 1, Ho, Wo).reshape(M, Cin)
        res = jnp.dot(a_dec, wsc_ref[...], preferred_element_type=jnp.float32)

    # ---- BN2 + ReLU (f32) ------------------------------------------------------
    # TODO(synk): training-mode dropout (droprate > 0) not implemented; eval-mode
    # dropout is identity so this matches the module in inference.
    act2 = jnp.maximum(h * s2_ref[0] + b2_ref[0], 0.0)

    # ---- conv2: 3x3 / stride 1 / pad 1, residual add fused into accumulator ---
    _zero_halo(pad2_ref, Ho, Wo)
    pad2_ref[:, 1:1 + Ho, 1:1 + Wo, :] = act2.reshape(nb, Ho, Wo, Cout).astype(pad2_ref.dtype)
    ap2 = pad2_ref[...]
    out = res
    for t in range(K * K):
        kh, kw = divmod(t, K)
        tap = ap2[:, kh:kh + Ho, kw:kw + Wo, :].reshape(M, Cout)
        out = out + jnp.dot(tap, w2_ref[t], preferred_element_type=jnp.float32)

    o_ref[...] = out.reshape(nb, Ho, Wo, Cout).astype(o_ref.dtype)


# ------------------------------ NHWC forward wrapper ---------------------------

def _auto_nb(N, H, W, Cin, Cout, mxu_itemsize):
    """Images per grid step.  Bigger blocks amortize per-step overhead / enlarge
    DMAs, but keep >= 2 grid steps (v7x has 2 TensorCores sharding the 'parallel'
    axis) and a modest per-step footprint (v7x VMEM is 64 MiB)."""
    per_img = (H + 2) * (W + 2) * (Cin + Cout) * (mxu_itemsize + 4)
    budget = 8 * 2**20
    nb = 1
    for cand in range(2, N + 1):
        if N % cand:
            continue
        if N // cand < 2:
            break
        if cand * per_img > budget:
            break
        nb = cand
    return nb


def basic_block_forward_nhwc(x, params, *, stride, droprate=0.0,
                             mxu_dtype=jnp.bfloat16, out_dtype=None, nb=None):
    """Fused BasicBlock forward, NHWC activations.  Inference-mode BN; eval-mode
    dropout (identity).  x may be f32 or bf16; out_dtype defaults to x.dtype."""
    del droprate  # identity at eval; TODO(synk): training-mode dropout.
    N, H, W, Cin = x.shape
    Cout = params["w1"].shape[0]
    equal_in_out = Cin == Cout
    K = 3

    Ho = (H + 2 - K) // stride + 1
    Wo = (W + 2 - K) // stride + 1
    if equal_in_out:
        assert stride == 1 and (Ho, Wo) == (H, W), "identity shortcut requires stride == 1"

    out_dtype = jnp.dtype(x.dtype) if out_dtype is None else jnp.dtype(out_dtype)
    mxu_itemsize = jnp.dtype(mxu_dtype).itemsize

    if nb is None:
        nb = _auto_nb(N, H, W, Cin, Cout, mxu_itemsize)
    assert N % nb == 0, (N, nb)

    def fold_bn(bn):
        s = bn["gamma"] / jnp.sqrt(bn["var"] + _EPS)
        return s, bn["beta"] - bn["mean"] * s

    s1, b1 = fold_bn(params["bn1"])
    s2, b2 = fold_bn(params["bn2"])

    # OIHW -> per-tap (K*K, Cin, Cout) matmul weights, cast once to the MXU dtype.
    def as_tap_weights(w_oihw):
        co, ci, kh, kw = w_oihw.shape
        return jnp.transpose(w_oihw, (2, 3, 1, 0)).reshape(kh * kw, ci, co).astype(mxu_dtype)

    w1m = as_tap_weights(params["w1"])             # (9, Cin, Cout)
    w2m = as_tap_weights(params["w2"])             # (9, Cout, Cout)

    args = [x,
            s1.reshape(1, Cin), b1.reshape(1, Cin),
            s2.reshape(1, Cout), b2.reshape(1, Cout),
            w1m, w2m]
    # Constant index_maps -> weights / folded BN scale+bias stay VMEM-resident.
    in_specs = [
        pl.BlockSpec((nb, H, W, Cin), lambda n: (n, 0, 0, 0)),
        pl.BlockSpec((1, Cin), lambda n: (0, 0)),
        pl.BlockSpec((1, Cin), lambda n: (0, 0)),
        pl.BlockSpec((1, Cout), lambda n: (0, 0)),
        pl.BlockSpec((1, Cout), lambda n: (0, 0)),
        pl.BlockSpec((K * K, Cin, Cout), lambda n: (0, 0, 0)),
        pl.BlockSpec((K * K, Cout, Cout), lambda n: (0, 0, 0)),
    ]
    n_wsc = 0
    if not equal_in_out:
        wsc = params["wsc"]
        co, ci, _, _ = wsc.shape
        args.append(jnp.transpose(wsc, (2, 3, 1, 0)).reshape(ci, co).astype(mxu_dtype))
        in_specs.append(pl.BlockSpec((Cin, Cout), lambda n: (0, 0)))
        n_wsc = 1

    Hp1 = (K - 1) + Ho * stride       # padded act1 extent (strided-tap safe)
    Wp1 = (K - 1) + Wo * stride
    scratch_shapes = [pltpu.VMEM((nb, Hp1, Wp1, Cin), mxu_dtype),
                      pltpu.VMEM((nb, Ho + 2, Wo + 2, Cout), mxu_dtype)]

    # Per-step VMEM budget: double-buffered in/out blocks + resident weights +
    # pad scratches + f32 working set; headroom capped well under v7x's 64 MiB.
    blk_in = nb * H * W * Cin * jnp.dtype(x.dtype).itemsize
    blk_out = nb * Ho * Wo * Cout * out_dtype.itemsize
    w_elems = K * K * Cin * Cout + K * K * Cout * Cout + n_wsc * Cin * Cout
    scr = (nb * Hp1 * Wp1 * Cin + nb * (Ho + 2) * (Wo + 2) * Cout) * mxu_itemsize
    scr *= 2 if stride > 1 else 1                  # phase copies for strided conv1
    work = 6 * nb * Ho * Wo * max(Cin, Cout) * 4   # live f32 values (acc / res / act)
    est = 2 * (blk_in + blk_out) + w_elems * mxu_itemsize + scr + work
    vmem_limit = int(min(48 * 2**20, max(16 * 2**20, 2 * est)))

    flops = 2 * N * Ho * Wo * Cout * (K * K * Cin + K * K * Cout
                                      + (0 if equal_in_out else Cin))
    bytes_accessed = (N * H * W * Cin * jnp.dtype(x.dtype).itemsize
                      + N * Ho * Wo * Cout * out_dtype.itemsize
                      + w_elems * mxu_itemsize + 4 * (2 * Cin + 2 * Cout))

    kern = functools.partial(_basic_block_kernel, stride=stride,
                             equal_in_out=equal_in_out, Ho=Ho, Wo=Wo, K=K)

    return pl.pallas_call(
        kern,
        out_shape=jax.ShapeDtypeStruct((N, Ho, Wo, Cout), out_dtype),
        grid=(N // nb,),
        in_specs=in_specs,
        out_specs=pl.BlockSpec((nb, Ho, Wo, Cout), lambda n: (n, 0, 0, 0)),
        scratch_shapes=scratch_shapes,
        compiler_params=pltpu.CompilerParams(
            dimension_semantics=("parallel",),
            vmem_limit_bytes=vmem_limit),
        cost_estimate=pl.CostEstimate(flops=int(flops), transcendentals=0,
                                      bytes_accessed=int(bytes_accessed)),
    )(*args)


def basic_block_forward(x_nchw, params, *, stride, droprate=0.0,
                        mxu_dtype=jnp.bfloat16, out_dtype=None, nb=None):
    """PyTorch-layout (NCHW) convenience wrapper.  When chaining blocks, call
    basic_block_forward_nhwc directly (optionally bf16 in/out) and keep
    activations NHWC end-to-end to avoid two HBM transpose passes per block."""
    x = jnp.transpose(x_nchw, (0, 2, 3, 1))
    out = basic_block_forward_nhwc(x, params, stride=stride, droprate=droprate,
                                   mxu_dtype=mxu_dtype, out_dtype=out_dtype, nb=nb)
    return jnp.transpose(out, (0, 3, 1, 2))


# ----------------------------- reference (plain JAX) ---------------------------

def reference_forward(x, params, *, stride, mxu_dtype=jnp.bfloat16):
    """Mirrors the kernel's dtype policy: f32 BN/ReLU, conv operands cast to
    mxu_dtype, f32 accumulation."""
    conv_prec = lax.Precision.HIGHEST if mxu_dtype == jnp.float32 else None

    def bn_relu(t, bn):
        s = bn["gamma"] / jnp.sqrt(bn["var"] + _EPS)
        b = bn["beta"] - bn["mean"] * s
        return jnp.maximum(t * s[None, :, None, None] + b[None, :, None, None], 0.0)

    def conv(t, w, st, pad):
        return lax.conv_general_dilated(
            t.astype(mxu_dtype), w.astype(mxu_dtype), (st, st),
            ((pad, pad), (pad, pad)),
            dimension_numbers=("NCHW", "OIHW", "NCHW"),
            preferred_element_type=jnp.float32, precision=conv_prec)

    equal = x.shape[1] == params["w1"].shape[0]
    a1 = bn_relu(x, params["bn1"])
    h = conv(a1, params["w1"], stride, 1)
    a2 = bn_relu(h, params["bn2"])
    out = conv(a2, params["w2"], 1, 1)
    res = x if equal else conv(a1, params["wsc"], stride, 0)
    return res + out


# ----------------------------------- setup -------------------------------------

def make_params(key, in_planes, out_planes):
    ks = jax.random.split(key, 12)

    def he(k, shape, fan_in):
        return jax.random.normal(k, shape, jnp.float32) * (2.0 / fan_in) ** 0.5

    def bn_params(kg, kb, km, kv, c):
        return dict(
            gamma=1.0 + 0.1 * jax.random.normal(kg, (c,), jnp.float32),
            beta=0.1 * jax.random.normal(kb, (c,), jnp.float32),
            mean=0.1 * jax.random.normal(km, (c,), jnp.float32),
            var=1.0 + 0.2 * jax.random.uniform(kv, (c,), jnp.float32),
        )

    p = {
        "w1": he(ks[0], (out_planes, in_planes, 3, 3), in_planes * 9),
        "w2": he(ks[1], (out_planes, out_planes, 3, 3), out_planes * 9),
        "bn1": bn_params(ks[3], ks[4], ks[5], ks[6], in_planes),
        "bn2": bn_params(ks[7], ks[8], ks[9], ks[10], out_planes),
    }
    p["wsc"] = (he(ks[2], (out_planes, in_planes, 1, 1), in_planes)
                if in_planes != out_planes else None)
    return p


if __name__ == "__main__":
    key = jax.random.PRNGKey(0)
    H = W = 16
    configs = [
        # channel change -> fused 1x1 shortcut, strided conv1
        dict(N=2, in_planes=4, out_planes=8, stride=2, nb=None,
             dtypes=(jnp.bfloat16, jnp.float32)),
        # equal in/out -> identity shortcut
        dict(N=2, in_planes=8, out_planes=8, stride=1, nb=None,
             dtypes=(jnp.bfloat16, jnp.float32)),
        # batched path: 2 images per grid step
        dict(N=4, in_planes=8, out_planes=8, stride=1, nb=2,
             dtypes=(jnp.bfloat16,)),
    ]

    fwd = jax.jit(basic_block_forward,
                  static_argnames=("stride", "droprate", "mxu_dtype", "out_dtype", "nb"))

    for cfg in configs:
        key, kx, kp = jax.random.split(key, 3)
        x = jax.random.normal(kx, (cfg["N"], cfg["in_planes"], H, W), jnp.float32)
        params = make_params(kp, cfg["in_planes"], cfg["out_planes"])

        for mxu_dtype in cfg["dtypes"]:
            out = fwd(x, params, stride=cfg["stride"], mxu_dtype=mxu_dtype, nb=cfg["nb"])
            out = jax.block_until_ready(out)

            ref = reference_forward(x, params, stride=cfg["stride"], mxu_dtype=mxu_dtype)
            assert out.shape == ref.shape, (out.shape, ref.shape)
            max_err = float(jnp.max(jnp.abs(out - ref)))
            assert jnp.allclose(out, ref, atol=1e-2, rtol=1e-2), \
                (cfg, str(mxu_dtype), max_err)

    print("KERNEL_OK")
</pallas_src>

<mosaic_0001>
module attributes {stable_mosaic.version = 11 : i64} {
  func.func @_basic_block_kernel(%arg0: i32, %arg1: memref<1x16x16x4xf32, #tpu.memory_space<vmem>>, %arg2: memref<1x4xf32, #tpu.memory_space<vmem>>, %arg3: memref<1x4xf32, #tpu.memory_space<vmem>>, %arg4: memref<1x8xf32, #tpu.memory_space<vmem>>, %arg5: memref<1x8xf32, #tpu.memory_space<vmem>>, %arg6: memref<9x4x8xbf16, #tpu.memory_space<vmem>>, %arg7: memref<9x8x8xbf16, #tpu.memory_space<vmem>>, %arg8: memref<4x8xbf16, #tpu.memory_space<vmem>>, %arg9: memref<1x8x8x8xf32, #tpu.memory_space<vmem>>, %arg10: memref<1x18x18x4xbf16, #tpu.memory_space<vmem>>, %arg11: memref<1x10x10x8xbf16, #tpu.memory_space<vmem>>) attributes {dimension_semantics = [#tpu.dimension_semantics<parallel>], iteration_bounds = array<i64: 2>, scalar_prefetch = 0 : i64, scratch_operands = 2 : i64, tpu.core_type = #tpu.core_type<tc>, window_params = [{transform_indices = @transform_0, window_bounds = array<i64: 1, 16, 16, 4>}, {pipeline_mode = #tpu.pipeline_mode<synchronous>, transform_indices = @transform_1, window_bounds = array<i64: 1, 4>}, {pipeline_mode = #tpu.pipeline_mode<synchronous>, transform_indices = @transform_2, window_bounds = array<i64: 1, 4>}, {pipeline_mode = #tpu.pipeline_mode<synchronous>, transform_indices = @transform_3, window_bounds = array<i64: 1, 8>}, {pipeline_mode = #tpu.pipeline_mode<synchronous>, transform_indices = @transform_4, window_bounds = array<i64: 1, 8>}, {pipeline_mode = #tpu.pipeline_mode<synchronous>, transform_indices = @transform_5, window_bounds = array<i64: 9, 4, 8>}, {pipeline_mode = #tpu.pipeline_mode<synchronous>, transform_indices = @transform_6, window_bounds = array<i64: 9, 8, 8>}, {pipeline_mode = #tpu.pipeline_mode<synchronous>, transform_indices = @transform_7, window_bounds = array<i64: 4, 8>}, {transform_indices = @transform_8, window_bounds = array<i64: 1, 8, 8, 8>}]} {
    %c0 = arith.constant 0 : index
    %c0_0 = arith.constant 0 : index
    %c0_1 = arith.constant 0 : index
    %c0_2 = arith.constant 0 : index
    %0 = vector.load %arg1[%c0, %c0_0, %c0_1, %c0_2] : memref<1x16x16x4xf32, #tpu.memory_space<vmem>>, vector<1x16x16x4xf32>
    %c0_3 = arith.constant 0 : index
    %c0_4 = arith.constant 0 : index
    %1 = vector.load %arg2[%c0_3, %c0_4] : memref<1x4xf32, #tpu.memory_space<vmem>>, vector<1x4xf32>
    %2 = vector.shape_cast %1 : vector<1x4xf32> to vector<4xf32>
    %3 = vector.shape_cast %2 : vector<4xf32> to vector<1x1x1x4xf32>
    %4 = vector.broadcast %3 : vector<1x1x1x4xf32> to vector<1x16x16x4xf32>
    %5 = arith.mulf %0, %4 : vector<1x16x16x4xf32>
    %c0_5 = arith.constant 0 : index
    %c0_6 = arith.constant 0 : index
    %6 = vector.load %arg3[%c0_5, %c0_6] : memref<1x4xf32, #tpu.memory_space<vmem>>, vector<1x4xf32>
    %7 = vector.shape_cast %6 : vector<1x4xf32> to vector<4xf32>
    %8 = vector.shape_cast %7 : vector<4xf32> to vector<1x1x1x4xf32>
    %9 = vector.broadcast %8 : vector<1x1x1x4xf32> to vector<1x16x16x4xf32>
    %10 = arith.addf %5, %9 : vector<1x16x16x4xf32>
    %cst = arith.constant 0.000000e+00 : f32
    %11 = vector.broadcast %cst : f32 to vector<1x16x16x4xf32>
    %12 = arith.maximumf %10, %11 : vector<1x16x16x4xf32>
    %cst_7 = arith.constant 0.000000e+00 : bf16
    %13 = vector.broadcast %cst_7 : bf16 to vector<1x1x18x4xbf16>
    %c0_8 = arith.constant 0 : index
    %c0_9 = arith.constant 0 : index
    %c0_10 = arith.constant 0 : index
    %c0_11 = arith.constant 0 : index
    %14 = vector.load %arg10[%c0_8, %c0_9, %c0_10, %c0_11] : memref<1x18x18x4xbf16, #tpu.memory_space<vmem>>, vector<1x1x18x4xbf16>
    tpu.vector_store %arg10[%c0_8, %c0_9, %c0_10, %c0_11], %13 {strides = array<i32>} : memref<1x18x18x4xbf16, #tpu.memory_space<vmem>>, vector<1x1x18x4xbf16>,
    %cst_12 = arith.constant 0.000000e+00 : bf16
    %15 = vector.broadcast %cst_12 : bf16 to vector<1x1x18x4xbf16>
    %c0_13 = arith.constant 0 : index
    %c17 = arith.constant 17 : index
    %c0_14 = arith.constant 0 : index
    %c0_15 = arith.constant 0 : index
    %16 = vector.load %arg10[%c0_13, %c17, %c0_14, %c0_15] : memref<1x18x18x4xbf16, #tpu.memory_space<vmem>>, vector<1x1x18x4xbf16>
    tpu.vector_store %arg10[%c0_13, %c17, %c0_14, %c0_15], %15 {strides = array<i32>} : memref<1x18x18x4xbf16, #tpu.memory_space<vmem>>, vector<1x1x18x4xbf16>,
    %cst_16 = arith.constant 0.000000e+00 : bf16
    %17 = vector.broadcast %cst_16 : bf16 to vector<1x16x1x4xbf16>
    %c0_17 = arith.constant 0 : index
    %c1 = arith.constant 1 : index
    %c0_18 = arith.constant 0 : index
    %c0_19 = arith.constant 0 : index
    %18 = vector.load %arg10[%c0_17, %c1, %c0_18, %c0_19] : memref<1x18x18x4xbf16, #tpu.memory_space<vmem>>, vector<1x16x1x4xbf16>
    tpu.vector_store %arg10[%c0_17, %c1, %c0_18, %c0_19], %17 {strides = array<i32>} : memref<1x18x18x4xbf16, #tpu.memory_space<vmem>>, vector<1x16x1x4xbf16>,
    %cst_20 = arith.constant 0.000000e+00 : bf16
    %19 = vector.broadcast %cst_20 : bf16 to vector<1x16x1x4xbf16>
    %c0_21 = arith.constant 0 : index
    %c1_22 = arith.constant 1 : index
    %c17_23 = arith.constant 17 : index
    %c0_24 = arith.constant 0 : index
    %20 = vector.load %arg10[%c0_21, %c1_22, %c17_23, %c0_24] : memref<1x18x18x4xbf16, #tpu.memory_space<vmem>>, vector<1x16x1x4xbf16>
    tpu.vector_store %arg10[%c0_21, %c1_22, %c17_23, %c0_24], %19 {strides = array<i32>} : memref<1x18x18x4xbf16, #tpu.memory_space<vmem>>, vector<1x16x1x4xbf16>,
    %21 = arith.truncf %12 : vector<1x16x16x4xf32> to vector<1x16x16x4xbf16>
    %c0_25 = arith.constant 0 : index
    %c1_26 = arith.constant 1 : index
    %c1_27 = arith.constant 1 : index
    %c0_28 = arith.constant 0 : index
    %22 = vector.load %arg10[%c0_25, %c1_26, %c1_27, %c0_28] : memref<1x18x18x4xbf16, #tpu.memory_space<vmem>>, vector<1x16x16x4xbf16>
    tpu.vector_store %arg10[%c0_25, %c1_26, %c1_27, %c0_28], %21 {strides = array<i32>} : memref<1x18x18x4xbf16, #tpu.memory_space<vmem>>, vector<1x16x16x4xbf16>,
    %c0_29 = arith.constant 0 : index
    %c0_30 = arith.constant 0 : index
    %c0_31 = arith.constant 0 : index
    %c0_32 = arith.constant 0 : index
    %23 = vector.load %arg10[%c0_29, %c0_30, %c0_31, %c0_32] : memref<1x18x18x4xbf16, #tpu.memory_space<vmem>>, vector<1x18x18x4xbf16>
    %24 = vector.shape_cast %23 : vector<1x18x18x4xbf16> to vector<18x18x4xbf16>
    %25 = vector.shape_cast %24 : vector<18x18x4xbf16> to vector<9x2x18x4xbf16>
    %26 = vector.extract_strided_slice %25 {offsets = [0, 0, 0, 0], sizes = [9, 1, 18, 4], strides = [1, 1, 1, 1]} : vector<9x2x18x4xbf16> to vector<9x1x18x4xbf16>
    %27 = vector.shape_cast %26 : vector<9x1x18x4xbf16> to vector<9x18x4xbf16>
    %28 = vector.shape_cast %27 : vector<9x18x4xbf16> to vector<9x9x2x4xbf16>
    %29 = vector.extract_strided_slice %28 {offsets = [0, 0, 0, 0], sizes = [9, 9, 1, 4], strides = [1, 1, 1, 1]} : vector<9x9x2x4xbf16> to vector<9x9x1x4xbf16>
    %30 = vector.shape_cast %29 : vector<9x9x1x4xbf16> to vector<9x9x4xbf16>
    %31 = vector.extract_strided_slice %27 {offsets = [0, 1, 0], sizes = [9, 16, 4], strides = [1, 1, 1]} : vector<9x18x4xbf16> to vector<9x16x4xbf16>
    %32 = vector.shape_cast %31 : vector<9x16x4xbf16> to vector<9x8x2x4xbf16>
    %33 = vector.extract_strided_slice %32 {offsets = [0, 0, 0, 0], sizes = [9, 8, 1, 4], strides = [1, 1, 1, 1]} : vector<9x8x2x4xbf16> to vector<9x8x1x4xbf16>
    %34 = vector.shape_cast %33 : vector<9x8x1x4xbf16> to vector<9x8x4xbf16>
    %35 = vector.extract_strided_slice %24 {offsets = [1, 0, 0], sizes = [16, 18, 4], strides = [1, 1, 1]} : vector<18x18x4xbf16> to vector<16x18x4xbf16>
    %36 = vector.shape_cast %35 : vector<16x18x4xbf16> to vector<8x2x18x4xbf16>
    %37 = vector.extract_strided_slice %36 {offsets = [0, 0, 0, 0], sizes = [8, 1, 18, 4], strides = [1, 1, 1, 1]} : vector<8x2x18x4xbf16> to vector<8x1x18x4xbf16>
    %38 = vector.shape_cast %37 : vector<8x1x18x4xbf16> to vector<8x18x4xbf16>
    %39 = vector.shape_cast %38 : vector<8x18x4xbf16> to vector<8x9x2x4xbf16>
    %40 = vector.extract_strided_slice %39 {offsets = [0, 0, 0, 0], sizes = [8, 9, 1, 4], strides = [1, 1, 1, 1]} : vector<8x9x2x4xbf16> to vector<8x9x1x4xbf16>
    %41 = vector.shape_cast %40 : vector<8x9x1x4xbf16> to vector<8x9x4xbf16>
    %42 = vector.extract_strided_slice %38 {offsets = [0, 1, 0], sizes = [8, 16, 4], strides = [1, 1, 1]} : vector<8x18x4xbf16> to vector<8x16x4xbf16>
    %43 = vector.shape_cast %42 : vector<8x16x4xbf16> to vector<8x8x2x4xbf16>
    %44 = vector.extract_strided_slice %43 {offsets = [0, 0, 0, 0], sizes = [8, 8, 1, 4], strides = [1, 1, 1, 1]} : vector<8x8x2x4xbf16> to vector<8x8x1x4xbf16>
    %45 = vector.shape_cast %44 : vector<8x8x1x4xbf16> to vector<8x8x4xbf16>
    %46 = vector.shape_cast %30 : vector<9x9x4xbf16> to vector<1x9x9x4xbf16>
    %47 = vector.shape_cast %34 : vector<9x8x4xbf16> to vector<1x9x8x4xbf16>
    %48 = vector.shape_cast %41 : vector<8x9x4xbf16> to vector<1x8x9x4xbf16>
    %49 = vector.shape_cast %45 : vector<8x8x4xbf16> to vector<1x8x8x4xbf16>
    %cst_33 = arith.constant 0.000000e+00 : f32
    %50 = vector.broadcast %cst_33 : f32 to vector<64x8xf32>
    %51 = vector.extract_strided_slice %46 {offsets = [0, 0, 0, 0], sizes = [1, 8, 8, 4], strides = [1, 1, 1, 1]} : vector<1x9x9x4xbf16> to vector<1x8x8x4xbf16>
    %52 = vector.shape_cast %51 : vector<1x8x8x4xbf16> to vector<64x4xbf16>
    %c0_34 = arith.constant 0 : index
    %c0_35 = arith.constant 0 : index
    %c0_36 = arith.constant 0 : index
    %53 = vector.load %arg6[%c0_34, %c0_35, %c0_36] : memref<9x4x8xbf16, #tpu.memory_space<vmem>>, vector<1x4x8xbf16>
    %54 = vector.shape_cast %53 : vector<1x4x8xbf16> to vector<4x8xbf16>
    %cst_37 = arith.constant dense<0.000000e+00> : vector<64x8xf32>
    %55 = tpu.matmul %52, %54, %cst_37 {dimension_numbers = #tpu.dot_dimension_numbers<[1], [0], [0], [1], [0, 0, 1, 1], [], []>} : vector<64x4xbf16>, vector<4x8xbf16>, vector<64x8xf32> -> vector<64x8xf32>
    %56 = arith.addf %50, %55 : vector<64x8xf32>
    %57 = vector.extract_strided_slice %47 {offsets = [0, 0, 0, 0], sizes = [1, 8, 8, 4], strides = [1, 1, 1, 1]} : vector<1x9x8x4xbf16> to vector<1x8x8x4xbf16>
    %58 = vector.shape_cast %57 : vector<1x8x8x4xbf16> to vector<64x4xbf16>
    %c1_38 = arith.constant 1 : index
    %c0_39 = arith.constant 0 : index
    %c0_40 = arith.constant 0 : index
    %59 = vector.load %arg6[%c1_38, %c0_39, %c0_40] : memref<9x4x8xbf16, #tpu.memory_space<vmem>>, vector<1x4x8xbf16>
    %60 = vector.shape_cast %59 : vector<1x4x8xbf16> to vector<4x8xbf16>
    %cst_41 = arith.constant dense<0.000000e+00> : vector<64x8xf32>
    %61 = tpu.matmul %58, %60, %cst_41 {dimension_numbers = #tpu.dot_dimension_numbers<[1], [0], [0], [1], [0, 0, 1, 1], [], []>} : vector<64x4xbf16>, vector<4x8xbf16>, vector<64x8xf32> -> vector<64x8xf32>
    %62 = arith.addf %56, %61 : vector<64x8xf32>
    %63 = vector.extract_strided_slice %46 {offsets = [0, 0, 1, 0], sizes = [1, 8, 8, 4], strides = [1, 1, 1, 1]} : vector<1x9x9x4xbf16> to vector<1x8x8x4xbf16>
    %64 = vector.shape_cast %63 : vector<1x8x8x4xbf16> to vector<64x4xbf16>
    %c2 = arith.constant 2 : index
    %c0_42 = arith.constant 0 : index
    %c0_43 = arith.constant 0 : index
    %65 = vector.load %arg6[%c2, %c0_42, %c0_43] : memref<9x4x8xbf16, #tpu.memory_space<vmem>>, vector<1x4x8xbf16>
    %66 = vector.shape_cast %65 : vector<1x4x8xbf16> to vector<4x8xbf16>
    %cst_44 = arith.constant dense<0.000000e+00> : vector<64x8xf32>
    %67 = tpu.matmul %64, %66, %cst_44 {dimension_numbers = #tpu.dot_dimension_numbers<[1], [0], [0], [1], [0, 0, 1, 1], [], []>} : vector<64x4xbf16>, vector<4x8xbf16>, vector<64x8xf32> -> vector<64x8xf32>
    %68 = arith.addf %62, %67 : vector<64x8xf32>
    %69 = vector.extract_strided_slice %48 {offsets = [0, 0, 0, 0], sizes = [1, 8, 8, 4], strides = [1, 1, 1, 1]} : vector<1x8x9x4xbf16> to vector<1x8x8x4xbf16>
    %70 = vector.shape_cast %69 : vector<1x8x8x4xbf16> to vector<64x4xbf16>
    %c3 = arith.constant 3 : index
    %c0_45 = arith.constant 0 : index
    %c0_46 = arith.constant 0 : index
    %71 = vector.load %arg6[%c3, %c0_45, %c0_46] : memref<9x4x8xbf16, #tpu.memory_space<vmem>>, vector<1x4x8xbf16>
    %72 = vector.shape_cast %71 : vector<1x4x8xbf16> to vector<4x8xbf16>
    %cst_47 = arith.constant dense<0.000000e+00> : vector<64x8xf32>
    %73 = tpu.matmul %70, %72, %cst_47 {dimension_numbers = #tpu.dot_dimension_numbers<[1], [0], [0], [1], [0, 0, 1, 1], [], []>} : vector<64x4xbf16>, vector<4x8xbf16>, vector<64x8xf32> -> vector<64x8xf32>
    %74 = arith.addf %68, %73 : vector<64x8xf32>
    %75 = vector.shape_cast %49 : vector<1x8x8x4xbf16> to vector<64x4xbf16>
    %c4 = arith.constant 4 : index
    %c0_48 = arith.constant 0 : index
    %c0_49 = arith.constant 0 : index
    %76 = vector.load %arg6[%c4, %c0_48, %c0_49] : memref<9x4x8xbf16, #tpu.memory_space<vmem>>, vector<1x4x8xbf16>
    %77 = vector.shape_cast %76 : vector<1x4x8xbf16> to vector<4x8xbf16>
    %cst_50 = arith.constant dense<0.000000e+00> : vector<64x8xf32>
    %78 = tpu.matmul %75, %77, %cst_50 {dimension_numbers = #tpu.dot_dimension_numbers<[1], [0], [0], [1], [0, 0, 1, 1], [], []>} : vector<64x4xbf16>, vector<4x8xbf16>, vector<64x8xf32> -> vector<64x8xf32>
    %79 = arith.addf %74, %78 : vector<64x8xf32>
    %80 = vector.extract_strided_slice %48 {offsets = [0, 0, 1, 0], sizes = [1, 8, 8, 4], strides = [1, 1, 1, 1]} : vector<1x8x9x4xbf16> to vector<1x8x8x4xbf16>
    %81 = vector.shape_cast %80 : vector<1x8x8x4xbf16> to vector<64x4xbf16>
    %c5 = arith.constant 5 : index
    %c0_51 = arith.constant 0 : index
    %c0_52 = arith.constant 0 : index
    %82 = vector.load %arg6[%c5, %c0_51, %c0_52] : memref<9x4x8xbf16, #tpu.memory_space<vmem>>, vector<1x4x8xbf16>
    %83 = vector.shape_cast %82 : vector<1x4x8xbf16> to vector<4x8xbf16>
    %cst_53 = arith.constant dense<0.000000e+00> : vector<64x8xf32>
    %84 = tpu.matmul %81, %83, %cst_53 {dimension_numbers = #tpu.dot_dimension_numbers<[1], [0], [0], [1], [0, 0, 1, 1], [], []>} : vector<64x4xbf16>, vector<4x8xbf16>, vector<64x8xf32> -> vector<64x8xf32>
    %85 = arith.addf %79, %84 : vector<64x8xf32>
    %86 = vector.extract_strided_slice %46 {offsets = [0, 1, 0, 0], sizes = [1, 8, 8, 4], strides = [1, 1, 1, 1]} : vector<1x9x9x4xbf16> to vector<1x8x8x4xbf16>
    %87 = vector.shape_cast %86 : vector<1x8x8x4xbf16> to vector<64x4xbf16>
    %c6 = arith.constant 6 : index
    %c0_54 = arith.constant 0 : index
    %c0_55 = arith.constant 0 : index
    %88 = vector.load %arg6[%c6, %c0_54, %c0_55] : memref<9x4x8xbf16, #tpu.memory_space<vmem>>, vector<1x4x8xbf16>
    %89 = vector.shape_cast %88 : vector<1x4x8xbf16> to vector<4x8xbf16>
    %cst_56 = arith.constant dense<0.000000e+00> : vector<64x8xf32>
    %90 = tpu.matmul %87, %89, %cst_56 {dimension_numbers = #tpu.dot_dimension_numbers<[1], [0], [0], [1], [0, 0, 1, 1], [], []>} : vector<64x4xbf16>, vector<4x8xbf16>, vector<64x8xf32> -> vector<64x8xf32>
    %91 = arith.addf %85, %90 : vector<64x8xf32>
    %92 = vector.extract_strided_slice %47 {offsets = [0, 1, 0, 0], sizes = [1, 8, 8, 4], strides = [1, 1, 1, 1]} : vector<1x9x8x4xbf16> to vector<1x8x8x4xbf16>
    %93 = vector.shape_cast %92 : vector<1x8x8x4xbf16> to vector<64x4xbf16>
    %c7 = arith.constant 7 : index
    %c0_57 = arith.constant 0 : index
    %c0_58 = arith.constant 0 : index
    %94 = vector.load %arg6[%c7, %c0_57, %c0_58] : memref<9x4x8xbf16, #tpu.memory_space<vmem>>, vector<1x4x8xbf16>
    %95 = vector.shape_cast %94 : vector<1x4x8xbf16> to vector<4x8xbf16>
    %cst_59 = arith.constant dense<0.000000e+00> : vector<64x8xf32>
    %96 = tpu.matmul %93, %95, %cst_59 {dimension_numbers = #tpu.dot_dimension_numbers<[1], [0], [0], [1], [0, 0, 1, 1], [], []>} : vector<64x4xbf16>, vector<4x8xbf16>, vector<64x8xf32> -> vector<64x8xf32>
    %97 = arith.addf %91, %96 : vector<64x8xf32>
    %98 = vector.extract_strided_slice %46 {offsets = [0, 1, 1, 0], sizes = [1, 8, 8, 4], strides = [1, 1, 1, 1]} : vector<1x9x9x4xbf16> to vector<1x8x8x4xbf16>
    %99 = vector.shape_cast %98 : vector<1x8x8x4xbf16> to vector<64x4xbf16>
    %c8 = arith.constant 8 : index
    %c0_60 = arith.constant 0 : index
    %c0_61 = arith.constant 0 : index
    %100 = vector.load %arg6[%c8, %c0_60, %c0_61] : memref<9x4x8xbf16, #tpu.memory_space<vmem>>, vector<1x4x8xbf16>
    %101 = vector.shape_cast %100 : vector<1x4x8xbf16> to vector<4x8xbf16>
    %cst_62 = arith.constant dense<0.000000e+00> : vector<64x8xf32>
    %102 = tpu.matmul %99, %101, %cst_62 {dimension_numbers = #tpu.dot_dimension_numbers<[1], [0], [0], [1], [0, 0, 1, 1], [], []>} : vector<64x4xbf16>, vector<4x8xbf16>, vector<64x8xf32> -> vector<64x8xf32>
    %103 = arith.addf %97, %102 : vector<64x8xf32>
    %104 = vector.shape_cast %49 : vector<1x8x8x4xbf16> to vector<64x4xbf16>
    %c0_63 = arith.constant 0 : index
    %c0_64 = arith.constant 0 : index
    %105 = vector.load %arg8[%c0_63, %c0_64] : memref<4x8xbf16, #tpu.memory_space<vmem>>, vector<4x8xbf16>
    %cst_65 = arith.constant dense<0.000000e+00> : vector<64x8xf32>
    %106 = tpu.matmul %104, %105, %cst_65 {dimension_numbers = #tpu.dot_dimension_numbers<[1], [0], [0], [1], [0, 0, 1, 1], [], []>} : vector<64x4xbf16>, vector<4x8xbf16>, vector<64x8xf32> -> vector<64x8xf32>
    %c0_66 = arith.constant 0 : index
    %c0_67 = arith.constant 0 : index
    %107 = vector.load %arg4[%c0_66, %c0_67] : memref<1x8xf32, #tpu.memory_space<vmem>>, vector<1x8xf32>
    %108 = vector.shape_cast %107 : vector<1x8xf32> to vector<8xf32>
    %109 = vector.shape_cast %108 : vector<8xf32> to vector<1x8xf32>
    %110 = vector.broadcast %109 : vector<1x8xf32> to vector<64x8xf32>
    %111 = arith.mulf %103, %110 : vector<64x8xf32>
    %c0_68 = arith.constant 0 : index
    %c0_69 = arith.constant 0 : index
    %112 = vector.load %arg5[%c0_68, %c0_69] : memref<1x8xf32, #tpu.memory_space<vmem>>, vector<1x8xf32>
    %113 = vector.shape_cast %112 : vector<1x8xf32> to vector<8xf32>
    %114 = vector.shape_cast %113 : vector<8xf32> to vector<1x8xf32>
    %115 = vector.broadcast %114 : vector<1x8xf32> to vector<64x8xf32>
    %116 = arith.addf %111, %115 : vector<64x8xf32>
    %cst_70 = arith.constant 0.000000e+00 : f32
    %117 = vector.broadcast %cst_70 : f32 to vector<64x8xf32>
    %118 = arith.maximumf %116, %117 : vector<64x8xf32>
    %cst_71 = arith.constant 0.000000e+00 : bf16
    %119 = vector.broadcast %cst_71 : bf16 to vector<1x1x10x8xbf16>
    %c0_72 = arith.constant 0 : index
    %c0_73 = arith.constant 0 : index
    %c0_74 = arith.constant 0 : index
    %c0_75 = arith.constant 0 : index
    %120 = vector.load %arg11[%c0_72, %c0_73, %c0_74, %c0_75] : memref<1x10x10x8xbf16, #tpu.memory_space<vmem>>, vector<1x1x10x8xbf16>
    tpu.vector_store %arg11[%c0_72, %c0_73, %c0_74, %c0_75], %119 {strides = array<i32>} : memref<1x10x10x8xbf16, #tpu.memory_space<vmem>>, vector<1x1x10x8xbf16>,
    %cst_76 = arith.constant 0.000000e+00 : bf16
    %121 = vector.broadcast %cst_76 : bf16 to vector<1x1x10x8xbf16>
    %c0_77 = arith.constant 0 : index
    %c9 = arith.constant 9 : index
    %c0_78 = arith.constant 0 : index
    %c0_79 = arith.constant 0 : index
    %122 = vector.load %arg11[%c0_77, %c9, %c0_78, %c0_79] : memref<1x10x10x8xbf16, #tpu.memory_space<vmem>>, vector<1x1x10x8xbf16>
    tpu.vector_store %arg11[%c0_77, %c9, %c0_78, %c0_79], %121 {strides = array<i32>} : memref<1x10x10x8xbf16, #tpu.memory_space<vmem>>, vector<1x1x10x8xbf16>,
    %cst_80 = arith.constant 0.000000e+00 : bf16
    %123 = vector.broadcast %cst_80 : bf16 to vector<1x8x1x8xbf16>
    %c0_81 = arith.constant 0 : index
    %c1_82 = arith.constant 1 : index
    %c0_83 = arith.constant 0 : index
    %c0_84 = arith.constant 0 : index
    %124 = vector.load %arg11[%c0_81, %c1_82, %c0_83, %c0_84] : memref<1x10x10x8xbf16, #tpu.memory_space<vmem>>, vector<1x8x1x8xbf16>
    tpu.vector_store %arg11[%c0_81, %c1_82, %c0_83, %c0_84], %123 {strides = array<i32>} : memref<1x10x10x8xbf16, #tpu.memory_space<vmem>>, vector<1x8x1x8xbf16>,
    %cst_85 = arith.constant 0.000000e+00 : bf16
    %125 = vector.broadcast %cst_85 : bf16 to vector<1x8x1x8xbf16>
    %c0_86 = arith.constant 0 : index
    %c1_87 = arith.constant 1 : index
    %c9_88 = arith.constant 9 : index
    %c0_89 = arith.constant 0 : index
    %126 = vector.load %arg11[%c0_86, %c1_87, %c9_88, %c0_89] : memref<1x10x10x8xbf16, #tpu.memory_space<vmem>>, vector<1x8x1x8xbf16>
    tpu.vector_store %arg11[%c0_86, %c1_87, %c9_88, %c0_89], %125 {strides = array<i32>} : memref<1x10x10x8xbf16, #tpu.memory_space<vmem>>, vector<1x8x1x8xbf16>,
    %127 = vector.shape_cast %118 : vector<64x8xf32> to vector<1x8x8x8xf32>
    %128 = arith.truncf %127 : vector<1x8x8x8xf32> to vector<1x8x8x8xbf16>
    %c0_90 = arith.constant 0 : index
    %c1_91 = arith.constant 1 : index
    %c1_92 = arith.constant 1 : index
    %c0_93 = arith.constant 0 : index
    %129 = vector.load %arg11[%c0_90, %c1_91, %c1_92, %c0_93] : memref<1x10x10x8xbf16, #tpu.memory_space<vmem>>, vector<1x8x8x8xbf16>
    tpu.vector_store %arg11[%c0_90, %c1_91, %c1_92, %c0_93], %128 {strides = array<i32>} : memref<1x10x10x8xbf16, #tpu.memory_space<vmem>>, vector<1x8x8x8xbf16>,
    %c0_94 = arith.constant 0 : index
    %c0_95 = arith.constant 0 : index
    %c0_96 = arith.constant 0 : index
    %c0_97 = arith.constant 0 : index
    %130 = vector.load %arg11[%c0_94, %c0_95, %c0_96, %c0_97] : memref<1x10x10x8xbf16, #tpu.memory_space<vmem>>, vector<1x10x10x8xbf16>
    %131 = vector.extract_strided_slice %130 {offsets = [0, 0, 0, 0], sizes = [1, 8, 8, 8], strides = [1, 1, 1, 1]} : vector<1x10x10x8xbf16> to vector<1x8x8x8xbf16>
    %132 = vector.shape_cast %131 : vector<1x8x8x8xbf16> to vector<64x8xbf16>
    %c0_98 = arith.constant 0 : index
    %c0_99 = arith.constant 0 : index
    %c0_100 = arith.constant 0 : index
    %133 = vector.load %arg7[%c0_98, %c0_99, %c0_100] : memref<9x8x8xbf16, #tpu.memory_space<vmem>>, vector<1x8x8xbf16>
    %134 = vector.shape_cast %133 : vector<1x8x8xbf16> to vector<8x8xbf16>
    %cst_101 = arith.constant dense<0.000000e+00> : vector<64x8xf32>
    %135 = tpu.matmul %132, %134, %cst_101 {dimension_numbers = #tpu.dot_dimension_numbers<[1], [0], [0], [1], [0, 0, 1, 1], [], []>} : vector<64x8xbf16>, vector<8x8xbf16>, vector<64x8xf32> -> vector<64x8xf32>
    %136 = arith.addf %106, %135 : vector<64x8xf32>
    %137 = vector.extract_strided_slice %130 {offsets = [0, 0, 1, 0], sizes = [1, 8, 8, 8], strides = [1, 1, 1, 1]} : vector<1x10x10x8xbf16> to vector<1x8x8x8xbf16>
    %138 = vector.shape_cast %137 : vector<1x8x8x8xbf16> to vector<64x8xbf16>
    %c1_102 = arith.constant 1 : index
    %c0_103 = arith.constant 0 : index
    %c0_104 = arith.constant 0 : index
    %139 = vector.load %arg7[%c1_102, %c0_103, %c0_104] : memref<9x8x8xbf16, #tpu.memory_space<vmem>>, vector<1x8x8xbf16>
    %140 = vector.shape_cast %139 : vector<1x8x8xbf16> to vector<8x8xbf16>
    %cst_105 = arith.constant dense<0.000000e+00> : vector<64x8xf32>
    %141 = tpu.matmul %138, %140, %cst_105 {dimension_numbers = #tpu.dot_dimension_numbers<[1], [0], [0], [1], [0, 0, 1, 1], [], []>} : vector<64x8xbf16>, vector<8x8xbf16>, vector<64x8xf32> -> vector<64x8xf32>
    %142 = arith.addf %136, %141 : vector<64x8xf32>
    %143 = vector.extract_strided_slice %130 {offsets = [0, 0, 2, 0], sizes = [1, 8, 8, 8], strides = [1, 1, 1, 1]} : vector<1x10x10x8xbf16> to vector<1x8x8x8xbf16>
    %144 = vector.shape_cast %143 : vector<1x8x8x8xbf16> to vector<64x8xbf16>
    %c2_106 = arith.constant 2 : index
    %c0_107 = arith.constant 0 : index
    %c0_108 = arith.constant 0 : index
    %145 = vector.load %arg7[%c2_106, %c0_107, %c0_108] : memref<9x8x8xbf16, #tpu.memory_space<vmem>>, vector<1x8x8xbf16>
    %146 = vector.shape_cast %145 : vector<1x8x8xbf16> to vector<8x8xbf16>
    %cst_109 = arith.constant dense<0.000000e+00> : vector<64x8xf32>
    %147 = tpu.matmul %144, %146, %cst_109 {dimension_numbers = #tpu.dot_dimension_numbers<[1], [0], [0], [1], [0, 0, 1, 1], [], []>} : vector<64x8xbf16>, vector<8x8xbf16>, vector<64x8xf32> -> vector<64x8xf32>
    %148 = arith.addf %142, %147 : vector<64x8xf32>
    %149 = vector.extract_strided_slice %130 {offsets = [0, 1, 0, 0], sizes = [1, 8, 8, 8], strides = [1, 1, 1, 1]} : vector<1x10x10x8xbf16> to vector<1x8x8x8xbf16>
    %150 = vector.shape_cast %149 : vector<1x8x8x8xbf16> to vector<64x8xbf16>
    %c3_110 = arith.constant 3 : index
    %c0_111 = arith.constant 0 : index
    %c0_112 = arith.constant 0 : index
    %151 = vector.load %arg7[%c3_110, %c0_111, %c0_112] : memref<9x8x8xbf16, #tpu.memory_space<vmem>>, vector<1x8x8xbf16>
    %152 = vector.shape_cast %151 : vector<1x8x8xbf16> to vector<8x8xbf16>
    %cst_113 = arith.constant dense<0.000000e+00> : vector<64x8xf32>
    %153 = tpu.matmul %150, %152, %cst_113 {dimension_numbers = #tpu.dot_dimension_numbers<[1], [0], [0], [1], [0, 0, 1, 1], [], []>} : vector<64x8xbf16>, vector<8x8xbf16>, vector<64x8xf32> -> vector<64x8xf32>
    %154 = arith.addf %148, %153 : vector<64x8xf32>
    %155 = vector.extract_strided_slice %130 {offsets = [0, 1, 1, 0], sizes = [1, 8, 8, 8], strides = [1, 1, 1, 1]} : vector<1x10x10x8xbf16> to vector<1x8x8x8xbf16>
    %156 = vector.shape_cast %155 : vector<1x8x8x8xbf16> to vector<64x8xbf16>
    %c4_114 = arith.constant 4 : index
    %c0_115 = arith.constant 0 : index
    %c0_116 = arith.constant 0 : index
    %157 = vector.load %arg7[%c4_114, %c0_115, %c0_116] : memref<9x8x8xbf16, #tpu.memory_space<vmem>>, vector<1x8x8xbf16>
    %158 = vector.shape_cast %157 : vector<1x8x8xbf16> to vector<8x8xbf16>
    %cst_117 = arith.constant dense<0.000000e+00> : vector<64x8xf32>
    %159 = tpu.matmul %156, %158, %cst_117 {dimension_numbers = #tpu.dot_dimension_numbers<[1], [0], [0], [1], [0, 0, 1, 1], [], []>} : vector<64x8xbf16>, vector<8x8xbf16>, vector<64x8xf32> -> vector<64x8xf32>
    %160 = arith.addf %154, %159 : vector<64x8xf32>
    %161 = vector.extract_strided_slice %130 {offsets = [0, 1, 2, 0], sizes = [1, 8, 8, 8], strides = [1, 1, 1, 1]} : vector<1x10x10x8xbf16> to vector<1x8x8x8xbf16>
    %162 = vector.shape_cast %161 : vector<1x8x8x8xbf16> to vector<64x8xbf16>
    %c5_118 = arith.constant 5 : index
    %c0_119 = arith.constant 0 : index
    %c0_120 = arith.constant 0 : index
    %163 = vector.load %arg7[%c5_118, %c0_119, %c0_120] : memref<9x8x8xbf16, #tpu.memory_space<vmem>>, vector<1x8x8xbf16>
    %164 = vector.shape_cast %163 : vector<1x8x8xbf16> to vector<8x8xbf16>
    %cst_121 = arith.constant dense<0.000000e+00> : vector<64x8xf32>
    %165 = tpu.matmul %162, %164, %cst_121 {dimension_numbers = #tpu.dot_dimension_numbers<[1], [0], [0], [1], [0, 0, 1, 1], [], []>} : vector<64x8xbf16>, vector<8x8xbf16>, vector<64x8xf32> -> vector<64x8xf32>
    %166 = arith.addf %160, %165 : vector<64x8xf32>
    %167 = vector.extract_strided_slice %130 {offsets = [0, 2, 0, 0], sizes = [1, 8, 8, 8], strides = [1, 1, 1, 1]} : vector<1x10x10x8xbf16> to vector<1x8x8x8xbf16>
    %168 = vector.shape_cast %167 : vector<1x8x8x8xbf16> to vector<64x8xbf16>
    %c6_122 = arith.constant 6 : index
    %c0_123 = arith.constant 0 : index
    %c0_124 = arith.constant 0 : index
    %169 = vector.load %arg7[%c6_122, %c0_123, %c0_124] : memref<9x8x8xbf16, #tpu.memory_space<vmem>>, vector<1x8x8xbf16>
    %170 = vector.shape_cast %169 : vector<1x8x8xbf16> to vector<8x8xbf16>
    %cst_125 = arith.constant dense<0.000000e+00> : vector<64x8xf32>
    %171 = tpu.matmul %168, %170, %cst_125 {dimension_numbers = #tpu.dot_dimension_numbers<[1], [0], [0], [1], [0, 0, 1, 1], [], []>} : vector<64x8xbf16>, vector<8x8xbf16>, vector<64x8xf32> -> vector<64x8xf32>
    %172 = arith.addf %166, %171 : vector<64x8xf32>
    %173 = vector.extract_strided_slice %130 {offsets = [0, 2, 1, 0], sizes = [1, 8, 8, 8], strides = [1, 1, 1, 1]} : vector<1x10x10x8xbf16> to vector<1x8x8x8xbf16>
    %174 = vector.shape_cast %173 : vector<1x8x8x8xbf16> to vector<64x8xbf16>
    %c7_126 = arith.constant 7 : index
    %c0_127 = arith.constant 0 : index
    %c0_128 = arith.constant 0 : index
    %175 = vector.load %arg7[%c7_126, %c0_127, %c0_128] : memref<9x8x8xbf16, #tpu.memory_space<vmem>>, vector<1x8x8xbf16>
    %176 = vector.shape_cast %175 : vector<1x8x8xbf16> to vector<8x8xbf16>
    %cst_129 = arith.constant dense<0.000000e+00> : vector<64x8xf32>
    %177 = tpu.matmul %174, %176, %cst_129 {dimension_numbers = #tpu.dot_dimension_numbers<[1], [0], [0], [1], [0, 0, 1, 1], [], []>} : vector<64x8xbf16>, vector<8x8xbf16>, vector<64x8xf32> -> vector<64x8xf32>
    %178 = arith.addf %172, %177 : vector<64x8xf32>
    %179 = vector.extract_strided_slice %130 {offsets = [0, 2, 2, 0], sizes = [1, 8, 8, 8], strides = [1, 1, 1, 1]} : vector<1x10x10x8xbf16> to vector<1x8x8x8xbf16>
    %180 = vector.shape_cast %179 : vector<1x8x8x8xbf16> to vector<64x8xbf16>
    %c8_130 = arith.constant 8 : index
    %c0_131 = arith.constant 0 : index
    %c0_132 = arith.constant 0 : index
    %181 = vector.load %arg7[%c8_130, %c0_131, %c0_132] : memref<9x8x8xbf16, #tpu.memory_space<vmem>>, vector<1x8x8xbf16>
    %182 = vector.shape_cast %181 : vector<1x8x8xbf16> to vector<8x8xbf16>
    %cst_133 = arith.constant dense<0.000000e+00> : vector<64x8xf32>
    %183 = tpu.matmul %180, %182, %cst_133 {dimension_numbers = #tpu.dot_dimension_numbers<[1], [0], [0], [1], [0, 0, 1, 1], [], []>} : vector<64x8xbf16>, vector<8x8xbf16>, vector<64x8xf32> -> vector<64x8xf32>
    %184 = arith.addf %178, %183 : vector<64x8xf32>
    %185 = vector.shape_cast %184 : vector<64x8xf32> to vector<1x8x8x8xf32>
    %c0_134 = arith.constant 0 : index
    %c0_135 = arith.constant 0 : index
    %c0_136 = arith.constant 0 : index
    %c0_137 = arith.constant 0 : index
    %186 = vector.load %arg9[%c0_134, %c0_135, %c0_136, %c0_137] : memref<1x8x8x8xf32, #tpu.memory_space<vmem>>, vector<1x8x8x8xf32>
    tpu.vector_store %arg9[%c0_134, %c0_135, %c0_136, %c0_137], %185 {strides = array<i32>} : memref<1x8x8x8xf32, #tpu.memory_space<vmem>>, vector<1x8x8x8xf32>,
    return
  }
  func.func @transform_0(%arg0: i32) -> (i32, i32, i32, i32) {
    %c0_i32 = arith.constant 0 : i32
    %c0_i32_0 = arith.constant 0 : i32
    %c0_i32_1 = arith.constant 0 : i32
    %c0_i32_2 = arith.constant 0 : i32
    return %arg0, %c0_i32, %c0_i32_0, %c0_i32_1 : i32, i32, i32, i32
  }
  func.func @transform_1(%arg0: i32) -> (i32, i32) {
    %c0_i32 = arith.constant 0 : i32
    %c0_i32_0 = arith.constant 0 : i32
    %c0_i32_1 = arith.constant 0 : i32
    return %c0_i32, %c0_i32_0 : i32, i32
  }
  func.func @transform_2(%arg0: i32) -> (i32, i32) {
    %c0_i32 = arith.constant 0 : i32
    %c0_i32_0 = arith.constant 0 : i32
    %c0_i32_1 = arith.constant 0 : i32
    return %c0_i32, %c0_i32_0 : i32, i32
  }
  func.func @transform_3(%arg0: i32) -> (i32, i32) {
    %c0_i32 = arith.constant 0 : i32
    %c0_i32_0 = arith.constant 0 : i32
    %c0_i32_1 = arith.constant 0 : i32
    return %c0_i32, %c0_i32_0 : i32, i32
  }
  func.func @transform_4(%arg0: i32) -> (i32, i32) {
    %c0_i32 = arith.constant 0 : i32
    %c0_i32_0 = arith.constant 0 : i32
    %c0_i32_1 = arith.constant 0 : i32
    return %c0_i32, %c0_i32_0 : i32, i32
  }
  func.func @transform_5(%arg0: i32) -> (i32, i32, i32) {
    %c0_i32 = arith.constant 0 : i32
    %c0_i32_0 = arith.constant 0 : i32
    %c0_i32_1 = arith.constant 0 : i32
    %c0_i32_2 = arith.constant 0 : i32
    return %c0_i32, %c0_i32_0, %c0_i32_1 : i32, i32, i32
  }
  func.func @transform_6(%arg0: i32) -> (i32, i32, i32) {
    %c0_i32 = arith.constant 0 : i32
    %c0_i32_0 = arith.constant 0 : i32
    %c0_i32_1 = arith.constant 0 : i32
    %c0_i32_2 = arith.constant 0 : i32
    return %c0_i32, %c0_i32_0, %c0_i32_1 : i32, i32, i32
  }
  func.func @transform_7(%arg0: i32) -> (i32, i32) {
    %c0_i32 = arith.constant 0 : i32
    %c0_i32_0 = arith.constant 0 : i32
    %c0_i32_1 = arith.constant 0 : i32
    return %c0_i32, %c0_i32_0 : i32, i32
  }
  func.func @transform_8(%arg0: i32) -> (i32, i32, i32, i32) {
    %c0_i32 = arith.constant 0 : i32
    %c0_i32_0 = arith.constant 0 : i32
    %c0_i32_1 = arith.constant 0 : i32
    %c0_i32_2 = arith.constant 0 : i32
    return %arg0, %c0_i32, %c0_i32_0, %c0_i32_1 : i32, i32, i32, i32
  }
}

</mosaic_0001>

<bundles_post_ra>
// kernel: basic_block_forward.1
= control target key start
LH: loop header
LB: loop body
LE: loop exit
PB: predicated region body
PF: predicated region fallthrough
CT: control target
= control target key end

     0   :  { %s8433_s27 = smov 0   ;;  %s13446_s0 = inlined_call_operand.vmem [shape: f32[2,16,16,4], index: 0, kind: input, shape index: {}]   ;;  %s13447_s1 = inlined_call_operand.vmem [shape: f32[1,4], index: 1, kind: input, shape index: {}]   ;;  %s13448_s2 = inlined_call_operand.vmem [shape: f32[1,4], index: 2, kind: input, shape index: {}]   ;;  %s13449_s3 = inlined_call_operand.vmem [shape: f32[1,8], index: 3, kind: input, shape index: {}]   ;;  %s13450_s4 = inlined_call_operand.vmem [shape: f32[1,8], index: 4, kind: input, shape index: {}]   ;;  %s13451_s5 = inlined_call_operand.vmem [shape: bf16[9,4,8], index: 5, kind: input, shape index: {}]   ;;  %s13452_s6 = inlined_call_operand.vmem [shape: bf16[9,8,8], index: 6, kind: input, shape index: {}]   ;;  %s13453_s7 = inlined_call_operand.vmem [shape: bf16[4,8], index: 7, kind: input, shape index: {}]   ;;  %s13454_s8 = inlined_call_operand.vmem [shape: f32[2,8,8,8], index: 8, kind: output, shape index: {}]  }
   0x1 LB: > { %s8108_s28 = sadd.s32 4294967295, %s8385_s27   ;;  %p8112_p0 = scmp.ge.s32.totalorder %s8385_s27, 1  ;;  %s8385_s27 = sphi %s8433_s27, %s18_s27  }
   0x2   : > { %p262_p1 = scmp.lt.s32.totalorder %s8385_s27, 3 }
   0x4   : > { %p263_p2 = pnand %p8112_p0, %p262_p1 }
   0x6   : > { %266 = sbr.rel (%p263_p2) target bundleno = 5711 (0x164f), region = 52 }
   0xb   : > { %v8253_v0 = vld [vmem:[%s13451_s5 + $0x2] sm:$0x3]  ;;  %vm13456_vm0 = vcmask 1041408   ;;  %p296_p3 = scmp.lt.s32.totalorder %s8108_s28, 1  ;;  %vm13457_vm1 = vcmask 27648   ;;  %vm446_vm2 = vcmask 24576  }
   0xc   : > { %v3163_v1 = vsel %vm13456_vm0, %v8253_v0, 0  ;;  %v8450_v2 = vld [vmem:[%s13447_s1] ss:$0 sm:$0xff]  ;;  %v13469_v3 = vmov 0   ;;  %vm454_vm3 = vsmask.f32 256 }
   0xd   : > { %8359 = vmatpush.bf16.msra.mxu3 %v3163_v1  ;;  %s15224_s28 = smov (!%p296_p3, %s8108_s28), 1  ;;  %3172 = vmatpush.bf16.msra.mxu0 %v3163_v1  ;;  %444 = vst.msk [vmem:[#allocation2] sm:$0xf] %vm13457_vm1, %v13469_v3  ;;  %v459_v4 = vld [vmem:[#allocation2 + $0x18] sm:$0x1]  ;;  %vm8459_vm4 = vmand %vm446_vm2, %vm454_vm3  ;;  %v13874_v5 = vmov 0 }
   0xe   : > { %s8357_s11 = sshll.u32 %s15224_s28, 8  ;;  %445 = vst.msk [vmem:[#allocation2 + $0x4] sm:$0xf] %vm13457_vm1, %v13469_v3  ;;  %v13875_v5 = vsel %vm8459_vm4, 4294967295, %v13874_v5  ;;  %v465_v6 = vld [vmem:[#allocation2 + $0x30] sm:$0x1] }
   0xf   : > { %13876 = vst [vmem:[#allocation4_spill] sm:$0xff] %v13875_v5  ;;  %s8466_s14 = scalar_lea.vmem %s13446_s0, %s8357_s11  ;;  %v8471_v7 = vld [vmem:[%s13448_s2] ss:$0 sm:$0xff]  ;;  %v471_v8 = vld [vmem:[#allocation2 + $0x48] sm:$0x1]  ;;  %v460_v12 = vsel %vm8459_vm4, 0, %v459_v4 }
  0x10   : > { %447 = vst.msk [vmem:[#allocation2 + $0x8] sm:$0x1] %vm446_vm2, %v13469_v3  ;;  %v309_v9 = vld [vmem:[%s8466_s14 + $0x10] sm:$0xff]  ;;  %v310_v10 = vld [vmem:[%s8466_s14 + $0x18] sm:$0xff]  ;;  %v466_v19 = vsel %vm8459_vm4, 0, %v465_v6  ;;  %v472_v25 = vsel %vm8459_vm4, 0, %v471_v8 }
  0x11   : > { %v313_v11 = vld [vmem:[%s8466_s14 + $0x30] sm:$0xff]  ;;  %v314_v13 = vld [vmem:[%s8466_s14 + $0x38] sm:$0xff]  ;;  %v345_v16 = vmul.f32 %v8450_v2, %v309_v9  ;;  %v346_v17 = vmul.f32 %v8450_v2, %v310_v10  ;;  %461 = vst [vmem:[#allocation2 + $0x18] sm:$0x1] %v460_v12  ;;  %v501_v30 = vld [vmem:[#allocation2 + $0xc0] sm:$0x1] }
  0x12   : > { %v317_v14 = vld [vmem:[%s8466_s14 + $0x50] sm:$0xff]  ;;  %v318_v15 = vld [vmem:[%s8466_s14 + $0x58] sm:$0xff]  ;;  %v349_v18 = vmul.f32 %v8450_v2, %v313_v11  ;;  %v350_v22 = vmul.f32 %v8450_v2, %v314_v13  ;;  %467 = vst [vmem:[#allocation2 + $0x30] sm:$0x1] %v466_v19  ;;  %v509_v35 = vld [vmem:[#allocation2 + $0x20] sm:$0x1] }
  0x13   : > { %v337_v20 = vld [vmem:[%s8466_s14 + $0xf0] sm:$0xff]  ;;  %v338_v21 = vld [vmem:[%s8466_s14 + $0xf8] sm:$0xff]  ;;  %v353_v23 = vmul.f32 %v8450_v2, %v317_v14  ;;  %v354_v24 = vmul.f32 %v8450_v2, %v318_v15  ;;  %v381_v28 = vadd.f32 %v8471_v7, %v345_v16  ;;  %v382_v29 = vadd.f32 %v8471_v7, %v346_v17  ;;  %v515_v36 = vld [vmem:[#allocation2 + $0x38] sm:$0x1]  ;;  %473 = vst [vmem:[#allocation2 + $0x48] sm:$0x1] %v472_v25 }
  0x14   : > { %v373_v26 = vmul.f32 %v8450_v2, %v337_v20  ;;  %v374_v27 = vmul.f32 %v8450_v2, %v338_v21  ;;  %v385_v31 = vadd.f32 %v8471_v7, %v349_v18  ;;  %v386_v32 = vadd.f32 %v8471_v7, %v350_v22  ;;  %v521_v41 = vld [vmem:[#allocation2 + $0x50] sm:$0x1]  ;;  %v551_v46 = vld [vmem:[#allocation2 + $0xc8] sm:$0x1]  ;;  %s8358_s25 = sshll.u32 %s15224_s28, 6 }
  0x15   : > { %v389_v33 = vadd.f32 %v8471_v7, %v353_v23  ;;  %v390_v34 = vadd.f32 %v8471_v7, %v354_v24  ;;  %v413_v39 = vmax.f32 %v381_v28, 0.0  ;;  %v414_v40 = vmax.f32 %v382_v29, 0.0  ;;  %s13401_s30 = scalar_lea.vmem %s13454_s8, %s8358_s25 }
  0x16   : > { %v409_v37 = vadd.f32 %v8471_v7, %v373_v26  ;;  %v410_v38 = vadd.f32 %v8471_v7, %v374_v27  ;;  %v417_v42 = vmax.f32 %v385_v31, 0.0  ;;  %v418_v43 = vmax.f32 %v386_v32, 0.0 }
  0x17   : > { %v421_v44 = vmax.f32 %v389_v33, 0.0  ;;  %v422_v45 = vmax.f32 %v390_v34, 0.0  ;;  %v502_v49 = vsel %vm8459_vm4, 0, %v501_v30  ;;  %vm13455_vm5 = vsmask.f32 7938 }
  0x18   : > { %v441_v47 = vmax.f32 %v409_v37, 0.0  ;;  %v442_v48 = vmax.f32 %v410_v38, 0.0  ;;  %503 = vst [vmem:[#allocation2 + $0xc0] sm:$0x1] %v502_v49  ;;  %vm8509_vm6 = vmand %vm446_vm2, %vm13455_vm5  ;;  %v13877_v50 = vmov 0  ;;  %v556_v51 = vpack.c.bf16 %v413_v39, %v413_v39 }
  0x19   : > { %v13878_v50 = vsel %vm8509_vm6, 4294967295, %v13877_v50  ;;  %v557_v52 = vpack.c.bf16 %v414_v40, %v414_v40  ;;  %v560_v53 = vpack.c.bf16 %v417_v42, %v417_v42  ;;  %v510_v54 = vsel %vm8509_vm6, 0, %v509_v35  ;;  %v917_v26 = vld [vmem:[#allocation2 + $0x18] sm:$0xf]  ;;  %v931_v27 = vld [vmem:[#allocation2 + $0x30] sm:$0xf]  ;;  %vm8531_vm9 = vmand %vm13457_vm1, %vm13455_vm5 }
  0x1a   : > { %13879 = vst [vmem:[#allocation5_spill] sm:$0xff] %v13878_v50  ;;  %v516_v55 = vsel %vm8509_vm6, 0, %v515_v36  ;;  %v522_v56 = vsel %vm8509_vm6, 0, %v521_v41  ;;  %v561_v57 = vpack.c.bf16 %v418_v43, %v418_v43  ;;  %v552_v58 = vsel %vm8509_vm6, 0, %v551_v46  ;;  %v945_v34 = vld [vmem:[#allocation2 + $0x48] sm:$0xf] }
  0x1b   : > { %511 = vst [vmem:[#allocation2 + $0x20] sm:$0x1] %v510_v54  ;;  %v564_v59 = vpack.c.bf16 %v421_v44, %v421_v44  ;;  %v565_v60 = vpack.c.bf16 %v422_v45, %v422_v45  ;;  %v584_v61 = vpack.c.bf16 %v441_v47, %v441_v47  ;;  %v8521_v62 = vpack.c.bf16 %v442_v48, %v442_v48 }
  0x1c   : > { %517 = vst [vmem:[#allocation2 + $0x38] sm:$0x1] %v516_v55  ;;  %vm13458_vm7 = vsmask.f32 4368  ;;  %v606_v63 = vshrl.u32 %v556_v51, 16  ;;  %v609_v0 = vshll.u32 %v556_v51, 16 }
  0x1d   : > { %523 = vst [vmem:[#allocation2 + $0x50] sm:$0x1] %v522_v56  ;;  %v614_v1 = vshrl.u32 %v557_v52, 16  ;;  %v617_v4 = vshll.u32 %v557_v52, 16  ;;  %v640_v6 = vshrl.u32 %v560_v53, 16  ;;  %v643_v8 = vshll.u32 %v560_v53, 16  ;;  %vm8525_vm8 = vmor %vm454_vm3, %vm13458_vm7 }
  0x1e   : > { %553 = vst [vmem:[#allocation2 + $0xc8] sm:$0x1] %v552_v58  ;;  %v608_v9 = vrot.slane %v606_v63, 7  ;;  %v648_v10 = vshrl.u32 %v561_v57, 16  ;;  %v651_v11 = vshll.u32 %v561_v57, 16  ;;  %v674_v12 = vshrl.u32 %v564_v59, 16 }
  0x1f   : > { %v616_v13 = vrot.slane %v614_v1, 7  ;;  %v642_v14 = vrot.slane %v640_v6, 7  ;;  %v677_v15 = vshll.u32 %v564_v59, 16  ;;  %v682_v16 = vshrl.u32 %v565_v60, 16  ;;  %v1015_v57 = vld [vmem:[#allocation2 + $0xc0] sm:$0xf] }
  0x20   : > { %v13880_v17 = vmov 0  ;;  %v611_v18 = vor.u32 %v609_v0, %v608_v9  ;;  %v612_v19 = vrot.slane %v608_v9, 4  ;;  %v650_v20 = vrot.slane %v648_v10, 7 }
  0x21   : > { %v13881_v17 = vsel %vm8525_vm8, 4294967295, %v13880_v17  ;;  %v676_v21 = vrot.slane %v674_v12, 7  ;;  %v619_v22 = vor.u32 %v617_v4, %v616_v13  ;;  %v621_v23 = vrot.slane %v616_v13, 4  ;;  %v1022_v4 = vld [vmem:[#allocation2] sm:$0xf] }
  0x22   : > { %13882 = vst [vmem:[#allocation6_spill] sm:$0xff] %v13881_v17  ;;  %v645_v24 = vor.u32 %v643_v8, %v642_v14  ;;  %v646_v25 = vrot.slane %v642_v14, 4  ;;  %v653_v28 = vor.u32 %v651_v11, %v650_v20  ;;  %v655_v29 = vrot.slane %v650_v20, 4  ;;  %v921_v33 = vld [vmem:[#allocation2 + $0x20] sm:$0x1] }
  0x23   : > { %v679_v30 = vor.u32 %v677_v15, %v676_v21  ;;  %v680_v31 = vrot.slane %v676_v21, 4  ;;  %v13883_v32 = vmov 0  ;;  %v620_v35 = vsel %vm8525_vm8, %v612_v19, %v619_v22  ;;  %v935_v39 = vld [vmem:[#allocation2 + $0x38] sm:$0x1] }
  0x24   : > { %v13884_v32 = vsel %vm8531_vm9, 4294967295, %v13883_v32  ;;  %v684_v36 = vrot.slane %v682_v16, 7  ;;  %v685_v37 = vshll.u32 %v565_v60, 16  ;;  %v844_v38 = vshrl.u32 %v584_v61, 16  ;;  %920 = vst.msk [vmem:[#allocation2 + $0x1c] sm:$0xf] %vm13457_vm1, %v620_v35 }
  0x25   : > { %13885 = vst [vmem:[#allocation7_spill] sm:$0xff] %v13884_v32  ;;  %v654_v40 = vsel %vm8525_vm8, %v646_v25, %v653_v28  ;;  %v847_v41 = vshll.u32 %v584_v61, 16  ;;  %v852_v42 = vshrl.u32 %v8521_v62, 16  ;;  %v855_v43 = vshll.u32 %v8521_v62, 16  ;;  %v949_v53 = vld [vmem:[#allocation2 + $0x50] sm:$0x1] }
  0x26   : > { %v687_v44 = vor.u32 %v685_v37, %v684_v36  ;;  %v689_v45 = vrot.slane %v684_v36, 4  ;;  %v846_v46 = vrot.slane %v844_v38, 7  ;;  %v918_v47 = vsel %vm8531_vm9, %v611_v18, %v917_v26  ;;  %934 = vst.msk [vmem:[#allocation2 + $0x34] sm:$0xf] %vm13457_vm1, %v654_v40  ;;  %v1019_v62 = vld [vmem:[#allocation2 + $0xc8] sm:$0x1] }
  0x27   : > { %v854_v48 = vrot.slane %v852_v42, 7  ;;  %919 = vst [vmem:[#allocation2 + $0x18] sm:$0xf] %v918_v47  ;;  %v922_v49 = vsel %vm8459_vm4, %v621_v23, %v921_v33  ;;  %v932_v51 = vsel %vm8531_vm9, %v645_v24, %v931_v27  ;;  %v936_v52 = vsel %vm8459_vm4, %v655_v29, %v935_v39  ;;  %v1023_v23 = vld [vmem:[#allocation2 + $0x4] sm:$0xf] }
  0x28   : > { %v849_v54 = vor.u32 %v847_v41, %v846_v46  ;;  %v850_v55 = vrot.slane %v846_v46, 4  ;;  %923 = vst [vmem:[#allocation2 + $0x20] sm:$0x1] %v922_v49  ;;  %v946_v56 = vsel %vm8531_vm9, %v679_v30, %v945_v34  ;;  %v688_v58 = vsel %vm8525_vm8, %v680_v31, %v687_v44  ;;  %v1024_v49 = vld [vmem:[#allocation2 + $0x8] sm:$0x1] }
  0x29   : > { %v857_v59 = vor.u32 %v855_v43, %v854_v48  ;;  %v859_v60 = vrot.slane %v854_v48, 4  ;;  %933 = vst [vmem:[#allocation2 + $0x30] sm:$0xf] %v932_v51  ;;  %v950_v61 = vsel %vm8459_vm4, %v689_v45, %v949_v53  ;;  %v1100_v6 = vrot.slane %v1022_v4, 3 }
  0x2a   : > { %937 = vst [vmem:[#allocation2 + $0x38] sm:$0x1] %v936_v52  ;;  %v1016_v63 = vsel %vm8531_vm9, %v849_v54, %v1015_v57  ;;  %vm13461_vm10 = vcmask 1041409   ;;  %vm13466_vm11 = vcmask 1040384   ;;  %vm1135_vm12 = vcmask 1042434  }
  0x2b   : > { %947 = vst [vmem:[#allocation2 + $0x48] sm:$0xf] %v946_v56  ;;  %v858_v0 = vsel %vm8525_vm8, %v850_v55, %v857_v59  ;;  %v1020_v1 = vsel %vm8459_vm4, %v859_v60, %v1019_v62  ;;  %v1132_v8 = vsel %vm13461_vm10, %v1022_v4, %v1100_v6  ;;  %vm1374_vm13 = vsmask.f32 1284 }
  0x2c   : > { %948 = vst.msk [vmem:[#allocation2 + $0x4c] sm:$0xf] %vm13457_vm1, %v688_v58  ;;  %v8566_v9 = vrot.slane %v1132_v8, 1  ;;  %vm1376_vm14 = vsmask.f32 2312  ;;  %v8569_v10 = vsel %vm13466_vm11, %v1022_v4, %v1100_v6  ;;  %vm1375_vm15 = vmor %vm454_vm3, %vm1374_vm13  ;;  %v1136_v11 = vsel %vm1135_vm12, %v1022_v4, %v1100_v6 }
  0x2d   : > { %951 = vst [vmem:[#allocation2 + $0x50] sm:$0x1] %v950_v61  ;;  %vm1378_vm2 = vsmask.f32 3340  ;;  %vm1377_vm5 = vmor %vm1375_vm15, %vm1376_vm14  ;;  %vm1381_vm0 = vsmask.f32 5396 }
  0x2e   : > { %1017 = vst [vmem:[#allocation2 + $0xc0] sm:$0xf] %v1016_v63  ;;  %vm1383_vm7 = vsmask.f32 6424  ;;  %vm13887_vm8 = vsmask.f32 4368 }
  0x2f   : > { %1018 = vst.msk [vmem:[#allocation2 + $0xc4] sm:$0xf] %vm13457_vm1, %v858_v0  ;;  %vm1379_vm1 = vmor %vm1377_vm5, %vm1378_vm2  ;;  %vm1385_vm6 = vsmask.f32 7452  ;;  %v1387_v12 = vshrl.u32 %v8569_v10, 16  ;;  %v1392_v13 = vshll.u32 %v8566_v9, 16 }
  0x30   : > { %1021 = vst [vmem:[#allocation2 + $0xc8] sm:$0x1] %v1020_v1  ;;  %vm1380_vm10 = vmor %vm1379_vm1, %vm13887_vm8  ;;  %v8576_v14 = vrot.slane %v1136_v11, 2  ;;  %v13889_v15 = vmov 0  ;;  %vm1139_vm13 = vcmask 1043459   ;;  %v1395_v18 = vshrl.u32 %v8566_v9, 16 }
  0x31   : > { %13886 = vst [vmem:[#allocation8_spill] sm:$0xff] %v8566_v9  ;;  %vm1382_vm9 = vmor %vm1380_vm10, %vm1381_vm0  ;;  %v1140_v20 = vsel %vm1139_vm13, %v1022_v4, %v1100_v6  ;;  %v1101_v27 = vrot.slane %v1023_v23, 3  ;;  %vm13893_vm0 = vcmask 1040384   ;;  %vm13895_vm1 = vcmask 1041409   ;;  %v1028_v55 = vld [vmem:[#allocation2 + $0x18] sm:$0xf] }
  0x32   : > { %13888 = vst [vmem:[#allocation9_spill] sm:$0xff] %v8576_v14  ;;  %vm1384_vm11 = vmor %vm1382_vm9, %vm1383_vm7  ;;  %v1400_v19 = vshll.u32 %v8576_v14, 16  ;;  %v8587_v21 = vrot.slane %v1140_v20, 3  ;;  %v1403_v25 = vshrl.u32 %v8576_v14, 16  ;;  %v1102_v54 = vrot.slane %v1024_v49, 3 }
  0x33   : > { %vm8578_vm4 = vmor %vm1384_vm11, %vm1385_vm6  ;;  %v8598_v29 = vsel %vm13893_vm0, %v1023_v23, %v1101_v27  ;;  %v1146_v34 = vsel %vm13895_vm1, %v1023_v23, %v1101_v27  ;;  %v1149_v40 = vsel %vm1135_vm12, %v1023_v23, %v1101_v27  ;;  %v1152_v46 = vsel %vm1139_vm13, %v1023_v23, %v1101_v27 }
  0x34   : > { %v13890_v15 = vsel %vm8578_vm4, 4294967295, %v13889_v15  ;;  %v1394_v16 = vsel %vm8578_vm4, %v1387_v12, %v1392_v13  ;;  %13892 = vst [vmem:[#allocation11_spill] sm:$0xff] %v8587_v21  ;;  %v1402_v22 = vsel %vm8578_vm4, %v1395_v18, %v1400_v19  ;;  %v1408_v26 = vshll.u32 %v8587_v21, 16  ;;  %vm13899_vm5 = vmmov %vm13893_vm0 }
  0x35   : > { %13891 = vst [vmem:[#allocation10_spill] sm:$0xff] %v13890_v15  ;;  %v1411_v31 = vshrl.u32 %v8587_v21, 16  ;;  %v1415_v33 = vshll.u32 %v8598_v29, 16  ;;  %v8605_v35 = vrot.slane %v1146_v34, 1  ;;  %v1418_v38 = vshrl.u32 %v8598_v29, 16  ;;  %vm13901_vm6 = vmmov %vm13895_vm1 }
  0x36   : > { %2709 = vst [vmem:[#allocation1] ss:$9 sm:$0xff] %v1394_v16  ;;  %v1410_v28 = vsel %vm8578_vm4, %v1403_v25, %v1408_v26  ;;  %v8614_v41 = vrot.slane %v1149_v40, 2  ;;  %v8623_v47 = vrot.slane %v1152_v46, 3  ;;  %v1103_v57 = vrot.slane %v1028_v55, 3  ;;  %vm13903_vm7 = vmmov %vm13893_vm0 }
  0x37   : > { %13894 = vst [vmem:[#allocation12_spill] sm:$0xff] %v8598_v29  ;;  %v1417_v36 = vsel %vm8578_vm4, %v1411_v31, %v1415_v33  ;;  %v1423_v39 = vshll.u32 %v8605_v35, 16  ;;  %v1426_v44 = vshrl.u32 %v8605_v35, 16  ;;  %v8634_v58 = vsel %vm13899_vm5, %v1024_v49, %v1102_v54  ;;  %v1029_v25 = vld [vmem:[#allocation2 + $0x1c] sm:$0xf]  ;;  %vm13910_vm8 = vmmov %vm13893_vm0 }
  0x38   : > { %13896 = vst [vmem:[#allocation13_spill] sm:$0xff] %v8605_v35  ;;  %v1431_v45 = vshll.u32 %v8614_v41, 16  ;;  %v1434_v52 = vshrl.u32 %v8614_v41, 16  ;;  %v1439_v53 = vshll.u32 %v8623_v47, 16  ;;  %v1442_v60 = vshrl.u32 %v8623_v47, 16  ;;  %vm13912_vm9 = vmmov %vm13895_vm1 }
  0x39   : > { %13897 = vst [vmem:[#allocation14_spill] sm:$0xff] %v8614_v41  ;;  %v1425_v42 = vsel %vm8578_vm4, %v1418_v38, %v1423_v39  ;;  %v1446_v61 = vshll.u32 %v8634_v58, 16  ;;  %v1161_v62 = vsel %vm13901_vm6, %v1028_v55, %v1103_v57  ;;  %v8646_v1 = vsel %vm13903_vm7, %v1028_v55, %v1103_v57  ;;  %vm13920_vm10 = vmmov %vm13893_vm0 }
  0x3a   : > { %13898 = vst [vmem:[#allocation15_spill] sm:$0xff] %v8623_v47  ;;  %v1433_v48 = vsel %vm8578_vm4, %v1426_v44, %v1431_v45  ;;  %v1441_v56 = vsel %vm8578_vm4, %v1434_v52, %v1439_v53  ;;  %v8641_v63 = vrot.slane %v1161_v62, 1  ;;  %v1449_v6 = vshrl.u32 %v8646_v1, 16  ;;  %v1030_v62 = vld [vmem:[#allocation2 + $0x20] sm:$0x1]  ;;  %vm13922_vm11 = vmmov %vm13895_vm1 }
  0x3b   : > { %13900 = vst [vmem:[#allocation16_spill] sm:$0xff] %v8634_v58  ;;  %v1448_v0 = vsel %vm8578_vm4, %v1442_v60, %v1446_v61  ;;  %v1164_v11 = vsel %vm1135_vm12, %v1028_v55, %v1103_v57  ;;  %v1167_v20 = vsel %vm1139_vm13, %v1028_v55, %v1103_v57  ;;  %v1104_v31 = vrot.slane %v1029_v25, 3  ;;  %vm13925_vm14 = vmmov %vm13893_vm0 }
  0x3c   : > { %13902 = vst [vmem:[#allocation17_spill] sm:$0xff] %v8641_v63  ;;  %v1454_v8 = vshll.u32 %v8641_v63, 16  ;;  %v8653_v12 = vrot.slane %v1164_v11, 2  ;;  %v1457_v18 = vshrl.u32 %v8641_v63, 16  ;;  %v1105_v11 = vrot.slane %v1030_v62, 3  ;;  %vm13932_vm15 = vmmov %vm13893_vm0 }
  0x3d   : > { %v8591_v24 = vld [vmem:[#allocation1] sm:$0xf]  ;;  %13904 = vst [vmem:[#allocation18_spill] sm:$0xff] %v8646_v1  ;;  %v8681_v34 = vsel %vm13910_vm8, %v1029_v25, %v1104_v31  ;;  %v1173_v40 = vsel %vm13912_vm9, %v1029_v25, %v1104_v31  ;;  %v1176_v49 = vsel %vm1135_vm12, %v1029_v25, %v1104_v31  ;;  %v1179_v57 = vsel %vm1139_vm13, %v1029_v25, %v1104_v31  ;;  %vm13934_vm2 = vmmov %vm13895_vm1 }
  0x3e   : > { %2713 = vst [vmem:[#allocation1] ss:$9 sm:$0xff] %v1402_v22  ;;  %v8657_v13 = vsel %vm8578_vm4, %v1449_v6, %v1454_v8  ;;  %v1462_v19 = vshll.u32 %v8653_v12, 16  ;;  %v8665_v22 = vrot.slane %v1167_v20, 3  ;;  %v1465_v27 = vshrl.u32 %v8653_v12, 16  ;;  %vm13945_vm5 = vmmov %vm13893_vm0 }
  0x3f   : > { %13905 = vst [vmem:[#allocation19_spill] sm:$0xff] %v8653_v12  ;;  %v1477_v39 = vshll.u32 %v8681_v34, 16  ;;  %v1480_v46 = vshrl.u32 %v8681_v34, 16  ;;  %v8701_v52 = vrot.slane %v1176_v49, 2  ;;  %v8713_v60 = vrot.slane %v1179_v57, 3  ;;  %vm13953_vm7 = vmmov %vm13893_vm0 }
  0x40   : > { %13906 = vst [vmem:[#allocation20_spill] sm:$0xff] %v8657_v13  ;;  %v8669_v23 = vsel %vm8578_vm4, %v1457_v18, %v1462_v19  ;;  %v1473_v38 = vshrl.u32 %v8665_v22, 16  ;;  %v1034_v18 = vld [vmem:[#allocation2 + $0x30] sm:$0xf]  ;;  %v8729_v25 = vsel %vm13920_vm10, %v1030_v62, %v1105_v11  ;;  %vm13951_vm6 = vnez %v13875_v5  ;;  %vm13956_vm9 = vmmov %vm13895_vm1 }
  0x41   : > { %13907 = vst [vmem:[#allocation21_spill] sm:$0xff] %v8665_v22  ;;  %v1496_v6 = vshrl.u32 %v8701_v52, 16  ;;  %v1501_v8 = vshll.u32 %v8713_v60, 16  ;;  %v1106_v20 = vrot.slane %v1034_v18, 3  ;;  %v1508_v31 = vshll.u32 %v8729_v25, 16  ;;  %vm13962_vm10 = vmmov %vm13893_vm0 }
  0x42   : > { %13908 = vst [vmem:[#allocation22_spill] sm:$0xff] %v8669_v23  ;;  %v8693_v44 = vsel %vm8578_vm4, %v1473_v38, %v1477_v39  ;;  %vm13955_vm8 = vnez %v13884_v32 }
  0x43   : > { %13911 = vst [vmem:[#allocation24_spill] sm:$0xff] %v8681_v34  ;;  %v8726_v19 = vsel %vm8578_vm4, %v1496_v6, %v1501_v8  ;;  %v1188_v38 = vsel %vm13922_vm11, %v1034_v18, %v1106_v20  ;;  %vm13965_vm11 = vmmov %vm13895_vm1 }
  0x44   : > { %13914 = vst [vmem:[#allocation26_spill] sm:$0xff] %v8693_v44  ;;  %v8737_v39 = vrot.slane %v1188_v38, 1 }
  0x45   : > { %v8600_v30 = vld [vmem:[#allocation1] sm:$0xf]  ;;  %13915 = vst [vmem:[#allocation27_spill] sm:$0xff] %v8701_v52 }
  0x46   : > { %2717 = vst [vmem:[#allocation1] ss:$9 sm:$0xff] %v1410_v28  ;;  %v1470_v28 = vshll.u32 %v8665_v22, 16  ;;  %v1519_v8 = vshrl.u32 %v8737_v39, 16 }
  0x47   : > { %13917 = vst [vmem:[#allocation29_spill] sm:$0xff] %v8713_v60 }
  0x48   : > { %v8678_v33 = vsel %vm8578_vm4, %v1465_v27, %v1470_v28  ;;  %13919 = vst [vmem:[#allocation31_spill] sm:$0xff] %v8726_v19  ;;  %v1504_v28 = vshrl.u32 %v8713_v60, 16 }
  0x49   : > { %13909 = vst [vmem:[#allocation23_spill] sm:$0xff] %v8678_v33 }
  0x4a   : > { %13921 = vst [vmem:[#allocation32_spill] sm:$0xff] %v8729_v25  ;;  %v1040_v25 = vld [vmem:[#allocation2 + $0x48] sm:$0xf] }
  0x4b   : > { %13923 = vst [vmem:[#allocation33_spill] sm:$0xff] %v8737_v39 }
  0x4d   : > { %v8609_v37 = vld [vmem:[#allocation1] sm:$0xf] }
  0x4e   : > { %2721 = vst [vmem:[#allocation1] ss:$9 sm:$0xff] %v1417_v36 }
  0x55   : > { %v8618_v43 = vld [vmem:[#allocation1] sm:$0xf] }
  0x56   : > { %2725 = vst [vmem:[#allocation1] ss:$9 sm:$0xff] %v1425_v42  ;;  %v8689_v42 = vrot.slane %v1173_v40, 1  ;;  %v8741_v40 = vsel %vm8578_vm4, %v1504_v28, %v1508_v31  ;;  %v1194_v28 = vsel %vm1139_vm13, %v1034_v18, %v1106_v20 }
  0x57   : > { %13924 = vst [vmem:[#allocation34_spill] sm:$0xff] %v8741_v40  ;;  %v8764_v31 = vrot.slane %v1194_v28, 3 }
  0x58   : > { %13913 = vst [vmem:[#allocation25_spill] sm:$0xff] %v8689_v42  ;;  %v1488_v55 = vshrl.u32 %v8689_v42, 16 }
  0x59   : > { %13929 = vst [vmem:[#allocation38_spill] sm:$0xff] %v8764_v31 }
  0x5d   : > { %v8627_v51 = vld [vmem:[#allocation1] sm:$0xf] }
  0x5e   : > { %2729 = vst [vmem:[#allocation1] ss:$9 sm:$0xff] %v1433_v48  ;;  %v1485_v48 = vshll.u32 %v8689_v42, 16 }
  0x60   : > { %v8705_v53 = vsel %vm8578_vm4, %v1480_v46, %v1485_v48  ;;  %v8744_v46 = vsel %vm13925_vm14, %v1034_v18, %v1106_v20  ;;  %vm13967_vm14 = vmmov %vm13893_vm0 }
  0x61   : > { %13916 = vst [vmem:[#allocation28_spill] sm:$0xff] %v8705_v53  ;;  %v1511_v49 = vshrl.u32 %v8744_v46, 16 }
  0x62   : > { %13926 = vst [vmem:[#allocation35_spill] sm:$0xff] %v8744_v46 }
  0x65   : > { %v8636_v59 = vld [vmem:[#allocation1] sm:$0xf] }
  0x66   : > { %2733 = vst [vmem:[#allocation1] ss:$9 sm:$0xff] %v1441_v56  ;;  %v1493_v56 = vshll.u32 %v8701_v52, 16 }
  0x68   : > { %v8717_v61 = vsel %vm8578_vm4, %v1488_v55, %v1493_v56  ;;  %v1516_v55 = vshll.u32 %v8737_v39, 16  ;;  %v1191_v56 = vsel %vm1135_vm12, %v1034_v18, %v1106_v20 }
  0x69   : > { %13918 = vst [vmem:[#allocation30_spill] sm:$0xff] %v8717_v61  ;;  %v8752_v57 = vrot.slane %v1191_v56, 2  ;;  %v1035_v56 = vld [vmem:[#allocation2 + $0x34] sm:$0xf] }
  0x6a   : > { %v8756_v62 = vsel %vm8578_vm4, %v1511_v49, %v1516_v55  ;;  %v1532_v55 = vshll.u32 %v8764_v31, 16 }
  0x6b   : > { %13927 = vst [vmem:[#allocation36_spill] sm:$0xff] %v8752_v57  ;;  %v1524_v11 = vshll.u32 %v8752_v57, 16  ;;  %v1527_v49 = vshrl.u32 %v8752_v57, 16  ;;  %v477_v57 = vld [vmem:[#allocation2 + $0x60] sm:$0x1] }
  0x6c   : > { %13928 = vst [vmem:[#allocation37_spill] sm:$0xff] %v8756_v62 }
  0x6d   : > { %v8648_v4 = vld [vmem:[#allocation1] sm:$0xf]  ;;  %v8768_v38 = vsel %vm8578_vm4, %v1519_v8, %v1524_v11  ;;  %v1535_v8 = vshrl.u32 %v8764_v31, 16 }
  0x6e   : > { %2737 = vst [vmem:[#allocation1] ss:$9 sm:$0xff] %v1448_v0 }
  0x6f   : > { %13930 = vst [vmem:[#allocation39_spill] sm:$0xff] %v8768_v38 }
  0x75   : > { %v8659_v16 = vld [vmem:[#allocation1] sm:$0xf] }
  0x76   : > { %2741 = vst [vmem:[#allocation1] ss:$9 sm:$0xff] %v8657_v13 }
  0x7d   : > { %v8671_v26 = vld [vmem:[#allocation1] sm:$0xf] }
  0x7e   : > { %2745 = vst [vmem:[#allocation1] ss:$9 sm:$0xff] %v8669_v23  ;;  %v1036_v23 = vld [vmem:[#allocation2 + $0x38] sm:$0x1] }
  0x85   : > { %v8683_v36 = vld [vmem:[#allocation1] sm:$0xf] }
  0x86   : > { %2749 = vst [vmem:[#allocation1] ss:$9 sm:$0xff] %v8678_v33 }
  0x8d   : > { %v8695_v45 = vld [vmem:[#allocation1] sm:$0xf] }
  0x8e   : > { %2753 = vst [vmem:[#allocation1] ss:$9 sm:$0xff] %v8693_v44 }
  0x95   : > { %v8707_v54 = vld [vmem:[#allocation1] sm:$0xf] }
  0x96   : > { %2757 = vst [vmem:[#allocation1] ss:$9 sm:$0xff] %v8705_v53 }
  0x9d   : > { %v8719_v0 = vld [vmem:[#allocation1] sm:$0xf] }
  0x9e   : > { %2761 = vst [vmem:[#allocation1] ss:$9 sm:$0xff] %v8717_v61 }
  0xa5   : > { %v8731_v27 = vld [vmem:[#allocation1] sm:$0xf] }
  0xa6   : > { %2765 = vst [vmem:[#allocation1] ss:$9 sm:$0xff] %v8726_v19 }
  0xad   : > { %v8746_v48 = vld [vmem:[#allocation1] sm:$0xf] }
  0xae   : > { %2769 = vst [vmem:[#allocation1] ss:$9 sm:$0xff] %v8741_v40  ;;  %v8777_v40 = vsel %vm8578_vm4, %v1527_v49, %v1532_v55 }
  0xaf   : > { %13931 = vst [vmem:[#allocation40_spill] sm:$0xff] %v8777_v40 }
  0xb5   : > { %v8758_v6 = vld [vmem:[#allocation1] sm:$0xf] }
  0xb6   : > { %2773 = vst [vmem:[#allocation1] ss:$9 sm:$0xff] %v8756_v62  ;;  %v1107_v62 = vrot.slane %v1035_v56, 3 }
  0xb8   : > { %v8780_v18 = vsel %vm13932_vm15, %v1035_v56, %v1107_v62  ;;  %v1200_v28 = vsel %vm13934_vm2, %v1035_v56, %v1107_v62  ;;  %v1203_v61 = vsel %vm1135_vm12, %v1035_v56, %v1107_v62  ;;  %vm13970_vm15 = vmmov %vm13895_vm1 }
  0xb9   : > { %13933 = vst [vmem:[#allocation41_spill] sm:$0xff] %v8780_v18  ;;  %v1539_v11 = vshll.u32 %v8780_v18, 16  ;;  %v1542_v55 = vshrl.u32 %v8780_v18, 16  ;;  %v8800_v53 = vrot.slane %v1203_v61, 2  ;;  %vm13972_vm2 = vmmov %vm13895_vm1 }
  0xbb   : > { %v8792_v19 = vsel %vm8578_vm4, %v1535_v8, %v1539_v11  ;;  %13937 = vst [vmem:[#allocation44_spill] sm:$0xff] %v8800_v53  ;;  %v1555_v11 = vshll.u32 %v8800_v53, 16 }
  0xbc   : > { %13936 = vst [vmem:[#allocation43_spill] sm:$0xff] %v8792_v19 }
  0xbd   : > { %v8770_v3 = vld [vmem:[#allocation1] sm:$0xf] }
  0xbe   : > { %2777 = vst [vmem:[#allocation1] ss:$9 sm:$0xff] %v8768_v38  ;;  %v8788_v38 = vrot.slane %v1200_v28, 1 }
  0xc0   : > { %13935 = vst [vmem:[#allocation42_spill] sm:$0xff] %v8788_v38  ;;  %v1550_v8 = vshrl.u32 %v8788_v38, 16 }
  0xc2   : > { %v8816_v61 = vsel %vm8578_vm4, %v1550_v8, %v1555_v11 }
  0xc3   : > { %13940 = vst [vmem:[#allocation47_spill] sm:$0xff] %v8816_v61 }
  0xc5   : > { %v8782_v20 = vld [vmem:[#allocation1] sm:$0xf] }
  0xc6   : > { %2781 = vst [vmem:[#allocation1] ss:$9 sm:$0xff] %v8777_v40  ;;  %v1547_v40 = vshll.u32 %v8788_v38, 16 }
  0xc8   : > { %v8804_v28 = vsel %vm8578_vm4, %v1542_v55, %v1547_v40  ;;  %v1558_v40 = vshrl.u32 %v8800_v53, 16 }
  0xc9   : > { %13938 = vst [vmem:[#allocation45_spill] sm:$0xff] %v8804_v28 }
  0xcd   : > { %v8794_v49 = vld [vmem:[#allocation1] sm:$0xf] }
  0xce   : > { %2785 = vst [vmem:[#allocation1] ss:$9 sm:$0xff] %v8792_v19  ;;  %v1206_v19 = vsel %vm1139_vm13, %v1035_v56, %v1107_v62  ;;  %v2982_v22 = vunpack.c.l.b16 %v8794_v49 }
  0xcf   : > { %v8812_v33 = vrot.slane %v1206_v19, 3  ;;  %v1109_v19 = vrot.slane %v1040_v25, 3 }
  0xd1   : > { %13939 = vst [vmem:[#allocation46_spill] sm:$0xff] %v8812_v33  ;;  %v1563_v55 = vshll.u32 %v8812_v33, 16  ;;  %v1566_v11 = vshrl.u32 %v8812_v33, 16  ;;  %v1215_v58 = vsel %vm13895_vm1, %v1040_v25, %v1109_v19  ;;  %v1221_v18 = vsel %vm1139_vm13, %v1040_v25, %v1109_v19 }
  0xd2   : > { %v8836_v53 = vrot.slane %v1215_v58, 1  ;;  %v8866_v31 = vrot.slane %v1221_v18, 3  ;;  %vm3038_vm1 = vcmask 1045509  }
  0xd3   : > { %v8825_v62 = vsel %vm8578_vm4, %v1558_v40, %v1563_v55 }
  0xd4   : > { %13941 = vst [vmem:[#allocation48_spill] sm:$0xff] %v8825_v62  ;;  %v1581_v38 = vshrl.u32 %v8836_v53, 16  ;;  %v1594_v18 = vshll.u32 %v8866_v31, 16 }
  0xd5   : > { %v8806_v44 = vld [vmem:[#allocation1] sm:$0xf]  ;;  %13943 = vst [vmem:[#allocation50_spill] sm:$0xff] %v8836_v53 }
  0xd6   : > { %2789 = vst [vmem:[#allocation1] ss:$9 sm:$0xff] %v8804_v28  ;;  %v1108_v28 = vrot.slane %v1036_v23, 3 }
  0xd7   : > { %13949 = vst [vmem:[#allocation55_spill] sm:$0xff] %v8866_v31 }
  0xd8   : > { %v8828_v56 = vsel %vm13893_vm0, %v1036_v23, %v1108_v28  ;;  %v8843_v23 = vsel %vm13945_vm5, %v1040_v25, %v1109_v19  ;;  %vm3035_vm0 = vcmask 1044484   ;;  %vm3041_vm5 = vcmask 1046534  }
  0xd9   : > { %13942 = vst [vmem:[#allocation49_spill] sm:$0xff] %v8828_v56  ;;  %v1573_v55 = vshrl.u32 %v8843_v23, 16 }
  0xda   : > { %13946 = vst [vmem:[#allocation52_spill] sm:$0xff] %v8843_v23 }
  0xdd   : > { %v8818_v13 = vld [vmem:[#allocation1] sm:$0xf] }
  0xde   : > { %2793 = vst [vmem:[#allocation1] ss:$9 sm:$0xff] %v8816_v61  ;;  %v1570_v61 = vshll.u32 %v8828_v56, 16  ;;  %v1218_v56 = vsel %vm1135_vm12, %v1040_v25, %v1109_v19 }
  0xdf   : > { %v8851_v33 = vrot.slane %v1218_v56, 2 }
  0xe0   : > { %v8840_v40 = vsel %vm8578_vm4, %v1566_v11, %v1570_v61  ;;  %v321_v11 = vld [vmem:[%s8466_s14 + $0x70] sm:$0xff] }
  0xe1   : > { %13944 = vst [vmem:[#allocation51_spill] sm:$0xff] %v8840_v40  ;;  %v357_v23 = vmul.f32 %v8450_v2, %v321_v11  ;;  %v1589_v25 = vshrl.u32 %v8851_v33, 16 }
  0xe2   : > { %13947 = vst [vmem:[#allocation53_spill] sm:$0xff] %v8851_v33 }
  0xe3   : > { %v393_v56 = vadd.f32 %v8471_v7, %v357_v23 }
  0xe5   : > { %v8830_v8 = vld [vmem:[#allocation1] sm:$0xf] }
  0xe6   : > { %2797 = vst [vmem:[#allocation1] ss:$9 sm:$0xff] %v8825_v62  ;;  %v1578_v62 = vshll.u32 %v8836_v53, 16  ;;  %v1041_v53 = vld [vmem:[#allocation2 + $0x4c] sm:$0xf] }
  0xe7   : > { %v1110_v23 = vrot.slane %v1041_v53, 3 }
  0xe8   : > { %v8855_v58 = vsel %vm8578_vm4, %v1573_v55, %v1578_v62  ;;  %v425_v55 = vmax.f32 %v393_v56, 0.0  ;;  %v8883_v56 = vsel %vm8578_vm4, %v1589_v25, %v1594_v18 }
  0xe9   : > { %13948 = vst [vmem:[#allocation54_spill] sm:$0xff] %v8855_v58  ;;  %v1227_v25 = vsel %vm13956_vm9, %v1041_v53, %v1110_v23  ;;  %vm13973_vm9 = vmmov %vm13972_vm2 }
  0xea   : > { %v568_v11 = vpack.c.bf16 %v425_v55, %v425_v55  ;;  %13952 = vst [vmem:[#allocation57_spill] sm:$0xff] %v8883_v56  ;;  %v8895_v18 = vrot.slane %v1227_v25, 1 }
  0xec   : > { %v708_v19 = vshrl.u32 %v568_v11, 16  ;;  %13957 = vst [vmem:[#allocation59_spill] sm:$0xff] %v8895_v18  ;;  %v1609_v25 = vshll.u32 %v8895_v18, 16 }
  0xed   : > { %v8845_v28 = vld [vmem:[#allocation1] sm:$0xf] }
  0xee   : > { %2801 = vst [vmem:[#allocation1] ss:$9 sm:$0xff] %v8840_v40  ;;  %v1586_v40 = vshll.u32 %v8851_v33, 16 }
  0xf0   : > { %v8870_v62 = vsel %vm8578_vm4, %v1581_v38, %v1586_v40  ;;  %v8879_v38 = vrot.slane %v708_v19, 7  ;;  %v711_v40 = vshll.u32 %v568_v11, 16  ;;  %v1597_v19 = vshrl.u32 %v8866_v31, 16 }
  0xf1   : > { %13950 = vst [vmem:[#allocation56_spill] sm:$0xff] %v8870_v62 }
  0xf5   : > { %v8857_v61 = vld [vmem:[#allocation1] sm:$0xf] }
  0xf6   : > { %2805 = vst [vmem:[#allocation1] ss:$9 sm:$0xff] %v8855_v58  ;;  %v478_v58 = vsel %vm13951_vm6, 0, %v477_v57  ;;  %v713_v57 = vor.u32 %v711_v40, %v8879_v38  ;;  %v1230_v40 = vsel %vm1135_vm12, %v1041_v53, %v1110_v23 }
  0xf7   : > { %479 = vst [vmem:[#allocation2 + $0x60] sm:$0x1] %v478_v58  ;;  %v8887_v58 = vsel %vm13953_vm7, %v1041_v53, %v1110_v23  ;;  %v8903_v60 = vrot.slane %v1230_v40, 2  ;;  %v322_v40 = vld [vmem:[%s8466_s14 + $0x78] sm:$0xff]  ;;  %vm3044_vm7 = vcmask 1047559  }
  0xf8   : > { %13954 = vst [vmem:[#allocation58_spill] sm:$0xff] %v8887_v58  ;;  %v1601_v11 = vshll.u32 %v8887_v58, 16 }
  0xf9   : > { %13959 = vst [vmem:[#allocation61_spill] sm:$0xff] %v8903_v60 }
  0xfa   : > { %v8900_v46 = vsel %vm8578_vm4, %v1597_v19, %v1601_v11  ;;  %v1612_v19 = vshrl.u32 %v8895_v18, 16  ;;  %v1617_v11 = vshll.u32 %v8903_v60, 16  ;;  %v2981_v18 = vunpack.c.l.b16 %v8782_v20 }
  0xfb   : > { %13958 = vst [vmem:[#allocation60_spill] sm:$0xff] %v8900_v46  ;;  %v2983_v20 = vunpack.c.l.b16 %v8806_v44  ;;  %v2984_v44 = vunpack.c.l.b16 %v8818_v13 }
  0xfc   : > { %v8931_v12 = vsel %vm8578_vm4, %v1612_v19, %v1617_v11 }
  0xfd   : > { %v8874_v39 = vld [vmem:[#allocation1] sm:$0xf]  ;;  %13964 = vst [vmem:[#allocation65_spill] sm:$0xff] %v8931_v12 }
  0xfe   : > { %2809 = vst [vmem:[#allocation1] ss:$9 sm:$0xff] %v8870_v62  ;;  %v959_v55 = vld [vmem:[#allocation2 + $0x60] sm:$0xf] }
  0xff   : > { %v960_v33 = vsel %vm13955_vm8, %v713_v57, %v959_v55  ;;  %v1233_v57 = vsel %vm1139_vm13, %v1041_v53, %v1110_v23 }
 0x100   : > { %961 = vst [vmem:[#allocation2 + $0x60] sm:$0xf] %v960_v33  ;;  %v1604_v33 = vshrl.u32 %v8887_v58, 16  ;;  %v8910_v52 = vrot.slane %v1233_v57, 3 }
 0x102   : > { %13960 = vst [vmem:[#allocation62_spill] sm:$0xff] %v8910_v52  ;;  %v8919_v23 = vsel %vm8578_vm4, %v1604_v33, %v1609_v25  ;;  %v1625_v58 = vshll.u32 %v8910_v52, 16  ;;  %v1628_v33 = vshrl.u32 %v8910_v52, 16  ;;  %v358_v25 = vmul.f32 %v8450_v2, %v322_v40 }
 0x103   : > { %13961 = vst [vmem:[#allocation63_spill] sm:$0xff] %v8919_v23  ;;  %v3060_v2 = vrot.slane %v2981_v18, 7  ;;  %v3062_v40 = vrot.slane %v2982_v22, 6 }
 0x104   : > { %v8959_v22 = vadd.f32 %v8471_v7, %v358_v25  ;;  %v8972_v25 = vrot.slane %v2984_v44, 4  ;;  %v2964_v44 = vunpack.c.l.b16 %v8591_v24  ;;  %v2975_v24 = vunpack.c.l.b16 %v8707_v54 }
 0x105   : > { %v2810_v62 = vld [vmem:[#allocation1] sm:$0xf] }
 0x106   : > { %2813 = vst [vmem:[#allocation1] ss:$9 sm:$0xff] %v8883_v56  ;;  %v1042_v56 = vld [vmem:[#allocation2 + $0x50] sm:$0x1] }
 0x107   : > { %v8908_v31 = vld [vmem:[#allocation2 + $0x60] sm:$0xf]  ;;  %v1111_v42 = vrot.slane %v1042_v56, 3 }
 0x108   : > { %v8915_v53 = vrot.slane %v8908_v31, 3 }
 0x109   : > { %v8925_v57 = vsel %vm13962_vm10, %v1042_v56, %v1111_v42  ;;  %v2980_v56 = vunpack.c.l.b16 %v8770_v3  ;;  %vm13860_vm10 = vcmask 31744  }
 0x10a   : > { %13963 = vst [vmem:[#allocation64_spill] sm:$0xff] %v8925_v57  ;;  %v1242_v42 = vsel %vm13965_vm11, %v8908_v31, %v8915_v53  ;;  %v1632_v11 = vshll.u32 %v8925_v57, 16  ;;  %v8950_v63 = vsel %vm13967_vm14, %v8908_v31, %v8915_v53  ;;  %vm13974_vm11 = vmmov %vm13972_vm2  ;;  %vm13975_vm14 = vnez %v13878_v50 }
 0x10b   : > { %13968 = vst [vmem:[#allocation67_spill] sm:$0xff] %v8950_v63  ;;  %v8952_v3 = vrot.slane %v1242_v42, 1 }
 0x10c   : > { %v8963_v18 = vsel %vm8578_vm4, %v1628_v33, %v1632_v11  ;;  %v2966_v11 = vunpack.c.l.b16 %v8609_v37  ;;  %v2974_v37 = vunpack.c.l.b16 %v8695_v45  ;;  %v2979_v45 = vunpack.c.l.b16 %v8758_v6 }
 0x10d   : > { %v2814_v55 = vld [vmem:[#allocation1] sm:$0xf]  ;;  %13969 = vst [vmem:[#allocation68_spill] sm:$0xff] %v8952_v3 }
 0x10e   : > { %2817 = vst [vmem:[#allocation1] ss:$9 sm:$0xff] %v8900_v46  ;;  %v1620_v46 = vshrl.u32 %v8903_v60, 16  ;;  %v2989_v60 = vunpack.c.l.b16 %v2810_v62  ;;  %v2990_v49 = vunpack.c.l.b16 %v2814_v55  ;;  %v2985_v62 = vunpack.c.l.b16 %v8830_v8 }
 0x10f   : > { %v3061_v55 = vsel %vm13970_vm15, %v3060_v2, %v2980_v56  ;;  %13971 = vst [vmem:[#allocation69_spill] sm:$0xff] %v8963_v18  ;;  %v1635_v56 = vshrl.u32 %v8950_v63, 16  ;;  %v426_v2 = vmax.f32 %v8959_v22, 0.0  ;;  %vm13979_vm15 = vnez %v13881_v17 }
 0x110   : > { %v8943_v19 = vsel %vm8578_vm4, %v1620_v46, %v1625_v58  ;;  %v2986_v46 = vunpack.c.l.b16 %v8845_v28  ;;  %v3074_v58 = vrot.slane %v2989_v60, 7  ;;  %v3063_v42 = vsel %vm1135_vm12, %v3062_v40, %v3061_v55  ;;  %v326_v28 = vld [vmem:[%s8466_s14 + $0x98] sm:$0xff] }
 0x111   : > { %13966 = vst [vmem:[#allocation66_spill] sm:$0xff] %v8943_v19  ;;  %v8974_v33 = vrot.slane %v2985_v62, 3  ;;  %v2967_v62 = vunpack.c.l.b16 %v8618_v43  ;;  %v2969_v55 = vunpack.c.l.b16 %v8636_v59  ;;  %v2976_v43 = vunpack.c.l.b16 %v8719_v0  ;;  %v325_v0 = vld [vmem:[%s8466_s14 + $0x90] sm:$0xff] }
 0x112   : > { %v3030_v59 = vrot.slane %v2966_v11, 6 }
 0x113   : > { %v3052_v11 = vrot.slane %v2976_v43, 4 }
 0x115   : > { %v2818_v34 = vld [vmem:[#allocation1] sm:$0xf] }
 0x116   : > { %2821 = vst [vmem:[#allocation1] ss:$9 sm:$0xff] %v8919_v23  ;;  %v2988_v23 = vunpack.c.l.b16 %v8874_v39  ;;  %v2991_v52 = vunpack.c.l.b16 %v2818_v34  ;;  %v3064_v39 = vrot.slane %v2983_v20, 5  ;;  %v3076_v34 = vrot.slane %v2990_v49, 6 }
 0x117   : > { %v1640_v20 = vshll.u32 %v8952_v3, 16  ;;  %v8976_v49 = vrot.slane %v2986_v46, 2  ;;  %v2968_v46 = vunpack.c.l.b16 %v8627_v51  ;;  %v2972_v51 = vunpack.c.l.b16 %v8671_v26 }
 0x118   : > { %v3075_v13 = vsel %vm13972_vm2, %v3074_v58, %v2988_v23  ;;  %v3078_v57 = vrot.slane %v2991_v52, 5  ;;  %v8979_v52 = vsel %vm1139_vm13, %v3064_v39, %v3063_v42  ;;  %v2965_v23 = vunpack.c.l.b16 %v8600_v30 }
 0x119   : > { %v3077_v60 = vsel %vm1135_vm12, %v3076_v34, %v3075_v13  ;;  %v2973_v30 = vunpack.c.l.b16 %v8683_v36  ;;  %v2970_v39 = vunpack.c.l.b16 %v8648_v4  ;;  %v2977_v34 = vunpack.c.l.b16 %v8731_v27 }
 0x11a   : > { %v8985_v40 = vsel %vm1139_vm13, %v3078_v57, %v3077_v60  ;;  %v2971_v57 = vunpack.c.l.b16 %v8659_v16  ;;  %v3028_v42 = vrot.slane %v2965_v23, 7  ;;  %v2978_v36 = vunpack.c.l.b16 %v8746_v48 }
 0x11b   : > { %v3032_v13 = vrot.slane %v2967_v62, 5  ;;  %v3034_v4 = vrot.slane %v2968_v46, 4  ;;  %v3037_v60 = vrot.slane %v2969_v55, 3  ;;  %v3046_v54 = vrot.slane %v2973_v30, 7 }
 0x11c   : > { %v3029_v16 = vsel %vm13973_vm9, %v3028_v42, %v2964_v44  ;;  %v3040_v27 = vrot.slane %v2970_v39, 2  ;;  %v3050_v23 = vrot.slane %v2975_v24, 5  ;;  %v3043_v6 = vrot.slane %v2971_v57, 1  ;;  %v483_v44 = vld [vmem:[#allocation2 + $0x78] sm:$0x1] }
 0x11d   : > { %v2822_v8 = vld [vmem:[#allocation1] sm:$0xf]  ;;  %v3031_v26 = vsel %vm1135_vm12, %v3030_v59, %v3029_v16  ;;  %v3047_v62 = vsel %vm13974_vm11, %v3046_v54, %v2972_v51  ;;  %v3054_v46 = vrot.slane %v2977_v34, 3  ;;  %v3058_v42 = vrot.slane %v2979_v45, 1  ;;  %v527_v51 = vld [vmem:[#allocation2 + $0x68] sm:$0x1] }
 0x11e   : > { %2825 = vst [vmem:[#allocation1] ss:$9 sm:$0xff] %v8931_v12  ;;  %v2992_v7 = vunpack.c.l.b16 %v2822_v8  ;;  %v3033_v48 = vsel %vm1139_vm13, %v3032_v13, %v3031_v26  ;;  %v9017_v24 = vld [vmem:[%s13447_s1] ss:$0 sm:$0xff]  ;;  %v533_v34 = vld [vmem:[#allocation2 + $0x80] sm:$0x1] }
 0x11f   : > { %v3036_v55 = vsel %vm3035_vm0, %v3034_v4, %v3033_v48  ;;  %v361_v57 = vmul.f32 %v9017_v24, %v325_v0  ;;  %v362_v43 = vmul.f32 %v9017_v24, %v326_v28  ;;  %v484_v45 = vsel %vm13951_vm6, 0, %v483_v44  ;;  %v9030_v54 = vld [vmem:[%s13448_s2] ss:$0 sm:$0xff]  ;;  %v495_v12 = vld [vmem:[#allocation2 + $0xa8] sm:$0x1] }
 0x120   : > { %v8990_v58 = vrot.slane %v2992_v7, 4  ;;  %v3048_v7 = vrot.slane %v2974_v37, 6  ;;  %v3056_v37 = vrot.slane %v2978_v36, 2  ;;  %v3039_v59 = vsel %vm3038_vm1, %v3037_v60, %v3036_v55  ;;  %485 = vst [vmem:[#allocation2 + $0x78] sm:$0x1] %v484_v45 }
 0x121   : > { %v3042_v4 = vsel %vm3041_vm5, %v3040_v27, %v3039_v59  ;;  %v397_v28 = vadd.f32 %v9030_v54, %v361_v57  ;;  %v528_v0 = vsel %vm13975_vm14, 0, %v527_v51  ;;  %v534_v26 = vsel %vm13975_vm14, 0, %v533_v34 }
 0x122   : > { %v3049_v30 = vsel %vm1135_vm12, %v3048_v7, %v3047_v62  ;;  %v3045_v16 = vsel %vm3044_vm7, %v3043_v6, %v3042_v4  ;;  %v569_v27 = vpack.c.bf16 %v426_v2, %v426_v2  ;;  %529 = vst [vmem:[#allocation2 + $0x68] sm:$0x1] %v528_v0  ;;  %v3081_v22 = vsel %vm3035_vm0, %v8990_v58, %v8985_v40 }
 0x123   : > { %v3051_v39 = vsel %vm1139_vm13, %v3050_v23, %v3049_v30  ;;  %v429_v6 = vmax.f32 %v397_v28, 0.0  ;;  %535 = vst [vmem:[#allocation2 + $0x80] sm:$0x1] %v534_v26  ;;  %vm13980_vm2 = vcmask 27648   ;;  %vm13985_vm11 = vcmask 1040384  }
 0x124   : > { %v3053_v36 = vsel %vm3035_vm0, %v3052_v11, %v3051_v39  ;;  %v3067_v11 = vsel %vm3035_vm0, %v8972_v25, %v8979_v52  ;;  %v716_v30 = vshrl.u32 %v569_v27, 16  ;;  %v719_v59 = vshll.u32 %v569_v27, 16  ;;  %vm13981_vm9 = vmmov %vm13980_vm2 }
 0x125   : > { %v2826_v8 = vld [vmem:[#allocation1] sm:$0xf]  ;;  %v3055_v60 = vsel %vm3038_vm1, %v3054_v46, %v3053_v36  ;;  %v572_v2 = vpack.c.bf16 %v429_v6, %v429_v6  ;;  %v3069_v25 = vsel %vm3038_vm1, %v8974_v33, %v3067_v11  ;;  %v714_v52 = vrot.slane %v8879_v38, 4 }
 0x126   : > { %2829 = vst [vmem:[#allocation1] ss:$9 sm:$0xff] %v8943_v19  ;;  %v2993_v13 = vunpack.c.l.b16 %v2826_v8  ;;  %v398_v8 = vadd.f32 %v9030_v54, %v362_v43  ;;  %v3057_v7 = vsel %vm3041_vm5, %v3056_v37, %v3055_v60  ;;  %v1245_v39 = vsel %vm1135_vm12, %v8908_v31, %v8915_v53 }
 0x127   : > { %v3059_v48 = vsel %vm3044_vm7, %v3058_v42, %v3057_v7  ;;  %v718_v42 = vrot.slane %v716_v30, 7  ;;  %v742_v57 = vshrl.u32 %v572_v2, 16  ;;  %v745_v43 = vshll.u32 %v572_v2, 16  ;;  %v973_v0 = vld [vmem:[#allocation2 + $0x78] sm:$0xf] }
 0x128   : > { %v430_v62 = vmax.f32 %v398_v8, 0.0  ;;  %v3082_v44 = vrot.slane %v2993_v13, 3  ;;  %v3144_v55 = vpack.c.b16 %v3059_v48, %v3045_v16  ;;  %v9058_v45 = vrot.slane %v1245_v39, 2 }
 0x129   : > { %v721_v13 = vor.u32 %v719_v59, %v718_v42  ;;  %v723_v4 = vrot.slane %v718_v42, 4  ;;  %v744_v36 = vrot.slane %v742_v57, 7  ;;  %v9066_v38 = vsel %vm8578_vm4, %v1635_v56, %v1640_v20  ;;  %v963_v7 = vld [vmem:[#allocation2 + $0x68] sm:$0x1] }
 0x12a   : > { %v573_v37 = vpack.c.bf16 %v430_v62, %v430_v62  ;;  %8254 = vmatmul.msk.bf16.vlgmr.msra.gmra.mxu0 %vm13860_vm10, %v3144_v55  ;;  %v3083_v58 = vsel %vm3038_vm1, %v3082_v44, %v3081_v22  ;;  %13976 = vst [vmem:[#allocation70_spill] sm:$0xff] %v9058_v45  ;;  %v3071_v16 = vsel %vm3041_vm5, %v8976_v49, %v3069_v25  ;;  %v13978_v60 = vunpack.c.l.b16 %v8857_v61  ;;  %v977_v61 = vld [vmem:[#allocation2 + $0x80] sm:$0x1] }
 0x12b   : > { %13977 = vst [vmem:[#allocation71_spill] sm:$0xff] %v9066_v38  ;;  %v722_v8 = vsel %vm13979_vm15, %v714_v52, %v721_v13  ;;  %v747_v27 = vor.u32 %v745_v43, %v744_v36  ;;  %v964_v49 = vsel %vm13951_vm6, %v723_v4, %v963_v7  ;;  %v1643_v6 = vshrl.u32 %v8952_v3, 16 }
 0x12c   : > { %v750_v51 = vshrl.u32 %v573_v37, 16  ;;  %v753_v40 = vshll.u32 %v573_v37, 16  ;;  %v3072_v28 = vrot.slane %v13978_v60, 1  ;;  %962 = vst.msk [vmem:[#allocation2 + $0x64] sm:$0xf] %vm13980_vm2, %v722_v8  ;;  %v1648_v55 = vshll.u32 %v9058_v45, 16 }
 0x12d   : > { %v2830_v23 = vld [vmem:[#allocation1] sm:$0xf]  ;;  %965 = vst [vmem:[#allocation2 + $0x68] sm:$0x1] %v964_v49  ;;  %v1248_v2 = vsel %vm1139_vm13, %v8908_v31, %v8915_v53  ;;  %v1651_v31 = vshrl.u32 %v9058_v45, 16  ;;  %vm13987_vm2 = vcmask 1041409  }
 0x12e   : > { %2833 = vst [vmem:[#allocation1] ss:$9 sm:$0xff] %v8963_v18  ;;  %v2994_v46 = vunpack.c.l.b16 %v2830_v23  ;;  %v752_v33 = vrot.slane %v750_v51, 7  ;;  %v748_v23 = vrot.slane %v744_v36, 4  ;;  %v3073_v30 = vsel %vm3044_vm7, %v3072_v28, %v3071_v16 }
 0x12f   : > { %v9093_v25 = vrot.slane %v1248_v2, 3  ;;  %v9097_v52 = vsel %vm8578_vm4, %v1643_v6, %v1648_v55 }
 0x130   : > { %v3084_v34 = vrot.slane %v2994_v46, 2  ;;  %v755_v11 = vor.u32 %v753_v40, %v752_v33  ;;  %v757_v48 = vrot.slane %v752_v33, 4  ;;  %v974_v46 = vsel %vm13955_vm8, %v747_v27, %v973_v0  ;;  %13983 = vst [vmem:[#allocation73_spill] sm:$0xff] %v9097_v52 }
 0x131   : > { %975 = vst [vmem:[#allocation2 + $0x78] sm:$0xf] %v974_v46  ;;  %v1656_v53 = vshll.u32 %v9093_v25, 16 }
 0x132   : > { %v3085_v20 = vsel %vm3041_vm5, %v3084_v34, %v3083_v58  ;;  %v756_v62 = vsel %vm13979_vm15, %v748_v23, %v755_v11  ;;  %v978_v44 = vsel %vm13951_vm6, %v757_v48, %v977_v61  ;;  %13982 = vst [vmem:[#allocation72_spill] sm:$0xff] %v9093_v25  ;;  %v1659_v58 = vshrl.u32 %v9093_v25, 16 }
 0x133   : > { %976 = vst.msk [vmem:[#allocation2 + $0x7c] sm:$0xf] %vm13981_vm9, %v756_v62  ;;  %v1047_v42 = vld [vmem:[#allocation2 + $0x64] sm:$0xf]  ;;  %v9107_v43 = vsel %vm8578_vm4, %v1651_v31, %v1656_v53  ;;  %vm13995_vm9 = vmmov %vm13985_vm11 }
 0x134   : > { %979 = vst [vmem:[#allocation2 + $0x80] sm:$0x1] %v978_v44  ;;  %v1113_v57 = vrot.slane %v1047_v42, 3 }
 0x135   : > { %v2834_v26 = vld [vmem:[#allocation1] sm:$0xf]  ;;  %13984 = vst [vmem:[#allocation74_spill] sm:$0xff] %v9107_v43 }
 0x136   : > { %v2995_v56 = vunpack.c.l.b16 %v2834_v26  ;;  %2837 = vst [vmem:[#allocation1] ss:$9 sm:$0xff] %v9066_v38  ;;  %v9110_v51 = vsel %vm13985_vm11, %v1047_v42, %v1113_v57  ;;  %v1254_v13 = vsel %vm13987_vm2, %v1047_v42, %v1113_v57  ;;  %v1257_v28 = vsel %vm1135_vm12, %v1047_v42, %v1113_v57  ;;  %vm13997_vm11 = vmmov %vm13987_vm2 }
 0x137   : > { %13986 = vst [vmem:[#allocation75_spill] sm:$0xff] %v9110_v51  ;;  %v1663_v34 = vshll.u32 %v9110_v51, 16  ;;  %v9118_v4 = vrot.slane %v1254_v13, 1  ;;  %v1666_v16 = vshrl.u32 %v9110_v51, 16  ;;  %v9130_v8 = vrot.slane %v1257_v28, 2  ;;  %vm14000_vm2 = vmmov %vm13995_vm9  ;;  %v329_v28 = vld [vmem:[%s8466_s14 + $0xb0] sm:$0xff] }
 0x138   : > { %v3086_v22 = vrot.slane %v2995_v56, 1  ;;  %v1260_v23 = vsel %vm1139_vm13, %v1047_v42, %v1113_v57  ;;  %v1048_v56 = vld [vmem:[#allocation2 + $0x68] sm:$0x1]  ;;  %v1052_v62 = vld [vmem:[#allocation2 + $0x78] sm:$0xf] }
 0x139   : > { %13988 = vst [vmem:[#allocation76_spill] sm:$0xff] %v9118_v4  ;;  %v9122_v36 = vsel %vm8578_vm4, %v1659_v58, %v1663_v34  ;;  %v1671_v60 = vshll.u32 %v9118_v4, 16  ;;  %v1674_v26 = vshrl.u32 %v9118_v4, 16  ;;  %v1679_v27 = vshll.u32 %v9130_v8, 16 }
 0x13a   : > { %v3087_v37 = vsel %vm3044_vm7, %v3086_v22, %v3085_v20  ;;  %13989 = vst [vmem:[#allocation77_spill] sm:$0xff] %v9122_v36  ;;  %v9142_v11 = vrot.slane %v1260_v23, 3  ;;  %v1682_v49 = vshrl.u32 %v9130_v8, 16  ;;  %v1114_v6 = vrot.slane %v1048_v56, 3 }
 0x13b   : > { %v3145_v59 = vpack.c.b16 %v3087_v37, %v3073_v30  ;;  %13990 = vst [vmem:[#allocation78_spill] sm:$0xff] %v9130_v8  ;;  %v9134_v7 = vsel %vm8578_vm4, %v1666_v16, %v1671_v60  ;;  %v9146_v48 = vsel %vm8578_vm4, %v1674_v26, %v1679_v27  ;;  %v1115_v44 = vrot.slane %v1052_v62, 3 }
 0x13c   : > { %13991 = vst [vmem:[#allocation79_spill] sm:$0xff] %v9134_v7  ;;  %v1687_v61 = vshll.u32 %v9142_v11, 16  ;;  %v9158_v55 = vsel %vm13995_vm9, %v1048_v56, %v1114_v6  ;;  %v1690_v22 = vshrl.u32 %v9142_v11, 16  ;;  %v365_v23 = vmul.f32 %v9017_v24, %v329_v28  ;;  %vm14007_vm9 = vmmov %vm14000_vm2 }
 0x13d   : > { %8255 = vmatmul.msk.bf16.vlgmr.msra.gmra.mxu3 %vm13860_vm10, %v3145_v59  ;;  %v9100_v39 = vld [vmem:[#allocation1] sm:$0xf]  ;;  %13992 = vst [vmem:[#allocation80_spill] sm:$0xff] %v9142_v11  ;;  %v1694_v2 = vshll.u32 %v9158_v55, 16  ;;  %v1269_v37 = vsel %vm13997_vm11, %v1052_v62, %v1115_v44  ;;  %v9173_v31 = vsel %vm14000_vm2, %v1052_v62, %v1115_v44  ;;  %v1272_v34 = vsel %vm1135_vm12, %v1052_v62, %v1115_v44 }
 0x13e   : > { %2841 = vst [vmem:[#allocation1] ss:$9 sm:$0xff] %v9097_v52  ;;  %v9155_v46 = vsel %vm8578_vm4, %v1682_v49, %v1687_v61  ;;  %v9166_v59 = vrot.slane %v1269_v37, 1  ;;  %v1697_v57 = vshrl.u32 %v9173_v31, 16  ;;  %v9181_v13 = vrot.slane %v1272_v34, 2 }
 0x13f   : > { %13993 = vst [vmem:[#allocation81_spill] sm:$0xff] %v9146_v48  ;;  %v9170_v42 = vsel %vm8578_vm4, %v1690_v22, %v1694_v2  ;;  %v1275_v56 = vsel %vm1139_vm13, %v1052_v62, %v1115_v44  ;;  %v401_v49 = vadd.f32 %v9030_v54, %v365_v23  ;;  %v489_v2 = vld [vmem:[#allocation2 + $0x90] sm:$0x1] }
 0x140   : > { %13994 = vst [vmem:[#allocation82_spill] sm:$0xff] %v9155_v46  ;;  %v1702_v58 = vshll.u32 %v9166_v59, 16  ;;  %v1705_v26 = vshrl.u32 %v9166_v59, 16  ;;  %v1710_v27 = vshll.u32 %v9181_v13, 16  ;;  %v9196_v61 = vrot.slane %v1275_v56, 3 }
 0x141   : > { %13996 = vst [vmem:[#allocation83_spill] sm:$0xff] %v9158_v55  ;;  %v433_v22 = vmax.f32 %v401_v49, 0.0  ;;  %v490_v37 = vsel %vm13951_vm6, 0, %v489_v2  ;;  %v1713_v62 = vshrl.u32 %v9181_v13, 16 }
 0x142   : > { %13998 = vst [vmem:[#allocation84_spill] sm:$0xff] %v9166_v59  ;;  %v9185_v16 = vsel %vm8578_vm4, %v1697_v57, %v1702_v58  ;;  %v9200_v6 = vsel %vm8578_vm4, %v1705_v26, %v1710_v27  ;;  %v1053_v57 = vld [vmem:[#allocation2 + $0x7c] sm:$0xf]  ;;  %v1718_v44 = vshll.u32 %v9196_v61, 16 }
 0x143   : > { %13999 = vst [vmem:[#allocation85_spill] sm:$0xff] %v9170_v42  ;;  %v576_v34 = vpack.c.bf16 %v433_v22, %v433_v22  ;;  %v1116_v23 = vrot.slane %v1053_v57, 3 }
 0x144   : > { %14001 = vst [vmem:[#allocation86_spill] sm:$0xff] %v9173_v31  ;;  %v9213_v56 = vsel %vm8578_vm4, %v1713_v62, %v1718_v44 }
 0x145   : > { %v9112_v40 = vld [vmem:[#allocation1] sm:$0xf]  ;;  %14002 = vst [vmem:[#allocation87_spill] sm:$0xff] %v9181_v13  ;;  %v776_v28 = vshrl.u32 %v576_v34, 16  ;;  %v779_v27 = vshll.u32 %v576_v34, 16  ;;  %v9217_v2 = vsel %vm14007_vm9, %v1053_v57, %v1116_v23  ;;  %v1721_v34 = vshrl.u32 %v9196_v61, 16 }
 0x146   : > { %2845 = vst [vmem:[#allocation1] ss:$9 sm:$0xff] %v9107_v43  ;;  %v1281_v62 = vsel %vm13997_vm11, %v1053_v57, %v1116_v23  ;;  %vm14017_vm9 = vcmask 1041408  }
 0x147   : > { %14003 = vst [vmem:[#allocation88_spill] sm:$0xff] %v9185_v16  ;;  %v9209_v26 = vrot.slane %v776_v28, 7  ;;  %v1725_v28 = vshll.u32 %v9217_v2, 16  ;;  %v9227_v44 = vrot.slane %v1281_v62, 1 }
 0x148   : > { %14004 = vst [vmem:[#allocation89_spill] sm:$0xff] %v9196_v61 }
 0x149   : > { %14005 = vst [vmem:[#allocation90_spill] sm:$0xff] %v9200_v6  ;;  %v781_v49 = vor.u32 %v779_v27, %v9209_v26  ;;  %v9231_v27 = vsel %vm8578_vm4, %v1721_v34, %v1725_v28 }
 0x14a   : > { %491 = vst [vmem:[#allocation2 + $0x90] sm:$0x1] %v490_v37 }
 0x14b   : > { %14006 = vst [vmem:[#allocation91_spill] sm:$0xff] %v9213_v56 }
 0x14c   : > { %14008 = vst [vmem:[#allocation92_spill] sm:$0xff] %v9217_v2 }
 0x14d   : > { %v9124_v33 = vld [vmem:[#allocation1] sm:$0xf]  ;;  %14009 = vst [vmem:[#allocation93_spill] sm:$0xff] %v9227_v44 }
 0x14e   : > { %2849 = vst [vmem:[#allocation1] ss:$9 sm:$0xff] %v9122_v36 }
 0x14f   : > { %14010 = vst [vmem:[#allocation94_spill] sm:$0xff] %v9231_v27 }
 0x151   : > { %v987_v22 = vld [vmem:[#allocation2 + $0x90] sm:$0xf] }
 0x155   : > { %v9136_v0 = vld [vmem:[#allocation1] sm:$0xf] }
 0x156   : > { %2853 = vst [vmem:[#allocation1] ss:$9 sm:$0xff] %v9134_v7 }
 0x15d   : > { %v9148_v20 = vld [vmem:[#allocation1] sm:$0xf] }
 0x15e   : > { %2857 = vst [vmem:[#allocation1] ss:$9 sm:$0xff] %v9146_v48  ;;  %v1287_v48 = vsel %vm1139_vm13, %v1053_v57, %v1116_v23 }
 0x15f   : > { %v9250_v7 = vrot.slane %v1287_v48, 3 }
 0x161   : > { %14013 = vst [vmem:[#allocation97_spill] sm:$0xff] %v9250_v7 }
 0x165   : > { %v9160_v30 = vld [vmem:[#allocation1] sm:$0xf] }
 0x166   : > { %2861 = vst [vmem:[#allocation1] ss:$9 sm:$0xff] %v9155_v46 }
 0x16d   : > { %v9175_v53 = vld [vmem:[#allocation1] sm:$0xf] }
 0x16e   : > { %2865 = vst [vmem:[#allocation1] ss:$9 sm:$0xff] %v9170_v42  ;;  %v330_v42 = vld [vmem:[%s8466_s14 + $0xb8] sm:$0xff] }
 0x16f   : > { %v366_v46 = vmul.f32 %v9017_v24, %v330_v42  ;;  %v1736_v42 = vshrl.u32 %v9227_v44, 16 }
 0x171   : > { %v402_v36 = vadd.f32 %v9030_v54, %v366_v46  ;;  %v1752_v46 = vshrl.u32 %v9250_v7, 16 }
 0x175   : > { %v9187_v60 = vld [vmem:[#allocation1] sm:$0xf] }
 0x176   : > { %2869 = vst [vmem:[#allocation1] ss:$9 sm:$0xff] %v9185_v16 }
 0x17d   : > { %v9204_v58 = vld [vmem:[#allocation1] sm:$0xf] }
 0x17e   : > { %2873 = vst [vmem:[#allocation1] ss:$9 sm:$0xff] %v9200_v6  ;;  %v988_v6 = vsel %vm13955_vm8, %v781_v49, %v987_v22  ;;  %v1728_v49 = vshrl.u32 %v9217_v2, 16  ;;  %v1733_v22 = vshll.u32 %v9227_v44, 16 }
 0x17f   : > { %989 = vst [vmem:[#allocation2 + $0x90] sm:$0xf] %v988_v6  ;;  %v1054_v6 = vld [vmem:[#allocation2 + $0x80] sm:$0x1] }
 0x180   : > { %v9246_v34 = vsel %vm8578_vm4, %v1728_v49, %v1733_v22  ;;  %v1117_v28 = vrot.slane %v1054_v6, 3  ;;  %v1749_v49 = vshll.u32 %v9250_v7, 16  ;;  %v434_v22 = vmax.f32 %v402_v36, 0.0 }
 0x181   : > { %14012 = vst [vmem:[#allocation96_spill] sm:$0xff] %v9246_v34  ;;  %v496_v7 = vsel %vm13951_vm6, 0, %v495_v12 }
 0x182   : > { %v577_v52 = vpack.c.bf16 %v434_v22, %v434_v22  ;;  %v334_v22 = vld [vmem:[%s8466_s14 + $0xd8] sm:$0xff]  ;;  %497 = vst [vmem:[#allocation2 + $0xa8] sm:$0x1] %v496_v7 }
 0x183   : > { %v370_v55 = vmul.f32 %v9017_v24, %v334_v22 }
 0x184   : > { %v787_v22 = vshll.u32 %v577_v52, 16 }
 0x185   : > { %v9219_v37 = vld [vmem:[#allocation1] sm:$0xf] }
 0x186   : > { %2877 = vst [vmem:[#allocation1] ss:$9 sm:$0xff] %v9213_v56  ;;  %v1284_v56 = vsel %vm1135_vm12, %v1053_v57, %v1116_v23  ;;  %v9257_v57 = vsel %vm14000_vm2, %v1054_v6, %v1117_v28  ;;  %v9261_v48 = vld [vmem:[#allocation2 + $0x90] sm:$0xf]  ;;  %v2705_v6 = vld [vmem:[%s13451_s5] sm:$0x3]  ;;  %vm14019_vm2 = vmmov %vm13997_vm11 }
 0x187   : > { %v9241_v62 = vrot.slane %v1284_v56, 2  ;;  %14014 = vst [vmem:[#allocation98_spill] sm:$0xff] %v9257_v57  ;;  %v1756_v43 = vshll.u32 %v9257_v57, 16  ;;  %v333_v28 = vld [vmem:[%s8466_s14 + $0xd0] sm:$0xff]  ;;  %v9276_v36 = vrot.slane %v9261_v48, 3  ;;  %v2998_v57 = vunpack.c.l.b16 %v9124_v33 }
 0x188   : > { %v369_v19 = vmul.f32 %v9017_v24, %v333_v28  ;;  %v782_v33 = vrot.slane %v9209_v26, 4 }
 0x189   : > { %14011 = vst [vmem:[#allocation95_spill] sm:$0xff] %v9241_v62  ;;  %v1741_v56 = vshll.u32 %v9241_v62, 16  ;;  %v1744_v23 = vshrl.u32 %v9241_v62, 16  ;;  %v784_v62 = vshrl.u32 %v577_v52, 16  ;;  %v3004_v52 = vunpack.c.l.b16 %v9204_v58 }
 0x18b   : > { %v9280_v18 = vsel %vm8578_vm4, %v1744_v23, %v1749_v49  ;;  %v539_v23 = vld [vmem:[#allocation2 + $0x98] sm:$0x1]  ;;  %v545_v49 = vld [vmem:[#allocation2 + $0xb0] sm:$0x1]  ;;  %v786_v24 = vrot.slane %v784_v62, 7 }
 0x18c   : > { %14016 = vst [vmem:[#allocation100_spill] sm:$0xff] %v9280_v18  ;;  %v540_v28 = vsel %vm13975_vm14, 0, %v539_v23  ;;  %v546_v12 = vsel %vm13975_vm14, 0, %v545_v49  ;;  %v3090_v49 = vrot.slane %v2998_v57, 6 }
 0x18d   : > { %v9233_v16 = vld [vmem:[#allocation1] sm:$0xf]  ;;  %541 = vst [vmem:[#allocation2 + $0x98] sm:$0x1] %v540_v28  ;;  %v789_v44 = vor.u32 %v787_v22, %v786_v24 }
 0x18e   : > { %2881 = vst [vmem:[#allocation1] ss:$9 sm:$0xff] %v9231_v27  ;;  %v3006_v23 = vunpack.c.l.b16 %v9233_v16 }
 0x18f   : > { %547 = vst [vmem:[#allocation2 + $0xb0] sm:$0x1] %v546_v12 }
 0x190   : > { %v3104_v58 = vrot.slane %v3006_v23, 6  ;;  %v1001_v23 = vld [vmem:[#allocation2 + $0xa8] sm:$0xf] }
 0x195   : > { %v9248_v27 = vld [vmem:[#allocation1] sm:$0xf] }
 0x196   : > { %2885 = vst [vmem:[#allocation1] ss:$9 sm:$0xff] %v9246_v34  ;;  %v9265_v34 = vsel %vm8578_vm4, %v1736_v42, %v1741_v56  ;;  %v2997_v42 = vunpack.c.l.b16 %v9112_v40  ;;  %v3579_v56 = vsel %vm14017_vm9, %v2705_v6, 0  ;;  %v3005_v40 = vunpack.c.l.b16 %v9219_v37 }
 0x197   : > { %14015 = vst [vmem:[#allocation99_spill] sm:$0xff] %v9265_v34  ;;  %3588 = vmatpush.bf16.msrb.mxu0 %v3579_v56  ;;  %8360 = vmatpush.bf16.msra.mxu1 %v3579_v56  ;;  %v405_v6 = vadd.f32 %v9030_v54, %v369_v19  ;;  %v9301_v56 = vsel %vm8578_vm4, %v1752_v46, %v1756_v43  ;;  %v2996_v19 = vunpack.c.l.b16 %v9100_v39  ;;  %v3007_v16 = vunpack.c.l.b16 %v9248_v27 }
 0x198   : > { %14018 = vst [vmem:[#allocation101_spill] sm:$0xff] %v9301_v56  ;;  %v3088_v7 = vrot.slane %v2997_v42, 7  ;;  %v3102_v62 = vrot.slane %v3005_v40, 7  ;;  %v790_v42 = vsel %vm13979_vm15, %v782_v33, %v789_v44  ;;  %vm14020_vm9 = vcmask 27648   ;;  %v991_v33 = vld [vmem:[#allocation2 + $0x98] sm:$0x1] }
 0x199   : > { %v437_v37 = vmax.f32 %v405_v6, 0.0  ;;  %v791_v6 = vrot.slane %v786_v24, 4  ;;  %990 = vst.msk [vmem:[#allocation2 + $0x94] sm:$0xf] %vm14020_vm9, %v790_v42 }
 0x19b   : > { %v580_v43 = vpack.c.bf16 %v437_v37, %v437_v37 }
 0x19d   : > { %v9269_v38 = vld [vmem:[#allocation1] sm:$0xf]  ;;  %v810_v28 = vshrl.u32 %v580_v43, 16  ;;  %v813_v12 = vshll.u32 %v580_v43, 16  ;;  %v3106_v43 = vrot.slane %v3007_v16, 5  ;;  %v3002_v16 = vunpack.c.l.b16 %v9175_v53 }
 0x19e   : > { %2889 = vst [vmem:[#allocation1] ss:$9 sm:$0xff] %v9265_v34  ;;  %v406_v34 = vadd.f32 %v9030_v54, %v370_v55  ;;  %v1296_v54 = vsel %vm13997_vm11, %v9261_v48, %v9276_v36  ;;  %v2999_v55 = vunpack.c.l.b16 %v9136_v0  ;;  %v3000_v0 = vunpack.c.l.b16 %v9148_v20  ;;  %vm14021_vm11 = vmmov %vm14019_vm2 }
 0x19f   : > { %v3103_v37 = vsel %vm14021_vm11, %v3102_v62, %v3004_v52  ;;  %v812_v44 = vrot.slane %v810_v28, 7  ;;  %v9318_v24 = vrot.slane %v1296_v54, 1  ;;  %v3008_v27 = vunpack.c.l.b16 %v9269_v38  ;;  %v1005_v52 = vld [vmem:[#allocation2 + $0xb0] sm:$0x1] }
 0x1a0   : > { %v438_v26 = vmax.f32 %v406_v34, 0.0  ;;  %v3089_v34 = vsel %vm14019_vm2, %v3088_v7, %v2996_v19  ;;  %v3092_v57 = vrot.slane %v2999_v55, 5  ;;  %v992_v20 = vsel %vm13951_vm6, %v791_v6, %v991_v33 }
 0x1a1   : > { %14022 = vst [vmem:[#allocation102_spill] sm:$0xff] %v9318_v24  ;;  %v3091_v19 = vsel %vm1135_vm12, %v3090_v49, %v3089_v34  ;;  %v816_v55 = vrot.slane %v812_v44, 4  ;;  %v3094_v62 = vrot.slane %v3000_v0, 4  ;;  %v3105_v54 = vsel %vm1135_vm12, %v3104_v58, %v3103_v37 }
 0x1a2   : > { %v581_v39 = vpack.c.bf16 %v438_v26, %v438_v26  ;;  %v3001_v26 = vunpack.c.l.b16 %v9160_v30  ;;  %993 = vst [vmem:[#allocation2 + $0x98] sm:$0x1] %v992_v20  ;;  %v3093_v49 = vsel %vm1139_vm13, %v3092_v57, %v3091_v19  ;;  %vm14023_vm2 = vcmask 1040384  }
 0x1a3   : > { %v9332_v30 = vsel %vm14023_vm2, %v9261_v48, %v9276_v36  ;;  %v3095_v57 = vsel %vm3035_vm0, %v3094_v62, %v3093_v49  ;;  %v1764_v37 = vshll.u32 %v9318_v24, 16  ;;  %v3098_v19 = vrot.slane %v3002_v16, 2  ;;  %vm14030_vm11 = vmmov %vm14023_vm2 }
 0x1a4   : > { %v818_v40 = vshrl.u32 %v581_v39, 16  ;;  %v821_v22 = vshll.u32 %v581_v39, 16  ;;  %v815_v39 = vor.u32 %v813_v12, %v812_v44  ;;  %14024 = vst [vmem:[#allocation103_spill] sm:$0xff] %v9332_v30  ;;  %v3108_v12 = vrot.slane %v3008_v27, 4 }
 0x1a5   : > { %v2890_v46 = vld [vmem:[#allocation1] sm:$0xf]  ;;  %v3096_v58 = vrot.slane %v3001_v26, 3  ;;  %v1759_v53 = vshrl.u32 %v9332_v30, 16  ;;  %v3003_v44 = vunpack.c.l.b16 %v9187_v60  ;;  %v1299_v27 = vsel %vm1135_vm12, %v9261_v48, %v9276_v36 }
 0x1a6   : > { %2893 = vst [vmem:[#allocation1] ss:$9 sm:$0xff] %v9280_v18  ;;  %v820_v7 = vrot.slane %v818_v40, 7  ;;  %v3009_v38 = vunpack.c.l.b16 %v2890_v46  ;;  %v1002_v34 = vsel %vm13955_vm8, %v815_v39, %v1001_v23  ;;  %v3107_v40 = vsel %vm1139_vm13, %v3106_v43, %v3105_v54 }
 0x1a7   : > { %1003 = vst [vmem:[#allocation2 + $0xa8] sm:$0xf] %v1002_v34  ;;  %v3097_v20 = vsel %vm3038_vm1, %v3096_v58, %v3095_v57  ;;  %v9351_v26 = vrot.slane %v1299_v27, 2  ;;  %v9355_v43 = vsel %vm8578_vm4, %v1759_v53, %v1764_v37  ;;  %v3100_v39 = vrot.slane %v3003_v44, 1 }
 0x1a8   : > { %v823_v42 = vor.u32 %v821_v22, %v820_v7  ;;  %v825_v28 = vrot.slane %v820_v7, 4  ;;  %v3110_v33 = vrot.slane %v3009_v38, 3  ;;  %v3109_v7 = vsel %vm3035_vm0, %v3108_v12, %v3107_v40  ;;  %14026 = vst [vmem:[#allocation105_spill] sm:$0xff] %v9355_v43 }
 0x1a9   : > { %14025 = vst [vmem:[#allocation104_spill] sm:$0xff] %v9351_v26  ;;  %v1302_v34 = vsel %vm1139_vm13, %v9261_v48, %v9276_v36  ;;  %v1775_v40 = vshrl.u32 %v9351_v26, 16  ;;  %vm14032_vm2 = vcmask 1041409  }
 0x1aa   : > { %v824_v0 = vsel %vm13979_vm15, %v816_v55, %v823_v42  ;;  %v1006_v46 = vsel %vm13951_vm6, %v825_v28, %v1005_v52  ;;  %v3111_v60 = vsel %vm3038_vm1, %v3110_v33, %v3109_v7  ;;  %v3099_v52 = vsel %vm3041_vm5, %v3098_v19, %v3097_v20 }
 0x1ab   : > { %1004 = vst.msk [vmem:[#allocation2 + $0xac] sm:$0xf] %vm14020_vm9, %v824_v0  ;;  %v1767_v42 = vshrl.u32 %v9318_v24, 16  ;;  %v1772_v28 = vshll.u32 %v9351_v26, 16  ;;  %v3101_v38 = vsel %vm3044_vm7, %v3100_v39, %v3099_v52  ;;  %v9368_v12 = vrot.slane %v1302_v34, 3  ;;  %vm14040_vm9 = vmmov %vm14030_vm11 }
 0x1ac   : > { %1007 = vst [vmem:[#allocation2 + $0xb0] sm:$0x1] %v1006_v46  ;;  %v1059_v46 = vld [vmem:[#allocation2 + $0x94] sm:$0xf] }
 0x1ad   : > { %v2894_v6 = vld [vmem:[#allocation1] sm:$0xf]  ;;  %14027 = vst [vmem:[#allocation106_spill] sm:$0xff] %v9368_v12  ;;  %v9372_v0 = vsel %vm8578_vm4, %v1767_v42, %v1772_v28  ;;  %v1780_v48 = vshll.u32 %v9368_v12, 16  ;;  %v1119_v36 = vrot.slane %v1059_v46, 3  ;;  %v1783_v37 = vshrl.u32 %v9368_v12, 16 }
 0x1ae   : > { %2897 = vst [vmem:[#allocation1] ss:$9 sm:$0xff] %v9301_v56  ;;  %v3010_v22 = vunpack.c.l.b16 %v2894_v6 }
 0x1af   : > { %14028 = vst [vmem:[#allocation107_spill] sm:$0xff] %v9372_v0  ;;  %v9385_v57 = vsel %vm14030_vm11, %v1059_v46, %v1119_v36  ;;  %v1308_v33 = vsel %vm14032_vm2, %v1059_v46, %v1119_v36  ;;  %v1311_v39 = vsel %vm1135_vm12, %v1059_v46, %v1119_v36  ;;  %v1314_v42 = vsel %vm1139_vm13, %v1059_v46, %v1119_v36  ;;  %vm14042_vm11 = vmmov %vm14032_vm2 }
 0x1b0   : > { %v3112_v23 = vrot.slane %v3010_v22, 2  ;;  %v9382_v22 = vsel %vm8578_vm4, %v1775_v40, %v1780_v48  ;;  %14031 = vst [vmem:[#allocation109_spill] sm:$0xff] %v9385_v57  ;;  %v1787_v44 = vshll.u32 %v9385_v57, 16  ;;  %v9393_v27 = vrot.slane %v1308_v33, 1  ;;  %v1064_v48 = vld [vmem:[#allocation2 + $0xa8] sm:$0xf]  ;;  %vm14045_vm2 = vmmov %vm14040_vm9 }
 0x1b1   : > { %14029 = vst [vmem:[#allocation108_spill] sm:$0xff] %v9382_v22  ;;  %v1790_v20 = vshrl.u32 %v9385_v57, 16  ;;  %v9417_v28 = vrot.slane %v1314_v42, 3  ;;  %v1121_v36 = vrot.slane %v1064_v48, 3 }
 0x1b2   : > { %v3113_v54 = vsel %vm3041_vm5, %v3112_v23, %v3111_v60  ;;  %14033 = vst [vmem:[#allocation110_spill] sm:$0xff] %v9393_v27  ;;  %v9397_v19 = vsel %vm8578_vm4, %v1783_v37, %v1787_v44  ;;  %v1795_v23 = vshll.u32 %v9393_v27, 16  ;;  %v9405_v60 = vrot.slane %v1311_v39, 2 }
 0x1b3   : > { %14034 = vst [vmem:[#allocation111_spill] sm:$0xff] %v9397_v19  ;;  %v1814_v33 = vshrl.u32 %v9417_v28, 16 }
 0x1b4   : > { %14035 = vst [vmem:[#allocation112_spill] sm:$0xff] %v9405_v60 }
 0x1b5   : > { %v2898_v55 = vld [vmem:[#allocation1] sm:$0xf]  ;;  %14037 = vst [vmem:[#allocation114_spill] sm:$0xff] %v9417_v28 }
 0x1b6   : > { %v3011_v62 = vunpack.c.l.b16 %v2898_v55  ;;  %2901 = vst [vmem:[#allocation1] ss:$9 sm:$0xff] %v9355_v43  ;;  %v9409_v55 = vsel %vm8578_vm4, %v1790_v20, %v1795_v23  ;;  %v1323_v23 = vsel %vm14042_vm11, %v1064_v48, %v1121_v36 }
 0x1b7   : > { %14036 = vst [vmem:[#allocation113_spill] sm:$0xff] %v9409_v55  ;;  %v9441_v39 = vrot.slane %v1323_v23, 1 }
 0x1b8   : > { %v3114_v49 = vrot.slane %v3011_v62, 1  ;;  %v1798_v62 = vshrl.u32 %v9393_v27, 16 }
 0x1b9   : > { %14043 = vst [vmem:[#allocation118_spill] sm:$0xff] %v9441_v39 }
 0x1ba   : > { %v3115_v6 = vsel %vm3044_vm7, %v3114_v49, %v3113_v54  ;;  %v1803_v54 = vshll.u32 %v9405_v60, 16  ;;  %v1060_v49 = vld [vmem:[#allocation2 + $0x98] sm:$0x1] }
 0x1bb   : > { %v3146_v16 = vpack.c.b16 %v3115_v6, %v3101_v38  ;;  %v1806_v6 = vshrl.u32 %v9405_v60, 16  ;;  %v1120_v40 = vrot.slane %v1060_v49, 3 }
 0x1bc   : > { %v9421_v38 = vsel %vm8578_vm4, %v1798_v62, %v1803_v54  ;;  %v9448_v54 = vsel %vm14045_vm2, %v1064_v48, %v1121_v36 }
 0x1bd   : > { %8256 = vmatmul.msk.bf16.gmra.mxu3 %vm13860_vm10, %v3146_v16  ;;  %v9375_v58 = vld [vmem:[#allocation1] sm:$0xf]  ;;  %14038 = vst [vmem:[#allocation115_spill] sm:$0xff] %v9421_v38  ;;  %v1811_v16 = vshll.u32 %v9417_v28, 16  ;;  %v9433_v37 = vsel %vm14040_vm9, %v1060_v49, %v1120_v40  ;;  %v1821_v49 = vshrl.u32 %v9448_v54, 16  ;;  %vm14052_vm9 = vmmov %vm14045_vm2 }
 0x1be   : > { %2905 = vst [vmem:[#allocation1] ss:$9 sm:$0xff] %v9372_v0  ;;  %v1818_v20 = vshll.u32 %v9433_v37, 16 }
 0x1bf   : > { %v9430_v46 = vsel %vm8578_vm4, %v1806_v6, %v1811_v16  ;;  %14041 = vst [vmem:[#allocation117_spill] sm:$0xff] %v9433_v37  ;;  %v1826_v6 = vshll.u32 %v9441_v39, 16  ;;  %v1326_v16 = vsel %vm1135_vm12, %v1064_v48, %v1121_v36  ;;  %v1066_v37 = vld [vmem:[#allocation2 + $0xb0] sm:$0x1] }
 0x1c0   : > { %14039 = vst [vmem:[#allocation116_spill] sm:$0xff] %v9430_v46  ;;  %v9445_v62 = vsel %vm8578_vm4, %v1814_v33, %v1818_v20  ;;  %v9456_v40 = vrot.slane %v1326_v16, 2  ;;  %v1829_v20 = vshrl.u32 %v9441_v39, 16  ;;  %v14078_v39 = vld [vmem:[#allocation41_spill] sm:$0xff] }
 0x1c1   : > { %14044 = vst [vmem:[#allocation119_spill] sm:$0xff] %v9445_v62  ;;  %v9460_v23 = vsel %vm8578_vm4, %v1821_v49, %v1826_v6 }
 0x1c2   : > { %14046 = vst [vmem:[#allocation120_spill] sm:$0xff] %v9448_v54  ;;  %v1837_v49 = vshrl.u32 %v9456_v40, 16  ;;  %v14080_v54 = vld [vmem:[#allocation42_spill] sm:$0xff] }
 0x1c3   : > { %14047 = vst [vmem:[#allocation121_spill] sm:$0xff] %v9456_v40 }
 0x1c4   : > { %14048 = vst [vmem:[#allocation122_spill] sm:$0xff] %v9460_v23 }
 0x1c5   : > { %v9387_v53 = vld [vmem:[#allocation1] sm:$0xf] }
 0x1c6   : > { %2909 = vst [vmem:[#allocation1] ss:$9 sm:$0xff] %v9382_v22 }
 0x1cd   : > { %v9399_v7 = vld [vmem:[#allocation1] sm:$0xf] }
 0x1ce   : > { %2913 = vst [vmem:[#allocation1] ss:$9 sm:$0xff] %v9397_v19 }
 0x1d5   : > { %v9411_v52 = vld [vmem:[#allocation1] sm:$0xf] }
 0x1d6   : > { %2917 = vst [vmem:[#allocation1] ss:$9 sm:$0xff] %v9409_v55  ;;  %v1065_v55 = vld [vmem:[#allocation2 + $0xac] sm:$0xf] }
 0x1dd   : > { %v9423_v34 = vld [vmem:[#allocation1] sm:$0xf] }
 0x1de   : > { %2921 = vst [vmem:[#allocation1] ss:$9 sm:$0xff] %v9421_v38 }
 0x1e5   : > { %v9435_v44 = vld [vmem:[#allocation1] sm:$0xf] }
 0x1e6   : > { %2925 = vst [vmem:[#allocation1] ss:$9 sm:$0xff] %v9430_v46  ;;  %v1329_v46 = vsel %vm1139_vm13, %v1064_v48, %v1121_v36 }
 0x1e7   : > { %v9468_v38 = vrot.slane %v1329_v46, 3 }
 0x1e9   : > { %14049 = vst [vmem:[#allocation123_spill] sm:$0xff] %v9468_v38  ;;  %v1842_v6 = vshll.u32 %v9468_v38, 16  ;;  %v1845_v36 = vshrl.u32 %v9468_v38, 16  ;;  %v14074_v38 = vld [vmem:[#allocation36_spill] sm:$0xff] }
 0x1eb   : > { %v9481_v22 = vsel %vm8578_vm4, %v1837_v49, %v1842_v6 }
 0x1ec   : > { %14051 = vst [vmem:[#allocation125_spill] sm:$0xff] %v9481_v22 }
 0x1ed   : > { %v9450_v42 = vld [vmem:[#allocation1] sm:$0xf] }
 0x1ee   : > { %2929 = vst [vmem:[#allocation1] ss:$9 sm:$0xff] %v9445_v62  ;;  %v1834_v62 = vshll.u32 %v9456_v40, 16  ;;  %v14076_v40 = vld [vmem:[#allocation38_spill] sm:$0xff] }
 0x1f0   : > { %v9472_v16 = vsel %vm8578_vm4, %v1829_v20, %v1834_v62 }
 0x1f1   : > { %14050 = vst [vmem:[#allocation124_spill] sm:$0xff] %v9472_v16 }
 0x1f5   : > { %v9462_v33 = vld [vmem:[#allocation1] sm:$0xf] }
 0x1f6   : > { %2933 = vst [vmem:[#allocation1] ss:$9 sm:$0xff] %v9460_v23  ;;  %v1122_v23 = vrot.slane %v1065_v55, 3 }
 0x1f8   : > { %v9484_v48 = vsel %vm14052_vm9, %v1065_v55, %v1122_v23  ;;  %v1335_v20 = vsel %vm14042_vm11, %v1065_v55, %v1122_v23  ;;  %v1338_v43 = vsel %vm1135_vm12, %v1065_v55, %v1122_v23  ;;  %vm14127_vm9 = vmmov %vm14042_vm11 }
 0x1f9   : > { %14053 = vst [vmem:[#allocation126_spill] sm:$0xff] %v9484_v48  ;;  %v1849_v62 = vshll.u32 %v9484_v48, 16  ;;  %v1852_v6 = vshrl.u32 %v9484_v48, 16  ;;  %v9504_v56 = vrot.slane %v1338_v43, 2  ;;  %v14072_v48 = vld [vmem:[#allocation33_spill] sm:$0xff]  ;;  %vm14128_vm11 = vmmov %vm14127_vm9 }
 0x1fb   : > { %v9496_v0 = vsel %vm8578_vm4, %v1845_v36, %v1849_v62  ;;  %14056 = vst [vmem:[#allocation129_spill] sm:$0xff] %v9504_v56  ;;  %v1865_v62 = vshll.u32 %v9504_v56, 16 }
 0x1fc   : > { %14055 = vst [vmem:[#allocation128_spill] sm:$0xff] %v9496_v0 }
 0x1fd   : > { %v9474_v19 = vld [vmem:[#allocation1] sm:$0xf] }
 0x1fe   : > { %2937 = vst [vmem:[#allocation1] ss:$9 sm:$0xff] %v9472_v16  ;;  %v9492_v16 = vrot.slane %v1335_v20, 1 }
 0x200   : > { %14054 = vst [vmem:[#allocation127_spill] sm:$0xff] %v9492_v16  ;;  %v1860_v36 = vshrl.u32 %v9492_v16, 16 }
 0x202   : > { %v9520_v43 = vsel %vm8578_vm4, %v1860_v36, %v1865_v62 }
 0x203   : > { %14059 = vst [vmem:[#allocation132_spill] sm:$0xff] %v9520_v43 }
 0x205   : > { %v9486_v46 = vld [vmem:[#allocation1] sm:$0xf] }
 0x206   : > { %2941 = vst [vmem:[#allocation1] ss:$9 sm:$0xff] %v9481_v22  ;;  %v1857_v22 = vshll.u32 %v9492_v16, 16  ;;  %v14070_v16 = vld [vmem:[#allocation35_spill] sm:$0xff] }
 0x208   : > { %v9508_v20 = vsel %vm8578_vm4, %v1852_v6, %v1857_v22  ;;  %v1868_v22 = vshrl.u32 %v9504_v56, 16  ;;  %v14069_v56 = vld [vmem:[#allocation29_spill] sm:$0xff] }
 0x209   : > { %14057 = vst [vmem:[#allocation130_spill] sm:$0xff] %v9508_v20 }
 0x20d   : > { %v9498_v49 = vld [vmem:[#allocation1] sm:$0xf] }
 0x20e   : > { %2945 = vst [vmem:[#allocation1] ss:$9 sm:$0xff] %v9496_v0  ;;  %v1341_v0 = vsel %vm1139_vm13, %v1065_v55, %v1122_v23 }
 0x20f   : > { %v9516_v50 = vrot.slane %v1341_v0, 3 }
 0x211   : > { %14058 = vst [vmem:[#allocation131_spill] sm:$0xff] %v9516_v50  ;;  %v1873_v6 = vshll.u32 %v9516_v50, 16  ;;  %v1876_v23 = vshrl.u32 %v9516_v50, 16  ;;  %v14068_v50 = vld [vmem:[#allocation27_spill] sm:$0xff] }
 0x213   : > { %v9529_v17 = vsel %vm8578_vm4, %v1868_v22, %v1873_v6 }
 0x214   : > { %14060 = vst [vmem:[#allocation133_spill] sm:$0xff] %v9529_v17 }
 0x215   : > { %v9510_v18 = vld [vmem:[#allocation1] sm:$0xf] }
 0x216   : > { %2949 = vst [vmem:[#allocation1] ss:$9 sm:$0xff] %v9508_v20  ;;  %v1123_v20 = vrot.slane %v1066_v37, 3 }
 0x218   : > { %v9532_v0 = vsel %vm14045_vm2, %v1066_v37, %v1123_v20  ;;  %vm14132_vm2 = vmmov %vm14127_vm9 }
 0x219   : > { %14061 = vst [vmem:[#allocation134_spill] sm:$0xff] %v9532_v0  ;;  %v1880_v36 = vshll.u32 %v9532_v0, 16  ;;  %v14063_v0 = vld [vmem:[#allocation17_spill] sm:$0xff] }
 0x21b   : > { %v9541_v62 = vsel %vm8578_vm4, %v1876_v23, %v1880_v36 }
 0x21c   : > { %14062 = vst [vmem:[#allocation135_spill] sm:$0xff] %v9541_v62 }
 0x21d   : > { %v9522_v32 = vld [vmem:[#allocation1] sm:$0xf] }
 0x21e   : > { %2953 = vst [vmem:[#allocation1] ss:$9 sm:$0xff] %v9520_v43 }
 0x225   : > { %v9534_v55 = vld [vmem:[#allocation1] sm:$0xf] }
 0x226   : > { %2957 = vst [vmem:[#allocation1] ss:$9 sm:$0xff] %v9529_v17 }
 0x22d   : > { %v9543_v43 = vld [vmem:[#allocation1] sm:$0xf] }
 0x22e   : > { %2961 = vst [vmem:[#allocation1] ss:$9 sm:$0xff] %v9541_v62 }
 0x235   : > { %v9546_v22 = vld [vmem:[#allocation1] sm:$0xf] }
 0x236   : > { %3194 = vst [vmem:[#allocation1] ss:$9 sm:$0xff] %v8569_v10 }
 0x23d   : > { %v9549_v37 = vld [vmem:[#allocation1] sm:$0xf] }
 0x23e   : > { %3197 = vst [vmem:[#allocation1] ss:$9 sm:$0xff] %v8566_v9  ;;  %v14067_v9 = vld [vmem:[#allocation25_spill] sm:$0xff] }
 0x245   : > { %v9552_v20 = vld [vmem:[#allocation1] sm:$0xf] }
 0x246   : > { %3200 = vst [vmem:[#allocation1] ss:$9 sm:$0xff] %v8576_v14  ;;  %v14066_v14 = vld [vmem:[#allocation24_spill] sm:$0xff] }
 0x24d   : > { %v9555_v6 = vld [vmem:[#allocation1] sm:$0xf] }
 0x24e   : > { %3203 = vst [vmem:[#allocation1] ss:$9 sm:$0xff] %v8587_v21  ;;  %v14065_v21 = vld [vmem:[#allocation21_spill] sm:$0xff] }
 0x255   : > { %v9558_v23 = vld [vmem:[#allocation1] sm:$0xf] }
 0x256   : > { %3206 = vst [vmem:[#allocation1] ss:$9 sm:$0xff] %v8598_v29  ;;  %v14064_v29 = vld [vmem:[#allocation19_spill] sm:$0xff] }
 0x25d   : > { %v9561_v36 = vld [vmem:[#allocation1] sm:$0xf] }
 0x25e   : > { %3209 = vst [vmem:[#allocation1] ss:$9 sm:$0xff] %v8605_v35 }
 0x265   : > { %v9564_v10 = vld [vmem:[#allocation1] sm:$0xf] }
 0x266   : > { %3212 = vst [vmem:[#allocation1] ss:$9 sm:$0xff] %v8614_v41 }
 0x26d   : > { %v9567_v62 = vld [vmem:[#allocation1] sm:$0xf] }
 0x26e   : > { %3215 = vst [vmem:[#allocation1] ss:$9 sm:$0xff] %v8623_v47 }
 0x275   : > { %v9570_v17 = vld [vmem:[#allocation1] sm:$0xf] }
 0x276   : > { %3218 = vst [vmem:[#allocation1] ss:$9 sm:$0xff] %v8646_v1 }
 0x27d   : > { %v9573_v15 = vld [vmem:[#allocation1] sm:$0xf] }
 0x27e   : > { %3221 = vst [vmem:[#allocation1] ss:$9 sm:$0xff] %v14063_v0 }
 0x285   : > { %v9576_v5 = vld [vmem:[#allocation1] sm:$0xf] }
 0x286   : > { %3224 = vst [vmem:[#allocation1] ss:$9 sm:$0xff] %v14064_v29 }
 0x28d   : > { %v9579_v35 = vld [vmem:[#allocation1] sm:$0xf] }
 0x28e   : > { %3227 = vst [vmem:[#allocation1] ss:$9 sm:$0xff] %v14065_v21 }
 0x295   : > { %v9582_v41 = vld [vmem:[#allocation1] sm:$0xf] }
 0x296   : > { %3230 = vst [vmem:[#allocation1] ss:$9 sm:$0xff] %v14066_v14 }
 0x29d   : > { %v9585_v47 = vld [vmem:[#allocation1] sm:$0xf] }
 0x29e   : > { %3233 = vst [vmem:[#allocation1] ss:$9 sm:$0xff] %v14067_v9 }
 0x2a5   : > { %v9588_v1 = vld [vmem:[#allocation1] sm:$0xf] }
 0x2a6   : > { %3236 = vst [vmem:[#allocation1] ss:$9 sm:$0xff] %v14068_v50 }
 0x2ad   : > { %v9591_v0 = vld [vmem:[#allocation1] sm:$0xf] }
 0x2ae   : > { %3239 = vst [vmem:[#allocation1] ss:$9 sm:$0xff] %v14069_v56 }
 0x2b5   : > { %v9594_v29 = vld [vmem:[#allocation1] sm:$0xf] }
 0x2b6   : > { %3242 = vst [vmem:[#allocation1] ss:$9 sm:$0xff] %v14070_v16 }
 0x2bd   : > { %v9597_v21 = vld [vmem:[#allocation1] sm:$0xf] }
 0x2be   : > { %14071 = vst [vmem:[#allocation136_spill] sm:$0xff] %v9597_v21  ;;  %v14082_v21 = vld [vmem:[#allocation44_spill] sm:$0xff] }
 0x2bf   : > { %3245 = vst [vmem:[#allocation1] ss:$9 sm:$0xff] %v14072_v48 }
 0x2c6   : > { %v9600_v14 = vld [vmem:[#allocation1] sm:$0xf] }
 0x2c7   : > { %14073 = vst [vmem:[#allocation137_spill] sm:$0xff] %v9600_v14  ;;  %v14084_v14 = vld [vmem:[#allocation46_spill] sm:$0xff] }
 0x2c8   : > { %3248 = vst [vmem:[#allocation1] ss:$9 sm:$0xff] %v14074_v38 }
 0x2cf   : > { %v9603_v9 = vld [vmem:[#allocation1] sm:$0xf] }
 0x2d0   : > { %14075 = vst [vmem:[#allocation138_spill] sm:$0xff] %v9603_v9  ;;  %v14086_v9 = vld [vmem:[#allocation52_spill] sm:$0xff] }
 0x2d1   : > { %3251 = vst [vmem:[#allocation1] ss:$9 sm:$0xff] %v14076_v40 }
 0x2d8   : > { %v9606_v50 = vld [vmem:[#allocation1] sm:$0xf] }
 0x2d9   : > { %14077 = vst [vmem:[#allocation139_spill] sm:$0xff] %v9606_v50  ;;  %v14088_v50 = vld [vmem:[#allocation50_spill] sm:$0xff] }
 0x2da   : > { %3254 = vst [vmem:[#allocation1] ss:$9 sm:$0xff] %v14078_v39 }
 0x2e1   : > { %v9609_v56 = vld [vmem:[#allocation1] sm:$0xf] }
 0x2e2   : > { %14079 = vst [vmem:[#allocation140_spill] sm:$0xff] %v9609_v56  ;;  %v14090_v56 = vld [vmem:[#allocation53_spill] sm:$0xff] }
 0x2e3   : > { %3257 = vst [vmem:[#allocation1] ss:$9 sm:$0xff] %v14080_v54 }
 0x2ea   : > { %v9612_v16 = vld [vmem:[#allocation1] sm:$0xf] }
 0x2eb   : > { %14081 = vst [vmem:[#allocation141_spill] sm:$0xff] %v9612_v16  ;;  %v14092_v16 = vld [vmem:[#allocation55_spill] sm:$0xff] }
 0x2ec   : > { %3260 = vst [vmem:[#allocation1] ss:$9 sm:$0xff] %v14082_v21 }
 0x2f3   : > { %v9615_v48 = vld [vmem:[#allocation1] sm:$0xf] }
 0x2f4   : > { %14083 = vst [vmem:[#allocation142_spill] sm:$0xff] %v9615_v48  ;;  %v14094_v48 = vld [vmem:[#allocation58_spill] sm:$0xff] }
 0x2f5   : > { %3263 = vst [vmem:[#allocation1] ss:$9 sm:$0xff] %v14084_v14 }
 0x2fc   : > { %v9618_v38 = vld [vmem:[#allocation1] sm:$0xf] }
 0x2fd   : > { %14085 = vst [vmem:[#allocation143_spill] sm:$0xff] %v9618_v38  ;;  %v14096_v38 = vld [vmem:[#allocation59_spill] sm:$0xff] }
 0x2fe   : > { %3266 = vst [vmem:[#allocation1] ss:$9 sm:$0xff] %v14086_v9 }
 0x305   : > { %v9621_v40 = vld [vmem:[#allocation1] sm:$0xf] }
 0x306   : > { %14087 = vst [vmem:[#allocation144_spill] sm:$0xff] %v9621_v40  ;;  %v14098_v40 = vld [vmem:[#allocation61_spill] sm:$0xff] }
 0x307   : > { %3269 = vst [vmem:[#allocation1] ss:$9 sm:$0xff] %v14088_v50 }
 0x30e   : > { %v9624_v39 = vld [vmem:[#allocation1] sm:$0xf] }
 0x30f   : > { %14089 = vst [vmem:[#allocation145_spill] sm:$0xff] %v9624_v39  ;;  %v14100_v39 = vld [vmem:[#allocation62_spill] sm:$0xff] }
 0x310   : > { %3272 = vst [vmem:[#allocation1] ss:$9 sm:$0xff] %v14090_v56 }
 0x317   : > { %v9627_v54 = vld [vmem:[#allocation1] sm:$0xf] }
 0x318   : > { %14091 = vst [vmem:[#allocation146_spill] sm:$0xff] %v9627_v54 }
 0x319   : > { %3275 = vst [vmem:[#allocation1] ss:$9 sm:$0xff] %v14092_v16 }
 0x320   : > { %v9630_v21 = vld [vmem:[#allocation1] sm:$0xf] }
 0x321   : > { %14093 = vst [vmem:[#allocation147_spill] sm:$0xff] %v9630_v21 }
 0x322   : > { %3278 = vst [vmem:[#allocation1] ss:$9 sm:$0xff] %v14094_v48 }
 0x329   : > { %v9633_v14 = vld [vmem:[#allocation1] sm:$0xf] }
 0x32a   : > { %14095 = vst [vmem:[#allocation148_spill] sm:$0xff] %v9633_v14 }
 0x32b   : > { %3281 = vst [vmem:[#allocation1] ss:$9 sm:$0xff] %v14096_v38 }
 0x332   : > { %v9636_v9 = vld [vmem:[#allocation1] sm:$0xf] }
 0x333   : > { %14097 = vst [vmem:[#allocation149_spill] sm:$0xff] %v9636_v9 }
 0x334   : > { %3284 = vst [vmem:[#allocation1] ss:$9 sm:$0xff] %v14098_v40 }
 0x33b   : > { %v9639_v50 = vld [vmem:[#allocation1] sm:$0xf] }
 0x33c   : > { %14099 = vst [vmem:[#allocation150_spill] sm:$0xff] %v9639_v50 }
 0x33d   : > { %3287 = vst [vmem:[#allocation1] ss:$9 sm:$0xff] %v14100_v39 }
 0x344   : > { %v9642_v56 = vld [vmem:[#allocation1] sm:$0xf] }
 0x345   : > { %14101 = vst [vmem:[#allocation151_spill] sm:$0xff] %v9642_v56 }
 0x346   : > { %3290 = vst [vmem:[#allocation1] ss:$9 sm:$0xff] %v8950_v63 }
 0x34d   : > { %v9645_v54 = vld [vmem:[#allocation1] sm:$0xf] }
 0x34e   : > { %14102 = vst [vmem:[#allocation152_spill] sm:$0xff] %v9645_v54 }
 0x34f   : > { %3293 = vst [vmem:[#allocation1] ss:$9 sm:$0xff] %v8952_v3 }
 0x356   : > { %v9648_v21 = vld [vmem:[#allocation1] sm:$0xf] }
 0x357   : > { %14103 = vst [vmem:[#allocation153_spill] sm:$0xff] %v9648_v21 }
 0x358   : > { %3296 = vst [vmem:[#allocation1] ss:$9 sm:$0xff] %v9058_v45 }
 0x35f   : > { %v9651_v14 = vld [vmem:[#allocation1] sm:$0xf] }
 0x360   : > { %14104 = vst [vmem:[#allocation154_spill] sm:$0xff] %v9651_v14 }
 0x361   : > { %3299 = vst [vmem:[#allocation1] ss:$9 sm:$0xff] %v9093_v25 }
 0x368   : > { %v9654_v9 = vld [vmem:[#allocation1] sm:$0xf] }
 0x369   : > { %14105 = vst [vmem:[#allocation155_spill] sm:$0xff] %v9654_v9 }
 0x36a   : > { %3302 = vst [vmem:[#allocation1] ss:$9 sm:$0xff] %v9110_v51 }
 0x371   : > { %v9657_v50 = vld [vmem:[#allocation1] sm:$0xf] }
 0x372   : > { %14106 = vst [vmem:[#allocation156_spill] sm:$0xff] %v9657_v50 }
 0x373   : > { %3305 = vst [vmem:[#allocation1] ss:$9 sm:$0xff] %v9118_v4 }
 0x37a   : > { %v9660_v63 = vld [vmem:[#allocation1] sm:$0xf] }
 0x37b   : > { %14107 = vst [vmem:[#allocation157_spill] sm:$0xff] %v9660_v63 }
 0x37c   : > { %3308 = vst [vmem:[#allocation1] ss:$9 sm:$0xff] %v9130_v8 }
 0x383   : > { %v9663_v54 = vld [vmem:[#allocation1] sm:$0xf] }
 0x384   : > { %14108 = vst [vmem:[#allocation158_spill] sm:$0xff] %v9663_v54 }
 0x385   : > { %3311 = vst [vmem:[#allocation1] ss:$9 sm:$0xff] %v9142_v11 }
 0x38c   : > { %v9666_v21 = vld [vmem:[#allocation1] sm:$0xf] }
 0x38d   : > { %14109 = vst [vmem:[#allocation159_spill] sm:$0xff] %v9666_v21  ;;  %v14115_v21 = vld [vmem:[#allocation93_spill] sm:$0xff] }
 0x38e   : > { %3314 = vst [vmem:[#allocation1] ss:$9 sm:$0xff] %v9173_v31 }
 0x395   : > { %v9669_v14 = vld [vmem:[#allocation1] sm:$0xf] }
 0x396   : > { %14110 = vst [vmem:[#allocation160_spill] sm:$0xff] %v9669_v14  ;;  %v14117_v14 = vld [vmem:[#allocation95_spill] sm:$0xff] }
 0x397   : > { %3317 = vst [vmem:[#allocation1] ss:$9 sm:$0xff] %v9166_v59 }
 0x39e   : > { %v9672_v9 = vld [vmem:[#allocation1] sm:$0xf] }
 0x39f   : > { %14111 = vst [vmem:[#allocation161_spill] sm:$0xff] %v9672_v9  ;;  %v14119_v9 = vld [vmem:[#allocation97_spill] sm:$0xff] }
 0x3a0   : > { %3320 = vst [vmem:[#allocation1] ss:$9 sm:$0xff] %v9181_v13 }
 0x3a7   : > { %v9675_v50 = vld [vmem:[#allocation1] sm:$0xf] }
 0x3a8   : > { %14112 = vst [vmem:[#allocation162_spill] sm:$0xff] %v9675_v50 }
 0x3a9   : > { %3323 = vst [vmem:[#allocation1] ss:$9 sm:$0xff] %v9196_v61 }
 0x3b0   : > { %v9678_v63 = vld [vmem:[#allocation1] sm:$0xf] }
 0x3b1   : > { %14113 = vst [vmem:[#allocation163_spill] sm:$0xff] %v9678_v63 }
 0x3b2   : > { %3326 = vst [vmem:[#allocation1] ss:$9 sm:$0xff] %v9217_v2 }
 0x3b9   : > { %v9681_v54 = vld [vmem:[#allocation1] sm:$0xf] }
 0x3ba   : > { %14114 = vst [vmem:[#allocation164_spill] sm:$0xff] %v9681_v54 }
 0x3bb   : > { %3329 = vst [vmem:[#allocation1] ss:$9 sm:$0xff] %v14115_v21 }
 0x3c2   : > { %v9684_v31 = vld [vmem:[#allocation1] sm:$0xf] }
 0x3c3   : > { %14116 = vst [vmem:[#allocation165_spill] sm:$0xff] %v9684_v31 }
 0x3c4   : > { %3332 = vst [vmem:[#allocation1] ss:$9 sm:$0xff] %v14117_v14 }
 0x3cb   : > { %v9687_v56 = vld [vmem:[#allocation1] sm:$0xf] }
 0x3cc   : > { %14118 = vst [vmem:[#allocation166_spill] sm:$0xff] %v9687_v56 }
 0x3cd   : > { %3335 = vst [vmem:[#allocation1] ss:$9 sm:$0xff] %v14119_v9 }
 0x3d4   : > { %v9690_v13 = vld [vmem:[#allocation1] sm:$0xf] }
 0x3d5   : > { %14120 = vst [vmem:[#allocation167_spill] sm:$0xff] %v9690_v13  ;;  %v3389_v13 = vunpack.c.l.b16 %v9558_v23  ;;  %v3394_v23 = vunpack.c.l.b16 %v9573_v15 }
 0x3d6   : > { %3338 = vst [vmem:[#allocation1] ss:$9 sm:$0xff] %v9332_v30 }
 0x3dd   : > { %v9693_v50 = vld [vmem:[#allocation1] sm:$0xf] }
 0x3de   : > { %14121 = vst [vmem:[#allocation168_spill] sm:$0xff] %v9693_v50  ;;  %v3387_v50 = vunpack.c.l.b16 %v9552_v20  ;;  %v3397_v20 = vunpack.c.l.b16 %v9582_v41 }
 0x3df   : > { %3341 = vst [vmem:[#allocation1] ss:$9 sm:$0xff] %v9318_v24 }
 0x3e6   : > { %v9696_v63 = vld [vmem:[#allocation1] sm:$0xf] }
 0x3e7   : > { %14122 = vst [vmem:[#allocation169_spill] sm:$0xff] %v9696_v63  ;;  %v3388_v63 = vunpack.c.l.b16 %v9555_v6  ;;  %v3393_v6 = vunpack.c.l.b16 %v9570_v17  ;;  %v3468_v17 = vrot.slane %v3397_v20, 5  ;;  %v3015_v20 = vunpack.c.l.b16 %v9411_v52 }
 0x3e8   : > { %3344 = vst [vmem:[#allocation1] ss:$9 sm:$0xff] %v9351_v26  ;;  %v3454_v26 = vrot.slane %v3389_v13, 5  ;;  %v3019_v52 = vunpack.c.l.b16 %v9462_v33 }
 0x3ef   : > { %v9699_v54 = vld [vmem:[#allocation1] sm:$0xf] }
 0x3f0   : > { %14123 = vst [vmem:[#allocation170_spill] sm:$0xff] %v9699_v54  ;;  %v3386_v54 = vunpack.c.l.b16 %v9549_v37  ;;  %v3399_v37 = vunpack.c.l.b16 %v9588_v1 }
 0x3f1   : > { %3347 = vst [vmem:[#allocation1] ss:$9 sm:$0xff] %v9368_v12  ;;  %v3450_v12 = vrot.slane %v3387_v50, 7 }
 0x3f2   : > { %v3472_v21 = vrot.slane %v3399_v37, 3  ;;  %v3022_v37 = vunpack.c.l.b16 %v9498_v49 }
 0x3f3   : > { %v3451_v41 = vsel %vm14127_vm9, %v3450_v12, %v3386_v54  ;;  %vm14133_vm9 = vmmov %vm14132_vm2 }
 0x3f8   : > { %v9702_v31 = vld [vmem:[#allocation1] sm:$0xf] }
 0x3f9   : > { %14124 = vst [vmem:[#allocation171_spill] sm:$0xff] %v9702_v31  ;;  %v3390_v31 = vunpack.c.l.b16 %v9561_v36  ;;  %v3400_v36 = vunpack.c.l.b16 %v9591_v0 }
 0x3fa   : > { %3350 = vst [vmem:[#allocation1] ss:$9 sm:$0xff] %v9385_v57  ;;  %v3391_v57 = vunpack.c.l.b16 %v9564_v10  ;;  %v3452_v10 = vrot.slane %v3388_v63, 6  ;;  %v3462_v63 = vrot.slane %v3393_v6, 1  ;;  %v3016_v6 = vunpack.c.l.b16 %v9423_v34 }
 0x3fb   : > { %v3020_v34 = vunpack.c.l.b16 %v9474_v19  ;;  %v8262_v19 = vld [vmem:[%s13451_s5 + $0x4] sm:$0x3] }
 0x3fc   : > { %v3458_v24 = vrot.slane %v3391_v57, 3  ;;  %v3453_v15 = vsel %vm1135_vm12, %v3452_v10, %v3451_v41  ;;  %v3024_v10 = vunpack.c.l.b16 %v9522_v32  ;;  %v3122_v49 = vrot.slane %v3016_v6, 4  ;;  %v14131_v32 = vld [vmem:[#allocation120_spill] sm:$0xff] }
 0x3fd   : > { %v3455_v50 = vsel %vm1139_vm13, %v3454_v26, %v3453_v15  ;;  %v3014_v26 = vunpack.c.l.b16 %v9399_v7  ;;  %v3021_v7 = vunpack.c.l.b16 %v9486_v46  ;;  %v3026_v46 = vunpack.c.l.b16 %v9543_v43 }
 0x3fe   : > { %v3136_v43 = vrot.slane %v3024_v10, 4 }
 0x401   : > { %v9705_v56 = vld [vmem:[#allocation1] sm:$0xf] }
 0x402   : > { %14125 = vst [vmem:[#allocation172_spill] sm:$0xff] %v9705_v56  ;;  %v3392_v56 = vunpack.c.l.b16 %v9567_v62  ;;  %v3401_v62 = vunpack.c.l.b16 %v9594_v29 }
 0x403   : > { %3353 = vst [vmem:[#allocation1] ss:$9 sm:$0xff] %v9393_v27  ;;  %v3395_v27 = vunpack.c.l.b16 %v9576_v5  ;;  %v3456_v5 = vrot.slane %v3390_v31, 4  ;;  %v3474_v31 = vrot.slane %v3400_v36, 2 }
 0x404   : > { %v3476_v12 = vrot.slane %v3401_v62, 1  ;;  %v3025_v62 = vunpack.c.l.b16 %v9534_v55  ;;  %v3130_v55 = vrot.slane %v3021_v7, 7 }
 0x405   : > { %v3457_v13 = vsel %vm3035_vm0, %v3456_v5, %v3455_v50  ;;  %v3118_v5 = vrot.slane %v3014_v26, 6  ;;  %v3128_v50 = vrot.slane %v3019_v52, 1 }
 0x406   : > { %v3459_v57 = vsel %vm3038_vm1, %v3458_v24, %v3457_v13  ;;  %v3017_v24 = vunpack.c.l.b16 %v9435_v44 }
 0x408   : > { %v3124_v41 = vrot.slane %v3017_v24, 3 }
 0x40a   : > { %v9708_v30 = vld [vmem:[#allocation1] sm:$0xf] }
 0x40b   : > { %14126 = vst [vmem:[#allocation173_spill] sm:$0xff] %v9708_v30  ;;  %v3396_v30 = vunpack.c.l.b16 %v9579_v35  ;;  %v3464_v35 = vrot.slane %v3395_v27, 7 }
 0x40c   : > { %3356 = vst [vmem:[#allocation1] ss:$9 sm:$0xff] %v9405_v60  ;;  %v3398_v60 = vunpack.c.l.b16 %v9585_v47  ;;  %v3460_v47 = vrot.slane %v3392_v56, 2  ;;  %v3012_v56 = vunpack.c.l.b16 %v9375_v58 }
 0x40d   : > { %v3466_v9 = vrot.slane %v3396_v30, 6  ;;  %v3465_v1 = vsel %vm14128_vm11, %v3464_v35, %v3394_v23  ;;  %vm14134_vm11 = vcmask 1041408  }
 0x40e   : > { %v3470_v14 = vrot.slane %v3398_v60, 4  ;;  %v3013_v60 = vunpack.c.l.b16 %v9387_v53 }
 0x40f   : > { %v3467_v29 = vsel %vm1135_vm12, %v3466_v9, %v3465_v1  ;;  %v3461_v9 = vsel %vm3041_vm5, %v3460_v47, %v3459_v57 }
 0x410   : > { %v3469_v30 = vsel %vm1139_vm13, %v3468_v17, %v3467_v29  ;;  %v3463_v23 = vsel %vm3044_vm7, %v3462_v63, %v3461_v9  ;;  %v3116_v44 = vrot.slane %v3013_v60, 7  ;;  %v3132_v17 = vrot.slane %v3022_v37, 6  ;;  %v14140_v37 = vld [vmem:[#allocation123_spill] sm:$0xff] }
 0x411   : > { %v3471_v27 = vsel %vm3035_vm0, %v3470_v14, %v3469_v30  ;;  %v3018_v14 = vunpack.c.l.b16 %v9450_v42  ;;  %v3120_v42 = vrot.slane %v3015_v20, 5  ;;  %v3131_v63 = vsel %vm14133_vm9, %v3130_v55, %v3020_v34  ;;  %v14144_v34 = vld [vmem:[#allocation127_spill] sm:$0xff]  ;;  %v14153_v55 = vld [vmem:[#allocation12_spill] sm:$0xff]  ;;  %vm14171_vm9 = vmmov %vm14132_vm2 }
 0x412   : > { %v3473_v54 = vsel %vm3038_vm1, %v3472_v21, %v3471_v27  ;;  %v3023_v21 = vunpack.c.l.b16 %v9510_v18  ;;  %v3027_v18 = vunpack.c.l.b16 %v9546_v22  ;;  %v3117_v33 = vsel %vm14132_vm2, %v3116_v44, %v3012_v56 }
 0x413   : > { %v9730_v0 = vld [vmem:[#allocation1] sm:$0xf]  ;;  %v3475_v58 = vsel %vm3041_vm5, %v3474_v31, %v3473_v54  ;;  %v3119_v47 = vsel %vm1135_vm12, %v3118_v5, %v3117_v33  ;;  %v3126_v1 = vrot.slane %v3018_v14, 2  ;;  %v3138_v29 = vrot.slane %v3025_v62, 3  ;;  %v14146_v62 = vld [vmem:[#allocation129_spill] sm:$0xff]  ;;  %v14148_v5 = vld [vmem:[#allocation131_spill] sm:$0xff] }
 0x414   : > { %14129 = vst [vmem:[#allocation174_spill] sm:$0xff] %v9730_v0  ;;  %v3477_v53 = vsel %vm3044_vm7, %v3476_v12, %v3475_v58  ;;  %v3134_v15 = vrot.slane %v3023_v21, 5  ;;  %v3121_v22 = vsel %vm1139_vm13, %v3120_v42, %v3119_v47  ;;  %v3997_v31 = vsel %vm14134_vm11, %v8262_v19, 0  ;;  %v14152_v19 = vld [vmem:[#allocation11_spill] sm:$0xff] }
 0x415   : > { %3359 = vst [vmem:[#allocation1] ss:$9 sm:$0xff] %v9417_v28  ;;  %v3562_v36 = vpack.c.b16 %v3477_v53, %v3463_v23  ;;  %v3123_v13 = vsel %vm3035_vm0, %v3122_v49, %v3121_v22  ;;  %v3133_v30 = vsel %vm1135_vm12, %v3132_v17, %v3131_v63  ;;  %v3140_v12 = vrot.slane %v3026_v46, 2  ;;  %4006 = vmatpush.bf16.msra.mxu0 %v3997_v31  ;;  %v14136_v23 = vld [vmem:[#allocation118_spill] sm:$0xff]  ;;  %v14138_v53 = vld [vmem:[#allocation121_spill] sm:$0xff]  ;;  %v14150_v46 = vld [vmem:[#allocation8_spill] sm:$0xff] }
 0x416   : > { %8361 = vmatpush.bf16.msra.mxu2 %v3997_v31  ;;  %v3125_v56 = vsel %vm3038_vm1, %v3124_v41, %v3123_v13  ;;  %v3135_v57 = vsel %vm1139_vm13, %v3134_v15, %v3133_v30  ;;  %v3142_v27 = vrot.slane %v3027_v18, 1  ;;  %v14151_v49 = vld [vmem:[#allocation9_spill] sm:$0xff]  ;;  %v14157_v63 = vld [vmem:[#allocation16_spill] sm:$0xff]  ;;  %v14159_v30 = vld [vmem:[#allocation19_spill] sm:$0xff] }
 0x417   : > { %8258 = vmatmul.msk.bf16.vlgmr.msrb.gmra.mxu0 %vm13860_vm10, %v3562_v36  ;;  %v3127_v60 = vsel %vm3041_vm5, %v3126_v1, %v3125_v56  ;;  %v3137_v26 = vsel %vm3035_vm0, %v3136_v43, %v3135_v57  ;;  %v14142_v36 = vld [vmem:[#allocation126_spill] sm:$0xff]  ;;  %v14154_v15 = vld [vmem:[#allocation13_spill] sm:$0xff]  ;;  %v14156_v43 = vld [vmem:[#allocation15_spill] sm:$0xff] }
 0x418   : > { %v3129_v9 = vsel %vm3044_vm7, %v3128_v50, %v3127_v60  ;;  %v3139_v54 = vsel %vm3038_vm1, %v3138_v29, %v3137_v26  ;;  %v14155_v1 = vld [vmem:[#allocation14_spill] sm:$0xff]  ;;  %v14158_v31 = vld [vmem:[#allocation17_spill] sm:$0xff] }
 0x419   : > { %v3141_v6 = vsel %vm3041_vm5, %v3140_v12, %v3139_v54  ;;  %v14160_v56 = vld [vmem:[#allocation21_spill] sm:$0xff]  ;;  %v14163_v54 = vld [vmem:[#allocation27_spill] sm:$0xff] }
 0x41a   : > { %v3143_v58 = vsel %vm3044_vm7, %v3142_v27, %v3141_v6  ;;  %v14161_v27 = vld [vmem:[#allocation24_spill] sm:$0xff]  ;;  %v14162_v26 = vld [vmem:[#allocation25_spill] sm:$0xff] }
 0x41b   : > { %v3147_v24 = vpack.c.b16 %v3143_v58, %v3129_v9  ;;  %v14164_v58 = vld [vmem:[#allocation29_spill] sm:$0xff] }
 0x41c   : > { %v9758_v35 = vld [vmem:[#allocation1] sm:$0xf] }
 0x41d   : > { %14130 = vst [vmem:[#allocation175_spill] sm:$0xff] %v9758_v35  ;;  %8257 = vmatmul.msk.bf16.gmra.mxu3 %vm13860_vm10, %v3147_v24 }
 0x41e   : > { %3362 = vst [vmem:[#allocation1] ss:$9 sm:$0xff] %v14131_v32  ;;  %v14169_v32 = vld [vmem:[#allocation41_spill] sm:$0xff] }
 0x425   : > { %v9780_v20 = vld [vmem:[#allocation1] sm:$0xf] }
 0x426   : > { %14135 = vst [vmem:[#allocation176_spill] sm:$0xff] %v9780_v20 }
 0x427   : > { %3365 = vst [vmem:[#allocation1] ss:$9 sm:$0xff] %v14136_v23 }
 0x42e   : > { %v9786_v14 = vld [vmem:[#allocation1] sm:$0xf] }
 0x42f   : > { %14137 = vst [vmem:[#allocation177_spill] sm:$0xff] %v9786_v14 }
 0x430   : > { %3368 = vst [vmem:[#allocation1] ss:$9 sm:$0xff] %v14138_v53 }
 0x437   : > { %v9789_v7 = vld [vmem:[#allocation1] sm:$0xf] }
 0x438   : > { %14139 = vst [vmem:[#allocation178_spill] sm:$0xff] %v9789_v7 }
 0x439   : > { %3371 = vst [vmem:[#allocation1] ss:$9 sm:$0xff] %v14140_v37 }
 0x440   : > { %v9792_v21 = vld [vmem:[#allocation1] sm:$0xf] }
 0x441   : > { %14141 = vst [vmem:[#allocation179_spill] sm:$0xff] %v9792_v21 }
 0x442   : > { %3374 = vst [vmem:[#allocation1] ss:$9 sm:$0xff] %v14142_v36 }
 0x449   : > { %v9795_v52 = vld [vmem:[#allocation1] sm:$0xf] }
 0x44a   : > { %14143 = vst [vmem:[#allocation180_spill] sm:$0xff] %v9795_v52 }
 0x44b   : > { %3377 = vst [vmem:[#allocation1] ss:$9 sm:$0xff] %v14144_v34 }
 0x452   : > { %v9798_v10 = vld [vmem:[#allocation1] sm:$0xf] }
 0x453   : > { %14145 = vst [vmem:[#allocation181_spill] sm:$0xff] %v9798_v10 }
 0x454   : > { %3380 = vst [vmem:[#allocation1] ss:$9 sm:$0xff] %v14146_v62 }
 0x45b   : > { %v9801_v44 = vld [vmem:[#allocation1] sm:$0xf] }
 0x45c   : > { %14147 = vst [vmem:[#allocation182_spill] sm:$0xff] %v9801_v44 }
 0x45d   : > { %3383 = vst [vmem:[#allocation1] ss:$9 sm:$0xff] %v14148_v5 }
 0x464   : > { %v9804_v42 = vld [vmem:[#allocation1] sm:$0xf] }
 0x465   : > { %14149 = vst [vmem:[#allocation183_spill] sm:$0xff] %v9804_v42 }
 0x466   : > { %3612 = vst [vmem:[#allocation1] ss:$9 sm:$0xff] %v14150_v46  ;;  %v14165_v46 = vld [vmem:[#allocation32_spill] sm:$0xff] }
 0x46d   : > { %v9807_v18 = vld [vmem:[#allocation1] sm:$0xf] }
 0x46e   : > { %3615 = vst [vmem:[#allocation1] ss:$9 sm:$0xff] %v14151_v49 }
 0x475   : > { %v3616_v41 = vld [vmem:[#allocation1] sm:$0xf] }
 0x476   : > { %3618 = vst [vmem:[#allocation1] ss:$9 sm:$0xff] %v14152_v19  ;;  %v14166_v19 = vld [vmem:[#allocation33_spill] sm:$0xff] }
 0x47d   : > { %v3619_v33 = vld [vmem:[#allocation1] sm:$0xf] }
 0x47e   : > { %3621 = vst [vmem:[#allocation1] ss:$9 sm:$0xff] %v14153_v55 }
 0x485   : > { %v3622_v17 = vld [vmem:[#allocation1] sm:$0xf] }
 0x486   : > { %3624 = vst [vmem:[#allocation1] ss:$9 sm:$0xff] %v14154_v15  ;;  %v14167_v15 = vld [vmem:[#allocation36_spill] sm:$0xff] }
 0x48d   : > { %v3625_v47 = vld [vmem:[#allocation1] sm:$0xf] }
 0x48e   : > { %3627 = vst [vmem:[#allocation1] ss:$9 sm:$0xff] %v14155_v1 }
 0x495   : > { %v3628_v50 = vld [vmem:[#allocation1] sm:$0xf] }
 0x496   : > { %3630 = vst [vmem:[#allocation1] ss:$9 sm:$0xff] %v14156_v43  ;;  %v14168_v43 = vld [vmem:[#allocation38_spill] sm:$0xff] }
 0x49d   : > { %v3631_v22 = vld [vmem:[#allocation1] sm:$0xf] }
 0x49e   : > { %3633 = vst [vmem:[#allocation1] ss:$9 sm:$0xff] %v14157_v63 }
 0x4a5   : > { %v3634_v29 = vld [vmem:[#allocation1] sm:$0xf] }
 0x4a6   : > { %3636 = vst [vmem:[#allocation1] ss:$9 sm:$0xff] %v14158_v31  ;;  %v3811_v31 = vunpack.c.l.b16 %v3634_v29  ;;  %v8267_v29 = vld [vmem:[%s13451_s5 + $0x6] sm:$0x3] }
 0x4ad   : > { %v3637_v13 = vld [vmem:[#allocation1] sm:$0xf] }
 0x4ae   : > { %3639 = vst [vmem:[#allocation1] ss:$9 sm:$0xff] %v14159_v30  ;;  %v3809_v30 = vunpack.c.l.b16 %v3628_v50  ;;  %v3812_v42 = vunpack.c.l.b16 %v3637_v13  ;;  %v3880_v50 = vrot.slane %v3811_v31, 1 }
 0x4b5   : > { %v3640_v12 = vld [vmem:[#allocation1] sm:$0xf] }
 0x4b6   : > { %3642 = vst [vmem:[#allocation1] ss:$9 sm:$0xff] %v14160_v56  ;;  %v3808_v56 = vunpack.c.l.b16 %v3625_v47  ;;  %v3813_v44 = vunpack.c.l.b16 %v3640_v12 }
 0x4bd   : > { %v3643_v57 = vld [vmem:[#allocation1] sm:$0xf] }
 0x4be   : > { %3645 = vst [vmem:[#allocation1] ss:$9 sm:$0xff] %v14161_v27  ;;  %v3807_v27 = vunpack.c.l.b16 %v3622_v17  ;;  %v3876_v17 = vrot.slane %v3809_v30, 3 }
 0x4c5   : > { %v3646_v60 = vld [vmem:[#allocation1] sm:$0xf] }
 0x4c6   : > { %3648 = vst [vmem:[#allocation1] ss:$9 sm:$0xff] %v14162_v26  ;;  %v3806_v26 = vunpack.c.l.b16 %v3619_v33  ;;  %v3815_v10 = vunpack.c.l.b16 %v3646_v60  ;;  %v3874_v33 = vrot.slane %v3808_v56, 4 }
 0x4cd   : > { %v3649_v9 = vld [vmem:[#allocation1] sm:$0xf] }
 0x4ce   : > { %3651 = vst [vmem:[#allocation1] ss:$9 sm:$0xff] %v14163_v54  ;;  %v3816_v20 = vunpack.c.l.b16 %v3649_v9  ;;  %v308_v9 = vld [vmem:[%s8466_s14 + $0x8] sm:$0xff] }
 0x4d0   : > { %v3888_v60 = vrot.slane %v3816_v20, 4  ;;  %v4423_v20 = vsel %vm14134_vm11, %v8267_v29, 0 }
 0x4d1   : > { %4432 = vmatpush.bf16.msrb.mxu3 %v4423_v20 }
 0x4d5   : > { %v3652_v6 = vld [vmem:[#allocation1] sm:$0xf] }
 0x4d6   : > { %3654 = vst [vmem:[#allocation1] ss:$9 sm:$0xff] %v14164_v58  ;;  %v3804_v58 = vunpack.c.l.b16 %v9807_v18  ;;  %v3817_v52 = vunpack.c.l.b16 %v3652_v6  ;;  %v3870_v18 = vrot.slane %v3806_v26, 6  ;;  %v307_v26 = vld [vmem:[%s8466_s14] sm:$0xff] }
 0x4d7   : > { %v311_v6 = vld [vmem:[%s8466_s14 + $0x20] sm:$0xff] }
 0x4d8   : > { %v3890_v31 = vrot.slane %v3817_v52, 3 }
 0x4dd   : > { %v3655_v24 = vld [vmem:[#allocation1] sm:$0xf] }
 0x4de   : > { %3657 = vst [vmem:[#allocation1] ss:$9 sm:$0xff] %v14165_v46  ;;  %v3805_v46 = vunpack.c.l.b16 %v3616_v41  ;;  %v3872_v41 = vrot.slane %v3807_v27, 5  ;;  %v456_v27 = vld [vmem:[#allocation2 + $0xc] sm:$0x1] }
 0x4e0   : > { %v3868_v7 = vrot.slane %v3805_v46, 7  ;;  %v312_v46 = vld [vmem:[%s8466_s14 + $0x28] sm:$0xff] }
 0x4e2   : > { %v3869_v13 = vsel %vm14132_vm2, %v3868_v7, %v3804_v58  ;;  %vm14182_vm2 = vcmask 27648  }
 0x4e3   : > { %v3871_v56 = vsel %vm1135_vm12, %v3870_v18, %v3869_v13  ;;  %vm14184_vm11 = vmmov %vm14182_vm2 }
 0x4e4   : > { %v3873_v7 = vsel %vm1139_vm13, %v3872_v41, %v3871_v56  ;;  %v457_v41 = vsel %vm13951_vm6, 0, %v456_v27 }
 0x4e5   : > { %v3658_v49 = vld [vmem:[#allocation1] sm:$0xf]  ;;  %458 = vst [vmem:[#allocation2 + $0xc] sm:$0x1] %v457_v41 }
 0x4e6   : > { %3660 = vst [vmem:[#allocation1] ss:$9 sm:$0xff] %v14166_v19  ;;  %v14170_v19 = vld [vmem:[#allocation42_spill] sm:$0xff]  ;;  %v3819_v21 = vunpack.c.l.b16 %v3658_v49 }
 0x4e7   : > { %v315_v49 = vld [vmem:[%s8466_s14 + $0x40] sm:$0xff] }
 0x4ed   : > { %v9825_v55 = vld [vmem:[#allocation1] sm:$0xf] }
 0x4ee   : > { %3663 = vst [vmem:[#allocation1] ss:$9 sm:$0xff] %v14167_v15  ;;  %v3810_v15 = vunpack.c.l.b16 %v3631_v22  ;;  %v3882_v22 = vrot.slane %v3813_v44, 7 }
 0x4f0   : > { %v3878_v47 = vrot.slane %v3810_v15, 2  ;;  %v3883_v30 = vsel %vm14171_vm9, %v3882_v22, %v3812_v42  ;;  %v14173_v15 = vld [vmem:[#allocation44_spill] sm:$0xff]  ;;  %v3875_v42 = vsel %vm3035_vm0, %v3874_v33, %v3873_v7  ;;  %vm14183_vm9 = vmmov %vm14182_vm2 }
 0x4f1   : > { %v3877_v22 = vsel %vm3038_vm1, %v3876_v17, %v3875_v42 }
 0x4f5   : > { %v9828_v1 = vld [vmem:[#allocation1] sm:$0xf] }
 0x4f6   : > { %3666 = vst [vmem:[#allocation1] ss:$9 sm:$0xff] %v14168_v43  ;;  %v3814_v43 = vunpack.c.l.b16 %v3643_v57  ;;  %v3886_v57 = vrot.slane %v3815_v10, 5  ;;  %v3894_v10 = vrot.slane %v3819_v21, 1 }
 0x4f8   : > { %v3884_v12 = vrot.slane %v3814_v43, 6  ;;  %v9861_v43 = vld [vmem:[%s13447_s1] ss:$0 sm:$0xff] }
 0x4f9   : > { %v343_v18 = vmul.f32 %v9861_v43, %v307_v26  ;;  %v344_v33 = vmul.f32 %v9861_v43, %v308_v9  ;;  %v347_v13 = vmul.f32 %v9861_v43, %v311_v6  ;;  %v348_v56 = vmul.f32 %v9861_v43, %v312_v46 }
 0x4fa   : > { %v3885_v58 = vsel %vm1135_vm12, %v3884_v12, %v3883_v30  ;;  %v3879_v12 = vsel %vm3041_vm5, %v3878_v47, %v3877_v22  ;;  %v351_v26 = vmul.f32 %v9861_v43, %v315_v49  ;;  %v462_v47 = vld [vmem:[#allocation2 + $0x24] sm:$0x1]  ;;  %v468_v49 = vld [vmem:[#allocation2 + $0x3c] sm:$0x1] }
 0x4fb   : > { %v3887_v52 = vsel %vm1139_vm13, %v3886_v57, %v3885_v58  ;;  %v3881_v30 = vsel %vm3044_vm7, %v3880_v50, %v3879_v12 }
 0x4fc   : > { %v3889_v29 = vsel %vm3035_vm0, %v3888_v60, %v3887_v52  ;;  %v9880_v60 = vld [vmem:[%s13448_s2] ss:$0 sm:$0xff] }
 0x4fd   : > { %v9831_v63 = vld [vmem:[#allocation1] sm:$0xf]  ;;  %v3891_v57 = vsel %vm3038_vm1, %v3890_v31, %v3889_v29  ;;  %v379_v9 = vadd.f32 %v9880_v60, %v343_v18  ;;  %v380_v6 = vadd.f32 %v9880_v60, %v344_v33  ;;  %v383_v7 = vadd.f32 %v9880_v60, %v347_v13 }
 0x4fe   : > { %3669 = vst [vmem:[#allocation1] ss:$9 sm:$0xff] %v14169_v32  ;;  %v3818_v32 = vunpack.c.l.b16 %v3655_v24  ;;  %v384_v50 = vadd.f32 %v9880_v60, %v348_v56  ;;  %v463_v18 = vsel %vm13951_vm6, 0, %v462_v47  ;;  %v14176_v33 = vld [vmem:[#allocation46_spill] sm:$0xff]  ;;  %v469_v13 = vsel %vm13951_vm6, 0, %v468_v49 }
 0x4ff   : > { %v411_v46 = vmax.f32 %v379_v9, 0.0  ;;  %v412_v42 = vmax.f32 %v380_v6, 0.0  ;;  %v415_v52 = vmax.f32 %v383_v7, 0.0  ;;  %464 = vst [vmem:[#allocation2 + $0x24] sm:$0x1] %v463_v18 }
 0x500   : > { %v3892_v44 = vrot.slane %v3818_v32, 2  ;;  %v316_v32 = vld [vmem:[%s8466_s14 + $0x48] sm:$0xff]  ;;  %470 = vst [vmem:[#allocation2 + $0x3c] sm:$0x1] %v469_v13 }
 0x501   : > { %v352_v17 = vmul.f32 %v9861_v43, %v316_v32  ;;  %v416_v32 = vmax.f32 %v384_v50, 0.0  ;;  %v554_v29 = vpack.c.bf16 %v411_v46, %v411_v46  ;;  %v555_v12 = vpack.c.bf16 %v412_v42, %v412_v42 }
 0x502   : > { %v3893_v27 = vsel %vm3041_vm5, %v3892_v44, %v3891_v57  ;;  %v387_v44 = vadd.f32 %v9880_v60, %v351_v26  ;;  %v558_v57 = vpack.c.bf16 %v415_v52, %v415_v52 }
 0x503   : > { %v3895_v31 = vsel %vm3044_vm7, %v3894_v10, %v3893_v27  ;;  %v388_v20 = vadd.f32 %v9880_v60, %v352_v17  ;;  %v559_v56 = vpack.c.bf16 %v416_v32, %v416_v32  ;;  %v589_v27 = vshrl.u32 %v554_v29, 16 }
 0x504   : > { %v3980_v58 = vpack.c.b16 %v3895_v31, %v3881_v30  ;;  %v419_v41 = vmax.f32 %v387_v44, 0.0  ;;  %v592_v17 = vshll.u32 %v554_v29, 16  ;;  %v597_v9 = vshrl.u32 %v555_v12, 16 }
 0x505   : > { %v9834_v54 = vld [vmem:[#allocation1] sm:$0xf]  ;;  %v420_v22 = vmax.f32 %v388_v20, 0.0  ;;  %v600_v47 = vshll.u32 %v555_v12, 16  ;;  %v623_v31 = vshrl.u32 %v558_v57, 16  ;;  %v626_v6 = vshll.u32 %v558_v57, 16 }
 0x506   : > { %3672 = vst [vmem:[#allocation1] ss:$9 sm:$0xff] %v14170_v19  ;;  %8263 = vmatmul.msk.bf16.vlgmr.msra.gmra.mxu0 %vm13860_vm10, %v3980_v58  ;;  %v562_v26 = vpack.c.bf16 %v419_v41, %v419_v41  ;;  %v591_v7 = vrot.slane %v589_v27, 7  ;;  %v631_v50 = vshrl.u32 %v559_v56, 16  ;;  %v634_v58 = vshll.u32 %v559_v56, 16 }
 0x507   : > { %v563_v30 = vpack.c.bf16 %v420_v22, %v420_v22  ;;  %v9897_v20 = vrot.slane %v597_v9, 7  ;;  %v625_v46 = vrot.slane %v623_v31, 7  ;;  %v910_v22 = vld [vmem:[#allocation2 + $0xc] sm:$0xf]  ;;  %v924_v27 = vld [vmem:[#allocation2 + $0x24] sm:$0xf] }
 0x508   : > { %v657_v44 = vshrl.u32 %v562_v26, 16  ;;  %v660_v49 = vshll.u32 %v562_v26, 16  ;;  %v594_v52 = vor.u32 %v592_v17, %v591_v7  ;;  %v595_v32 = vrot.slane %v591_v7, 4  ;;  %v14179_v17 = vld [vmem:[#allocation49_spill] sm:$0xff] }
 0x509   : > { %v665_v42 = vshrl.u32 %v563_v30, 16  ;;  %v9899_v18 = vrot.slane %v631_v50, 7  ;;  %v602_v29 = vor.u32 %v600_v47, %v9897_v20  ;;  %v628_v13 = vor.u32 %v626_v6, %v625_v46 }
 0x50a   : > { %v659_v41 = vrot.slane %v657_v44, 7  ;;  %v629_v12 = vrot.slane %v625_v46, 4  ;;  %v911_v47 = vsel %vm13955_vm8, %v594_v52, %v910_v22  ;;  %v938_v46 = vld [vmem:[#allocation2 + $0x3c] sm:$0xf] }
 0x50b   : > { %v9902_v57 = vrot.slane %v665_v42, 7  ;;  %v636_v9 = vor.u32 %v634_v58, %v9899_v18  ;;  %v603_v50 = vsel %vm13979_vm15, %v595_v32, %v602_v29  ;;  %v925_v6 = vsel %vm13955_vm8, %v628_v13, %v924_v27  ;;  %912 = vst [vmem:[#allocation2 + $0xc] sm:$0xf] %v911_v47  ;;  %v14186_v32 = vld [vmem:[#allocation50_spill] sm:$0xff] }
 0x50c   : > { %v662_v31 = vor.u32 %v660_v49, %v659_v41  ;;  %v663_v26 = vrot.slane %v659_v41, 4  ;;  %913 = vst.msk [vmem:[#allocation2 + $0x10] sm:$0xf] %vm14182_vm2, %v603_v50  ;;  %v14188_v41 = vld [vmem:[#allocation53_spill] sm:$0xff]  ;;  %vm14242_vm2 = vcmask 1040384  }
 0x50d   : > { %v9847_v24 = vld [vmem:[#allocation1] sm:$0xf]  ;;  %14177 = vst [vmem:[#allocation11_spill] sm:$0xff] %v9902_v57  ;;  %v637_v42 = vsel %vm13979_vm15, %v629_v12, %v636_v9 }
 0x50e   : > { %14172 = vst [vmem:[#allocation8_spill] sm:$0xff] %v9847_v24  ;;  %v506_v24 = vld [vmem:[#allocation2 + $0x14] sm:$0x1] }
 0x50f   : > { %3675 = vst [vmem:[#allocation1] ss:$9 sm:$0xff] %v14173_v15  ;;  %v14232_v15 = vld [vmem:[#allocation117_spill] sm:$0xff] }
 0x510   : > { %926 = vst [vmem:[#allocation2 + $0x24] sm:$0xf] %v925_v6 }
 0x511   : > { %927 = vst.msk [vmem:[#allocation2 + $0x28] sm:$0xf] %vm14183_vm9, %v637_v42  ;;  %vm14244_vm9 = vcmask 1041409  }
 0x516   : > { %v9891_v10 = vld [vmem:[#allocation1] sm:$0xf] }
 0x517   : > { %14175 = vst [vmem:[#allocation9_spill] sm:$0xff] %v9891_v10 }
 0x518   : > { %3678 = vst [vmem:[#allocation1] ss:$9 sm:$0xff] %v14176_v33  ;;  %v668_v33 = vshll.u32 %v563_v30, 16  ;;  %v939_v30 = vsel %vm13955_vm8, %v662_v31, %v938_v46  ;;  %v14195_v31 = vld [vmem:[#allocation64_spill] sm:$0xff] }
 0x519   : > { %940 = vst [vmem:[#allocation2 + $0x3c] sm:$0xf] %v939_v30 }
 0x51a   : > { %v670_v58 = vor.u32 %v668_v33, %v9902_v57 }
 0x51c   : > { %v671_v49 = vsel %vm13979_vm15, %v663_v26, %v670_v58 }
 0x51d   : > { %941 = vst.msk [vmem:[#allocation2 + $0x40] sm:$0xf] %vm14184_vm11, %v671_v49  ;;  %v14204_v49 = vld [vmem:[#allocation83_spill] sm:$0xff]  ;;  %vm14248_vm11 = vmmov %vm14242_vm2 }
 0x51f   : > { %v9904_v56 = vld [vmem:[#allocation1] sm:$0xf] }
 0x520   : > { %14178 = vst [vmem:[#allocation12_spill] sm:$0xff] %v9904_v56 }
 0x521   : > { %3681 = vst [vmem:[#allocation1] ss:$9 sm:$0xff] %v14179_v17 }
 0x528   : > { %v9924_v52 = vld [vmem:[#allocation1] sm:$0xf] }
 0x529   : > { %14185 = vst [vmem:[#allocation13_spill] sm:$0xff] %v9924_v52 }
 0x52a   : > { %3684 = vst [vmem:[#allocation1] ss:$9 sm:$0xff] %v14186_v32  ;;  %v14229_v32 = vld [vmem:[#allocation112_spill] sm:$0xff] }
 0x531   : > { %v9927_v33 = vld [vmem:[#allocation1] sm:$0xf] }
 0x532   : > { %14187 = vst [vmem:[#allocation14_spill] sm:$0xff] %v9927_v33 }
 0x533   : > { %3687 = vst [vmem:[#allocation1] ss:$9 sm:$0xff] %v14188_v41  ;;  %v14227_v41 = vld [vmem:[#allocation110_spill] sm:$0xff] }
 0x53a   : > { %v9930_v22 = vld [vmem:[#allocation1] sm:$0xf] }
 0x53b   : > { %14189 = vst [vmem:[#allocation15_spill] sm:$0xff] %v9930_v22 }
 0x53c   : > { %3690 = vst [vmem:[#allocation1] ss:$9 sm:$0xff] %v14092_v16  ;;  %v14225_v16 = vld [vmem:[#allocation109_spill] sm:$0xff] }
 0x543   : > { %v9933_v29 = vld [vmem:[#allocation1] sm:$0xf] }
 0x544   : > { %14190 = vst [vmem:[#allocation16_spill] sm:$0xff] %v9933_v29 }
 0x545   : > { %3693 = vst [vmem:[#allocation1] ss:$9 sm:$0xff] %v14094_v48  ;;  %v14223_v48 = vld [vmem:[#allocation106_spill] sm:$0xff] }
 0x54c   : > { %v9936_v13 = vld [vmem:[#allocation1] sm:$0xf] }
 0x54d   : > { %14191 = vst [vmem:[#allocation4_spill] sm:$0xff] %v9936_v13 }
 0x54e   : > { %3696 = vst [vmem:[#allocation1] ss:$9 sm:$0xff] %v14096_v38  ;;  %v14221_v38 = vld [vmem:[#allocation104_spill] sm:$0xff] }
 0x555   : > { %v9939_v12 = vld [vmem:[#allocation1] sm:$0xf] }
 0x556   : > { %14192 = vst [vmem:[#allocation6_spill] sm:$0xff] %v9939_v12 }
 0x557   : > { %3699 = vst [vmem:[#allocation1] ss:$9 sm:$0xff] %v14098_v40  ;;  %v14219_v40 = vld [vmem:[#allocation102_spill] sm:$0xff] }
 0x55e   : > { %v9942_v27 = vld [vmem:[#allocation1] sm:$0xf] }
 0x55f   : > { %14193 = vst [vmem:[#allocation7_spill] sm:$0xff] %v9942_v27 }
 0x560   : > { %3702 = vst [vmem:[#allocation1] ss:$9 sm:$0xff] %v14100_v39  ;;  %v14217_v39 = vld [vmem:[#allocation98_spill] sm:$0xff] }
 0x567   : > { %v9945_v9 = vld [vmem:[#allocation1] sm:$0xf] }
 0x568   : > { %14194 = vst [vmem:[#allocation184_spill] sm:$0xff] %v9945_v9 }
 0x569   : > { %3705 = vst [vmem:[#allocation1] ss:$9 sm:$0xff] %v14195_v31 }
 0x570   : > { %v9948_v26 = vld [vmem:[#allocation1] sm:$0xf] }
 0x571   : > { %14196 = vst [vmem:[#allocation185_spill] sm:$0xff] %v9948_v26 }
 0x572   : > { %3708 = vst [vmem:[#allocation1] ss:$9 sm:$0xff] %v8952_v3  ;;  %v14215_v3 = vld [vmem:[#allocation97_spill] sm:$0xff] }
 0x579   : > { %v9951_v50 = vld [vmem:[#allocation1] sm:$0xf] }
 0x57a   : > { %14197 = vst [vmem:[#allocation186_spill] sm:$0xff] %v9951_v50 }
 0x57b   : > { %3711 = vst [vmem:[#allocation1] ss:$9 sm:$0xff] %v9058_v45  ;;  %v14213_v45 = vld [vmem:[#allocation95_spill] sm:$0xff] }
 0x582   : > { %v9954_v47 = vld [vmem:[#allocation1] sm:$0xf] }
 0x583   : > { %14198 = vst [vmem:[#allocation187_spill] sm:$0xff] %v9954_v47 }
 0x584   : > { %3714 = vst [vmem:[#allocation1] ss:$9 sm:$0xff] %v9093_v25  ;;  %v14211_v25 = vld [vmem:[#allocation93_spill] sm:$0xff] }
 0x58b   : > { %v9957_v6 = vld [vmem:[#allocation1] sm:$0xf] }
 0x58c   : > { %14199 = vst [vmem:[#allocation188_spill] sm:$0xff] %v9957_v6 }
 0x58d   : > { %3717 = vst [vmem:[#allocation1] ss:$9 sm:$0xff] %v9110_v51  ;;  %v14207_v51 = vld [vmem:[#allocation87_spill] sm:$0xff] }
 0x594   : > { %v9960_v46 = vld [vmem:[#allocation1] sm:$0xf] }
 0x595   : > { %14200 = vst [vmem:[#allocation189_spill] sm:$0xff] %v9960_v46 }
 0x596   : > { %3720 = vst [vmem:[#allocation1] ss:$9 sm:$0xff] %v9118_v4 }
 0x59d   : > { %v9963_v42 = vld [vmem:[#allocation1] sm:$0xf] }
 0x59e   : > { %14201 = vst [vmem:[#allocation190_spill] sm:$0xff] %v9963_v42 }
 0x59f   : > { %3723 = vst [vmem:[#allocation1] ss:$9 sm:$0xff] %v9130_v8 }
 0x5a6   : > { %v9966_v58 = vld [vmem:[#allocation1] sm:$0xf] }
 0x5a7   : > { %14202 = vst [vmem:[#allocation191_spill] sm:$0xff] %v9966_v58 }
 0x5a8   : > { %3726 = vst [vmem:[#allocation1] ss:$9 sm:$0xff] %v9142_v11 }
 0x5af   : > { %v9969_v30 = vld [vmem:[#allocation1] sm:$0xf] }
 0x5b0   : > { %14203 = vst [vmem:[#allocation192_spill] sm:$0xff] %v9969_v30  ;;  %v10115_v30 = vld [vmem:[#allocation2 + $0x3c] sm:$0xf] }
 0x5b1   : > { %3729 = vst [vmem:[#allocation1] ss:$9 sm:$0xff] %v14204_v49 }
 0x5b8   : > { %v9972_v31 = vld [vmem:[#allocation1] sm:$0xf] }
 0x5b9   : > { %14205 = vst [vmem:[#allocation193_spill] sm:$0xff] %v9972_v31 }
 0x5ba   : > { %3732 = vst [vmem:[#allocation1] ss:$9 sm:$0xff] %v9166_v59 }
 0x5c1   : > { %v9975_v17 = vld [vmem:[#allocation1] sm:$0xf] }
 0x5c2   : > { %14206 = vst [vmem:[#allocation194_spill] sm:$0xff] %v9975_v17  ;;  %v1032_v17 = vld [vmem:[#allocation2 + $0x28] sm:$0xf] }
 0x5c3   : > { %3735 = vst [vmem:[#allocation1] ss:$9 sm:$0xff] %v14207_v51 }
 0x5ca   : > { %v9978_v4 = vld [vmem:[#allocation1] sm:$0xf] }
 0x5cb   : > { %14208 = vst [vmem:[#allocation195_spill] sm:$0xff] %v9978_v4 }
 0x5cc   : > { %3738 = vst [vmem:[#allocation1] ss:$9 sm:$0xff] %v9196_v61 }
 0x5d3   : > { %v9981_v8 = vld [vmem:[#allocation1] sm:$0xf] }
 0x5d4   : > { %14209 = vst [vmem:[#allocation196_spill] sm:$0xff] %v9981_v8 }
 0x5d5   : > { %3741 = vst [vmem:[#allocation1] ss:$9 sm:$0xff] %v9217_v2 }
 0x5dc   : > { %v9984_v11 = vld [vmem:[#allocation1] sm:$0xf] }
 0x5dd   : > { %14210 = vst [vmem:[#allocation197_spill] sm:$0xff] %v9984_v11 }
 0x5de   : > { %3744 = vst [vmem:[#allocation1] ss:$9 sm:$0xff] %v14211_v25 }
 0x5e5   : > { %v9987_v49 = vld [vmem:[#allocation1] sm:$0xf] }
 0x5e6   : > { %14212 = vst [vmem:[#allocation198_spill] sm:$0xff] %v9987_v49 }
 0x5e7   : > { %3747 = vst [vmem:[#allocation1] ss:$9 sm:$0xff] %v14213_v45 }
 0x5ee   : > { %v9990_v59 = vld [vmem:[#allocation1] sm:$0xf] }
 0x5ef   : > { %14214 = vst [vmem:[#allocation199_spill] sm:$0xff] %v9990_v59 }
 0x5f0   : > { %3750 = vst [vmem:[#allocation1] ss:$9 sm:$0xff] %v14215_v3 }
 0x5f7   : > { %v9993_v51 = vld [vmem:[#allocation1] sm:$0xf] }
 0x5f8   : > { %14216 = vst [vmem:[#allocation200_spill] sm:$0xff] %v9993_v51 }
 0x5f9   : > { %3753 = vst [vmem:[#allocation1] ss:$9 sm:$0xff] %v14217_v39 }
 0x600   : > { %v9996_v61 = vld [vmem:[#allocation1] sm:$0xf] }
 0x601   : > { %14218 = vst [vmem:[#allocation201_spill] sm:$0xff] %v9996_v61 }
 0x602   : > { %3756 = vst [vmem:[#allocation1] ss:$9 sm:$0xff] %v14219_v40 }
 0x609   : > { %v9999_v2 = vld [vmem:[#allocation1] sm:$0xf] }
 0x60a   : > { %14220 = vst [vmem:[#allocation202_spill] sm:$0xff] %v9999_v2 }
 0x60b   : > { %3759 = vst [vmem:[#allocation1] ss:$9 sm:$0xff] %v14221_v38 }
 0x612   : > { %v10002_v25 = vld [vmem:[#allocation1] sm:$0xf] }
 0x613   : > { %14222 = vst [vmem:[#allocation203_spill] sm:$0xff] %v10002_v25 }
 0x614   : > { %3762 = vst [vmem:[#allocation1] ss:$9 sm:$0xff] %v14223_v48 }
 0x61b   : > { %v10005_v45 = vld [vmem:[#allocation1] sm:$0xf] }
 0x61c   : > { %14224 = vst [vmem:[#allocation204_spill] sm:$0xff] %v10005_v45 }
 0x61d   : > { %3765 = vst [vmem:[#allocation1] ss:$9 sm:$0xff] %v14225_v16 }
 0x624   : > { %v10008_v3 = vld [vmem:[#allocation1] sm:$0xf] }
 0x625   : > { %14226 = vst [vmem:[#allocation205_spill] sm:$0xff] %v10008_v3 }
 0x626   : > { %3768 = vst [vmem:[#allocation1] ss:$9 sm:$0xff] %v14227_v41 }
 0x62d   : > { %v10011_v39 = vld [vmem:[#allocation1] sm:$0xf] }
 0x62e   : > { %14228 = vst [vmem:[#allocation206_spill] sm:$0xff] %v10011_v39  ;;  %v1031_v39 = vld [vmem:[#allocation2 + $0x24] sm:$0xf] }
 0x62f   : > { %3771 = vst [vmem:[#allocation1] ss:$9 sm:$0xff] %v14229_v32 }
 0x636   : > { %v10014_v40 = vld [vmem:[#allocation1] sm:$0xf] }
 0x637   : > { %14230 = vst [vmem:[#allocation207_spill] sm:$0xff] %v10014_v40 }
 0x638   : > { %3774 = vst [vmem:[#allocation1] ss:$9 sm:$0xff] %v9417_v28 }
 0x63f   : > { %v10017_v38 = vld [vmem:[#allocation1] sm:$0xf] }
 0x640   : > { %14231 = vst [vmem:[#allocation208_spill] sm:$0xff] %v10017_v38 }
 0x641   : > { %3777 = vst [vmem:[#allocation1] ss:$9 sm:$0xff] %v14232_v15 }
 0x648   : > { %v10020_v48 = vld [vmem:[#allocation1] sm:$0xf] }
 0x649   : > { %14233 = vst [vmem:[#allocation209_spill] sm:$0xff] %v10020_v48 }
 0x64a   : > { %3780 = vst [vmem:[#allocation1] ss:$9 sm:$0xff] %v14136_v23 }
 0x651   : > { %v10023_v16 = vld [vmem:[#allocation1] sm:$0xf] }
 0x652   : > { %14234 = vst [vmem:[#allocation210_spill] sm:$0xff] %v10023_v16  ;;  %v1026_v16 = vld [vmem:[#allocation2 + $0x10] sm:$0xf] }
 0x653   : > { %3783 = vst [vmem:[#allocation1] ss:$9 sm:$0xff] %v14138_v53  ;;  %v1025_v53 = vld [vmem:[#allocation2 + $0xc] sm:$0xf] }
 0x654   : > { %v1969_v14 = vrot.slane %v1025_v53, 3 }
 0x65a   : > { %v10026_v41 = vld [vmem:[#allocation1] sm:$0xf] }
 0x65b   : > { %14235 = vst [vmem:[#allocation211_spill] sm:$0xff] %v10026_v41 }
 0x65c   : > { %3786 = vst [vmem:[#allocation1] ss:$9 sm:$0xff] %v14140_v37  ;;  %v14241_v37 = vld [vmem:[#allocation134_spill] sm:$0xff] }
 0x663   : > { %v10029_v32 = vld [vmem:[#allocation1] sm:$0xf] }
 0x664   : > { %14236 = vst [vmem:[#allocation212_spill] sm:$0xff] %v10029_v32 }
 0x665   : > { %3789 = vst [vmem:[#allocation1] ss:$9 sm:$0xff] %v14142_v36  ;;  %v10045_v36 = vsel %vm14242_vm2, %v1025_v53, %v1969_v14  ;;  %vm14250_vm2 = vmmov %vm14244_vm9 }
 0x66c   : > { %v10032_v28 = vld [vmem:[#allocation1] sm:$0xf] }
 0x66d   : > { %14237 = vst [vmem:[#allocation213_spill] sm:$0xff] %v10032_v28 }
 0x66e   : > { %3792 = vst [vmem:[#allocation1] ss:$9 sm:$0xff] %v14144_v34  ;;  %v1996_v34 = vsel %vm14244_vm9, %v1025_v53, %v1969_v14  ;;  %vm14254_vm9 = vmmov %vm14248_vm11 }
 0x675   : > { %v10035_v15 = vld [vmem:[#allocation1] sm:$0xf] }
 0x676   : > { %14238 = vst [vmem:[#allocation214_spill] sm:$0xff] %v10035_v15 }
 0x677   : > { %3795 = vst [vmem:[#allocation1] ss:$9 sm:$0xff] %v14146_v62  ;;  %v10051_v62 = vrot.slane %v1996_v34, 1  ;;  %v1970_v34 = vrot.slane %v1026_v16, 3 }
 0x679   : > { %14245 = vst [vmem:[#allocation218_spill] sm:$0xff] %v10051_v62  ;;  %v10069_v28 = vsel %vm14248_vm11, %v1026_v16, %v1970_v34  ;;  %v2014_v38 = vsel %vm1139_vm13, %v1026_v16, %v1970_v34  ;;  %vm14255_vm11 = vmmov %vm14250_vm2 }
 0x67a   : > { %14249 = vst [vmem:[#allocation221_spill] sm:$0xff] %v10069_v28  ;;  %v10085_v40 = vrot.slane %v2014_v38, 3 }
 0x67c   : > { %14253 = vst [vmem:[#allocation224_spill] sm:$0xff] %v10085_v40 }
 0x67e   : > { %v10038_v23 = vld [vmem:[#allocation1] sm:$0xf] }
 0x67f   : > { %14239 = vst [vmem:[#allocation215_spill] sm:$0xff] %v10038_v23 }
 0x680   : > { %3798 = vst [vmem:[#allocation1] ss:$9 sm:$0xff] %v14148_v5  ;;  %v1999_v5 = vsel %vm1135_vm12, %v1025_v53, %v1969_v14 }
 0x687   : > { %v10041_v19 = vld [vmem:[#allocation1] sm:$0xf] }
 0x688   : > { %14240 = vst [vmem:[#allocation216_spill] sm:$0xff] %v10041_v19  ;;  %v10057_v19 = vrot.slane %v1999_v5, 2  ;;  %v2008_v5 = vsel %vm14250_vm2, %v1026_v16, %v1970_v34  ;;  %vm14259_vm2 = vmmov %vm14254_vm9 }
 0x689   : > { %3801 = vst [vmem:[#allocation1] ss:$9 sm:$0xff] %v14241_v37  ;;  %v10075_v41 = vrot.slane %v2008_v5, 1  ;;  %v1972_v5 = vrot.slane %v1031_v39, 3 }
 0x68a   : > { %14246 = vst [vmem:[#allocation219_spill] sm:$0xff] %v10057_v19 }
 0x68b   : > { %14251 = vst [vmem:[#allocation222_spill] sm:$0xff] %v10075_v41  ;;  %v10089_v45 = vsel %vm14254_vm9, %v1031_v39, %v1972_v5  ;;  %v2026_v38 = vsel %vm1135_vm12, %v1031_v39, %v1972_v5  ;;  %v2029_v51 = vsel %vm1139_vm13, %v1031_v39, %v1972_v5  ;;  %vm14261_vm9 = vmmov %vm14255_vm11 }
 0x68c   : > { %v10105_v59 = vrot.slane %v2029_v51, 3 }
 0x68e   : > { %14258 = vst [vmem:[#allocation227_spill] sm:$0xff] %v10105_v59 }
 0x690   : > { %v10047_v35 = vld [vmem:[#allocation1] sm:$0xf] }
 0x691   : > { %14243 = vst [vmem:[#allocation217_spill] sm:$0xff] %v10047_v35  ;;  %v2002_v35 = vsel %vm1139_vm13, %v1025_v53, %v1969_v14 }
 0x692   : > { %4038 = vst [vmem:[#allocation1] ss:$9 sm:$0xff] %v10045_v36  ;;  %v10063_v23 = vrot.slane %v2002_v35, 3  ;;  %v2011_v35 = vsel %vm1135_vm12, %v1026_v16, %v1970_v34  ;;  %v10101_v16 = vrot.slane %v2026_v38, 2 }
 0x693   : > { %v10081_v53 = vrot.slane %v2011_v35, 2  ;;  %v2023_v35 = vsel %vm14255_vm11, %v1031_v39, %v1972_v5  ;;  %v10120_v39 = vrot.slane %v10115_v30, 3  ;;  %vm14264_vm11 = vmmov %vm14261_vm9 }
 0x694   : > { %14247 = vst [vmem:[#allocation220_spill] sm:$0xff] %v10063_v23  ;;  %v10095_v2 = vrot.slane %v2023_v35, 1  ;;  %v1973_v35 = vrot.slane %v1032_v17, 3 }
 0x695   : > { %14252 = vst [vmem:[#allocation223_spill] sm:$0xff] %v10081_v53  ;;  %v2050_v42 = vsel %vm14264_vm11, %v10115_v30, %v10120_v39  ;;  %v10133_v46 = vsel %vm14259_vm2, %v10115_v30, %v10120_v39  ;;  %v2053_v6 = vsel %vm1135_vm12, %v10115_v30, %v10120_v39  ;;  %vm14266_vm11 = vmmov %vm14261_vm9 }
 0x696   : > { %14256 = vst [vmem:[#allocation225_spill] sm:$0xff] %v10095_v2  ;;  %v10109_v11 = vsel %vm14259_vm2, %v1032_v17, %v1973_v35  ;;  %v2035_v38 = vsel %vm14261_vm9, %v1032_v17, %v1973_v35  ;;  %v2038_v51 = vsel %vm1135_vm12, %v1032_v17, %v1973_v35  ;;  %v2041_v58 = vsel %vm1139_vm13, %v1032_v17, %v1973_v35 }
 0x697   : > { %14257 = vst [vmem:[#allocation226_spill] sm:$0xff] %v10101_v16  ;;  %v10113_v4 = vrot.slane %v2035_v38, 1  ;;  %v10122_v5 = vrot.slane %v2038_v51, 2  ;;  %v10128_v38 = vrot.slane %v2041_v58, 3  ;;  %v10138_v51 = vrot.slane %v2050_v42, 1 }
 0x698   : > { %14260 = vst [vmem:[#allocation228_spill] sm:$0xff] %v10109_v11  ;;  %vm14267_vm2 = vcmask 1041408   ;;  %v10175_v56 = vrot.slane %v2053_v6, 2 }
 0x699   : > { %v10053_v0 = vld [vmem:[#allocation1] sm:$0xf]  ;;  %14262 = vst [vmem:[#allocation229_spill] sm:$0xff] %v10113_v4 }
 0x69a   : > { %4041 = vst [vmem:[#allocation1] ss:$9 sm:$0xff] %v10051_v62  ;;  %v4230_v50 = vunpack.c.l.b16 %v10053_v0 }
 0x69b   : > { %14263 = vst [vmem:[#allocation230_spill] sm:$0xff] %v10122_v5 }
 0x69c   : > { %14265 = vst [vmem:[#allocation231_spill] sm:$0xff] %v10128_v38 }
 0x6a1   : > { %v10059_v37 = vld [vmem:[#allocation1] sm:$0xf] }
 0x6a2   : > { %4044 = vst [vmem:[#allocation1] ss:$9 sm:$0xff] %v10057_v19  ;;  %v4231_v17 = vunpack.c.l.b16 %v10059_v37 }
 0x6a4   : > { %v4294_v37 = vrot.slane %v4231_v17, 7 }
 0x6a9   : > { %v10065_v15 = vld [vmem:[#allocation1] sm:$0xf] }
 0x6aa   : > { %4047 = vst [vmem:[#allocation1] ss:$9 sm:$0xff] %v10063_v23  ;;  %v4232_v35 = vunpack.c.l.b16 %v10065_v15 }
 0x6ac   : > { %v4296_v22 = vrot.slane %v4232_v35, 6  ;;  %v324_v35 = vld [vmem:[%s8466_s14 + $0x88] sm:$0xff] }
 0x6b1   : > { %v10071_v32 = vld [vmem:[#allocation1] sm:$0xf] }
 0x6b2   : > { %4050 = vst [vmem:[#allocation1] ss:$9 sm:$0xff] %v10069_v28  ;;  %v4233_v58 = vunpack.c.l.b16 %v10071_v32 }
 0x6b4   : > { %v4298_v0 = vrot.slane %v4233_v58, 5 }
 0x6b9   : > { %v10077_v14 = vld [vmem:[#allocation1] sm:$0xf] }
 0x6ba   : > { %4053 = vst [vmem:[#allocation1] ss:$9 sm:$0xff] %v10075_v41  ;;  %v4234_v57 = vunpack.c.l.b16 %v10077_v14 }
 0x6bc   : > { %v4300_v32 = vrot.slane %v4234_v57, 4 }
 0x6c1   : > { %v4054_v48 = vld [vmem:[#allocation1] sm:$0xf] }
 0x6c2   : > { %4056 = vst [vmem:[#allocation1] ss:$9 sm:$0xff] %v10081_v53  ;;  %v4235_v26 = vunpack.c.l.b16 %v4054_v48  ;;  %v4295_v48 = vsel %vm14261_vm9, %v4294_v37, %v4230_v50  ;;  %v331_v37 = vld [vmem:[%s8466_s14 + $0xc0] sm:$0xff]  ;;  %vm14271_vm9 = vcmask 27648  }
 0x6c4   : > { %v4302_v14 = vrot.slane %v4235_v26, 3  ;;  %v323_v26 = vld [vmem:[%s8466_s14 + $0x80] sm:$0xff] }
 0x6c9   : > { %v4057_v3 = vld [vmem:[#allocation1] sm:$0xf] }
 0x6ca   : > { %4059 = vst [vmem:[#allocation1] ss:$9 sm:$0xff] %v10085_v40  ;;  %v4236_v9 = vunpack.c.l.b16 %v4057_v3  ;;  %v8272_v3 = vld [vmem:[%s13451_s5 + $0x8] sm:$0x3] }
 0x6d1   : > { %v10091_v25 = vld [vmem:[#allocation1] sm:$0xf] }
 0x6d2   : > { %4062 = vst [vmem:[#allocation1] ss:$9 sm:$0xff] %v10089_v45  ;;  %v4237_v15 = vunpack.c.l.b16 %v10091_v25 }
 0x6d9   : > { %v10097_v61 = vld [vmem:[#allocation1] sm:$0xf] }
 0x6da   : > { %4065 = vst [vmem:[#allocation1] ss:$9 sm:$0xff] %v10095_v2  ;;  %v4238_v27 = vunpack.c.l.b16 %v10097_v61  ;;  %v319_v61 = vld [vmem:[%s8466_s14 + $0x60] sm:$0xff] }
 0x6e1   : > { %v4066_v34 = vld [vmem:[#allocation1] sm:$0xf] }
 0x6e2   : > { %4068 = vst [vmem:[#allocation1] ss:$9 sm:$0xff] %v10101_v16  ;;  %v4239_v33 = vunpack.c.l.b16 %v4066_v34  ;;  %v4297_v34 = vsel %vm1135_vm12, %v4296_v22, %v4295_v48  ;;  %v355_v22 = vmul.f32 %v9861_v43, %v319_v61  ;;  %v359_v61 = vmul.f32 %v9861_v43, %v323_v26 }
 0x6e3   : > { %v4299_v52 = vsel %vm1139_vm13, %v4298_v0, %v4297_v34  ;;  %v336_v34 = vld [vmem:[%s8466_s14 + $0xe8] sm:$0xff] }
 0x6e4   : > { %v372_v6 = vmul.f32 %v9861_v43, %v336_v34  ;;  %v498_v34 = vld [vmem:[#allocation2 + $0xb4] sm:$0x1] }
 0x6e9   : > { %v4069_v49 = vld [vmem:[#allocation1] sm:$0xf] }
 0x6ea   : > { %4071 = vst [vmem:[#allocation1] ss:$9 sm:$0xff] %v10105_v59  ;;  %v4240_v42 = vunpack.c.l.b16 %v4069_v49  ;;  %v320_v49 = vld [vmem:[%s8466_s14 + $0x68] sm:$0xff] }
 0x6eb   : > { %v356_v0 = vmul.f32 %v9861_v43, %v320_v49 }
 0x6f1   : > { %v4072_v8 = vld [vmem:[#allocation1] sm:$0xf] }
 0x6f2   : > { %4074 = vst [vmem:[#allocation1] ss:$9 sm:$0xff] %v10109_v11  ;;  %v4241_v12 = vunpack.c.l.b16 %v4072_v8  ;;  %v4304_v8 = vrot.slane %v4236_v9, 2  ;;  %v327_v9 = vld [vmem:[%s8466_s14 + $0xa0] sm:$0xff] }
 0x6f4   : > { %v4312_v17 = vrot.slane %v4241_v12, 5 }
 0x6f9   : > { %v4075_v31 = vld [vmem:[#allocation1] sm:$0xf] }
 0x6fa   : > { %4077 = vst [vmem:[#allocation1] ss:$9 sm:$0xff] %v10113_v4  ;;  %v4242_v13 = vunpack.c.l.b16 %v4075_v31  ;;  %v4308_v31 = vrot.slane %v4239_v33, 7  ;;  %v4913_v33 = vsel %vm14267_vm2, %v8272_v3, 0  ;;  %v332_v3 = vld [vmem:[%s8466_s14 + $0xc8] sm:$0xff]  ;;  %vm14275_vm2 = vmmov %vm14271_vm9 }
 0x6fb   : > { %4922 = vmatpush.bf16.msrb.mxu0 %v4913_v33  ;;  %v368_v26 = vmul.f32 %v9861_v43, %v332_v3  ;;  %v408_v3 = vadd.f32 %v9880_v60, %v372_v6 }
 0x6fc   : > { %v4314_v25 = vrot.slane %v4242_v13, 4  ;;  %v4309_v50 = vsel %vm14266_vm11, %v4308_v31, %v4238_v27  ;;  %v335_v31 = vld [vmem:[%s8466_s14 + $0xe0] sm:$0xff]  ;;  %vm14273_vm11 = vmmov %vm14271_vm9 }
 0x6fd   : > { %v440_v6 = vmax.f32 %v408_v3, 0.0 }
 0x701   : > { %v4078_v47 = vld [vmem:[#allocation1] sm:$0xf] }
 0x702   : > { %4080 = vst [vmem:[#allocation1] ss:$9 sm:$0xff] %v10122_v5  ;;  %v4243_v29 = vunpack.c.l.b16 %v4078_v47  ;;  %v4310_v47 = vrot.slane %v4240_v42, 6  ;;  %v328_v42 = vld [vmem:[%s8466_s14 + $0xa8] sm:$0xff] }
 0x704   : > { %v4316_v57 = vrot.slane %v4243_v29, 3  ;;  %v4301_v29 = vsel %vm3035_vm0, %v4300_v32, %v4299_v52  ;;  %v4311_v12 = vsel %vm1135_vm12, %v4310_v47, %v4309_v50  ;;  %v4306_v52 = vrot.slane %v4237_v15, 1 }
 0x705   : > { %v4303_v27 = vsel %vm3038_vm1, %v4302_v14, %v4301_v29  ;;  %v4313_v48 = vsel %vm1139_vm13, %v4312_v17, %v4311_v12  ;;  %v363_v47 = vmul.f32 %v9861_v43, %v327_v9  ;;  %v364_v14 = vmul.f32 %v9861_v43, %v328_v42  ;;  %v474_v42 = vld [vmem:[#allocation2 + $0x54] sm:$0x1] }
 0x706   : > { %v4315_v32 = vsel %vm3035_vm0, %v4314_v25, %v4313_v48  ;;  %v4305_v49 = vsel %vm3041_vm5, %v4304_v8, %v4303_v27  ;;  %v367_v17 = vmul.f32 %v9861_v43, %v331_v37  ;;  %v391_v15 = vadd.f32 %v9880_v60, %v355_v22  ;;  %v480_v37 = vld [vmem:[#allocation2 + $0x6c] sm:$0x1]  ;;  %v486_v27 = vld [vmem:[#allocation2 + $0x84] sm:$0x1] }
 0x707   : > { %v4317_v33 = vsel %vm3038_vm1, %v4316_v57, %v4315_v32  ;;  %v392_v25 = vadd.f32 %v9880_v60, %v356_v0  ;;  %v395_v9 = vadd.f32 %v9880_v60, %v359_v61  ;;  %v400_v29 = vadd.f32 %v9880_v60, %v364_v14 }
 0x708   : > { %v403_v57 = vadd.f32 %v9880_v60, %v367_v17  ;;  %v404_v12 = vadd.f32 %v9880_v60, %v368_v26  ;;  %v4307_v22 = vsel %vm3044_vm7, %v4306_v52, %v4305_v49 }
 0x709   : > { %v4081_v58 = vld [vmem:[#allocation1] sm:$0xf]  ;;  %v424_v32 = vmax.f32 %v392_v25, 0.0  ;;  %v432_v26 = vmax.f32 %v400_v29, 0.0 }
 0x70a   : > { %4083 = vst [vmem:[#allocation1] ss:$9 sm:$0xff] %v10128_v38  ;;  %v4244_v13 = vunpack.c.l.b16 %v4081_v58  ;;  %v360_v58 = vmul.f32 %v9861_v43, %v324_v35  ;;  %v371_v35 = vmul.f32 %v9861_v43, %v335_v31  ;;  %v492_v31 = vld [vmem:[#allocation2 + $0x9c] sm:$0x1]  ;;  %v435_v10 = vmax.f32 %v403_v57, 0.0 }
 0x70b   : > { %v436_v49 = vmax.f32 %v404_v12, 0.0  ;;  %v493_v25 = vsel %vm13951_vm6, 0, %v492_v31  ;;  %v567_v29 = vpack.c.bf16 %v424_v32, %v424_v32  ;;  %v575_v3 = vpack.c.bf16 %v432_v26, %v432_v26 }
 0x70c   : > { %v4318_v50 = vrot.slane %v4244_v13, 2  ;;  %v396_v8 = vadd.f32 %v9880_v60, %v360_v58  ;;  %v399_v13 = vadd.f32 %v9880_v60, %v363_v47  ;;  %v407_v48 = vadd.f32 %v9880_v60, %v371_v35  ;;  %494 = vst [vmem:[#allocation2 + $0x9c] sm:$0x1] %v493_v25 }
 0x70d   : > { %v423_v58 = vmax.f32 %v391_v15, 0.0  ;;  %v427_v47 = vmax.f32 %v395_v9, 0.0  ;;  %v481_v60 = vsel %vm13951_vm6, 0, %v480_v37  ;;  %v487_v15 = vsel %vm13951_vm6, 0, %v486_v27 }
 0x70e   : > { %v4319_v0 = vsel %vm3041_vm5, %v4318_v50, %v4317_v33  ;;  %v428_v14 = vmax.f32 %v396_v8, 0.0  ;;  %v431_v17 = vmax.f32 %v399_v13, 0.0  ;;  %v475_v50 = vsel %vm13951_vm6, 0, %v474_v42  ;;  %v512_v33 = vld [vmem:[#allocation2 + $0x2c] sm:$0x1] }
 0x70f   : > { %v439_v35 = vmax.f32 %v407_v48, 0.0  ;;  %476 = vst [vmem:[#allocation2 + $0x54] sm:$0x1] %v475_v50  ;;  %v499_v8 = vsel %vm13951_vm6, 0, %v498_v34  ;;  %v566_v13 = vpack.c.bf16 %v423_v58, %v423_v58  ;;  %v507_v42 = vsel %vm13975_vm14, 0, %v506_v24 }
 0x710   : > { %482 = vst [vmem:[#allocation2 + $0x6c] sm:$0x1] %v481_v60  ;;  %v570_v37 = vpack.c.bf16 %v427_v47, %v427_v47  ;;  %v513_v27 = vsel %vm13975_vm14, 0, %v512_v33  ;;  %v574_v48 = vpack.c.bf16 %v431_v17, %v431_v17  ;;  %v579_v34 = vpack.c.bf16 %v436_v49, %v436_v49 }
 0x711   : > { %v4084_v43 = vld [vmem:[#allocation1] sm:$0xf]  ;;  %488 = vst [vmem:[#allocation2 + $0x84] sm:$0x1] %v487_v15  ;;  %v604_v24 = vrot.slane %v9897_v20, 4  ;;  %v638_v58 = vrot.slane %v9899_v18, 4 }
 0x712   : > { %4086 = vst [vmem:[#allocation1] ss:$9 sm:$0xff] %v10133_v46  ;;  %v4245_v61 = vunpack.c.l.b16 %v4084_v43  ;;  %v571_v43 = vpack.c.bf16 %v428_v14, %v428_v14  ;;  %v691_v32 = vshrl.u32 %v566_v13, 16  ;;  %v699_v47 = vshrl.u32 %v567_v29, 16 }
 0x713   : > { %500 = vst [vmem:[#allocation2 + $0xb4] sm:$0x1] %v499_v8  ;;  %v702_v14 = vshll.u32 %v567_v29, 16  ;;  %v725_v17 = vshrl.u32 %v570_v37, 16  ;;  %v728_v60 = vshll.u32 %v570_v37, 16  ;;  %v759_v33 = vshrl.u32 %v574_v48, 16 }
 0x714   : > { %v4320_v52 = vrot.slane %v4245_v61, 1  ;;  %v10219_v61 = vpack.c.bf16 %v440_v6, %v440_v6  ;;  %508 = vst [vmem:[#allocation2 + $0x14] sm:$0x1] %v507_v42  ;;  %v733_v26 = vshrl.u32 %v571_v43, 16  ;;  %v693_v49 = vrot.slane %v691_v32, 7 }
 0x715   : > { %514 = vst [vmem:[#allocation2 + $0x2c] sm:$0x1] %v513_v27  ;;  %v10224_v50 = vrot.slane %v699_v47, 7  ;;  %v762_v6 = vshll.u32 %v574_v48, 16  ;;  %v767_v15 = vshrl.u32 %v575_v3, 16  ;;  %v770_v8 = vshll.u32 %v575_v3, 16 }
 0x716   : > { %v4321_v9 = vsel %vm3044_vm7, %v4320_v52, %v4319_v0  ;;  %v578_v0 = vpack.c.bf16 %v435_v10, %v435_v10  ;;  %v694_v10 = vshll.u32 %v566_v13, 16  ;;  %v736_v52 = vshll.u32 %v571_v43, 16  ;;  %v952_v47 = vld [vmem:[#allocation2 + $0x54] sm:$0xf] }
 0x717   : > { %v4406_v57 = vpack.c.b16 %v4321_v9, %v4307_v22  ;;  %v10217_v22 = vpack.c.bf16 %v439_v35, %v439_v35  ;;  %v727_v35 = vrot.slane %v725_v17, 7  ;;  %v10226_v20 = vrot.slane %v733_v26, 7  ;;  %v966_v26 = vld [vmem:[#allocation2 + $0x6c] sm:$0xf] }
 0x718   : > { %v697_v18 = vrot.slane %v693_v49, 4  ;;  %v704_v25 = vor.u32 %v702_v14, %v10224_v50  ;;  %v761_v9 = vrot.slane %v759_v33, 7  ;;  %v696_v13 = vor.u32 %v694_v10, %v693_v49 }
 0x719   : > { %v10214_v31 = vld [vmem:[#allocation1] sm:$0xf]  ;;  %8268 = vmatmul.msk.bf16.vlgmr.msrb.gmra.mxu3 %vm13860_vm10, %v4406_v57  ;;  %14269 = vst [vmem:[#allocation5_spill] sm:$0xff] %v10226_v20  ;;  %v731_v29 = vrot.slane %v727_v35, 4  ;;  %v738_v57 = vor.u32 %v736_v52, %v10226_v20  ;;  %v10230_v42 = vrot.slane %v767_v15, 7  ;;  %v730_v43 = vor.u32 %v728_v60, %v727_v35 }
 0x71a   : > { %4089 = vst [vmem:[#allocation1] ss:$9 sm:$0xff] %v10138_v51  ;;  %v705_v37 = vsel %vm13979_vm15, %v697_v18, %v704_v25  ;;  %v765_v27 = vrot.slane %v761_v9, 4  ;;  %v793_v32 = vshrl.u32 %v578_v0, 16  ;;  %v764_v17 = vor.u32 %v762_v6, %v761_v9  ;;  %v980_v52 = vld [vmem:[#allocation2 + $0x84] sm:$0xf] }
 0x71b   : > { %14270 = vst [vmem:[#allocation232_spill] sm:$0xff] %v10230_v42  ;;  %v739_v14 = vsel %vm13979_vm15, %v731_v29, %v738_v57  ;;  %v796_v3 = vshll.u32 %v578_v0, 16  ;;  %v801_v10 = vshrl.u32 %v579_v34, 16  ;;  %v804_v33 = vshll.u32 %v579_v34, 16  ;;  %v914_v25 = vld [vmem:[#allocation2 + $0x14] sm:$0x1] }
 0x71c   : > { %955 = vst.msk [vmem:[#allocation2 + $0x58] sm:$0xf] %vm14271_vm9, %v705_v37  ;;  %v795_v49 = vrot.slane %v793_v32, 7  ;;  %v827_v60 = vshrl.u32 %v10217_v22, 16  ;;  %v830_v35 = vshll.u32 %v10217_v22, 16  ;;  %v772_v15 = vor.u32 %v770_v8, %v10230_v42  ;;  %vm14276_vm9 = vmmov %vm14275_vm2 }
 0x71d   : > { %v10243_v18 = vrot.slane %v801_v10, 7  ;;  %v835_v6 = vshrl.u32 %v10219_v61, 16  ;;  %v838_v0 = vshll.u32 %v10219_v61, 16  ;;  %v915_v37 = vsel %vm13951_vm6, %v604_v24, %v914_v25  ;;  %v928_v34 = vld [vmem:[#allocation2 + $0x2c] sm:$0x1] }
 0x71e   : > { %v798_v9 = vor.u32 %v796_v3, %v795_v49  ;;  %v799_v29 = vrot.slane %v795_v49, 4  ;;  %v829_v57 = vrot.slane %v827_v60, 7  ;;  %969 = vst.msk [vmem:[#allocation2 + $0x70] sm:$0xf] %vm14273_vm11, %v739_v14  ;;  %v929_v8 = vsel %vm13951_vm6, %v638_v58, %v928_v34  ;;  %v994_v3 = vld [vmem:[#allocation2 + $0x9c] sm:$0xf]  ;;  %vm14277_vm11 = vmmov %vm14275_vm2 }
 0x71f   : > { %14272 = vst [vmem:[#allocation233_spill] sm:$0xff] %v10243_v18  ;;  %v806_v22 = vor.u32 %v804_v33, %v10243_v18  ;;  %v10251_v32 = vrot.slane %v835_v6, 7  ;;  %v953_v61 = vsel %vm13955_vm8, %v696_v13, %v952_v47  ;;  %v967_v24 = vsel %vm13955_vm8, %v730_v43, %v966_v26  ;;  %v1008_v58 = vld [vmem:[#allocation2 + $0xb4] sm:$0xf] }
 0x720   : > { %916 = vst [vmem:[#allocation2 + $0x14] sm:$0x1] %v915_v37  ;;  %v832_v10 = vor.u32 %v830_v35, %v829_v57  ;;  %v981_v14 = vsel %vm13955_vm8, %v764_v17, %v980_v52  ;;  %v773_v49 = vsel %vm13979_vm15, %v765_v27, %v772_v15  ;;  %v833_v33 = vrot.slane %v829_v57, 4 }
 0x721   : > { %v10234_v48 = vld [vmem:[#allocation1] sm:$0xf]  ;;  %14274 = vst [vmem:[#allocation234_spill] sm:$0xff] %v10251_v32  ;;  %v840_v60 = vor.u32 %v838_v0, %v10251_v32  ;;  %v2056_v13 = vsel %vm1139_vm13, %v10115_v30, %v10120_v39  ;;  %v995_v47 = vsel %vm13955_vm8, %v798_v9, %v994_v3  ;;  %v807_v43 = vsel %vm13979_vm15, %v799_v29, %v806_v22  ;;  %v1038_v39 = vld [vmem:[#allocation2 + $0x40] sm:$0xf] }
 0x722   : > { %4092 = vst [vmem:[#allocation1] ss:$9 sm:$0xff] %v10175_v56  ;;  %v1009_v27 = vsel %vm13955_vm8, %v832_v10, %v1008_v58  ;;  %v10274_v17 = vrot.slane %v2056_v13, 3  ;;  %v1976_v52 = vrot.slane %v1038_v39, 3  ;;  %vm14279_vm8 = vcmask 1041409  }
 0x723   : > { %930 = vst [vmem:[#allocation2 + $0x2c] sm:$0x1] %v929_v8  ;;  %v841_v26 = vsel %vm13979_vm15, %v833_v33, %v840_v60  ;;  %v1044_v13 = vld [vmem:[#allocation2 + $0x58] sm:$0xf] }
 0x724   : > { %954 = vst [vmem:[#allocation2 + $0x54] sm:$0xf] %v953_v61  ;;  %v2062_v7 = vsel %vm14279_vm8, %v1038_v39, %v1976_v52  ;;  %v2065_v0 = vsel %vm1135_vm12, %v1038_v39, %v1976_v52  ;;  %v2068_v29 = vsel %vm1139_vm13, %v1038_v39, %v1976_v52 }
 0x725   : > { %968 = vst [vmem:[#allocation2 + $0x6c] sm:$0xf] %v967_v24  ;;  %v10290_v15 = vrot.slane %v2062_v7, 1  ;;  %v10296_v25 = vrot.slane %v2065_v0, 2  ;;  %v10302_v57 = vrot.slane %v2068_v29, 3 }
 0x726   : > { %982 = vst [vmem:[#allocation2 + $0x84] sm:$0xf] %v981_v14 }
 0x727   : > { %983 = vst.msk [vmem:[#allocation2 + $0x88] sm:$0xf] %vm14275_vm2, %v773_v49  ;;  %vm14278_vm2 = vcmask 1040384  }
 0x728   : > { %996 = vst [vmem:[#allocation2 + $0x9c] sm:$0xf] %v995_v47  ;;  %v10284_v44 = vsel %vm14278_vm2, %v1038_v39, %v1976_v52  ;;  %vm14280_vm15 = vmmov %vm14278_vm2 }
 0x729   : > { %997 = vst.msk [vmem:[#allocation2 + $0xa0] sm:$0xf] %vm14276_vm9, %v807_v43  ;;  %v10279_v30 = vld [vmem:[#allocation1] sm:$0xf]  ;;  %vm14282_vm9 = vmmov %vm14279_vm8  ;;  %v1979_v43 = vrot.slane %v1044_v13, 3 }
 0x72a   : > { %1010 = vst [vmem:[#allocation2 + $0xb4] sm:$0xf] %v1009_v27 }
 0x72b   : > { %1011 = vst.msk [vmem:[#allocation2 + $0xb8] sm:$0xf] %vm14277_vm11, %v841_v26  ;;  %v1043_v37 = vld [vmem:[#allocation2 + $0x54] sm:$0xf]  ;;  %vm14286_vm11 = vmmov %vm14278_vm2  ;;  %v2092_v0 = vsel %vm1135_vm12, %v1044_v13, %v1979_v43 }
 0x72c   : > { %4095 = vst [vmem:[#allocation1] ss:$9 sm:$0xff] %v10274_v17  ;;  %v1978_v22 = vrot.slane %v1043_v37, 3  ;;  %v10332_v27 = vsel %vm14286_vm11, %v1044_v13, %v1979_v43  ;;  %vm14288_vm2 = vmmov %vm14279_vm8  ;;  %v10344_v29 = vrot.slane %v2092_v0, 2 }
 0x72d   : > { %14287 = vst [vmem:[#allocation239_spill] sm:$0xff] %v10332_v27  ;;  %v2089_v39 = vsel %vm14288_vm2, %v1044_v13, %v1979_v43  ;;  %vm14292_vm8 = vmmov %vm14286_vm11 }
 0x72e   : > { %v10308_v8 = vsel %vm14280_vm15, %v1043_v37, %v1978_v22  ;;  %v2077_v3 = vsel %vm14282_vm9, %v1043_v37, %v1978_v22  ;;  %v2080_v14 = vsel %vm1135_vm12, %v1043_v37, %v1978_v22  ;;  %v2083_v60 = vsel %vm1139_vm13, %v1043_v37, %v1978_v22  ;;  %14290 = vst [vmem:[#allocation241_spill] sm:$0xff] %v10344_v29  ;;  %vm14294_vm15 = vmmov %vm14288_vm2 }
 0x72f   : > { %14281 = vst [vmem:[#allocation235_spill] sm:$0xff] %v10308_v8  ;;  %v10314_v10 = vrot.slane %v2077_v3, 1  ;;  %v10320_v49 = vrot.slane %v2080_v14, 2  ;;  %v10326_v58 = vrot.slane %v2083_v60, 3  ;;  %v10338_v52 = vrot.slane %v2089_v39, 1  ;;  %vm14301_vm9 = vmmov %vm14292_vm8 }
 0x730   : > { %v2095_v22 = vsel %vm1139_vm13, %v1044_v13, %v1979_v43  ;;  %v1049_v14 = vld [vmem:[#allocation2 + $0x6c] sm:$0xf]  ;;  %vm14304_vm11 = vmmov %vm14288_vm2 }
 0x731   : > { %14283 = vst [vmem:[#allocation236_spill] sm:$0xff] %v10314_v10  ;;  %v10350_v3 = vrot.slane %v2095_v22, 3  ;;  %v1981_v39 = vrot.slane %v1049_v14, 3  ;;  %vm14311_vm2 = vmmov %vm14292_vm8 }
 0x732   : > { %14284 = vst [vmem:[#allocation237_spill] sm:$0xff] %v10320_v49 }
 0x733   : > { %v10286_v35 = vld [vmem:[#allocation1] sm:$0xf]  ;;  %14285 = vst [vmem:[#allocation238_spill] sm:$0xff] %v10326_v58  ;;  %v10356_v32 = vsel %vm14292_vm8, %v1049_v14, %v1981_v39  ;;  %v2104_v0 = vsel %vm14294_vm15, %v1049_v14, %v1981_v39  ;;  %v2107_v43 = vsel %vm1135_vm12, %v1049_v14, %v1981_v39  ;;  %vm14314_vm8 = vmmov %vm14304_vm11 }
 0x734   : > { %4098 = vst [vmem:[#allocation1] ss:$9 sm:$0xff] %v10284_v44  ;;  %v10362_v42 = vrot.slane %v2104_v0, 1  ;;  %v10368_v22 = vrot.slane %v2107_v43, 2  ;;  %vm14321_vm15 = vmmov %vm14311_vm2 }
 0x735   : > { %14289 = vst [vmem:[#allocation240_spill] sm:$0xff] %v10338_v52 }
 0x736   : > { %14291 = vst [vmem:[#allocation242_spill] sm:$0xff] %v10350_v3 }
 0x737   : > { %14293 = vst [vmem:[#allocation243_spill] sm:$0xff] %v10356_v32 }
 0x738   : > { %14295 = vst [vmem:[#allocation244_spill] sm:$0xff] %v10362_v42 }
 0x739   : > { %14297 = vst [vmem:[#allocation246_spill] sm:$0xff] %v10368_v22 }
 0x73b   : > { %v10292_v6 = vld [vmem:[#allocation1] sm:$0xf] }
 0x73c   : > { %4101 = vst [vmem:[#allocation1] ss:$9 sm:$0xff] %v10290_v15 }
 0x743   : > { %v10298_v9 = vld [vmem:[#allocation1] sm:$0xf] }
 0x744   : > { %4104 = vst [vmem:[#allocation1] ss:$9 sm:$0xff] %v10296_v25 }
 0x74b   : > { %v10304_v34 = vld [vmem:[#allocation1] sm:$0xf] }
 0x74c   : > { %4107 = vst [vmem:[#allocation1] ss:$9 sm:$0xff] %v10302_v57 }
 0x753   : > { %v10310_v61 = vld [vmem:[#allocation1] sm:$0xf] }
 0x754   : > { %4110 = vst [vmem:[#allocation1] ss:$9 sm:$0xff] %v10308_v8 }
 0x75b   : > { %v10316_v24 = vld [vmem:[#allocation1] sm:$0xf] }
 0x75c   : > { %4113 = vst [vmem:[#allocation1] ss:$9 sm:$0xff] %v10314_v10 }
 0x763   : > { %v10322_v33 = vld [vmem:[#allocation1] sm:$0xf] }
 0x764   : > { %4116 = vst [vmem:[#allocation1] ss:$9 sm:$0xff] %v10320_v49 }
 0x76b   : > { %v10328_v47 = vld [vmem:[#allocation1] sm:$0xf] }
 0x76c   : > { %4119 = vst [vmem:[#allocation1] ss:$9 sm:$0xff] %v10326_v58 }
 0x773   : > { %v10334_v26 = vld [vmem:[#allocation1] sm:$0xf] }
 0x774   : > { %4122 = vst [vmem:[#allocation1] ss:$9 sm:$0xff] %v10332_v27 }
 0x77b   : > { %v10340_v7 = vld [vmem:[#allocation1] sm:$0xf] }
 0x77c   : > { %4125 = vst [vmem:[#allocation1] ss:$9 sm:$0xff] %v10338_v52 }
 0x783   : > { %v10346_v37 = vld [vmem:[#allocation1] sm:$0xf] }
 0x784   : > { %4128 = vst [vmem:[#allocation1] ss:$9 sm:$0xff] %v10344_v29 }
 0x78b   : > { %v10352_v60 = vld [vmem:[#allocation1] sm:$0xf] }
 0x78c   : > { %4131 = vst [vmem:[#allocation1] ss:$9 sm:$0xff] %v10350_v3  ;;  %v2110_v3 = vsel %vm1139_vm13, %v1049_v14, %v1981_v39 }
 0x78d   : > { %v10374_v29 = vrot.slane %v2110_v3, 3 }
 0x78f   : > { %14299 = vst [vmem:[#allocation248_spill] sm:$0xff] %v10374_v29 }
 0x793   : > { %v10358_v18 = vld [vmem:[#allocation1] sm:$0xf] }
 0x794   : > { %4134 = vst [vmem:[#allocation1] ss:$9 sm:$0xff] %v10356_v32  ;;  %v1050_v32 = vld [vmem:[#allocation2 + $0x70] sm:$0xf] }
 0x795   : > { %v1982_v0 = vrot.slane %v1050_v32, 3 }
 0x797   : > { %v2116_v43 = vsel %vm14304_vm11, %v1050_v32, %v1982_v0  ;;  %v2119_v3 = vsel %vm1135_vm12, %v1050_v32, %v1982_v0  ;;  %vm14331_vm11 = vmmov %vm14311_vm2 }
 0x798   : > { %v10392_v39 = vrot.slane %v2119_v3, 2 }
 0x79a   : > { %14307 = vst [vmem:[#allocation254_spill] sm:$0xff] %v10392_v39 }
 0x79b   : > { %v10364_v13 = vld [vmem:[#allocation1] sm:$0xf] }
 0x79c   : > { %14296 = vst [vmem:[#allocation245_spill] sm:$0xff] %v10364_v13  ;;  %v10380_v13 = vsel %vm14301_vm9, %v1050_v32, %v1982_v0  ;;  %vm14324_vm9 = vmmov %vm14314_vm8 }
 0x79d   : > { %4137 = vst [vmem:[#allocation1] ss:$9 sm:$0xff] %v10362_v42 }
 0x79e   : > { %14302 = vst [vmem:[#allocation250_spill] sm:$0xff] %v10380_v13 }
 0x7a4   : > { %v10370_v20 = vld [vmem:[#allocation1] sm:$0xf] }
 0x7a5   : > { %14298 = vst [vmem:[#allocation247_spill] sm:$0xff] %v10370_v20  ;;  %v10386_v20 = vrot.slane %v2116_v43, 1 }
 0x7a6   : > { %4140 = vst [vmem:[#allocation1] ss:$9 sm:$0xff] %v10368_v22 }
 0x7a7   : > { %14305 = vst [vmem:[#allocation252_spill] sm:$0xff] %v10386_v20 }
 0x7ad   : > { %v10376_v52 = vld [vmem:[#allocation1] sm:$0xf] }
 0x7ae   : > { %14300 = vst [vmem:[#allocation249_spill] sm:$0xff] %v10376_v52 }
 0x7af   : > { %4143 = vst [vmem:[#allocation1] ss:$9 sm:$0xff] %v10374_v29 }
 0x7b6   : > { %v10382_v42 = vld [vmem:[#allocation1] sm:$0xf] }
 0x7b7   : > { %14303 = vst [vmem:[#allocation251_spill] sm:$0xff] %v10382_v42  ;;  %v2122_v42 = vsel %vm1139_vm13, %v1050_v32, %v1982_v0 }
 0x7b8   : > { %4146 = vst [vmem:[#allocation1] ss:$9 sm:$0xff] %v10380_v13  ;;  %v10398_v52 = vrot.slane %v2122_v42, 3  ;;  %v1055_v13 = vld [vmem:[#allocation2 + $0x84] sm:$0xf] }
 0x7b9   : > { %v1984_v43 = vrot.slane %v1055_v13, 3 }
 0x7ba   : > { %14309 = vst [vmem:[#allocation256_spill] sm:$0xff] %v10398_v52 }
 0x7bb   : > { %v2131_v3 = vsel %vm14314_vm8, %v1055_v13, %v1984_v43  ;;  %v2134_v42 = vsel %vm1135_vm12, %v1055_v13, %v1984_v43 }
 0x7bc   : > { %v10416_v0 = vrot.slane %v2134_v42, 2 }
 0x7be   : > { %14317 = vst [vmem:[#allocation262_spill] sm:$0xff] %v10416_v0 }
 0x7bf   : > { %v10388_v14 = vld [vmem:[#allocation1] sm:$0xf] }
 0x7c0   : > { %14306 = vst [vmem:[#allocation253_spill] sm:$0xff] %v10388_v14 }
 0x7c1   : > { %4149 = vst [vmem:[#allocation1] ss:$9 sm:$0xff] %v10386_v20  ;;  %v10404_v20 = vsel %vm14311_vm2, %v1055_v13, %v1984_v43  ;;  %vm14334_vm2 = vmmov %vm14314_vm8 }
 0x7c2   : > { %14312 = vst [vmem:[#allocation258_spill] sm:$0xff] %v10404_v20  ;;  %vm14341_vm8 = vmmov %vm14331_vm11 }
 0x7c8   : > { %v10394_v29 = vld [vmem:[#allocation1] sm:$0xf] }
 0x7c9   : > { %14308 = vst [vmem:[#allocation255_spill] sm:$0xff] %v10394_v29 }
 0x7ca   : > { %4152 = vst [vmem:[#allocation1] ss:$9 sm:$0xff] %v10392_v39  ;;  %v10410_v39 = vrot.slane %v2131_v3, 1 }
 0x7cc   : > { %14315 = vst [vmem:[#allocation260_spill] sm:$0xff] %v10410_v39 }
 0x7d1   : > { %v10400_v22 = vld [vmem:[#allocation1] sm:$0xf] }
 0x7d2   : > { %14310 = vst [vmem:[#allocation257_spill] sm:$0xff] %v10400_v22 }
 0x7d3   : > { %4155 = vst [vmem:[#allocation1] ss:$9 sm:$0xff] %v10398_v52 }
 0x7da   : > { %v10406_v14 = vld [vmem:[#allocation1] sm:$0xf] }
 0x7db   : > { %14313 = vst [vmem:[#allocation259_spill] sm:$0xff] %v10406_v14  ;;  %v2137_v14 = vsel %vm1139_vm13, %v1055_v13, %v1984_v43 }
 0x7dc   : > { %4158 = vst [vmem:[#allocation1] ss:$9 sm:$0xff] %v10404_v20  ;;  %v10422_v22 = vrot.slane %v2137_v14, 3  ;;  %v1056_v20 = vld [vmem:[#allocation2 + $0x88] sm:$0xf] }
 0x7dd   : > { %v1985_v3 = vrot.slane %v1056_v20, 3 }
 0x7de   : > { %14319 = vst [vmem:[#allocation264_spill] sm:$0xff] %v10422_v22 }
 0x7df   : > { %v2143_v42 = vsel %vm14324_vm9, %v1056_v20, %v1985_v3  ;;  %v2146_v14 = vsel %vm1135_vm12, %v1056_v20, %v1985_v3  ;;  %vm14351_vm9 = vmmov %vm14341_vm8 }
 0x7e0   : > { %v10440_v43 = vrot.slane %v2146_v14, 2 }
 0x7e2   : > { %14327 = vst [vmem:[#allocation270_spill] sm:$0xff] %v10440_v43 }
 0x7e3   : > { %v10412_v32 = vld [vmem:[#allocation1] sm:$0xf] }
 0x7e4   : > { %14316 = vst [vmem:[#allocation261_spill] sm:$0xff] %v10412_v32 }
 0x7e5   : > { %4161 = vst [vmem:[#allocation1] ss:$9 sm:$0xff] %v10410_v39  ;;  %v10428_v39 = vsel %vm14321_vm15, %v1056_v20, %v1985_v3  ;;  %vm14344_vm15 = vmmov %vm14334_vm2 }
 0x7e6   : > { %14322 = vst [vmem:[#allocation266_spill] sm:$0xff] %v10428_v39 }
 0x7ec   : > { %v10418_v52 = vld [vmem:[#allocation1] sm:$0xf] }
 0x7ed   : > { %14318 = vst [vmem:[#allocation263_spill] sm:$0xff] %v10418_v52 }
 0x7ee   : > { %4164 = vst [vmem:[#allocation1] ss:$9 sm:$0xff] %v10416_v0  ;;  %v10434_v0 = vrot.slane %v2143_v42, 1 }
 0x7f0   : > { %14325 = vst [vmem:[#allocation268_spill] sm:$0xff] %v10434_v0 }
 0x7f5   : > { %v10424_v29 = vld [vmem:[#allocation1] sm:$0xf] }
 0x7f6   : > { %14320 = vst [vmem:[#allocation265_spill] sm:$0xff] %v10424_v29 }
 0x7f7   : > { %4167 = vst [vmem:[#allocation1] ss:$9 sm:$0xff] %v10422_v22 }
 0x7fe   : > { %v10430_v32 = vld [vmem:[#allocation1] sm:$0xf] }
 0x7ff   : > { %14323 = vst [vmem:[#allocation267_spill] sm:$0xff] %v10430_v32  ;;  %v2149_v32 = vsel %vm1139_vm13, %v1056_v20, %v1985_v3 }
 0x800   : > { %4170 = vst [vmem:[#allocation1] ss:$9 sm:$0xff] %v10428_v39  ;;  %v10446_v29 = vrot.slane %v2149_v32, 3  ;;  %v1061_v39 = vld [vmem:[#allocation2 + $0x9c] sm:$0xf] }
 0x801   : > { %v1987_v42 = vrot.slane %v1061_v39, 3 }
 0x802   : > { %14329 = vst [vmem:[#allocation272_spill] sm:$0xff] %v10446_v29 }
 0x803   : > { %v2158_v14 = vsel %vm14334_vm2, %v1061_v39, %v1987_v42  ;;  %v2161_v32 = vsel %vm1135_vm12, %v1061_v39, %v1987_v42 }
 0x804   : > { %v10464_v3 = vrot.slane %v2161_v32, 2 }
 0x806   : > { %14337 = vst [vmem:[#allocation278_spill] sm:$0xff] %v10464_v3 }
 0x807   : > { %v10436_v13 = vld [vmem:[#allocation1] sm:$0xf] }
 0x808   : > { %14326 = vst [vmem:[#allocation269_spill] sm:$0xff] %v10436_v13 }
 0x809   : > { %4173 = vst [vmem:[#allocation1] ss:$9 sm:$0xff] %v10434_v0  ;;  %v10452_v0 = vsel %vm14331_vm11, %v1061_v39, %v1987_v42  ;;  %vm14354_vm11 = vmmov %vm14334_vm2 }
 0x80a   : > { %14332 = vst [vmem:[#allocation274_spill] sm:$0xff] %v10452_v0  ;;  %vm14361_vm2 = vmmov %vm14341_vm8 }
 0x810   : > { %v10442_v22 = vld [vmem:[#allocation1] sm:$0xf] }
 0x811   : > { %14328 = vst [vmem:[#allocation271_spill] sm:$0xff] %v10442_v22 }
 0x812   : > { %4176 = vst [vmem:[#allocation1] ss:$9 sm:$0xff] %v10440_v43  ;;  %v10458_v43 = vrot.slane %v2158_v14, 1 }
 0x814   : > { %14335 = vst [vmem:[#allocation276_spill] sm:$0xff] %v10458_v43 }
 0x819   : > { %v10448_v52 = vld [vmem:[#allocation1] sm:$0xf] }
 0x81a   : > { %14330 = vst [vmem:[#allocation273_spill] sm:$0xff] %v10448_v52 }
 0x81b   : > { %4179 = vst [vmem:[#allocation1] ss:$9 sm:$0xff] %v10446_v29 }
 0x822   : > { %v10454_v13 = vld [vmem:[#allocation1] sm:$0xf] }
 0x823   : > { %14333 = vst [vmem:[#allocation275_spill] sm:$0xff] %v10454_v13  ;;  %v2164_v13 = vsel %vm1139_vm13, %v1061_v39, %v1987_v42 }
 0x824   : > { %4182 = vst [vmem:[#allocation1] ss:$9 sm:$0xff] %v10452_v0  ;;  %v10470_v52 = vrot.slane %v2164_v13, 3  ;;  %v1062_v0 = vld [vmem:[#allocation2 + $0xa0] sm:$0xf] }
 0x825   : > { %v1988_v14 = vrot.slane %v1062_v0, 3 }
 0x826   : > { %14339 = vst [vmem:[#allocation280_spill] sm:$0xff] %v10470_v52 }
 0x827   : > { %v2170_v32 = vsel %vm14344_vm15, %v1062_v0, %v1988_v14  ;;  %v2173_v13 = vsel %vm1135_vm12, %v1062_v0, %v1988_v14  ;;  %vm14380_vm15 = vmmov %vm14361_vm2 }
 0x828   : > { %v10488_v42 = vrot.slane %v2173_v13, 2 }
 0x82a   : > { %14347 = vst [vmem:[#allocation286_spill] sm:$0xff] %v10488_v42 }
 0x82b   : > { %v10460_v20 = vld [vmem:[#allocation1] sm:$0xf] }
 0x82c   : > { %14336 = vst [vmem:[#allocation277_spill] sm:$0xff] %v10460_v20  ;;  %v10476_v20 = vsel %vm14341_vm8, %v1062_v0, %v1988_v14  ;;  %vm14364_vm8 = vmmov %vm14354_vm11 }
 0x82d   : > { %4185 = vst [vmem:[#allocation1] ss:$9 sm:$0xff] %v10458_v43 }
 0x82e   : > { %14342 = vst [vmem:[#allocation282_spill] sm:$0xff] %v10476_v20 }
 0x834   : > { %v10466_v29 = vld [vmem:[#allocation1] sm:$0xf] }
 0x835   : > { %14338 = vst [vmem:[#allocation279_spill] sm:$0xff] %v10466_v29  ;;  %v10482_v29 = vrot.slane %v2170_v32, 1 }
 0x836   : > { %4188 = vst [vmem:[#allocation1] ss:$9 sm:$0xff] %v10464_v3 }
 0x837   : > { %14345 = vst [vmem:[#allocation284_spill] sm:$0xff] %v10482_v29 }
 0x83d   : > { %v10472_v22 = vld [vmem:[#allocation1] sm:$0xf] }
 0x83e   : > { %14340 = vst [vmem:[#allocation281_spill] sm:$0xff] %v10472_v22 }
 0x83f   : > { %4191 = vst [vmem:[#allocation1] ss:$9 sm:$0xff] %v10470_v52 }
 0x846   : > { %v10478_v43 = vld [vmem:[#allocation1] sm:$0xf] }
 0x847   : > { %14343 = vst [vmem:[#allocation283_spill] sm:$0xff] %v10478_v43  ;;  %v2176_v43 = vsel %vm1139_vm13, %v1062_v0, %v1988_v14 }
 0x848   : > { %4194 = vst [vmem:[#allocation1] ss:$9 sm:$0xff] %v10476_v20  ;;  %v10494_v22 = vrot.slane %v2176_v43, 3  ;;  %v1067_v20 = vld [vmem:[#allocation2 + $0xb4] sm:$0xf] }
 0x849   : > { %v1990_v32 = vrot.slane %v1067_v20, 3 }
 0x84a   : > { %14349 = vst [vmem:[#allocation288_spill] sm:$0xff] %v10494_v22 }
 0x84b   : > { %v2185_v13 = vsel %vm14354_vm11, %v1067_v20, %v1990_v32  ;;  %v2188_v43 = vsel %vm1135_vm12, %v1067_v20, %v1990_v32  ;;  %vm14393_vm11 = vmmov %vm14364_vm8 }
 0x84c   : > { %v10512_v14 = vrot.slane %v2188_v43, 2 }
 0x84e   : > { %14357 = vst [vmem:[#allocation294_spill] sm:$0xff] %v10512_v14 }
 0x84f   : > { %v10484_v39 = vld [vmem:[#allocation1] sm:$0xf] }
 0x850   : > { %14346 = vst [vmem:[#allocation285_spill] sm:$0xff] %v10484_v39 }
 0x851   : > { %4197 = vst [vmem:[#allocation1] ss:$9 sm:$0xff] %v10482_v29  ;;  %v10500_v29 = vsel %vm14351_vm9, %v1067_v20, %v1990_v32  ;;  %vm14387_vm9 = vmmov %vm14361_vm2 }
 0x852   : > { %14352 = vst [vmem:[#allocation290_spill] sm:$0xff] %v10500_v29 }
 0x858   : > { %v10490_v52 = vld [vmem:[#allocation1] sm:$0xf] }
 0x859   : > { %14348 = vst [vmem:[#allocation287_spill] sm:$0xff] %v10490_v52 }
 0x85a   : > { %4200 = vst [vmem:[#allocation1] ss:$9 sm:$0xff] %v10488_v42  ;;  %v10506_v42 = vrot.slane %v2185_v13, 1 }
 0x85c   : > { %14355 = vst [vmem:[#allocation292_spill] sm:$0xff] %v10506_v42 }
 0x861   : > { %v10496_v3 = vld [vmem:[#allocation1] sm:$0xf] }
 0x862   : > { %14350 = vst [vmem:[#allocation289_spill] sm:$0xff] %v10496_v3 }
 0x863   : > { %4203 = vst [vmem:[#allocation1] ss:$9 sm:$0xff] %v10494_v22 }
 0x86a   : > { %v10502_v39 = vld [vmem:[#allocation1] sm:$0xf] }
 0x86b   : > { %14353 = vst [vmem:[#allocation291_spill] sm:$0xff] %v10502_v39  ;;  %v2191_v39 = vsel %vm1139_vm13, %v1067_v20, %v1990_v32 }
 0x86c   : > { %4206 = vst [vmem:[#allocation1] ss:$9 sm:$0xff] %v10500_v29  ;;  %v10518_v3 = vrot.slane %v2191_v39, 3  ;;  %v1068_v29 = vld [vmem:[#allocation2 + $0xb8] sm:$0xf] }
 0x86d   : > { %v1991_v13 = vrot.slane %v1068_v29, 3 }
 0x86e   : > { %14359 = vst [vmem:[#allocation296_spill] sm:$0xff] %v10518_v3 }
 0x86f   : > { %v2197_v43 = vsel %vm14364_vm8, %v1068_v29, %v1991_v13  ;;  %v2200_v39 = vsel %vm1135_vm12, %v1068_v29, %v1991_v13 }
 0x870   : > { %v10536_v32 = vrot.slane %v2200_v39, 2 }
 0x872   : > { %14367 = vst [vmem:[#allocation302_spill] sm:$0xff] %v10536_v32 }
 0x873   : > { %v10508_v0 = vld [vmem:[#allocation1] sm:$0xf] }
 0x874   : > { %14356 = vst [vmem:[#allocation293_spill] sm:$0xff] %v10508_v0 }
 0x875   : > { %4209 = vst [vmem:[#allocation1] ss:$9 sm:$0xff] %v10506_v42  ;;  %v10524_v42 = vsel %vm14361_vm2, %v1068_v29, %v1991_v13  ;;  %vm14394_vm2 = vmmov %vm14364_vm8 }
 0x876   : > { %14362 = vst [vmem:[#allocation298_spill] sm:$0xff] %v10524_v42  ;;  %vm14408_vm8 = vmmov %vm14394_vm2 }
 0x87c   : > { %v10514_v22 = vld [vmem:[#allocation1] sm:$0xf] }
 0x87d   : > { %14358 = vst [vmem:[#allocation295_spill] sm:$0xff] %v10514_v22 }
 0x87e   : > { %4212 = vst [vmem:[#allocation1] ss:$9 sm:$0xff] %v10512_v14  ;;  %v10530_v14 = vrot.slane %v2197_v43, 1  ;;  %v2209_v43 = vshrl.u32 %v10045_v36, 16  ;;  %v2225_v36 = vshrl.u32 %v10057_v19, 16 }
 0x880   : > { %14365 = vst [vmem:[#allocation300_spill] sm:$0xff] %v10530_v14 }
 0x885   : > { %v10520_v52 = vld [vmem:[#allocation1] sm:$0xf] }
 0x886   : > { %14360 = vst [vmem:[#allocation297_spill] sm:$0xff] %v10520_v52 }
 0x887   : > { %4215 = vst [vmem:[#allocation1] ss:$9 sm:$0xff] %v10518_v3 }
 0x88e   : > { %v10526_v0 = vld [vmem:[#allocation1] sm:$0xf] }
 0x88f   : > { %14363 = vst [vmem:[#allocation299_spill] sm:$0xff] %v10526_v0  ;;  %v2203_v0 = vsel %vm1139_vm13, %v1068_v29, %v1991_v13  ;;  %v2217_v29 = vshrl.u32 %v10051_v62, 16 }
 0x890   : > { %4218 = vst [vmem:[#allocation1] ss:$9 sm:$0xff] %v10524_v42  ;;  %v10542_v52 = vrot.slane %v2203_v0, 3  ;;  %v2222_v0 = vshll.u32 %v10057_v19, 16  ;;  %v2240_v19 = vshrl.u32 %v10069_v28, 16 }
 0x892   : > { %14369 = vst [vmem:[#allocation304_spill] sm:$0xff] %v10542_v52  ;;  %v10560_v13 = vsel %vm8578_vm4, %v2217_v29, %v2222_v0  ;;  %v2237_v29 = vshll.u32 %v10069_v28, 16 }
 0x893   : > { %14374 = vst [vmem:[#allocation307_spill] sm:$0xff] %v10560_v13 }
 0x897   : > { %v10532_v20 = vld [vmem:[#allocation1] sm:$0xf] }
 0x898   : > { %14366 = vst [vmem:[#allocation301_spill] sm:$0xff] %v10532_v20 }
 0x899   : > { %4221 = vst [vmem:[#allocation1] ss:$9 sm:$0xff] %v10530_v14  ;;  %v2214_v14 = vshll.u32 %v10051_v62, 16  ;;  %v2233_v62 = vshrl.u32 %v10063_v23, 16 }
 0x89b   : > { %v10551_v39 = vsel %vm8578_vm4, %v2209_v43, %v2214_v14  ;;  %v2230_v14 = vshll.u32 %v10063_v23, 16  ;;  %v10578_v0 = vsel %vm8578_vm4, %v2233_v62, %v2237_v29  ;;  %v2248_v23 = vshrl.u32 %v10075_v41, 16 }
 0x89c   : > { %14372 = vst [vmem:[#allocation10_spill] sm:$0xff] %v10551_v39  ;;  %v2253_v62 = vshll.u32 %v10081_v53, 16 }
 0x89d   : > { %v10569_v43 = vsel %vm8578_vm4, %v2225_v36, %v2230_v14  ;;  %14376 = vst [vmem:[#allocation309_spill] sm:$0xff] %v10578_v0  ;;  %v2245_v36 = vshll.u32 %v10075_v41, 16 }
 0x89e   : > { %14375 = vst [vmem:[#allocation308_spill] sm:$0xff] %v10569_v43  ;;  %v10596_v29 = vsel %vm8578_vm4, %v2248_v23, %v2253_v62  ;;  %v2264_v23 = vshrl.u32 %v10085_v40, 16 }
 0x89f   : > { %v10587_v14 = vsel %vm8578_vm4, %v2240_v19, %v2245_v36  ;;  %14378 = vst [vmem:[#allocation311_spill] sm:$0xff] %v10596_v29  ;;  %v2256_v19 = vshrl.u32 %v10081_v53, 16  ;;  %v2261_v36 = vshll.u32 %v10085_v40, 16  ;;  %v2302_v40 = vshrl.u32 %v10109_v11, 16 }
 0x8a0   : > { %v10538_v3 = vld [vmem:[#allocation1] sm:$0xf]  ;;  %14377 = vst [vmem:[#allocation310_spill] sm:$0xff] %v10587_v14 }
 0x8a1   : > { %14368 = vst [vmem:[#allocation303_spill] sm:$0xff] %v10538_v3  ;;  %v2333_v3 = vshrl.u32 %v10133_v46, 16 }
 0x8a2   : > { %4224 = vst [vmem:[#allocation1] ss:$9 sm:$0xff] %v10536_v32 }
 0x8a9   : > { %v10544_v42 = vld [vmem:[#allocation1] sm:$0xf] }
 0x8aa   : > { %14370 = vst [vmem:[#allocation305_spill] sm:$0xff] %v10544_v42 }
 0x8ab   : > { %4227 = vst [vmem:[#allocation1] ss:$9 sm:$0xff] %v10542_v52 }
 0x8b2   : > { %v10553_v22 = vld [vmem:[#allocation1] sm:$0xf] }
 0x8b3   : > { %14373 = vst [vmem:[#allocation306_spill] sm:$0xff] %v10553_v22 }
 0x8b4   : > { %4465 = vst [vmem:[#allocation1] ss:$9 sm:$0xff] %v10551_v39 }
 0x8bb   : > { %v10562_v52 = vld [vmem:[#allocation1] sm:$0xf] }
 0x8bc   : > { %4469 = vst [vmem:[#allocation1] ss:$9 sm:$0xff] %v10560_v13 }
 0x8c3   : > { %v10571_v39 = vld [vmem:[#allocation1] sm:$0xf] }
 0x8c4   : > { %4473 = vst [vmem:[#allocation1] ss:$9 sm:$0xff] %v10569_v43 }
 0x8cb   : > { %v10580_v13 = vld [vmem:[#allocation1] sm:$0xf] }
 0x8cc   : > { %4477 = vst [vmem:[#allocation1] ss:$9 sm:$0xff] %v10578_v0  ;;  %v1027_v0 = vld [vmem:[#allocation2 + $0x14] sm:$0x1] }
 0x8cd   : > { %v1971_v32 = vrot.slane %v1027_v0, 3 }
 0x8cf   : > { %v10608_v41 = vsel %vm14380_vm15, %v1027_v0, %v1971_v32  ;;  %v2276_v32 = vshll.u32 %v10095_v2, 16  ;;  %vm14409_vm15 = vmmov %vm14394_vm2 }
 0x8d0   : > { %14381 = vst [vmem:[#allocation313_spill] sm:$0xff] %v10608_v41  ;;  %v2268_v62 = vshll.u32 %v10608_v41, 16  ;;  %v2292_v41 = vshll.u32 %v10105_v59, 16 }
 0x8d3   : > { %v10589_v43 = vld [vmem:[#allocation1] sm:$0xf] }
 0x8d4   : > { %4481 = vst [vmem:[#allocation1] ss:$9 sm:$0xff] %v10587_v14  ;;  %v10605_v14 = vsel %vm8578_vm4, %v2256_v19, %v2261_v36  ;;  %v2271_v19 = vshrl.u32 %v10089_v45, 16  ;;  %v2287_v45 = vshrl.u32 %v10101_v16, 16 }
 0x8d5   : > { %14379 = vst [vmem:[#allocation312_spill] sm:$0xff] %v10605_v14 }
 0x8d6   : > { %v10626_v0 = vsel %vm8578_vm4, %v2271_v19, %v2276_v32  ;;  %v10640_v19 = vsel %vm8578_vm4, %v2287_v45, %v2292_v41  ;;  %v2307_v41 = vshll.u32 %v10113_v4, 16  ;;  %v2310_v45 = vshrl.u32 %v10113_v4, 16 }
 0x8d7   : > { %14383 = vst [vmem:[#allocation315_spill] sm:$0xff] %v10626_v0 }
 0x8d8   : > { %14385 = vst [vmem:[#allocation317_spill] sm:$0xff] %v10640_v19  ;;  %v10659_v42 = vsel %vm8578_vm4, %v2302_v40, %v2307_v41  ;;  %v4721_v40 = vunpack.c.l.b16 %v10571_v39  ;;  %v4722_v41 = vunpack.c.l.b16 %v10580_v13  ;;  %v2338_v13 = vshll.u32 %v10138_v51, 16 }
 0x8d9   : > { %14389 = vst [vmem:[#allocation320_spill] sm:$0xff] %v10659_v42 }
 0x8da   : > { %v4786_v10 = vrot.slane %v4722_v41, 6 }
 0x8db   : > { %v10598_v28 = vld [vmem:[#allocation1] sm:$0xf] }
 0x8dc   : > { %4485 = vst [vmem:[#allocation1] ss:$9 sm:$0xff] %v10596_v29  ;;  %v10617_v29 = vsel %vm8578_vm4, %v2264_v23, %v2268_v62  ;;  %v2284_v23 = vshll.u32 %v10101_v16, 16 }
 0x8dd   : > { %14382 = vst [vmem:[#allocation314_spill] sm:$0xff] %v10617_v29 }
 0x8e3   : > { %v10610_v22 = vld [vmem:[#allocation1] sm:$0xf] }
 0x8e4   : > { %4489 = vst [vmem:[#allocation1] ss:$9 sm:$0xff] %v10605_v14  ;;  %v2279_v14 = vshrl.u32 %v10095_v2, 16  ;;  %v2299_v2 = vshll.u32 %v10109_v11, 16  ;;  %v2326_v11 = vshrl.u32 %v10128_v38, 16 }
 0x8e6   : > { %v10633_v62 = vsel %vm8578_vm4, %v2279_v14, %v2284_v23  ;;  %v1033_v14 = vld [vmem:[#allocation2 + $0x2c] sm:$0x1] }
 0x8e7   : > { %14384 = vst [vmem:[#allocation316_spill] sm:$0xff] %v10633_v62 }
 0x8eb   : > { %v10619_v53 = vld [vmem:[#allocation1] sm:$0xf] }
 0x8ec   : > { %4493 = vst [vmem:[#allocation1] ss:$9 sm:$0xff] %v10617_v29 }
 0x8f3   : > { %v4494_v36 = vld [vmem:[#allocation1] sm:$0xf] }
 0x8f4   : > { %4497 = vst [vmem:[#allocation1] ss:$9 sm:$0xff] %v10626_v0  ;;  %v2295_v0 = vshrl.u32 %v10105_v59, 16 }
 0x8f6   : > { %v10647_v23 = vsel %vm8578_vm4, %v2295_v0, %v2299_v2  ;;  %v2318_v2 = vshrl.u32 %v10122_v5, 16  ;;  %v2323_v0 = vshll.u32 %v10128_v38, 16  ;;  %v4726_v38 = vunpack.c.l.b16 %v10619_v53 }
 0x8f7   : > { %14386 = vst [vmem:[#allocation318_spill] sm:$0xff] %v10647_v23 }
 0x8fb   : > { %v4498_v29 = vld [vmem:[#allocation1] sm:$0xf] }
 0x8fc   : > { %4501 = vst [vmem:[#allocation1] ss:$9 sm:$0xff] %v10633_v62  ;;  %v1974_v62 = vrot.slane %v1033_v14, 3  ;;  %v4728_v27 = vunpack.c.l.b16 %v4498_v29 }
 0x8fe   : > { %v10655_v59 = vsel %vm14387_vm9, %v1033_v14, %v1974_v62  ;;  %v4720_v14 = vunpack.c.l.b16 %v10562_v52  ;;  %v4784_v52 = vrot.slane %v4721_v40, 7  ;;  %vm14410_vm9 = vmmov %vm14394_vm2 }
 0x8ff   : > { %14388 = vst [vmem:[#allocation319_spill] sm:$0xff] %v10655_v59  ;;  %v2330_v4 = vshll.u32 %v10655_v59, 16  ;;  %v4727_v59 = vunpack.c.l.b16 %v4494_v36 }
 0x900   : > { %v4785_v29 = vsel %vm14393_vm11, %v4784_v52, %v4720_v14  ;;  %v14396_v52 = vld [vmem:[#allocation8_spill] sm:$0xff]  ;;  %vm14411_vm11 = vmmov %vm14394_vm2 }
 0x901   : > { %v4796_v40 = vrot.slane %v4727_v59, 1 }
 0x903   : > { %v4502_v32 = vld [vmem:[#allocation1] sm:$0xf] }
 0x904   : > { %4505 = vst [vmem:[#allocation1] ss:$9 sm:$0xff] %v10640_v19  ;;  %v2315_v19 = vshll.u32 %v10122_v5, 16  ;;  %v4723_v5 = vunpack.c.l.b16 %v10589_v43  ;;  %v4729_v46 = vunpack.c.l.b16 %v4502_v32  ;;  %v10681_v43 = vsel %vm8578_vm4, %v2318_v2, %v2323_v0 }
 0x905   : > { %14391 = vst [vmem:[#allocation322_spill] sm:$0xff] %v10681_v43 }
 0x906   : > { %v4788_v39 = vrot.slane %v4723_v5, 5  ;;  %v4798_v53 = vrot.slane %v4729_v46, 7  ;;  %v4794_v5 = vrot.slane %v4726_v38, 2  ;;  %v3820_v38 = vunpack.c.l.b16 %v9825_v55 }
 0x907   : > { %v3823_v46 = vunpack.c.l.b16 %v9834_v54 }
 0x908   : > { %v4799_v41 = vsel %vm14394_vm2, %v4798_v53, %v4728_v27 }
 0x909   : > { %v3900_v59 = vrot.slane %v3823_v46, 5 }
 0x90b   : > { %v4506_v16 = vld [vmem:[#allocation1] sm:$0xf] }
 0x90c   : > { %4509 = vst [vmem:[#allocation1] ss:$9 sm:$0xff] %v10647_v23  ;;  %v10665_v23 = vsel %vm8578_vm4, %v2310_v45, %v2315_v19  ;;  %v4724_v19 = vunpack.c.l.b16 %v10598_v28  ;;  %v4725_v45 = vunpack.c.l.b16 %v10610_v22  ;;  %v4730_v58 = vunpack.c.l.b16 %v4506_v16 }
 0x90d   : > { %14390 = vst [vmem:[#allocation321_spill] sm:$0xff] %v10665_v23  ;;  %v10685_v28 = vsel %vm8578_vm4, %v2326_v11, %v2330_v4  ;;  %v10694_v4 = vsel %vm8578_vm4, %v2333_v3, %v2338_v13  ;;  %v3822_v3 = vunpack.c.l.b16 %v9831_v63  ;;  %v14397_v13 = vld [vmem:[#allocation9_spill] sm:$0xff] }
 0x90e   : > { %14392 = vst [vmem:[#allocation323_spill] sm:$0xff] %v10685_v28  ;;  %v4790_v22 = vrot.slane %v4724_v19, 4  ;;  %v4792_v36 = vrot.slane %v4725_v45, 3  ;;  %v4800_v16 = vrot.slane %v4730_v58, 6  ;;  %v3821_v19 = vunpack.c.l.b16 %v9828_v1 }
 0x90f   : > { %14395 = vst [vmem:[#allocation324_spill] sm:$0xff] %v10694_v4 }
 0x910   : > { %v4801_v0 = vsel %vm1135_vm12, %v4800_v16, %v4799_v41  ;;  %v14401_v41 = vld [vmem:[#allocation16_spill] sm:$0xff]  ;;  %v3896_v11 = vrot.slane %v3821_v19, 7 }
 0x911   : > { %v3830_v63 = vunpack.c.l.b16 %v14401_v41 }
 0x913   : > { %v4510_v62 = vld [vmem:[#allocation1] sm:$0xf]  ;;  %v3912_v8 = vrot.slane %v3830_v63, 6 }
 0x914   : > { %4513 = vst [vmem:[#allocation1] ss:$9 sm:$0xff] %v10659_v42  ;;  %v4731_v49 = vunpack.c.l.b16 %v4510_v62  ;;  %v4787_v62 = vsel %vm1135_vm12, %v4786_v10, %v4785_v29  ;;  %v14398_v29 = vld [vmem:[#allocation12_spill] sm:$0xff] }
 0x915   : > { %v4789_v2 = vsel %vm1139_vm13, %v4788_v39, %v4787_v62  ;;  %v3824_v39 = vunpack.c.l.b16 %v14396_v52  ;;  %v3826_v16 = vunpack.c.l.b16 %v14398_v29  ;;  %v14400_v62 = vld [vmem:[#allocation15_spill] sm:$0xff] }
 0x916   : > { %v4802_v32 = vrot.slane %v4731_v49, 5  ;;  %v4791_v58 = vsel %vm3035_vm0, %v4790_v22, %v4789_v2  ;;  %v3825_v22 = vunpack.c.l.b16 %v14397_v13  ;;  %v3829_v1 = vunpack.c.l.b16 %v14400_v62  ;;  %v14402_v2 = vld [vmem:[#allocation4_spill] sm:$0xff]  ;;  %v14405_v52 = vld [vmem:[#allocation7_spill] sm:$0xff]  ;;  %v14407_v13 = vld [vmem:[#allocation185_spill] sm:$0xff] }
 0x917   : > { %v4793_v27 = vsel %vm3038_vm1, %v4792_v36, %v4791_v58  ;;  %v14404_v58 = vld [vmem:[#allocation14_spill] sm:$0xff]  ;;  %v3835_v29 = vunpack.c.l.b16 %v14407_v13  ;;  %v3902_v62 = vrot.slane %v3824_v39, 4  ;;  %v3906_v41 = vrot.slane %v3826_v16, 2 }
 0x918   : > { %v4803_v49 = vsel %vm1139_vm13, %v4802_v32, %v4801_v0  ;;  %v4795_v45 = vsel %vm3041_vm5, %v4794_v5, %v4793_v27  ;;  %v14399_v32 = vld [vmem:[#allocation13_spill] sm:$0xff]  ;;  %v3831_v5 = vunpack.c.l.b16 %v14402_v2  ;;  %v14403_v0 = vld [vmem:[#allocation6_spill] sm:$0xff]  ;;  %v3828_v27 = vunpack.c.l.b16 %v14404_v58 }
 0x919   : > { %v10710_v55 = vsel %vm3044_vm7, %v4796_v40, %v4795_v45  ;;  %v3827_v36 = vunpack.c.l.b16 %v14399_v32  ;;  %v3832_v54 = vunpack.c.l.b16 %v14403_v0  ;;  %v3833_v40 = vunpack.c.l.b16 %v14405_v52  ;;  %v14406_v45 = vld [vmem:[#allocation184_spill] sm:$0xff] }
 0x91a   : > { %v3898_v32 = vrot.slane %v3822_v3, 6  ;;  %v3910_v42 = vrot.slane %v3829_v1, 7  ;;  %v3897_v0 = vsel %vm14408_vm8, %v3896_v11, %v3820_v38  ;;  %v3922_v1 = vrot.slane %v3835_v29, 1  ;;  %vm14428_vm8 = vmmov %vm14394_vm2 }
 0x91b   : > { %v4514_v14 = vld [vmem:[#allocation1] sm:$0xf]  ;;  %v3918_v19 = vrot.slane %v3833_v40, 3  ;;  %v3908_v46 = vrot.slane %v3827_v36, 1  ;;  %v4250_v13 = vunpack.c.l.b16 %v10292_v6  ;;  %v4253_v29 = vunpack.c.l.b16 %v10310_v61 }
 0x91c   : > { %4517 = vst [vmem:[#allocation1] ss:$9 sm:$0xff] %v10665_v23  ;;  %v4732_v10 = vunpack.c.l.b16 %v4514_v14  ;;  %v3904_v23 = vrot.slane %v3825_v22, 3  ;;  %v3899_v52 = vsel %vm1135_vm12, %v3898_v32, %v3897_v0  ;;  %v4257_v6 = vunpack.c.l.b16 %v10334_v26 }
 0x91d   : > { %v3901_v3 = vsel %vm1139_vm13, %v3900_v59, %v3899_v52  ;;  %v4258_v0 = vunpack.c.l.b16 %v10340_v7 }
 0x91e   : > { %v4804_v53 = vrot.slane %v4732_v10, 4  ;;  %v3834_v10 = vunpack.c.l.b16 %v14406_v45  ;;  %v3911_v45 = vsel %vm14409_vm15, %v3910_v42, %v3828_v27  ;;  %v3903_v11 = vsel %vm3035_vm0, %v3902_v62, %v3901_v3 }
 0x91f   : > { %v3913_v39 = vsel %vm1135_vm12, %v3912_v8, %v3911_v45  ;;  %v3905_v63 = vsel %vm3038_vm1, %v3904_v23, %v3903_v11  ;;  %v4247_v42 = vunpack.c.l.b16 %v10234_v48  ;;  %v4248_v27 = vunpack.c.l.b16 %v10279_v30 }
 0x920   : > { %v4805_v14 = vsel %vm3035_vm0, %v4804_v53, %v4803_v49  ;;  %v3914_v49 = vrot.slane %v3831_v5, 5  ;;  %v3916_v53 = vrot.slane %v3832_v54, 4  ;;  %v3920_v22 = vrot.slane %v3834_v10, 2 }
 0x921   : > { %v4246_v54 = vunpack.c.l.b16 %v10214_v31  ;;  %v3907_v36 = vsel %vm3041_vm5, %v3906_v41, %v3905_v63  ;;  %v4249_v23 = vunpack.c.l.b16 %v10286_v35  ;;  %v4251_v48 = vunpack.c.l.b16 %v10298_v9 }
 0x922   : > { %v3915_v38 = vsel %vm1139_vm13, %v3914_v49, %v3913_v39  ;;  %v3909_v40 = vsel %vm3044_vm7, %v3908_v46, %v3907_v36  ;;  %v4254_v30 = vunpack.c.l.b16 %v10316_v24  ;;  %v4255_v41 = vunpack.c.l.b16 %v10322_v33 }
 0x923   : > { %v4518_v2 = vld [vmem:[#allocation1] sm:$0xf]  ;;  %v3917_v5 = vsel %vm3035_vm0, %v3916_v53, %v3915_v38  ;;  %v4259_v9 = vunpack.c.l.b16 %v10346_v37  ;;  %v4322_v61 = vrot.slane %v4247_v42, 7  ;;  %v4324_v49 = vrot.slane %v4248_v27, 6  ;;  %v14412_v42 = vld [vmem:[#allocation136_spill] sm:$0xff] }
 0x924   : > { %4521 = vst [vmem:[#allocation1] ss:$9 sm:$0xff] %v10681_v43  ;;  %v4733_v58 = vunpack.c.l.b16 %v4518_v2  ;;  %v3919_v8 = vsel %vm3038_vm1, %v3918_v19, %v3917_v5  ;;  %v4256_v2 = vunpack.c.l.b16 %v10328_v47  ;;  %v4326_v24 = vrot.slane %v4249_v23, 5  ;;  %v14414_v23 = vld [vmem:[#allocation138_spill] sm:$0xff] }
 0x925   : > { %v3921_v10 = vsel %vm3041_vm5, %v3920_v22, %v3919_v8  ;;  %v4261_v33 = vunpack.c.l.b16 %v10358_v18  ;;  %v4328_v47 = vrot.slane %v4250_v13, 4  ;;  %v4323_v52 = vsel %vm14410_vm9, %v4322_v61, %v4246_v54  ;;  %v14413_v8 = vld [vmem:[#allocation137_spill] sm:$0xff] }
 0x926   : > { %v4806_v16 = vrot.slane %v4733_v58, 3  ;;  %v3923_v31 = vsel %vm3044_vm7, %v3922_v1, %v3921_v10  ;;  %v4330_v58 = vrot.slane %v4251_v48, 3  ;;  %v4336_v26 = vrot.slane %v4255_v41, 7 }
 0x927   : > { %v3981_v62 = vpack.c.b16 %v3923_v31, %v3909_v40  ;;  %v4338_v19 = vrot.slane %v4256_v2, 6  ;;  %v4325_v7 = vsel %vm1135_vm12, %v4324_v49, %v4323_v52  ;;  %v4334_v37 = vrot.slane %v4253_v29, 1  ;;  %v14417_v2 = vld [vmem:[#allocation141_spill] sm:$0xff]  ;;  %v14422_v52 = vld [vmem:[#allocation147_spill] sm:$0xff] }
 0x928   : > { %v4807_v59 = vsel %vm3038_vm1, %v4806_v16, %v4805_v14  ;;  %v4252_v14 = vunpack.c.l.b16 %v10304_v34  ;;  %v4260_v34 = vunpack.c.l.b16 %v10352_v60  ;;  %v4340_v3 = vrot.slane %v4257_v6, 5  ;;  %v14418_v6 = vld [vmem:[#allocation142_spill] sm:$0xff]  ;;  %v14420_v49 = vld [vmem:[#allocation145_spill] sm:$0xff] }
 0x929   : > { %8264 = vmatmul.msk.bf16.vlgmr.msra.gmra.mxu2 %vm13860_vm10, %v3981_v62  ;;  %v4342_v46 = vrot.slane %v4258_v0, 4  ;;  %v4327_v39 = vsel %vm1139_vm13, %v4326_v24, %v4325_v7  ;;  %v4337_v22 = vsel %vm14411_vm11, %v4336_v26, %v4254_v30  ;;  %v4344_v16 = vrot.slane %v4259_v9, 3  ;;  %v14423_v26 = vld [vmem:[#allocation148_spill] sm:$0xff]  ;;  %vm14459_vm11 = vmmov %vm14394_vm2 }
 0x92a   : > { %v4332_v45 = vrot.slane %v4252_v14, 2  ;;  %v4329_v18 = vsel %vm3035_vm0, %v4328_v47, %v4327_v39  ;;  %v4339_v11 = vsel %vm1135_vm12, %v4338_v19, %v4337_v22  ;;  %v4346_v38 = vrot.slane %v4260_v34, 2  ;;  %v14415_v14 = vld [vmem:[#allocation139_spill] sm:$0xff]  ;;  %v14426_v22 = vld [vmem:[#allocation150_spill] sm:$0xff] }
 0x92b   : > { %v4522_v32 = vld [vmem:[#allocation1] sm:$0xf]  ;;  %v4348_v1 = vrot.slane %v4261_v33, 1  ;;  %v4331_v5 = vsel %vm3038_vm1, %v4330_v58, %v4329_v18  ;;  %v4341_v54 = vsel %vm1139_vm13, %v4340_v3, %v4339_v11  ;;  %v3402_v36 = vunpack.c.l.b16 %v14412_v42  ;;  %v14419_v34 = vld [vmem:[#allocation143_spill] sm:$0xff] }
 0x92c   : > { %4525 = vst [vmem:[#allocation1] ss:$9 sm:$0xff] %v10685_v28  ;;  %v4734_v35 = vunpack.c.l.b16 %v4522_v32  ;;  %v4333_v40 = vsel %vm3041_vm5, %v4332_v45, %v4331_v5  ;;  %v4343_v10 = vsel %vm3035_vm0, %v4342_v46, %v4341_v54  ;;  %v3404_v13 = vunpack.c.l.b16 %v14414_v23  ;;  %v14416_v32 = vld [vmem:[#allocation140_spill] sm:$0xff]  ;;  %v14425_v46 = vld [vmem:[#allocation149_spill] sm:$0xff]  ;;  %v14427_v18 = vld [vmem:[#allocation151_spill] sm:$0xff] }
 0x92d   : > { %v4335_v31 = vsel %vm3044_vm7, %v4334_v37, %v4333_v40  ;;  %v4345_v48 = vsel %vm3038_vm1, %v4344_v16, %v4343_v10  ;;  %v3405_v29 = vunpack.c.l.b16 %v14415_v14  ;;  %v3406_v62 = vunpack.c.l.b16 %v14416_v32  ;;  %v14424_v37 = vld [vmem:[#allocation144_spill] sm:$0xff]  ;;  %v524_v23 = vld [vmem:[#allocation2 + $0x5c] sm:$0x1] }
 0x92e   : > { %v4808_v53 = vrot.slane %v4734_v35, 2  ;;  %v4347_v41 = vsel %vm3041_vm5, %v4346_v38, %v4345_v48  ;;  %v3407_v35 = vunpack.c.l.b16 %v14417_v2  ;;  %v3408_v0 = vunpack.c.l.b16 %v14418_v6 }
 0x92f   : > { %v4349_v9 = vsel %vm3044_vm7, %v4348_v1, %v4347_v41  ;;  %v3409_v61 = vunpack.c.l.b16 %v14419_v34  ;;  %v3411_v24 = vunpack.c.l.b16 %v14420_v49  ;;  %v3413_v45 = vunpack.c.l.b16 %v14422_v52 }
 0x930   : > { %v4809_v60 = vsel %vm3041_vm5, %v4808_v53, %v4807_v59  ;;  %v3403_v59 = vunpack.c.l.b16 %v14413_v8  ;;  %v14421_v53 = vld [vmem:[#allocation146_spill] sm:$0xff]  ;;  %v4407_v58 = vpack.c.b16 %v4349_v9, %v4335_v31  ;;  %v3414_v19 = vunpack.c.l.b16 %v14423_v26 }
 0x931   : > { %v3412_v33 = vunpack.c.l.b16 %v14421_v53  ;;  %v3410_v3 = vunpack.c.l.b16 %v14424_v37  ;;  %v3415_v39 = vunpack.c.l.b16 %v14425_v46  ;;  %v3416_v16 = vunpack.c.l.b16 %v14426_v22 }
 0x932   : > { %8269 = vmatmul.msk.bf16.gmra.mxu3 %vm13860_vm10, %v4407_v58  ;;  %v3417_v11 = vunpack.c.l.b16 %v14427_v18  ;;  %v3478_v38 = vrot.slane %v3403_v59, 7  ;;  %v3480_v1 = vrot.slane %v3404_v13, 6  ;;  %v3486_v5 = vrot.slane %v3407_v35, 3  ;;  %v14432_v58 = vld [vmem:[#allocation11_spill] sm:$0xff] }
 0x933   : > { %v4526_v63 = vld [vmem:[#allocation1] sm:$0xf]  ;;  %v3488_v54 = vrot.slane %v3408_v0, 2  ;;  %v3492_v42 = vrot.slane %v3411_v24, 7  ;;  %v3496_v40 = vrot.slane %v3413_v45, 5  ;;  %v3498_v10 = vrot.slane %v3414_v19, 4 }
 0x934   : > { %v4735_v27 = vunpack.c.l.b16 %v4526_v63  ;;  %4529 = vst [vmem:[#allocation1] ss:$9 sm:$0xff] %v10694_v4  ;;  %v3484_v63 = vrot.slane %v3406_v62, 4  ;;  %v3479_v8 = vsel %vm14394_vm2, %v3478_v38, %v3402_v36  ;;  %v3490_v48 = vrot.slane %v3409_v61, 1 }
 0x935   : > { %v3481_v31 = vsel %vm1135_vm12, %v3480_v1, %v3479_v8  ;;  %v3493_v59 = vsel %vm14428_vm8, %v3492_v42, %v3410_v3  ;;  %v3500_v13 = vrot.slane %v3415_v39, 3  ;;  %v3502_v32 = vrot.slane %v3416_v16, 2  ;;  %vm14478_vm8 = vmmov %vm14394_vm2 }
 0x936   : > { %v4810_v30 = vrot.slane %v4735_v27, 1  ;;  %v3494_v27 = vrot.slane %v3412_v33, 6  ;;  %v3504_v2 = vrot.slane %v3417_v11, 1  ;;  %v525_v35 = vsel %vm13975_vm14, 0, %v524_v23 }
 0x937   : > { %526 = vst [vmem:[#allocation2 + $0x5c] sm:$0x1] %v525_v35  ;;  %v14429_v9 = vshll.u32 %v10175_v56, 16  ;;  %v14430_v34 = vshrl.u32 %v10138_v51, 16  ;;  %v672_v52 = vrot.slane %v14432_v58, 4  ;;  %v2349_v45 = vshrl.u32 %v10175_v56, 16 }
 0x938   : > { %v4811_v47 = vsel %vm3044_vm7, %v4810_v30, %v4809_v60  ;;  %v3482_v60 = vrot.slane %v3405_v29, 5  ;;  %v3495_v29 = vsel %vm1135_vm12, %v3494_v27, %v3493_v59  ;;  %v2354_v26 = vshll.u32 %v10274_v17, 16 }
 0x939   : > { %v4896_v7 = vpack.c.b16 %v4811_v47, %v10710_v55  ;;  %v518_v55 = vld [vmem:[#allocation2 + $0x44] sm:$0x1]  ;;  %v3497_v41 = vsel %vm1139_vm13, %v3496_v40, %v3495_v29  ;;  %v10814_v61 = vsel %vm8578_vm4, %v14430_v34, %v14429_v9  ;;  %v2361_v18 = vshll.u32 %v10284_v44, 16  ;;  %v14443_v9 = vld [vmem:[#allocation237_spill] sm:$0xff] }
 0x93a   : > { %v3483_v14 = vsel %vm1139_vm13, %v3482_v60, %v3481_v31  ;;  %v519_v62 = vsel %vm13975_vm14, 0, %v518_v55  ;;  %v3499_v0 = vsel %vm3035_vm0, %v3498_v10, %v3497_v41  ;;  %14431 = vst [vmem:[#allocation8_spill] sm:$0xff] %v10814_v61  ;;  %v10831_v39 = vsel %vm8578_vm4, %v2349_v45, %v2354_v26  ;;  %v14441_v41 = vld [vmem:[#allocation236_spill] sm:$0xff]  ;;  %v14447_v26 = vld [vmem:[#allocation239_spill] sm:$0xff] }
 0x93b   : > { %8273 = vmatmul.msk.bf16.vlgmr.msrb.gmra.mxu0 %vm13860_vm10, %v4896_v7  ;;  %v10800_v30 = vld [vmem:[#allocation1] sm:$0xf]  ;;  %v3485_v36 = vsel %vm3035_vm0, %v3484_v63, %v3483_v14  ;;  %520 = vst [vmem:[#allocation2 + $0x44] sm:$0x1] %v519_v62  ;;  %v3501_v24 = vsel %vm3038_vm1, %v3500_v13, %v3499_v0  ;;  %v706_v7 = vrot.slane %v10224_v50, 4  ;;  %v2357_v50 = vshrl.u32 %v10274_v17, 16 }
 0x93c   : > { %v3487_v6 = vsel %vm3038_vm1, %v3486_v5, %v3485_v36  ;;  %4533 = vst [vmem:[#allocation1] ss:$9 sm:$0xff] %v10814_v61  ;;  %v3503_v33 = vsel %vm3041_vm5, %v3502_v32, %v3501_v24  ;;  %v2364_v1 = vshrl.u32 %v10284_v44, 16  ;;  %v2369_v60 = vshll.u32 %v10290_v15, 16  ;;  %v14440_v62 = vld [vmem:[#allocation235_spill] sm:$0xff] }
 0x93d   : > { %v3489_v49 = vsel %vm3041_vm5, %v3488_v54, %v3487_v6  ;;  %v3505_v47 = vsel %vm3044_vm7, %v3504_v2, %v3503_v33  ;;  %14433 = vst [vmem:[#allocation9_spill] sm:$0xff] %v10831_v39  ;;  %v10842_v11 = vsel %vm8578_vm4, %v2357_v50, %v2361_v18  ;;  %v2372_v54 = vshrl.u32 %v10290_v15, 16  ;;  %v14445_v33 = vld [vmem:[#allocation238_spill] sm:$0xff]  ;;  %v14449_v50 = vld [vmem:[#allocation240_spill] sm:$0xff] }
 0x93e   : > { %v3491_v53 = vsel %vm3044_vm7, %v3490_v48, %v3489_v49  ;;  %v956_v46 = vld [vmem:[#allocation2 + $0x5c] sm:$0x1]  ;;  %14434 = vst [vmem:[#allocation12_spill] sm:$0xff] %v10842_v11  ;;  %v10851_v63 = vsel %vm8578_vm4, %v2364_v1, %v2369_v60  ;;  %v2377_v42 = vshll.u32 %v10296_v25, 16  ;;  %v2380_v40 = vshrl.u32 %v10296_v25, 16  ;;  %v14450_v60 = vld [vmem:[#allocation241_spill] sm:$0xff] }
 0x93f   : > { %v3563_v19 = vpack.c.b16 %v3505_v47, %v3491_v53  ;;  %v957_v22 = vsel %vm13951_vm6, %v706_v7, %v956_v46  ;;  %14435 = vst [vmem:[#allocation13_spill] sm:$0xff] %v10851_v63  ;;  %v2385_v10 = vshll.u32 %v10302_v57, 16  ;;  %vm14438_vm15 = vcmask 1040384  }
 0x940   : > { %958 = vst [vmem:[#allocation2 + $0x5c] sm:$0x1] %v957_v22  ;;  %v10860_v55 = vsel %vm8578_vm4, %v2372_v54, %v2377_v42  ;;  %v2388_v13 = vshrl.u32 %v10302_v57, 16  ;;  %v2395_v36 = vshrl.u32 %v14440_v62, 16  ;;  %v2400_v2 = vshll.u32 %v14441_v41, 16  ;;  %vm14451_vm9 = vmmov %vm14438_vm15 }
 0x941   : > { %8259 = vmatmul.msk.bf16.vlgmr.msra.gmra.mxu1 %vm13860_vm10, %v3563_v19  ;;  %14436 = vst [vmem:[#allocation15_spill] sm:$0xff] %v10860_v55  ;;  %v10869_v31 = vsel %vm8578_vm4, %v2380_v40, %v2385_v10  ;;  %v2403_v0 = vshrl.u32 %v14441_v41, 16  ;;  %v2408_v34 = vshll.u32 %v14443_v9, 16  ;;  %v2411_v53 = vshrl.u32 %v14443_v9, 16  ;;  %v14453_v10 = vld [vmem:[#allocation242_spill] sm:$0xff] }
 0x942   : > { %v942_v37 = vld [vmem:[#allocation2 + $0x44] sm:$0x1]  ;;  %14437 = vst [vmem:[#allocation16_spill] sm:$0xff] %v10869_v31  ;;  %v10890_v35 = vsel %vm8578_vm4, %v2395_v36, %v2400_v2  ;;  %v2416_v47 = vshll.u32 %v14445_v33, 16  ;;  %v2419_v45 = vshrl.u32 %v14445_v33, 16  ;;  %v2423_v19 = vshll.u32 %v14447_v26, 16 }
 0x943   : > { %v943_v3 = vsel %vm13951_vm6, %v672_v52, %v942_v37  ;;  %v10835_v16 = vld [vmem:[#allocation1] sm:$0xf]  ;;  %14442 = vst [vmem:[#allocation6_spill] sm:$0xff] %v10890_v35  ;;  %v10897_v49 = vsel %vm8578_vm4, %v2403_v0, %v2408_v34  ;;  %v2426_v22 = vshrl.u32 %v14447_v26, 16  ;;  %v2431_v18 = vshll.u32 %v14449_v50, 16  ;;  %v14455_v36 = vld [vmem:[#allocation243_spill] sm:$0xff] }
 0x944   : > { %944 = vst [vmem:[#allocation2 + $0x44] sm:$0x1] %v943_v3  ;;  %v10904_v58 = vsel %vm8578_vm4, %v2411_v53, %v2416_v47  ;;  %v10911_v37 = vsel %vm8578_vm4, %v2419_v45, %v2423_v19  ;;  %v2434_v1 = vshrl.u32 %v14449_v50, 16  ;;  %v2439_v54 = vshll.u32 %v14450_v60, 16 }
 0x945   : > { %4537 = vst [vmem:[#allocation1] ss:$9 sm:$0xff] %v10831_v39  ;;  %v2442_v40 = vshrl.u32 %v14450_v60, 16  ;;  %v2457_v2 = vshrl.u32 %v14455_v36, 16  ;;  %v4736_v34 = vunpack.c.l.b16 %v10800_v30  ;;  %v4737_v53 = vunpack.c.l.b16 %v10835_v16 }
 0x946   : > { %14444 = vst [vmem:[#allocation14_spill] sm:$0xff] %v10897_v49 }
 0x947   : > { %14446 = vst [vmem:[#allocation7_spill] sm:$0xff] %v10904_v58  ;;  %v1045_v7 = vld [vmem:[#allocation2 + $0x5c] sm:$0x1]  ;;  %v4812_v30 = vrot.slane %v4737_v53, 7 }
 0x948   : > { %14448 = vst [vmem:[#allocation184_spill] sm:$0xff] %v10911_v37  ;;  %v1980_v3 = vrot.slane %v1045_v7, 3 }
 0x94a   : > { %v10919_v42 = vsel %vm14451_vm9, %v1045_v7, %v1980_v3  ;;  %vm14496_vm9 = vmmov %vm14394_vm2 }
 0x94b   : > { %v1039_v8 = vld [vmem:[#allocation2 + $0x44] sm:$0x1]  ;;  %v2454_v62 = vshll.u32 %v10919_v42, 16 }
 0x94c   : > { %v10844_v38 = vld [vmem:[#allocation1] sm:$0xf]  ;;  %v1977_v23 = vrot.slane %v1039_v8, 3 }
 0x94d   : > { %4541 = vst [vmem:[#allocation1] ss:$9 sm:$0xff] %v10842_v11  ;;  %v4738_v47 = vunpack.c.l.b16 %v10844_v38  ;;  %v14549_v11 = vld [vmem:[#allocation274_spill] sm:$0xff] }
 0x94e   : > { %v10872_v48 = vsel %vm14438_vm15, %v1039_v8, %v1977_v23  ;;  %v10923_v8 = vsel %vm8578_vm4, %v2426_v22, %v2431_v18  ;;  %v2447_v23 = vshll.u32 %v14453_v10, 16  ;;  %vm14479_vm15 = vmmov %vm14394_vm2  ;;  %v2581_v39 = vshrl.u32 %v14549_v11, 16 }
 0x94f   : > { %v2392_v14 = vshll.u32 %v10872_v48, 16  ;;  %14452 = vst [vmem:[#allocation185_spill] sm:$0xff] %v10923_v8 }
 0x951   : > { %v10881_v29 = vsel %vm8578_vm4, %v2388_v13, %v2392_v14  ;;  %v10929_v13 = vsel %vm8578_vm4, %v2434_v1, %v2439_v54  ;;  %v2450_v14 = vshrl.u32 %v14453_v10, 16 }
 0x952   : > { %14439 = vst [vmem:[#allocation4_spill] sm:$0xff] %v10881_v29 }
 0x953   : > { %14454 = vst [vmem:[#allocation136_spill] sm:$0xff] %v10929_v13 }
 0x954   : > { %v10853_v5 = vld [vmem:[#allocation1] sm:$0xf] }
 0x955   : > { %4545 = vst [vmem:[#allocation1] ss:$9 sm:$0xff] %v10851_v63  ;;  %v4739_v45 = vunpack.c.l.b16 %v10853_v5  ;;  %v10945_v5 = vsel %vm8578_vm4, %v2442_v40, %v2447_v23 }
 0x956   : > { %14457 = vst [vmem:[#allocation137_spill] sm:$0xff] %v10945_v5 }
 0x957   : > { %v4816_v16 = vrot.slane %v4739_v45, 5 }
 0x95c   : > { %v10862_v27 = vld [vmem:[#allocation1] sm:$0xf] }
 0x95d   : > { %4549 = vst [vmem:[#allocation1] ss:$9 sm:$0xff] %v10860_v55  ;;  %v4740_v19 = vunpack.c.l.b16 %v10862_v27  ;;  %v10949_v27 = vsel %vm8578_vm4, %v2450_v14, %v2454_v62  ;;  %v14471_v62 = vld [vmem:[#allocation196_spill] sm:$0xff] }
 0x95e   : > { %14458 = vst [vmem:[#allocation138_spill] sm:$0xff] %v10949_v27 }
 0x964   : > { %v10874_v59 = vld [vmem:[#allocation1] sm:$0xf] }
 0x965   : > { %4553 = vst [vmem:[#allocation1] ss:$9 sm:$0xff] %v10869_v31  ;;  %v4741_v7 = vunpack.c.l.b16 %v10874_v59  ;;  %v4818_v59 = vrot.slane %v4740_v19, 4 }
 0x96c   : > { %v10883_v32 = vld [vmem:[#allocation1] sm:$0xf] }
 0x96d   : > { %4557 = vst [vmem:[#allocation1] ss:$9 sm:$0xff] %v10881_v29  ;;  %v4742_v3 = vunpack.c.l.b16 %v10883_v32 }
 0x96f   : > { %v4822_v53 = vrot.slane %v4742_v3, 2 }
 0x974   : > { %v4558_v6 = vld [vmem:[#allocation1] sm:$0xf] }
 0x975   : > { %4561 = vst [vmem:[#allocation1] ss:$9 sm:$0xff] %v10890_v35  ;;  %v4743_v22 = vunpack.c.l.b16 %v4558_v6  ;;  %v4813_v6 = vsel %vm14459_vm11, %v4812_v30, %v4736_v34  ;;  %vm14497_vm11 = vmmov %vm14394_vm2 }
 0x97c   : > { %v4562_v24 = vld [vmem:[#allocation1] sm:$0xf] }
 0x97d   : > { %4565 = vst [vmem:[#allocation1] ss:$9 sm:$0xff] %v10897_v49  ;;  %v4744_v18 = vunpack.c.l.b16 %v4562_v24  ;;  %v4820_v24 = vrot.slane %v4741_v7, 3  ;;  %v14477_v49 = vld [vmem:[#allocation201_spill] sm:$0xff] }
 0x984   : > { %v4566_v52 = vld [vmem:[#allocation1] sm:$0xf] }
 0x985   : > { %4569 = vst [vmem:[#allocation1] ss:$9 sm:$0xff] %v10904_v58  ;;  %v4745_v1 = vunpack.c.l.b16 %v4566_v52  ;;  %v14456_v58 = vld [vmem:[#allocation244_spill] sm:$0xff] }
 0x986   : > { %v2462_v38 = vshll.u32 %v14456_v58, 16 }
 0x987   : > { %v4826_v32 = vrot.slane %v4745_v1, 7  ;;  %v14472_v1 = vld [vmem:[#allocation197_spill] sm:$0xff] }
 0x988   : > { %v10958_v14 = vsel %vm8578_vm4, %v2457_v2, %v2462_v38  ;;  %v14464_v2 = vld [vmem:[#allocation188_spill] sm:$0xff] }
 0x989   : > { %v4827_v45 = vsel %vm14394_vm2, %v4826_v32, %v4744_v18  ;;  %14460 = vst [vmem:[#allocation139_spill] sm:$0xff] %v10958_v14  ;;  %v14465_v32 = vld [vmem:[#allocation189_spill] sm:$0xff] }
 0x98c   : > { %v4570_v46 = vld [vmem:[#allocation1] sm:$0xf] }
 0x98d   : > { %4573 = vst [vmem:[#allocation1] ss:$9 sm:$0xff] %v10911_v37  ;;  %v4746_v54 = vunpack.c.l.b16 %v4570_v46  ;;  %v4814_v37 = vrot.slane %v4738_v47, 6  ;;  %v4824_v47 = vrot.slane %v4743_v22, 1  ;;  %v14462_v22 = vld [vmem:[#allocation246_spill] sm:$0xff] }
 0x98f   : > { %v4828_v52 = vrot.slane %v4746_v54, 6 }
 0x991   : > { %v4829_v23 = vsel %vm1135_vm12, %v4828_v52, %v4827_v45 }
 0x994   : > { %v4574_v0 = vld [vmem:[#allocation1] sm:$0xf] }
 0x995   : > { %4577 = vst [vmem:[#allocation1] ss:$9 sm:$0xff] %v10923_v8  ;;  %v4747_v36 = vunpack.c.l.b16 %v4574_v0  ;;  %v4815_v0 = vsel %vm1135_vm12, %v4814_v37, %v4813_v6  ;;  %v14461_v37 = vld [vmem:[#allocation186_spill] sm:$0xff]  ;;  %v3839_v6 = vunpack.c.l.b16 %v14465_v32  ;;  %v14475_v8 = vld [vmem:[#allocation199_spill] sm:$0xff] }
 0x996   : > { %v4817_v40 = vsel %vm1139_vm13, %v4816_v16, %v4815_v0  ;;  %v3836_v3 = vunpack.c.l.b16 %v14461_v37  ;;  %v3838_v16 = vunpack.c.l.b16 %v14464_v2  ;;  %v14469_v37 = vld [vmem:[#allocation193_spill] sm:$0xff]  ;;  %v3846_v2 = vunpack.c.l.b16 %v14471_v62 }
 0x997   : > { %v4830_v46 = vrot.slane %v4747_v36, 5  ;;  %v4819_v19 = vsel %vm3035_vm0, %v4818_v59, %v4817_v40  ;;  %v14463_v36 = vld [vmem:[#allocation187_spill] sm:$0xff]  ;;  %v14466_v59 = vld [vmem:[#allocation190_spill] sm:$0xff]  ;;  %v3928_v29 = vrot.slane %v3839_v6, 5 }
 0x998   : > { %v4821_v54 = vsel %vm3038_vm1, %v4820_v24, %v4819_v19  ;;  %v3837_v30 = vunpack.c.l.b16 %v14463_v36  ;;  %v3840_v52 = vunpack.c.l.b16 %v14466_v59  ;;  %v3843_v24 = vunpack.c.l.b16 %v14469_v37  ;;  %v14470_v19 = vld [vmem:[#allocation195_spill] sm:$0xff] }
 0x999   : > { %v4831_v7 = vsel %vm1139_vm13, %v4830_v46, %v4829_v23  ;;  %v4823_v38 = vsel %vm3041_vm5, %v4822_v53, %v4821_v54  ;;  %v14467_v46 = vld [vmem:[#allocation191_spill] sm:$0xff]  ;;  %v14468_v23 = vld [vmem:[#allocation192_spill] sm:$0xff]  ;;  %v3845_v36 = vunpack.c.l.b16 %v14470_v19  ;;  %v3847_v53 = vunpack.c.l.b16 %v14472_v1  ;;  %v14473_v54 = vld [vmem:[#allocation198_spill] sm:$0xff] }
 0x99a   : > { %v3841_v0 = vunpack.c.l.b16 %v14467_v46  ;;  %v10974_v45 = vsel %vm3044_vm7, %v4824_v47, %v4823_v38  ;;  %v3848_v32 = vunpack.c.l.b16 %v14473_v54  ;;  %v3849_v47 = vunpack.c.l.b16 %v14475_v8  ;;  %v14476_v38 = vld [vmem:[#allocation200_spill] sm:$0xff] }
 0x99b   : > { %v3924_v35 = vrot.slane %v3837_v30, 7  ;;  %v3926_v37 = vrot.slane %v3838_v16, 6  ;;  %v3930_v19 = vrot.slane %v3840_v52, 4  ;;  %v3938_v55 = vrot.slane %v3845_v36, 7 }
 0x99c   : > { %v4578_v34 = vld [vmem:[#allocation1] sm:$0xf]  ;;  %v3932_v31 = vrot.slane %v3841_v0, 3  ;;  %v3940_v63 = vrot.slane %v3846_v2, 6  ;;  %v3946_v30 = vrot.slane %v3849_v47, 3  ;;  %v3936_v6 = vrot.slane %v3843_v24, 1 }
 0x99d   : > { %4581 = vst [vmem:[#allocation1] ss:$9 sm:$0xff] %v10929_v13  ;;  %v4748_v18 = vunpack.c.l.b16 %v4578_v34  ;;  %v3842_v34 = vunpack.c.l.b16 %v14468_v23  ;;  %v14474_v13 = vld [vmem:[#allocation194_spill] sm:$0xff]  ;;  %v3851_v23 = vunpack.c.l.b16 %v14477_v49  ;;  %v3925_v54 = vsel %vm14478_vm8, %v3924_v35, %v3836_v3  ;;  %v14482_v47 = vld [vmem:[#allocation249_spill] sm:$0xff]  ;;  %vm14514_vm8 = vmmov %vm14394_vm2 }
 0x99e   : > { %v3844_v46 = vunpack.c.l.b16 %v14474_v13  ;;  %v3927_v13 = vsel %vm1135_vm12, %v3926_v37, %v3925_v54 }
 0x99f   : > { %v4832_v40 = vrot.slane %v4748_v18, 4  ;;  %v3850_v18 = vunpack.c.l.b16 %v14476_v38  ;;  %v3934_v62 = vrot.slane %v3842_v34, 2  ;;  %v3929_v16 = vsel %vm1139_vm13, %v3928_v29, %v3927_v13  ;;  %v14486_v13 = vld [vmem:[#allocation257_spill] sm:$0xff] }
 0x9a0   : > { %v3939_v49 = vsel %vm14479_vm15, %v3938_v55, %v3844_v46  ;;  %v3931_v35 = vsel %vm3035_vm0, %v3930_v19, %v3929_v16  ;;  %v3950_v36 = vrot.slane %v3851_v23, 1  ;;  %v14481_v55 = vld [vmem:[#allocation247_spill] sm:$0xff]  ;;  %vm14530_vm15 = vcmask 1040384  }
 0x9a1   : > { %v4833_v59 = vsel %vm3035_vm0, %v4832_v40, %v4831_v7  ;;  %v3942_v7 = vrot.slane %v3847_v53, 5  ;;  %v3944_v40 = vrot.slane %v3848_v32, 4  ;;  %v3941_v52 = vsel %vm1135_vm12, %v3940_v63, %v3939_v49  ;;  %v14480_v32 = vld [vmem:[#allocation245_spill] sm:$0xff]  ;;  %v14483_v19 = vld [vmem:[#allocation251_spill] sm:$0xff] }
 0x9a2   : > { %v3948_v0 = vrot.slane %v3850_v18, 2  ;;  %v3933_v2 = vsel %vm3038_vm1, %v3932_v31, %v3931_v35  ;;  %v4262_v38 = vunpack.c.l.b16 %v14480_v32  ;;  %v4263_v46 = vunpack.c.l.b16 %v14481_v55  ;;  %v14487_v49 = vld [vmem:[#allocation259_spill] sm:$0xff] }
 0x9a3   : > { %v3943_v3 = vsel %vm1139_vm13, %v3942_v7, %v3941_v52  ;;  %v3935_v24 = vsel %vm3041_vm5, %v3934_v62, %v3933_v2  ;;  %v4264_v18 = vunpack.c.l.b16 %v14482_v47  ;;  %v4265_v31 = vunpack.c.l.b16 %v14483_v19  ;;  %v14488_v52 = vld [vmem:[#allocation261_spill] sm:$0xff]  ;;  %v14489_v35 = vld [vmem:[#allocation263_spill] sm:$0xff] }
 0x9a4   : > { %v4582_v1 = vld [vmem:[#allocation1] sm:$0xf]  ;;  %v3945_v53 = vsel %vm3035_vm0, %v3944_v40, %v3943_v3  ;;  %v3937_v37 = vsel %vm3044_vm7, %v3936_v6, %v3935_v24  ;;  %v14485_v40 = vld [vmem:[#allocation255_spill] sm:$0xff]  ;;  %v4269_v62 = vunpack.c.l.b16 %v14487_v49  ;;  %v4271_v6 = vunpack.c.l.b16 %v14489_v35  ;;  %v14490_v3 = vld [vmem:[#allocation265_spill] sm:$0xff] }
 0x9a5   : > { %4585 = vst [vmem:[#allocation1] ss:$9 sm:$0xff] %v10945_v5  ;;  %v4749_v8 = vunpack.c.l.b16 %v4582_v1  ;;  %v3947_v63 = vsel %vm3038_vm1, %v3946_v30, %v3945_v53  ;;  %v14484_v1 = vld [vmem:[#allocation253_spill] sm:$0xff]  ;;  %v14491_v53 = vld [vmem:[#allocation267_spill] sm:$0xff]  ;;  %v4352_v19 = vrot.slane %v4264_v18, 6 }
 0x9a6   : > { %v3949_v23 = vsel %vm3041_vm5, %v3948_v0, %v3947_v63  ;;  %v4266_v54 = vunpack.c.l.b16 %v14484_v1  ;;  %v4272_v0 = vunpack.c.l.b16 %v14490_v3  ;;  %v4273_v32 = vunpack.c.l.b16 %v14491_v53  ;;  %v14493_v24 = vld [vmem:[#allocation271_spill] sm:$0xff]  ;;  %v14494_v47 = vld [vmem:[#allocation273_spill] sm:$0xff] }
 0x9a7   : > { %v4834_v34 = vrot.slane %v4749_v8, 3  ;;  %v3951_v7 = vsel %vm3044_vm7, %v3950_v36, %v3949_v23  ;;  %v4267_v8 = vunpack.c.l.b16 %v14485_v40  ;;  %v14492_v36 = vld [vmem:[#allocation269_spill] sm:$0xff]  ;;  %v4275_v63 = vunpack.c.l.b16 %v14493_v24  ;;  %v14495_v40 = vld [vmem:[#allocation275_spill] sm:$0xff] }
 0x9a8   : > { %v3982_v30 = vpack.c.b16 %v3951_v7, %v3937_v37  ;;  %v4274_v55 = vunpack.c.l.b16 %v14492_v36  ;;  %v4276_v23 = vunpack.c.l.b16 %v14494_v47  ;;  %v4350_v37 = vrot.slane %v4263_v46, 7 }
 0x9a9   : > { %v4835_v29 = vsel %vm3038_vm1, %v4834_v34, %v4833_v59  ;;  %v4268_v59 = vunpack.c.l.b16 %v14486_v13  ;;  %v4270_v34 = vunpack.c.l.b16 %v14488_v52  ;;  %v4354_v1 = vrot.slane %v4265_v31, 5 }
 0x9aa   : > { %8265 = vmatmul.msk.bf16.gmra.mxu2 %vm13860_vm10, %v3982_v30  ;;  %v4277_v13 = vunpack.c.l.b16 %v14495_v40  ;;  %v4356_v49 = vrot.slane %v4266_v54, 4  ;;  %v4358_v52 = vrot.slane %v4267_v8, 3  ;;  %v4364_v3 = vrot.slane %v4271_v6, 7  ;;  %v14501_v40 = vld [vmem:[#allocation155_spill] sm:$0xff] }
 0x9ab   : > { %v4360_v35 = vrot.slane %v4268_v59, 2  ;;  %v4366_v53 = vrot.slane %v4272_v0, 6  ;;  %v4362_v24 = vrot.slane %v4269_v62, 1  ;;  %v4370_v30 = vrot.slane %v4274_v55, 4  ;;  %v14499_v55 = vld [vmem:[#allocation153_spill] sm:$0xff] }
 0x9ac   : > { %v4586_v16 = vld [vmem:[#allocation1] sm:$0xf]  ;;  %v4365_v18 = vsel %vm14497_vm11, %v4364_v3, %v4270_v34  ;;  %v4372_v31 = vrot.slane %v4275_v63, 3  ;;  %v4376_v59 = vrot.slane %v4277_v13, 1  ;;  %v3421_v13 = vunpack.c.l.b16 %v14501_v40  ;;  %v14503_v3 = vld [vmem:[#allocation157_spill] sm:$0xff]  ;;  %vm14553_vm11 = vmmov %vm14394_vm2 }
 0x9ad   : > { %4589 = vst [vmem:[#allocation1] ss:$9 sm:$0xff] %v10949_v27  ;;  %v4750_v2 = vunpack.c.l.b16 %v4586_v16  ;;  %v4351_v16 = vsel %vm14496_vm9, %v4350_v37, %v4262_v38  ;;  %v4368_v27 = vrot.slane %v4273_v32, 5  ;;  %v4367_v8 = vsel %vm1135_vm12, %v4366_v53, %v4365_v18  ;;  %v14500_v63 = vld [vmem:[#allocation154_spill] sm:$0xff]  ;;  %vm14544_vm9 = vmmov %vm14530_vm15 }
 0x9ae   : > { %v4353_v36 = vsel %vm1135_vm12, %v4352_v19, %v4351_v16  ;;  %v4374_v38 = vrot.slane %v4276_v23, 2  ;;  %v3423_v53 = vunpack.c.l.b16 %v14503_v3 }
 0x9af   : > { %v4836_v7 = vrot.slane %v4750_v2, 2  ;;  %v4355_v46 = vsel %vm1139_vm13, %v4354_v1, %v4353_v36  ;;  %v4369_v62 = vsel %vm1139_vm13, %v4368_v27, %v4367_v8  ;;  %v14498_v2 = vld [vmem:[#allocation152_spill] sm:$0xff]  ;;  %v3420_v1 = vunpack.c.l.b16 %v14500_v63  ;;  %v14511_v63 = vld [vmem:[#allocation165_spill] sm:$0xff] }
 0x9b0   : > { %v4357_v54 = vsel %vm3035_vm0, %v4356_v49, %v4355_v46  ;;  %v3418_v32 = vunpack.c.l.b16 %v14498_v2  ;;  %v4371_v34 = vsel %vm3035_vm0, %v4370_v30, %v4369_v62  ;;  %v14502_v27 = vld [vmem:[#allocation156_spill] sm:$0xff]  ;;  %v14505_v46 = vld [vmem:[#allocation159_spill] sm:$0xff] }
 0x9b1   : > { %v4837_v47 = vsel %vm3041_vm5, %v4836_v7, %v4835_v29  ;;  %v4359_v0 = vsel %vm3038_vm1, %v4358_v52, %v4357_v54  ;;  %v3419_v29 = vunpack.c.l.b16 %v14499_v55  ;;  %v4373_v7 = vsel %vm3038_vm1, %v4372_v31, %v4371_v34  ;;  %v14506_v54 = vld [vmem:[#allocation161_spill] sm:$0xff]  ;;  %v14508_v62 = vld [vmem:[#allocation163_spill] sm:$0xff]  ;;  %v14509_v55 = vld [vmem:[#allocation164_spill] sm:$0xff] }
 0x9b2   : > { %v4361_v19 = vsel %vm3041_vm5, %v4360_v35, %v4359_v0  ;;  %v3422_v49 = vunpack.c.l.b16 %v14502_v27  ;;  %v4375_v16 = vsel %vm3041_vm5, %v4374_v38, %v4373_v7  ;;  %v14504_v35 = vld [vmem:[#allocation158_spill] sm:$0xff]  ;;  %v3425_v18 = vunpack.c.l.b16 %v14505_v46  ;;  %v14513_v27 = vld [vmem:[#allocation167_spill] sm:$0xff] }
 0x9b3   : > { %v4363_v23 = vsel %vm3044_vm7, %v4362_v24, %v4361_v19  ;;  %v3424_v36 = vunpack.c.l.b16 %v14504_v35  ;;  %v4377_v30 = vsel %vm3044_vm7, %v4376_v59, %v4375_v16  ;;  %v3427_v8 = vunpack.c.l.b16 %v14506_v54  ;;  %v14507_v24 = vld [vmem:[#allocation162_spill] sm:$0xff]  ;;  %v14510_v19 = vld [vmem:[#allocation160_spill] sm:$0xff] }
 0x9b4   : > { %v4590_v6 = vld [vmem:[#allocation1] sm:$0xf]  ;;  %v4408_v0 = vpack.c.b16 %v4377_v30, %v4363_v23  ;;  %v3429_v2 = vunpack.c.l.b16 %v14508_v62  ;;  %v3426_v34 = vunpack.c.l.b16 %v14510_v19  ;;  %v3431_v7 = vunpack.c.l.b16 %v14511_v63 }
 0x9b5   : > { %v4751_v37 = vunpack.c.l.b16 %v4590_v6  ;;  %4593 = vst [vmem:[#allocation1] ss:$9 sm:$0xff] %v10958_v14  ;;  %v3428_v6 = vunpack.c.l.b16 %v14507_v24  ;;  %v14512_v59 = vld [vmem:[#allocation166_spill] sm:$0xff]  ;;  %v3433_v16 = vunpack.c.l.b16 %v14513_v27  ;;  %v3506_v3 = vrot.slane %v3419_v29, 7 }
 0x9b6   : > { %v3432_v40 = vunpack.c.l.b16 %v14512_v59  ;;  %8270 = vmatmul.msk.bf16.gmra.mxu3 %vm13860_vm10, %v4408_v0  ;;  %v3508_v35 = vrot.slane %v3420_v1, 6  ;;  %v3512_v23 = vrot.slane %v3422_v49, 4  ;;  %v3516_v30 = vrot.slane %v3424_v36, 2 }
 0x9b7   : > { %v4838_v52 = vrot.slane %v4751_v37, 1  ;;  %v3430_v37 = vunpack.c.l.b16 %v14509_v55  ;;  %v3520_v46 = vrot.slane %v3427_v8, 7  ;;  %v3507_v54 = vsel %vm14394_vm2, %v3506_v3, %v3418_v32  ;;  %v536_v55 = vld [vmem:[#allocation2 + $0x8c] sm:$0x1] }
 0x9b8   : > { %v3522_v24 = vrot.slane %v3428_v6, 6  ;;  %v3509_v0 = vsel %vm1135_vm12, %v3508_v35, %v3507_v54  ;;  %v3518_v19 = vrot.slane %v3425_v18, 1  ;;  %v3528_v1 = vrot.slane %v3431_v7, 3  ;;  %v14518_v35 = vld [vmem:[#allocation5_spill] sm:$0xff]  ;;  %v14520_v54 = vld [vmem:[#allocation232_spill] sm:$0xff] }
 0x9b9   : > { %v4839_v31 = vsel %vm3044_vm7, %v4838_v52, %v4837_v47  ;;  %v3510_v47 = vrot.slane %v3421_v13, 5  ;;  %v3514_v52 = vrot.slane %v3423_v53, 3  ;;  %v3526_v62 = vrot.slane %v3430_v37, 4 }
 0x9ba   : > { %v4897_v38 = vpack.c.b16 %v4839_v31, %v10974_v45  ;;  %v530_v45 = vld [vmem:[#allocation2 + $0x74] sm:$0x1]  ;;  %v3524_v31 = vrot.slane %v3429_v2, 5  ;;  %v3521_v29 = vsel %vm14514_vm8, %v3520_v46, %v3426_v34  ;;  %v3530_v53 = vrot.slane %v3432_v40, 2  ;;  %vm14572_vm8 = vmmov %vm14394_vm2 }
 0x9bb   : > { %v3511_v13 = vsel %vm1139_vm13, %v3510_v47, %v3509_v0  ;;  %v3523_v49 = vsel %vm1135_vm12, %v3522_v24, %v3521_v29  ;;  %v531_v36 = vsel %vm13975_vm14, 0, %v530_v45  ;;  %v3532_v2 = vrot.slane %v3433_v16, 1 }
 0x9bc   : > { %8274 = vmatmul.msk.bf16.gmra.mxu0 %vm13860_vm10, %v4897_v38  ;;  %v11064_v8 = vld [vmem:[#allocation1] sm:$0xf]  ;;  %v3513_v32 = vsel %vm3035_vm0, %v3512_v23, %v3511_v13  ;;  %v3525_v6 = vsel %vm1139_vm13, %v3524_v31, %v3523_v49  ;;  %532 = vst [vmem:[#allocation2 + $0x74] sm:$0x1] %v531_v36  ;;  %v537_v18 = vsel %vm13975_vm14, 0, %v536_v55  ;;  %v14515_v34 = vshll.u32 %v14462_v22, 16 }
 0x9bd   : > { %v3515_v37 = vsel %vm3038_vm1, %v3514_v52, %v3513_v32  ;;  %v3527_v38 = vsel %vm3035_vm0, %v3526_v62, %v3525_v6  ;;  %538 = vst [vmem:[#allocation2 + $0x8c] sm:$0x1] %v537_v18  ;;  %v14516_v63 = vshrl.u32 %v14456_v58, 16  ;;  %v740_v47 = vrot.slane %v14518_v35, 4  ;;  %v14519_v52 = vld [vmem:[#allocation248_spill] sm:$0xff] }
 0x9be   : > { %v3517_v59 = vsel %vm3041_vm5, %v3516_v30, %v3515_v37  ;;  %v3529_v40 = vsel %vm3038_vm1, %v3528_v1, %v3527_v38  ;;  %v2473_v23 = vshrl.u32 %v14462_v22, 16  ;;  %v2478_v46 = vshll.u32 %v14519_v52, 16  ;;  %v14522_v1 = vld [vmem:[#allocation250_spill] sm:$0xff]  ;;  %v14524_v32 = vld [vmem:[#allocation252_spill] sm:$0xff] }
 0x9bf   : > { %v11078_v7 = vsel %vm8578_vm4, %v14516_v63, %v14515_v34  ;;  %v3519_v27 = vsel %vm3044_vm7, %v3518_v19, %v3517_v59  ;;  %v3531_v16 = vsel %vm3041_vm5, %v3530_v53, %v3529_v40  ;;  %v774_v24 = vrot.slane %v14520_v54, 4  ;;  %v14526_v38 = vld [vmem:[#allocation254_spill] sm:$0xff] }
 0x9c0   : > { %14517 = vst [vmem:[#allocation140_spill] sm:$0xff] %v11078_v7  ;;  %v3533_v3 = vsel %vm3044_vm7, %v3532_v2, %v3531_v16  ;;  %v11095_v55 = vsel %vm8578_vm4, %v2473_v23, %v2478_v46  ;;  %v2481_v29 = vshrl.u32 %v14519_v52, 16  ;;  %v2485_v13 = vshll.u32 %v14522_v1, 16  ;;  %v14528_v16 = vld [vmem:[#allocation256_spill] sm:$0xff] }
 0x9c1   : > { %4597 = vst [vmem:[#allocation1] ss:$9 sm:$0xff] %v11078_v7  ;;  %v3564_v45 = vpack.c.b16 %v3533_v3, %v3519_v27  ;;  %v2488_v36 = vshrl.u32 %v14522_v1, 16  ;;  %v2493_v6 = vshll.u32 %v14524_v32, 16  ;;  %v2496_v37 = vshrl.u32 %v14524_v32, 16 }
 0x9c2   : > { %14521 = vst [vmem:[#allocation141_spill] sm:$0xff] %v11095_v55  ;;  %v11106_v49 = vsel %vm8578_vm4, %v2481_v29, %v2485_v13  ;;  %v2501_v34 = vshll.u32 %v14526_v38, 16  ;;  %v2504_v27 = vshrl.u32 %v14526_v38, 16  ;;  %v2509_v3 = vshll.u32 %v14528_v16, 16 }
 0x9c3   : > { %8260 = vmatmul.msk.bf16.gmra.mxu1 %vm13860_vm10, %v3564_v45  ;;  %v970_v30 = vld [vmem:[#allocation2 + $0x74] sm:$0x1]  ;;  %14523 = vst [vmem:[#allocation142_spill] sm:$0xff] %v11106_v49  ;;  %v11115_v2 = vsel %vm8578_vm4, %v2488_v36, %v2493_v6  ;;  %v2512_v45 = vshrl.u32 %v14528_v16, 16 }
 0x9c4   : > { %v971_v31 = vsel %vm13951_vm6, %v740_v47, %v970_v30  ;;  %v984_v62 = vld [vmem:[#allocation2 + $0x8c] sm:$0x1]  ;;  %14525 = vst [vmem:[#allocation143_spill] sm:$0xff] %v11115_v2  ;;  %v11124_v63 = vsel %vm8578_vm4, %v2496_v37, %v2501_v34  ;;  %v11133_v47 = vsel %vm8578_vm4, %v2504_v27, %v2509_v3  ;;  %v14536_v37 = vld [vmem:[#allocation262_spill] sm:$0xff] }
 0x9c5   : > { %972 = vst [vmem:[#allocation2 + $0x74] sm:$0x1] %v971_v31  ;;  %v985_v0 = vsel %vm13951_vm6, %v774_v24, %v984_v62  ;;  %v14533_v31 = vld [vmem:[#allocation258_spill] sm:$0xff]  ;;  %v2532_v34 = vshll.u32 %v14536_v37, 16  ;;  %v2535_v3 = vshrl.u32 %v14536_v37, 16 }
 0x9c6   : > { %986 = vst [vmem:[#allocation2 + $0x8c] sm:$0x1] %v985_v0  ;;  %v2519_v62 = vshrl.u32 %v14533_v31, 16  ;;  %v14534_v0 = vld [vmem:[#allocation260_spill] sm:$0xff] }
 0x9c7   : > { %14527 = vst [vmem:[#allocation145_spill] sm:$0xff] %v11124_v63  ;;  %v2524_v29 = vshll.u32 %v14534_v0, 16  ;;  %v2527_v6 = vshrl.u32 %v14534_v0, 16 }
 0x9c8   : > { %v11099_v19 = vld [vmem:[#allocation1] sm:$0xf]  ;;  %14529 = vst [vmem:[#allocation146_spill] sm:$0xff] %v11133_v47 }
 0x9c9   : > { %4601 = vst [vmem:[#allocation1] ss:$9 sm:$0xff] %v11095_v55  ;;  %v11154_v13 = vsel %vm8578_vm4, %v2519_v62, %v2524_v29  ;;  %v14540_v29 = vld [vmem:[#allocation266_spill] sm:$0xff] }
 0x9ca   : > { %14535 = vst [vmem:[#allocation144_spill] sm:$0xff] %v11154_v13 }
 0x9cc   : > { %v1051_v59 = vld [vmem:[#allocation2 + $0x74] sm:$0x1] }
 0x9cd   : > { %v1983_v35 = vrot.slane %v1051_v59, 3 }
 0x9cf   : > { %v11136_v23 = vsel %vm14530_vm15, %v1051_v59, %v1983_v35  ;;  %v11161_v59 = vsel %vm8578_vm4, %v2527_v6, %v2532_v34  ;;  %v14538_v35 = vld [vmem:[#allocation264_spill] sm:$0xff]  ;;  %vm14573_vm15 = vmmov %vm14394_vm2 }
 0x9d0   : > { %v11108_v53 = vld [vmem:[#allocation1] sm:$0xf]  ;;  %14531 = vst [vmem:[#allocation147_spill] sm:$0xff] %v11136_v23  ;;  %v2516_v54 = vshll.u32 %v11136_v23, 16  ;;  %v2543_v62 = vshrl.u32 %v14538_v35, 16 }
 0x9d1   : > { %4605 = vst [vmem:[#allocation1] ss:$9 sm:$0xff] %v11106_v49  ;;  %v1057_v6 = vld [vmem:[#allocation2 + $0x8c] sm:$0x1] }
 0x9d2   : > { %v11145_v24 = vsel %vm8578_vm4, %v2512_v45, %v2516_v54  ;;  %14537 = vst [vmem:[#allocation149_spill] sm:$0xff] %v11161_v59  ;;  %v2540_v45 = vshll.u32 %v14538_v35, 16 }
 0x9d3   : > { %14532 = vst [vmem:[#allocation148_spill] sm:$0xff] %v11145_v24 }
 0x9d4   : > { %v11168_v54 = vsel %vm8578_vm4, %v2535_v3, %v2540_v45  ;;  %v14542_v3 = vld [vmem:[#allocation268_spill] sm:$0xff] }
 0x9d5   : > { %14539 = vst [vmem:[#allocation150_spill] sm:$0xff] %v11168_v54  ;;  %v2555_v45 = vshll.u32 %v14542_v3, 16 }
 0x9d8   : > { %v11117_v18 = vld [vmem:[#allocation1] sm:$0xf] }
 0x9d9   : > { %4609 = vst [vmem:[#allocation1] ss:$9 sm:$0xff] %v11115_v2  ;;  %v4755_v61 = vunpack.c.l.b16 %v11117_v18 }
 0x9e0   : > { %v11126_v40 = vld [vmem:[#allocation1] sm:$0xf] }
 0x9e1   : > { %4613 = vst [vmem:[#allocation1] ss:$9 sm:$0xff] %v11124_v63  ;;  %v2558_v63 = vshrl.u32 %v14542_v3, 16  ;;  %v14550_v3 = vld [vmem:[#allocation276_spill] sm:$0xff] }
 0x9e8   : > { %v11138_v46 = vld [vmem:[#allocation1] sm:$0xf] }
 0x9e9   : > { %4617 = vst [vmem:[#allocation1] ss:$9 sm:$0xff] %v11133_v47  ;;  %v2550_v47 = vshrl.u32 %v14540_v29, 16 }
 0x9eb   : > { %v11187_v55 = vsel %vm8578_vm4, %v2550_v47, %v2555_v45  ;;  %v4753_v47 = vunpack.c.l.b16 %v11099_v19  ;;  %v4754_v45 = vunpack.c.l.b16 %v11108_v53  ;;  %v4844_v19 = vrot.slane %v4755_v61, 5 }
 0x9ec   : > { %14546 = vst [vmem:[#allocation235_spill] sm:$0xff] %v11187_v55  ;;  %v2586_v53 = vshll.u32 %v14550_v3, 16 }
 0x9f0   : > { %v11147_v30 = vld [vmem:[#allocation1] sm:$0xf] }
 0x9f1   : > { %4621 = vst [vmem:[#allocation1] ss:$9 sm:$0xff] %v11145_v24  ;;  %v4758_v4 = vunpack.c.l.b16 %v11147_v30 }
 0x9f3   : > { %v4850_v61 = vrot.slane %v4758_v4, 2 }
 0x9f8   : > { %v4622_v36 = vld [vmem:[#allocation1] sm:$0xf] }
 0x9f9   : > { %4625 = vst [vmem:[#allocation1] ss:$9 sm:$0xff] %v11154_v13  ;;  %v2547_v13 = vshll.u32 %v14540_v29, 16  ;;  %v4759_v28 = vunpack.c.l.b16 %v4622_v36  ;;  %v14571_v29 = vld [vmem:[#allocation217_spill] sm:$0xff] }
 0x9fb   : > { %v11175_v34 = vsel %vm8578_vm4, %v2543_v62, %v2547_v13  ;;  %v14547_v62 = vld [vmem:[#allocation272_spill] sm:$0xff] }
 0x9fc   : > { %14541 = vst [vmem:[#allocation151_spill] sm:$0xff] %v11175_v34  ;;  %v2571_v7 = vshll.u32 %v14547_v62, 16  ;;  %v2574_v14 = vshrl.u32 %v14547_v62, 16 }
 0xa00   : > { %v4626_v27 = vld [vmem:[#allocation1] sm:$0xf] }
 0xa01   : > { %4629 = vst [vmem:[#allocation1] ss:$9 sm:$0xff] %v11161_v59  ;;  %v1986_v59 = vrot.slane %v1057_v6, 3  ;;  %v4760_v43 = vunpack.c.l.b16 %v4626_v27 }
 0xa03   : > { %v11183_v49 = vsel %vm14544_vm9, %v1057_v6, %v1986_v59  ;;  %v4752_v6 = vunpack.c.l.b16 %v11064_v8  ;;  %v4840_v8 = vrot.slane %v4753_v47, 7  ;;  %v4852_v47 = vrot.slane %v4759_v28, 1  ;;  %v14556_v28 = vld [vmem:[#allocation278_spill] sm:$0xff]  ;;  %vm14590_vm9 = vmmov %vm14394_vm2 }
 0xa04   : > { %14545 = vst [vmem:[#allocation11_spill] sm:$0xff] %v11183_v49  ;;  %v2578_v5 = vshll.u32 %v11183_v49, 16 }
 0xa05   : > { %v4841_v36 = vsel %vm14553_vm11, %v4840_v8, %v4752_v6  ;;  %vm14591_vm11 = vmmov %vm14394_vm2 }
 0xa08   : > { %v4630_v31 = vld [vmem:[#allocation1] sm:$0xf] }
 0xa09   : > { %4633 = vst [vmem:[#allocation1] ss:$9 sm:$0xff] %v11168_v54  ;;  %v14543_v54 = vld [vmem:[#allocation270_spill] sm:$0xff]  ;;  %v4761_v11 = vunpack.c.l.b16 %v4630_v31 }
 0xa0a   : > { %v2563_v2 = vshll.u32 %v14543_v54, 16  ;;  %v2566_v13 = vshrl.u32 %v14543_v54, 16  ;;  %v4842_v54 = vrot.slane %v4754_v45, 6 }
 0xa0b   : > { %v4854_v30 = vrot.slane %v4761_v11, 7  ;;  %v14557_v11 = vld [vmem:[#allocation203_spill] sm:$0xff] }
 0xa0c   : > { %v11209_v18 = vsel %vm8578_vm4, %v2566_v13, %v2571_v7  ;;  %v3853_v8 = vunpack.c.l.b16 %v14557_v11 }
 0xa0d   : > { %14551 = vst [vmem:[#allocation237_spill] sm:$0xff] %v11209_v18  ;;  %v4855_v45 = vsel %vm14394_vm2, %v4854_v30, %v4760_v43  ;;  %v14559_v30 = vld [vmem:[#allocation205_spill] sm:$0xff] }
 0xa0e   : > { %v3952_v35 = vrot.slane %v3853_v8, 7 }
 0xa10   : > { %v4634_v24 = vld [vmem:[#allocation1] sm:$0xf] }
 0xa11   : > { %4637 = vst [vmem:[#allocation1] ss:$9 sm:$0xff] %v11175_v34  ;;  %v11193_v34 = vsel %vm8578_vm4, %v2558_v63, %v2563_v2  ;;  %v4756_v2 = vunpack.c.l.b16 %v11126_v40  ;;  %v4757_v63 = vunpack.c.l.b16 %v11138_v46  ;;  %v4762_v49 = vunpack.c.l.b16 %v4634_v24 }
 0xa12   : > { %14548 = vst [vmem:[#allocation236_spill] sm:$0xff] %v11193_v34  ;;  %v11213_v40 = vsel %vm8578_vm4, %v2574_v14, %v2578_v5  ;;  %v11222_v5 = vsel %vm8578_vm4, %v2581_v39, %v2586_v53  ;;  %v14558_v39 = vld [vmem:[#allocation204_spill] sm:$0xff] }
 0xa13   : > { %14552 = vst [vmem:[#allocation238_spill] sm:$0xff] %v11213_v40  ;;  %v4846_v46 = vrot.slane %v4756_v2, 4  ;;  %v4848_v27 = vrot.slane %v4757_v63, 3  ;;  %v4856_v24 = vrot.slane %v4762_v49, 6  ;;  %v14565_v14 = vld [vmem:[#allocation212_spill] sm:$0xff]  ;;  %v14566_v2 = vld [vmem:[#allocation213_spill] sm:$0xff] }
 0xa14   : > { %14554 = vst [vmem:[#allocation239_spill] sm:$0xff] %v11222_v5 }
 0xa15   : > { %v4857_v13 = vsel %vm1135_vm12, %v4856_v24, %v4855_v45 }
 0xa18   : > { %v4638_v59 = vld [vmem:[#allocation1] sm:$0xf] }
 0xa19   : > { %4641 = vst [vmem:[#allocation1] ss:$9 sm:$0xff] %v11187_v55  ;;  %v4763_v62 = vunpack.c.l.b16 %v4638_v59  ;;  %v4843_v59 = vsel %vm1135_vm12, %v4842_v54, %v4841_v36  ;;  %v14555_v54 = vld [vmem:[#allocation202_spill] sm:$0xff]  ;;  %v3855_v36 = vunpack.c.l.b16 %v14559_v30  ;;  %v14569_v55 = vld [vmem:[#allocation215_spill] sm:$0xff] }
 0xa1a   : > { %v4845_v7 = vsel %vm1139_vm13, %v4844_v19, %v4843_v59  ;;  %v3852_v4 = vunpack.c.l.b16 %v14555_v54  ;;  %v3854_v19 = vunpack.c.l.b16 %v14558_v39  ;;  %v14563_v54 = vld [vmem:[#allocation209_spill] sm:$0xff]  ;;  %v3862_v39 = vunpack.c.l.b16 %v14565_v14 }
 0xa1b   : > { %v4858_v31 = vrot.slane %v4763_v62, 5  ;;  %v4847_v49 = vsel %vm3035_vm0, %v4846_v46, %v4845_v7  ;;  %v14560_v46 = vld [vmem:[#allocation206_spill] sm:$0xff]  ;;  %v3956_v37 = vrot.slane %v3855_v36, 5 }
 0xa1c   : > { %v4849_v63 = vsel %vm3038_vm1, %v4848_v27, %v4847_v49  ;;  %v3856_v24 = vunpack.c.l.b16 %v14560_v46  ;;  %v3859_v27 = vunpack.c.l.b16 %v14563_v54  ;;  %v14564_v49 = vld [vmem:[#allocation211_spill] sm:$0xff]  ;;  %v3954_v54 = vrot.slane %v3854_v19, 6 }
 0xa1d   : > { %v4859_v62 = vsel %vm1139_vm13, %v4858_v31, %v4857_v13  ;;  %v4851_v53 = vsel %vm3041_vm5, %v4850_v61, %v4849_v63  ;;  %v14561_v31 = vld [vmem:[#allocation207_spill] sm:$0xff]  ;;  %v14562_v13 = vld [vmem:[#allocation208_spill] sm:$0xff]  ;;  %v3861_v11 = vunpack.c.l.b16 %v14564_v49  ;;  %v3863_v61 = vunpack.c.l.b16 %v14566_v2  ;;  %v14567_v63 = vld [vmem:[#allocation214_spill] sm:$0xff] }
 0xa1e   : > { %v3857_v59 = vunpack.c.l.b16 %v14561_v31  ;;  %v11238_v45 = vsel %vm3044_vm7, %v4852_v47, %v4851_v53  ;;  %v3864_v30 = vunpack.c.l.b16 %v14567_v63  ;;  %v3865_v47 = vunpack.c.l.b16 %v14569_v55  ;;  %v14570_v53 = vld [vmem:[#allocation216_spill] sm:$0xff] }
 0xa1f   : > { %v3958_v49 = vrot.slane %v3856_v24, 4  ;;  %v3966_v23 = vrot.slane %v3861_v11, 7  ;;  %v3953_v63 = vsel %vm14572_vm8, %v3952_v35, %v3852_v4  ;;  %v3968_v16 = vrot.slane %v3862_v39, 6  ;;  %vm14608_vm8 = vmmov %vm14394_vm2 }
 0xa20   : > { %v4642_v6 = vld [vmem:[#allocation1] sm:$0xf]  ;;  %v3960_v0 = vrot.slane %v3857_v59, 3  ;;  %v3974_v8 = vrot.slane %v3865_v47, 3  ;;  %v3964_v36 = vrot.slane %v3859_v27, 1  ;;  %v14576_v47 = vld [vmem:[#allocation281_spill] sm:$0xff] }
 0xa21   : > { %4645 = vst [vmem:[#allocation1] ss:$9 sm:$0xff] %v11193_v34  ;;  %v4764_v43 = vunpack.c.l.b16 %v4642_v6  ;;  %v3858_v6 = vunpack.c.l.b16 %v14562_v13  ;;  %v14568_v34 = vld [vmem:[#allocation210_spill] sm:$0xff]  ;;  %v3867_v13 = vunpack.c.l.b16 %v14571_v29 }
 0xa22   : > { %v3860_v31 = vunpack.c.l.b16 %v14568_v34  ;;  %v3955_v34 = vsel %vm1135_vm12, %v3954_v54, %v3953_v63 }
 0xa23   : > { %v4860_v7 = vrot.slane %v4764_v43, 4  ;;  %v3866_v43 = vunpack.c.l.b16 %v14570_v53  ;;  %v3962_v14 = vrot.slane %v3858_v6, 2  ;;  %v3957_v19 = vsel %vm1139_vm13, %v3956_v37, %v3955_v34  ;;  %v14580_v34 = vld [vmem:[#allocation289_spill] sm:$0xff] }
 0xa24   : > { %v3967_v29 = vsel %vm14573_vm15, %v3966_v23, %v3860_v31  ;;  %v3959_v35 = vsel %vm3035_vm0, %v3958_v49, %v3957_v19  ;;  %v3978_v11 = vrot.slane %v3867_v13, 1  ;;  %v14575_v23 = vld [vmem:[#allocation279_spill] sm:$0xff] }
 0xa25   : > { %v4861_v46 = vsel %vm3035_vm0, %v4860_v7, %v4859_v62  ;;  %v3970_v62 = vrot.slane %v3863_v61, 5  ;;  %v3972_v7 = vrot.slane %v3864_v30, 4  ;;  %v3969_v24 = vsel %vm1135_vm12, %v3968_v16, %v3967_v29  ;;  %v14574_v30 = vld [vmem:[#allocation277_spill] sm:$0xff]  ;;  %v14577_v49 = vld [vmem:[#allocation283_spill] sm:$0xff] }
 0xa26   : > { %v3976_v59 = vrot.slane %v3866_v43, 2  ;;  %v3961_v39 = vsel %vm3038_vm1, %v3960_v0, %v3959_v35  ;;  %v4278_v53 = vunpack.c.l.b16 %v14574_v30  ;;  %v4279_v31 = vunpack.c.l.b16 %v14575_v23  ;;  %v14581_v29 = vld [vmem:[#allocation291_spill] sm:$0xff] }
 0xa27   : > { %v3971_v4 = vsel %vm1139_vm13, %v3970_v62, %v3969_v24  ;;  %v3963_v27 = vsel %vm3041_vm5, %v3962_v14, %v3961_v39  ;;  %v4280_v43 = vunpack.c.l.b16 %v14576_v47  ;;  %v4281_v0 = vunpack.c.l.b16 %v14577_v49  ;;  %v14582_v24 = vld [vmem:[#allocation293_spill] sm:$0xff]  ;;  %v14583_v35 = vld [vmem:[#allocation295_spill] sm:$0xff] }
 0xa28   : > { %v4646_v2 = vld [vmem:[#allocation1] sm:$0xf]  ;;  %v3973_v61 = vsel %vm3035_vm0, %v3972_v7, %v3971_v4  ;;  %v3965_v54 = vsel %vm3044_vm7, %v3964_v36, %v3963_v27  ;;  %v14579_v7 = vld [vmem:[#allocation287_spill] sm:$0xff]  ;;  %v4285_v14 = vunpack.c.l.b16 %v14581_v29  ;;  %v4287_v36 = vunpack.c.l.b16 %v14583_v35  ;;  %v14584_v4 = vld [vmem:[#allocation297_spill] sm:$0xff] }
 0xa29   : > { %4649 = vst [vmem:[#allocation1] ss:$9 sm:$0xff] %v11209_v18  ;;  %v4765_v55 = vunpack.c.l.b16 %v4646_v2  ;;  %v3975_v16 = vsel %vm3038_vm1, %v3974_v8, %v3973_v61  ;;  %v14578_v2 = vld [vmem:[#allocation285_spill] sm:$0xff]  ;;  %v14585_v61 = vld [vmem:[#allocation299_spill] sm:$0xff]  ;;  %v4380_v49 = vrot.slane %v4280_v43, 6 }
 0xa2a   : > { %v3977_v13 = vsel %vm3041_vm5, %v3976_v59, %v3975_v16  ;;  %v4282_v63 = vunpack.c.l.b16 %v14578_v2  ;;  %v4288_v59 = vunpack.c.l.b16 %v14584_v4  ;;  %v4289_v30 = vunpack.c.l.b16 %v14585_v61  ;;  %v14587_v27 = vld [vmem:[#allocation303_spill] sm:$0xff]  ;;  %v14588_v47 = vld [vmem:[#allocation305_spill] sm:$0xff] }
 0xa2b   : > { %v4862_v6 = vrot.slane %v4765_v55, 3  ;;  %v3979_v62 = vsel %vm3044_vm7, %v3978_v11, %v3977_v13  ;;  %v4283_v55 = vunpack.c.l.b16 %v14579_v7  ;;  %v14586_v11 = vld [vmem:[#allocation301_spill] sm:$0xff]  ;;  %v4291_v16 = vunpack.c.l.b16 %v14587_v27  ;;  %v14589_v7 = vld [vmem:[#allocation306_spill] sm:$0xff] }
 0xa2c   : > { %v3983_v8 = vpack.c.b16 %v3979_v62, %v3965_v54  ;;  %v4290_v23 = vunpack.c.l.b16 %v14586_v11  ;;  %v4292_v13 = vunpack.c.l.b16 %v14588_v47  ;;  %v4378_v54 = vrot.slane %v4279_v31, 7 }
 0xa2d   : > { %v4863_v37 = vsel %vm3038_vm1, %v4862_v6, %v4861_v46  ;;  %v4284_v46 = vunpack.c.l.b16 %v14580_v34  ;;  %v4286_v6 = vunpack.c.l.b16 %v14582_v24  ;;  %v4382_v2 = vrot.slane %v4281_v0, 5 }
 0xa2e   : > { %8266 = vmatmul.msk.bf16.gmra.mxu2 %vm13860_vm10, %v3983_v8  ;;  %v4293_v34 = vunpack.c.l.b16 %v14589_v7  ;;  %v4384_v29 = vrot.slane %v4282_v63, 4  ;;  %v4386_v24 = vrot.slane %v4283_v55, 3  ;;  %v4392_v4 = vrot.slane %v4287_v36, 7  ;;  %v14595_v7 = vld [vmem:[#allocation171_spill] sm:$0xff] }
 0xa2f   : > { %v4388_v35 = vrot.slane %v4284_v46, 2  ;;  %v4394_v61 = vrot.slane %v4288_v59, 6  ;;  %v4390_v27 = vrot.slane %v4285_v14, 1  ;;  %v4398_v8 = vrot.slane %v4290_v23, 4  ;;  %v14593_v23 = vld [vmem:[#allocation169_spill] sm:$0xff] }
 0xa30   : > { %v4650_v19 = vld [vmem:[#allocation1] sm:$0xf]  ;;  %v4393_v43 = vsel %vm14591_vm11, %v4392_v4, %v4286_v6  ;;  %v4400_v0 = vrot.slane %v4291_v16, 3  ;;  %v4404_v46 = vrot.slane %v4293_v34, 1  ;;  %v3437_v34 = vunpack.c.l.b16 %v14595_v7  ;;  %v14597_v4 = vld [vmem:[#allocation173_spill] sm:$0xff]  ;;  %vm14644_vm11 = vmmov %vm14394_vm2 }
 0xa31   : > { %4653 = vst [vmem:[#allocation1] ss:$9 sm:$0xff] %v11213_v40  ;;  %v4766_v39 = vunpack.c.l.b16 %v4650_v19  ;;  %v4379_v19 = vsel %vm14590_vm9, %v4378_v54, %v4278_v53  ;;  %v4396_v40 = vrot.slane %v4289_v30, 5  ;;  %v4395_v55 = vsel %vm1135_vm12, %v4394_v61, %v4393_v43  ;;  %v14594_v16 = vld [vmem:[#allocation170_spill] sm:$0xff] }
 0xa32   : > { %v4381_v11 = vsel %vm1135_vm12, %v4380_v49, %v4379_v19  ;;  %v4402_v53 = vrot.slane %v4292_v13, 2  ;;  %v3439_v61 = vunpack.c.l.b16 %v14597_v4 }
 0xa33   : > { %v4864_v62 = vrot.slane %v4766_v39, 2  ;;  %v4383_v31 = vsel %vm1139_vm13, %v4382_v2, %v4381_v11  ;;  %v4397_v14 = vsel %vm1139_vm13, %v4396_v40, %v4395_v55  ;;  %v14592_v39 = vld [vmem:[#allocation168_spill] sm:$0xff]  ;;  %v3436_v2 = vunpack.c.l.b16 %v14594_v16  ;;  %v14605_v16 = vld [vmem:[#allocation181_spill] sm:$0xff] }
 0xa34   : > { %v4385_v63 = vsel %vm3035_vm0, %v4384_v29, %v4383_v31  ;;  %v3434_v30 = vunpack.c.l.b16 %v14592_v39  ;;  %v4399_v6 = vsel %vm3035_vm0, %v4398_v8, %v4397_v14  ;;  %v14596_v40 = vld [vmem:[#allocation172_spill] sm:$0xff]  ;;  %v14599_v31 = vld [vmem:[#allocation175_spill] sm:$0xff] }
 0xa35   : > { %v4865_v47 = vsel %vm3041_vm5, %v4864_v62, %v4863_v37  ;;  %v4387_v59 = vsel %vm3038_vm1, %v4386_v24, %v4385_v63  ;;  %v3435_v37 = vunpack.c.l.b16 %v14593_v23  ;;  %v4401_v62 = vsel %vm3038_vm1, %v4400_v0, %v4399_v6  ;;  %v14600_v63 = vld [vmem:[#allocation177_spill] sm:$0xff]  ;;  %v14602_v14 = vld [vmem:[#allocation179_spill] sm:$0xff]  ;;  %v14603_v23 = vld [vmem:[#allocation180_spill] sm:$0xff] }
 0xa36   : > { %v4389_v49 = vsel %vm3041_vm5, %v4388_v35, %v4387_v59  ;;  %v3438_v29 = vunpack.c.l.b16 %v14596_v40  ;;  %v4403_v19 = vsel %vm3041_vm5, %v4402_v53, %v4401_v62  ;;  %v14598_v35 = vld [vmem:[#allocation174_spill] sm:$0xff]  ;;  %v3441_v43 = vunpack.c.l.b16 %v14599_v31  ;;  %v14607_v40 = vld [vmem:[#allocation183_spill] sm:$0xff] }
 0xa37   : > { %v4391_v13 = vsel %vm3044_vm7, %v4390_v27, %v4389_v49  ;;  %v3440_v11 = vunpack.c.l.b16 %v14598_v35  ;;  %v4405_v8 = vsel %vm3044_vm7, %v4404_v46, %v4403_v19  ;;  %v3443_v55 = vunpack.c.l.b16 %v14600_v63  ;;  %v14601_v27 = vld [vmem:[#allocation178_spill] sm:$0xff]  ;;  %v14604_v49 = vld [vmem:[#allocation176_spill] sm:$0xff] }
 0xa38   : > { %v4654_v36 = vld [vmem:[#allocation1] sm:$0xf]  ;;  %v4409_v59 = vpack.c.b16 %v4405_v8, %v4391_v13  ;;  %v3445_v39 = vunpack.c.l.b16 %v14602_v14  ;;  %v3442_v6 = vunpack.c.l.b16 %v14604_v49  ;;  %v3447_v62 = vunpack.c.l.b16 %v14605_v16 }
 0xa39   : > { %v4767_v54 = vunpack.c.l.b16 %v4654_v36  ;;  %4657 = vst [vmem:[#allocation1] ss:$9 sm:$0xff] %v11222_v5  ;;  %v3444_v36 = vunpack.c.l.b16 %v14601_v27  ;;  %v14606_v46 = vld [vmem:[#allocation182_spill] sm:$0xff]  ;;  %v3449_v19 = vunpack.c.l.b16 %v14607_v40  ;;  %v3534_v4 = vrot.slane %v3435_v37, 7 }
 0xa3a   : > { %v3448_v7 = vunpack.c.l.b16 %v14606_v46  ;;  %8271 = vmatmul.msk.bf16.gmra.mxu3 %vm13860_vm10, %v4409_v59  ;;  %v3536_v35 = vrot.slane %v3436_v2, 6  ;;  %v3540_v13 = vrot.slane %v3438_v29, 4  ;;  %v3544_v8 = vrot.slane %v3440_v11, 2 }
 0xa3b   : > { %v4866_v24 = vrot.slane %v4767_v54, 1  ;;  %v3446_v54 = vunpack.c.l.b16 %v14603_v23  ;;  %v3548_v31 = vrot.slane %v3443_v55, 7  ;;  %v3535_v63 = vsel %vm14394_vm2, %v3534_v4, %v3434_v30  ;;  %v548_v23 = vld [vmem:[#allocation2 + $0xbc] sm:$0x1]  ;;  %v14612_v4 = vld [vmem:[#allocation233_spill] sm:$0xff] }
 0xa3c   : > { %v3550_v27 = vrot.slane %v3444_v36, 6  ;;  %v3537_v59 = vsel %vm1135_vm12, %v3536_v35, %v3535_v63  ;;  %v3546_v49 = vrot.slane %v3441_v43, 1  ;;  %v3556_v2 = vrot.slane %v3447_v62, 3 }
 0xa3d   : > { %v4867_v0 = vsel %vm3044_vm7, %v4866_v24, %v4865_v47  ;;  %v3538_v47 = vrot.slane %v3437_v34, 5  ;;  %v3542_v24 = vrot.slane %v3439_v61, 3  ;;  %v3554_v14 = vrot.slane %v3446_v54, 4 }
 0xa3e   : > { %v4898_v53 = vpack.c.b16 %v4867_v0, %v11238_v45  ;;  %v542_v45 = vld [vmem:[#allocation2 + $0xa4] sm:$0x1]  ;;  %v3552_v0 = vrot.slane %v3445_v39, 5  ;;  %v3549_v37 = vsel %vm14608_vm8, %v3548_v31, %v3442_v6  ;;  %v3558_v61 = vrot.slane %v3448_v7, 2 }
 0xa3f   : > { %v3539_v34 = vsel %vm1139_vm13, %v3538_v47, %v3537_v59  ;;  %v3551_v29 = vsel %vm1135_vm12, %v3550_v27, %v3549_v37  ;;  %v543_v11 = vsel %vm13975_vm14, 0, %v542_v45  ;;  %v3560_v39 = vrot.slane %v3449_v19, 1  ;;  %v14614_v45 = vld [vmem:[#allocation234_spill] sm:$0xff] }
 0xa40   : > { %8275 = vmatmul.msk.bf16.gmra.mxu0 %vm13860_vm10, %v4898_v53  ;;  %v11328_v55 = vld [vmem:[#allocation1] sm:$0xf]  ;;  %v3541_v30 = vsel %vm3035_vm0, %v3540_v13, %v3539_v34  ;;  %v3553_v36 = vsel %vm1139_vm13, %v3552_v0, %v3551_v29  ;;  %544 = vst [vmem:[#allocation2 + $0xa4] sm:$0x1] %v543_v11  ;;  %v549_v43 = vsel %vm13975_vm14, 0, %v548_v23  ;;  %v14609_v6 = vshll.u32 %v14556_v28, 16 }
 0xa41   : > { %v3543_v54 = vsel %vm3038_vm1, %v3542_v24, %v3541_v30  ;;  %v3555_v53 = vsel %vm3035_vm0, %v3554_v14, %v3553_v36  ;;  %550 = vst [vmem:[#allocation2 + $0xbc] sm:$0x1] %v549_v43  ;;  %v14610_v16 = vshrl.u32 %v14550_v3, 16  ;;  %v808_v35 = vrot.slane %v14612_v4, 4  ;;  %v14613_v13 = vld [vmem:[#allocation280_spill] sm:$0xff]  ;;  %v14616_v37 = vld [vmem:[#allocation282_spill] sm:$0xff] }
 0xa42   : > { %v3545_v46 = vsel %vm3041_vm5, %v3544_v8, %v3543_v54  ;;  %v3557_v7 = vsel %vm3038_vm1, %v3556_v2, %v3555_v53  ;;  %v2597_v47 = vshrl.u32 %v14556_v28, 16  ;;  %v2602_v24 = vshll.u32 %v14613_v13, 16  ;;  %v14620_v43 = vld [vmem:[#allocation286_spill] sm:$0xff] }
 0xa43   : > { %v11342_v62 = vsel %vm8578_vm4, %v14610_v16, %v14609_v6  ;;  %v3547_v12 = vsel %vm3044_vm7, %v3546_v49, %v3545_v46  ;;  %v3559_v40 = vsel %vm3041_vm5, %v3558_v61, %v3557_v7  ;;  %v842_v63 = vrot.slane %v14614_v45, 4  ;;  %v14618_v61 = vld [vmem:[#allocation284_spill] sm:$0xff] }
 0xa44   : > { %14611 = vst [vmem:[#allocation240_spill] sm:$0xff] %v11342_v62  ;;  %v3561_v19 = vsel %vm3044_vm7, %v3560_v39, %v3559_v40  ;;  %v11359_v14 = vsel %vm8578_vm4, %v2597_v47, %v2602_v24  ;;  %v2605_v49 = vshrl.u32 %v14613_v13, 16  ;;  %v2609_v2 = vshll.u32 %v14616_v37, 16  ;;  %v14622_v7 = vld [vmem:[#allocation288_spill] sm:$0xff] }
 0xa45   : > { %4661 = vst [vmem:[#allocation1] ss:$9 sm:$0xff] %v11342_v62  ;;  %v3565_v31 = vpack.c.b16 %v3561_v19, %v3547_v12  ;;  %v2612_v21 = vshrl.u32 %v14616_v37, 16  ;;  %v2617_v11 = vshll.u32 %v14618_v61, 16  ;;  %v2620_v39 = vshrl.u32 %v14618_v61, 16 }
 0xa46   : > { %14615 = vst [vmem:[#allocation241_spill] sm:$0xff] %v11359_v14  ;;  %v11370_v34 = vsel %vm8578_vm4, %v2605_v49, %v2609_v2  ;;  %v2625_v54 = vshll.u32 %v14620_v43, 16  ;;  %v2628_v46 = vshrl.u32 %v14620_v43, 16  ;;  %v2633_v12 = vshll.u32 %v14622_v7, 16 }
 0xa47   : > { %8261 = vmatmul.msk.bf16.gmra.mxu1 %vm13860_vm10, %v3565_v31  ;;  %v998_v8 = vld [vmem:[#allocation2 + $0xa4] sm:$0x1]  ;;  %14617 = vst [vmem:[#allocation242_spill] sm:$0xff] %v11370_v34  ;;  %v11379_v30 = vsel %vm8578_vm4, %v2612_v21, %v2617_v11  ;;  %v2636_v47 = vshrl.u32 %v14622_v7, 16  ;;  %v14629_v21 = vld [vmem:[#allocation294_spill] sm:$0xff]  ;;  %vm14640_vm14 = vcmask 1041408   ;;  %v4768_v62 = vunpack.c.l.b16 %v11328_v55 }
 0xa48   : > { %v999_v27 = vsel %vm13951_vm6, %v808_v35, %v998_v8  ;;  %v1012_v0 = vld [vmem:[#allocation2 + $0xbc] sm:$0x1]  ;;  %14619 = vst [vmem:[#allocation243_spill] sm:$0xff] %v11379_v30  ;;  %v11388_v53 = vsel %vm8578_vm4, %v2620_v39, %v2625_v54  ;;  %v11397_v19 = vsel %vm8578_vm4, %v2628_v46, %v2633_v12  ;;  %v2656_v11 = vshll.u32 %v14629_v21, 16  ;;  %v14631_v46 = vld [vmem:[#allocation296_spill] sm:$0xff]  ;;  %vm14641_vm15 = vmmov %vm14640_vm14 }
 0xa49   : > { %1000 = vst [vmem:[#allocation2 + $0xa4] sm:$0x1] %v999_v27  ;;  %v1013_v23 = vsel %vm13951_vm6, %v842_v63, %v1012_v0  ;;  %vm14624_vm6 = vcmask 1040384   ;;  %v14626_v63 = vld [vmem:[#allocation290_spill] sm:$0xff]  ;;  %v14627_v27 = vld [vmem:[#allocation292_spill] sm:$0xff]  ;;  %v2664_v12 = vshll.u32 %v14631_v46, 16  ;;  %vm14737_vm8 = vmmov %vm14640_vm14 }
 0xa4a   : > { %1014 = vst [vmem:[#allocation2 + $0xbc] sm:$0x1] %v1013_v23  ;;  %v2643_v8 = vshrl.u32 %v14626_v63, 16  ;;  %v2648_v0 = vshll.u32 %v14627_v27, 16  ;;  %v2651_v2 = vshrl.u32 %v14627_v27, 16  ;;  %v14633_v63 = vld [vmem:[#allocation298_spill] sm:$0xff]  ;;  %vm14643_vm9 = vmmov %vm14624_vm6 }
 0xa4b   : > { %14621 = vst [vmem:[#allocation244_spill] sm:$0xff] %v11388_v53 }
 0xa4c   : > { %v11363_v59 = vld [vmem:[#allocation1] sm:$0xf]  ;;  %14623 = vst [vmem:[#allocation186_spill] sm:$0xff] %v11397_v19  ;;  %v11418_v23 = vsel %vm8578_vm4, %v2643_v8, %v2648_v0  ;;  %v11427_v39 = vsel %vm8578_vm4, %v2651_v2, %v2656_v11  ;;  %v2671_v8 = vshll.u32 %v14633_v63, 16  ;;  %v2674_v11 = vshrl.u32 %v14633_v63, 16 }
 0xa4d   : > { %4665 = vst [vmem:[#allocation1] ss:$9 sm:$0xff] %v11359_v14 }
 0xa4e   : > { %14628 = vst [vmem:[#allocation187_spill] sm:$0xff] %v11418_v23 }
 0xa4f   : > { %14630 = vst [vmem:[#allocation188_spill] sm:$0xff] %v11427_v39 }
 0xa50   : > { %v1063_v6 = vld [vmem:[#allocation2 + $0xa4] sm:$0x1] }
 0xa51   : > { %v1989_v40 = vrot.slane %v1063_v6, 3 }
 0xa53   : > { %v11400_v4 = vsel %vm14624_vm6, %v1063_v6, %v1989_v40  ;;  %v2659_v6 = vshrl.u32 %v14629_v21, 16  ;;  %vm14739_vm6 = vmmov %vm14394_vm2 }
 0xa54   : > { %v11372_v29 = vld [vmem:[#allocation1] sm:$0xf]  ;;  %v2640_v24 = vshll.u32 %v11400_v4, 16 }
 0xa55   : > { %4669 = vst [vmem:[#allocation1] ss:$9 sm:$0xff] %v11370_v34  ;;  %v11434_v40 = vsel %vm8578_vm4, %v2659_v6, %v2664_v12 }
 0xa56   : > { %v11409_v31 = vsel %vm8578_vm4, %v2636_v47, %v2640_v24  ;;  %14632 = vst [vmem:[#allocation189_spill] sm:$0xff] %v11434_v40  ;;  %v2667_v24 = vshrl.u32 %v14631_v46, 16 }
 0xa57   : > { %14625 = vst [vmem:[#allocation246_spill] sm:$0xff] %v11409_v31 }
 0xa58   : > { %v11441_v0 = vsel %vm8578_vm4, %v2667_v24, %v2671_v8  ;;  %v1069_v8 = vld [vmem:[#allocation2 + $0xbc] sm:$0x1] }
 0xa59   : > { %14634 = vst [vmem:[#allocation190_spill] sm:$0xff] %v11441_v0  ;;  %v1992_v14 = vrot.slane %v1069_v8, 3 }
 0xa5c   : > { %v11381_v36 = vld [vmem:[#allocation1] sm:$0xf] }
 0xa5d   : > { %4673 = vst [vmem:[#allocation1] ss:$9 sm:$0xff] %v11379_v30  ;;  %v14639_v30 = vld [vmem:[#allocation304_spill] sm:$0xff] }
 0xa5e   : > { %v2695_v34 = vshll.u32 %v14639_v30, 16 }
 0xa64   : > { %v11390_v16 = vld [vmem:[#allocation1] sm:$0xf] }
 0xa65   : > { %4677 = vst [vmem:[#allocation1] ss:$9 sm:$0xff] %v11388_v53  ;;  %v4769_v53 = vunpack.c.l.b16 %v11363_v59  ;;  %v4770_v59 = vunpack.c.l.b16 %v11372_v29 }
 0xa67   : > { %v4868_v5 = vrot.slane %v4769_v53, 7  ;;  %v2698_v53 = vshrl.u32 %v14639_v30, 16 }
 0xa69   : > { %v4869_v55 = vsel %vm14644_vm11, %v4868_v5, %v4768_v62 }
 0xa6c   : > { %v11402_v35 = vld [vmem:[#allocation1] sm:$0xf] }
 0xa6d   : > { %4681 = vst [vmem:[#allocation1] ss:$9 sm:$0xff] %v11397_v19 }
 0xa74   : > { %v11411_v45 = vld [vmem:[#allocation1] sm:$0xf] }
 0xa75   : > { %4685 = vst [vmem:[#allocation1] ss:$9 sm:$0xff] %v11409_v31  ;;  %v14637_v31 = vld [vmem:[#allocation302_spill] sm:$0xff] }
 0xa76   : > { %v2687_v19 = vshll.u32 %v14637_v31, 16 }
 0xa7c   : > { %v11420_v49 = vld [vmem:[#allocation1] sm:$0xf] }
 0xa7d   : > { %4689 = vst [vmem:[#allocation1] ss:$9 sm:$0xff] %v11418_v23 }
 0xa84   : > { %v4690_v54 = vld [vmem:[#allocation1] sm:$0xf] }
 0xa85   : > { %4693 = vst [vmem:[#allocation1] ss:$9 sm:$0xff] %v11427_v39  ;;  %v14635_v39 = vld [vmem:[#allocation300_spill] sm:$0xff] }
 0xa86   : > { %v2679_v23 = vshll.u32 %v14635_v39, 16 }
 0xa88   : > { %v11448_v6 = vsel %vm8578_vm4, %v2674_v11, %v2679_v23  ;;  %v8282_v23 = vld [vmem:[%s13451_s5 + $0xc] sm:$0x3]  ;;  %v8287_v11 = vld [vmem:[%s13451_s5 + $0xe] sm:$0x3] }
 0xa89   : > { %14636 = vst [vmem:[#allocation191_spill] sm:$0xff] %v11448_v6 }
 0xa8c   : > { %v4694_v47 = vld [vmem:[#allocation1] sm:$0xf] }
 0xa8d   : > { %4697 = vst [vmem:[#allocation1] ss:$9 sm:$0xff] %v11434_v40  ;;  %v2682_v40 = vshrl.u32 %v14635_v39, 16  ;;  %v11476_v39 = vsel %vm14643_vm9, %v1069_v8, %v1992_v14 }
 0xa8f   : > { %v11455_v24 = vsel %vm8578_vm4, %v2682_v40, %v2687_v19  ;;  %v5765_v19 = vsel %vm14640_vm14, %v8282_v23, 0  ;;  %v6199_v40 = vsel %vm14641_vm15, %v8287_v11, 0  ;;  %v4771_v23 = vunpack.c.l.b16 %v11381_v36  ;;  %vm14740_vm14 = vmmov %vm14394_vm2 }
 0xa90   : > { %14638 = vst [vmem:[#allocation192_spill] sm:$0xff] %v11455_v24  ;;  %5774 = vmatpush.bf16.msrb.mxu2 %v5765_v19  ;;  %6208 = vmatpush.bf16.msra.mxu3 %v6199_v40  ;;  %v4776_v11 = vunpack.c.l.b16 %v4690_v54  ;;  %v4870_v19 = vrot.slane %v4770_v59, 6  ;;  %vm14821_vm15 = vmmov %vm14643_vm9 }
 0xa91   : > { %v4872_v14 = vrot.slane %v4771_v23, 5  ;;  %v4774_v23 = vunpack.c.l.b16 %v11411_v45  ;;  %vm14823_vm9 = vmmov %vm14394_vm2 }
 0xa92   : > { %v4871_v54 = vsel %vm1135_vm12, %v4870_v19, %v4869_v55  ;;  %vm14830_vm11 = vmmov %vm14821_vm15 }
 0xa94   : > { %v4698_v2 = vld [vmem:[#allocation1] sm:$0xf] }
 0xa95   : > { %4701 = vst [vmem:[#allocation1] ss:$9 sm:$0xff] %v11441_v0 }
 0xa9c   : > { %v4702_v12 = vld [vmem:[#allocation1] sm:$0xf] }
 0xa9d   : > { %4705 = vst [vmem:[#allocation1] ss:$9 sm:$0xff] %v11448_v6  ;;  %v2690_v6 = vshrl.u32 %v14637_v31, 16  ;;  %v4778_v31 = vunpack.c.l.b16 %v4698_v2  ;;  %v4779_v29 = vunpack.c.l.b16 %v4702_v12  ;;  %v4772_v2 = vunpack.c.l.b16 %v11390_v16 }
 0xa9e   : > { %v4873_v16 = vsel %vm1139_vm13, %v4872_v14, %v4871_v54  ;;  %v14646_v54 = vld [vmem:[#allocation218_spill] sm:$0xff] }
 0xa9f   : > { %v11473_v18 = vsel %vm8578_vm4, %v2690_v6, %v2695_v34  ;;  %v2702_v34 = vshll.u32 %v11476_v39, 16  ;;  %v4884_v6 = vrot.slane %v4778_v31, 6  ;;  %v4886_v40 = vrot.slane %v4779_v29, 5 }
 0xaa0   : > { %14642 = vst [vmem:[#allocation193_spill] sm:$0xff] %v11473_v18  ;;  %v4874_v5 = vrot.slane %v4772_v2, 4  ;;  %v4775_v29 = vunpack.c.l.b16 %v11420_v49 }
 0xaa1   : > { %v11489_v12 = vsel %vm8578_vm4, %v2698_v53, %v2702_v34  ;;  %v4878_v53 = vrot.slane %v4774_v23, 2  ;;  %v14648_v23 = vld [vmem:[#allocation220_spill] sm:$0xff] }
 0xaa2   : > { %14645 = vst [vmem:[#allocation195_spill] sm:$0xff] %v11489_v12  ;;  %v4875_v19 = vsel %vm3035_vm0, %v4874_v5, %v4873_v16  ;;  %v14647_v16 = vld [vmem:[#allocation219_spill] sm:$0xff] }
 0xaa4   : > { %v4706_v0 = vld [vmem:[#allocation1] sm:$0xf] }
 0xaa5   : > { %4709 = vst [vmem:[#allocation1] ss:$9 sm:$0xff] %v11455_v24  ;;  %v4777_v24 = vunpack.c.l.b16 %v4694_v47  ;;  %v4780_v36 = vunpack.c.l.b16 %v4706_v0 }
 0xaa7   : > { %v4882_v63 = vrot.slane %v4777_v24, 7  ;;  %v4773_v24 = vunpack.c.l.b16 %v11402_v35 }
 0xaa9   : > { %v4883_v8 = vsel %vm14394_vm2, %v4882_v63, %v4776_v11  ;;  %v4888_v63 = vrot.slane %v4780_v36, 4  ;;  %v4876_v0 = vrot.slane %v4773_v24, 3 }
 0xaaa   : > { %v4885_v62 = vsel %vm1135_vm12, %v4884_v6, %v4883_v8  ;;  %v4880_v6 = vrot.slane %v4775_v29, 1  ;;  %v14651_v29 = vld [vmem:[#allocation223_spill] sm:$0xff] }
 0xaab   : > { %v4887_v35 = vsel %vm1139_vm13, %v4886_v40, %v4885_v62  ;;  %v4877_v34 = vsel %vm3038_vm1, %v4876_v0, %v4875_v19  ;;  %v14649_v0 = vld [vmem:[#allocation221_spill] sm:$0xff] }
 0xaac   : > { %v4710_v47 = vld [vmem:[#allocation1] sm:$0xf]  ;;  %v4879_v8 = vsel %vm3041_vm5, %v4878_v53, %v4877_v34  ;;  %v14652_v53 = vld [vmem:[#allocation224_spill] sm:$0xff]  ;;  %v14653_v34 = vld [vmem:[#allocation313_spill] sm:$0xff] }
 0xaad   : > { %4713 = vst [vmem:[#allocation1] ss:$9 sm:$0xff] %v11473_v18  ;;  %v4781_v59 = vunpack.c.l.b16 %v4710_v47  ;;  %v4889_v47 = vsel %vm3035_vm0, %v4888_v63, %v4887_v35  ;;  %v4881_v49 = vsel %vm3044_vm7, %v4880_v6, %v4879_v8  ;;  %v14654_v6 = vld [vmem:[#allocation225_spill] sm:$0xff]  ;;  %v14696_v18 = vld [vmem:[#allocation268_spill] sm:$0xff] }
 0xaaf   : > { %v4890_v55 = vrot.slane %v4781_v59, 3 }
 0xab1   : > { %v4891_v45 = vsel %vm3038_vm1, %v4890_v55, %v4889_v47 }
 0xab4   : > { %v4714_v31 = vld [vmem:[#allocation1] sm:$0xf] }
 0xab5   : > { %4717 = vst [vmem:[#allocation1] ss:$9 sm:$0xff] %v11489_v12  ;;  %v4782_v11 = vunpack.c.l.b16 %v4714_v31  ;;  %v14694_v12 = vld [vmem:[#allocation266_spill] sm:$0xff] }
 0xab7   : > { %v4892_v2 = vrot.slane %v4782_v11, 2  ;;  %v14650_v11 = vld [vmem:[#allocation222_spill] sm:$0xff] }
 0xab9   : > { %v4893_v24 = vsel %vm3041_vm5, %v4892_v2, %v4891_v45 }
 0xabc   : > { %v4718_v14 = vld [vmem:[#allocation1] sm:$0xf] }
 0xabd   : > { %v4783_v36 = vunpack.c.l.b16 %v4718_v14  ;;  %4954 = vst [vmem:[#allocation1] ss:$9 sm:$0xff] %v14646_v54  ;;  %v14655_v14 = vld [vmem:[#allocation226_spill] sm:$0xff] }
 0xabf   : > { %v4894_v40 = vrot.slane %v4783_v36, 1  ;;  %v14656_v36 = vld [vmem:[#allocation227_spill] sm:$0xff] }
 0xac1   : > { %v4895_v5 = vsel %vm3044_vm7, %v4894_v40, %v4893_v24  ;;  %v14657_v24 = vld [vmem:[#allocation228_spill] sm:$0xff]  ;;  %v14658_v40 = vld [vmem:[#allocation229_spill] sm:$0xff] }
 0xac2   : > { %v4899_v62 = vpack.c.b16 %v4895_v5, %v4881_v49 }
 0xac4   : > { %8276 = vmatmul.msk.bf16.gmra.mxu0 %vm13860_vm10, %v4899_v62  ;;  %v11507_v59 = vld [vmem:[#allocation1] sm:$0xf] }
 0xac5   : > { %4957 = vst [vmem:[#allocation1] ss:$9 sm:$0xff] %v14647_v16  ;;  %v14659_v62 = vld [vmem:[#allocation230_spill] sm:$0xff] }
 0xacc   : > { %v11510_v31 = vld [vmem:[#allocation1] sm:$0xf] }
 0xacd   : > { %4960 = vst [vmem:[#allocation1] ss:$9 sm:$0xff] %v14648_v23  ;;  %v14660_v23 = vld [vmem:[#allocation231_spill] sm:$0xff] }
 0xad4   : > { %v11513_v63 = vld [vmem:[#allocation1] sm:$0xf] }
 0xad5   : > { %4963 = vst [vmem:[#allocation1] ss:$9 sm:$0xff] %v14649_v0 }
 0xadc   : > { %v11516_v35 = vld [vmem:[#allocation1] sm:$0xf] }
 0xadd   : > { %4966 = vst [vmem:[#allocation1] ss:$9 sm:$0xff] %v14650_v11  ;;  %v14661_v11 = vld [vmem:[#allocation319_spill] sm:$0xff] }
 0xae4   : > { %v11519_v19 = vld [vmem:[#allocation1] sm:$0xf] }
 0xae5   : > { %4969 = vst [vmem:[#allocation1] ss:$9 sm:$0xff] %v14651_v29 }
 0xaec   : > { %v11522_v55 = vld [vmem:[#allocation1] sm:$0xf] }
 0xaed   : > { %4972 = vst [vmem:[#allocation1] ss:$9 sm:$0xff] %v14652_v53 }
 0xaf4   : > { %v11525_v47 = vld [vmem:[#allocation1] sm:$0xf] }
 0xaf5   : > { %4975 = vst [vmem:[#allocation1] ss:$9 sm:$0xff] %v14653_v34 }
 0xafc   : > { %v11528_v2 = vld [vmem:[#allocation1] sm:$0xf] }
 0xafd   : > { %4978 = vst [vmem:[#allocation1] ss:$9 sm:$0xff] %v14654_v6 }
 0xb04   : > { %v11531_v45 = vld [vmem:[#allocation1] sm:$0xf] }
 0xb05   : > { %4981 = vst [vmem:[#allocation1] ss:$9 sm:$0xff] %v14655_v14 }
 0xb0c   : > { %v11534_v8 = vld [vmem:[#allocation1] sm:$0xf] }
 0xb0d   : > { %4984 = vst [vmem:[#allocation1] ss:$9 sm:$0xff] %v14656_v36 }
 0xb14   : > { %v11537_v54 = vld [vmem:[#allocation1] sm:$0xf] }
 0xb15   : > { %4987 = vst [vmem:[#allocation1] ss:$9 sm:$0xff] %v14657_v24  ;;  %v14684_v24 = vld [vmem:[#allocation256_spill] sm:$0xff] }
 0xb1c   : > { %v11540_v49 = vld [vmem:[#allocation1] sm:$0xf] }
 0xb1d   : > { %4990 = vst [vmem:[#allocation1] ss:$9 sm:$0xff] %v14658_v40  ;;  %v14686_v40 = vld [vmem:[#allocation147_spill] sm:$0xff] }
 0xb24   : > { %v11543_v5 = vld [vmem:[#allocation1] sm:$0xf] }
 0xb25   : > { %4993 = vst [vmem:[#allocation1] ss:$9 sm:$0xff] %v14659_v62  ;;  %v14688_v62 = vld [vmem:[#allocation260_spill] sm:$0xff] }
 0xb2c   : > { %v11546_v16 = vld [vmem:[#allocation1] sm:$0xf] }
 0xb2d   : > { %4996 = vst [vmem:[#allocation1] ss:$9 sm:$0xff] %v14660_v23  ;;  %v14690_v23 = vld [vmem:[#allocation262_spill] sm:$0xff] }
 0xb34   : > { %v11549_v0 = vld [vmem:[#allocation1] sm:$0xf] }
 0xb35   : > { %4999 = vst [vmem:[#allocation1] ss:$9 sm:$0xff] %v14661_v11  ;;  %v14692_v11 = vld [vmem:[#allocation264_spill] sm:$0xff] }
 0xb3c   : > { %v11552_v29 = vld [vmem:[#allocation1] sm:$0xf] }
 0xb3d   : > { %5002 = vst [vmem:[#allocation1] ss:$9 sm:$0xff] %v10138_v51 }
 0xb44   : > { %v11555_v53 = vld [vmem:[#allocation1] sm:$0xf] }
 0xb45   : > { %14662 = vst [vmem:[#allocation196_spill] sm:$0xff] %v11555_v53 }
 0xb46   : > { %5005 = vst [vmem:[#allocation1] ss:$9 sm:$0xff] %v10175_v56 }
 0xb4d   : > { %v11558_v34 = vld [vmem:[#allocation1] sm:$0xf] }
 0xb4e   : > { %14663 = vst [vmem:[#allocation197_spill] sm:$0xff] %v11558_v34 }
 0xb4f   : > { %5008 = vst [vmem:[#allocation1] ss:$9 sm:$0xff] %v10274_v17 }
 0xb56   : > { %v11561_v6 = vld [vmem:[#allocation1] sm:$0xf] }
 0xb57   : > { %14664 = vst [vmem:[#allocation198_spill] sm:$0xff] %v11561_v6 }
 0xb58   : > { %5011 = vst [vmem:[#allocation1] ss:$9 sm:$0xff] %v10284_v44 }
 0xb5f   : > { %v11564_v14 = vld [vmem:[#allocation1] sm:$0xf] }
 0xb60   : > { %14665 = vst [vmem:[#allocation194_spill] sm:$0xff] %v11564_v14 }
 0xb61   : > { %5014 = vst [vmem:[#allocation1] ss:$9 sm:$0xff] %v10290_v15 }
 0xb68   : > { %v11567_v36 = vld [vmem:[#allocation1] sm:$0xf] }
 0xb69   : > { %14666 = vst [vmem:[#allocation199_spill] sm:$0xff] %v11567_v36 }
 0xb6a   : > { %5017 = vst [vmem:[#allocation1] ss:$9 sm:$0xff] %v10296_v25 }
 0xb71   : > { %v11570_v51 = vld [vmem:[#allocation1] sm:$0xf] }
 0xb72   : > { %14667 = vst [vmem:[#allocation200_spill] sm:$0xff] %v11570_v51 }
 0xb73   : > { %5020 = vst [vmem:[#allocation1] ss:$9 sm:$0xff] %v10302_v57 }
 0xb7a   : > { %v11573_v56 = vld [vmem:[#allocation1] sm:$0xf] }
 0xb7b   : > { %14668 = vst [vmem:[#allocation201_spill] sm:$0xff] %v11573_v56 }
 0xb7c   : > { %5023 = vst [vmem:[#allocation1] ss:$9 sm:$0xff] %v10872_v48 }
 0xb83   : > { %v11576_v17 = vld [vmem:[#allocation1] sm:$0xf] }
 0xb84   : > { %14669 = vst [vmem:[#allocation245_spill] sm:$0xff] %v11576_v17 }
 0xb85   : > { %5026 = vst [vmem:[#allocation1] ss:$9 sm:$0xff] %v14441_v41 }
 0xb8c   : > { %v11579_v44 = vld [vmem:[#allocation1] sm:$0xf] }
 0xb8d   : > { %14670 = vst [vmem:[#allocation247_spill] sm:$0xff] %v11579_v44 }
 0xb8e   : > { %5029 = vst [vmem:[#allocation1] ss:$9 sm:$0xff] %v14443_v9 }
 0xb95   : > { %v11582_v15 = vld [vmem:[#allocation1] sm:$0xf] }
 0xb96   : > { %14671 = vst [vmem:[#allocation249_spill] sm:$0xff] %v11582_v15 }
 0xb97   : > { %5032 = vst [vmem:[#allocation1] ss:$9 sm:$0xff] %v14445_v33 }
 0xb9e   : > { %v11585_v25 = vld [vmem:[#allocation1] sm:$0xf] }
 0xb9f   : > { %14672 = vst [vmem:[#allocation251_spill] sm:$0xff] %v11585_v25  ;;  %v14738_v25 = vld [vmem:[#allocation44_spill] sm:$0xff] }
 0xba0   : > { %5035 = vst [vmem:[#allocation1] ss:$9 sm:$0xff] %v14447_v26 }
 0xba7   : > { %v11588_v57 = vld [vmem:[#allocation1] sm:$0xf] }
 0xba8   : > { %14673 = vst [vmem:[#allocation253_spill] sm:$0xff] %v11588_v57 }
 0xba9   : > { %5038 = vst [vmem:[#allocation1] ss:$9 sm:$0xff] %v14449_v50 }
 0xbb0   : > { %v11591_v48 = vld [vmem:[#allocation1] sm:$0xf] }
 0xbb1   : > { %14674 = vst [vmem:[#allocation255_spill] sm:$0xff] %v11591_v48 }
 0xbb2   : > { %5041 = vst [vmem:[#allocation1] ss:$9 sm:$0xff] %v14450_v60 }
 0xbb9   : > { %v11594_v41 = vld [vmem:[#allocation1] sm:$0xf] }
 0xbba   : > { %14675 = vst [vmem:[#allocation257_spill] sm:$0xff] %v11594_v41 }
 0xbbb   : > { %5044 = vst [vmem:[#allocation1] ss:$9 sm:$0xff] %v14453_v10 }
 0xbc2   : > { %v11597_v9 = vld [vmem:[#allocation1] sm:$0xf] }
 0xbc3   : > { %14676 = vst [vmem:[#allocation259_spill] sm:$0xff] %v11597_v9 }
 0xbc4   : > { %5047 = vst [vmem:[#allocation1] ss:$9 sm:$0xff] %v10919_v42 }
 0xbcb   : > { %v11600_v33 = vld [vmem:[#allocation1] sm:$0xf] }
 0xbcc   : > { %14677 = vst [vmem:[#allocation261_spill] sm:$0xff] %v11600_v33 }
 0xbcd   : > { %5050 = vst [vmem:[#allocation1] ss:$9 sm:$0xff] %v14456_v58 }
 0xbd4   : > { %v11603_v26 = vld [vmem:[#allocation1] sm:$0xf] }
 0xbd5   : > { %14678 = vst [vmem:[#allocation263_spill] sm:$0xff] %v11603_v26 }
 0xbd6   : > { %5053 = vst [vmem:[#allocation1] ss:$9 sm:$0xff] %v14462_v22 }
 0xbdd   : > { %v11606_v50 = vld [vmem:[#allocation1] sm:$0xf] }
 0xbde   : > { %14679 = vst [vmem:[#allocation265_spill] sm:$0xff] %v11606_v50 }
 0xbdf   : > { %5056 = vst [vmem:[#allocation1] ss:$9 sm:$0xff] %v14519_v52 }
 0xbe6   : > { %v11609_v60 = vld [vmem:[#allocation1] sm:$0xf] }
 0xbe7   : > { %14680 = vst [vmem:[#allocation267_spill] sm:$0xff] %v11609_v60 }
 0xbe8   : > { %5059 = vst [vmem:[#allocation1] ss:$9 sm:$0xff] %v14522_v1 }
 0xbef   : > { %v11612_v10 = vld [vmem:[#allocation1] sm:$0xf] }
 0xbf0   : > { %14681 = vst [vmem:[#allocation269_spill] sm:$0xff] %v11612_v10 }
 0xbf1   : > { %5062 = vst [vmem:[#allocation1] ss:$9 sm:$0xff] %v14524_v32 }
 0xbf8   : > { %v11615_v42 = vld [vmem:[#allocation1] sm:$0xf] }
 0xbf9   : > { %14682 = vst [vmem:[#allocation271_spill] sm:$0xff] %v11615_v42 }
 0xbfa   : > { %5065 = vst [vmem:[#allocation1] ss:$9 sm:$0xff] %v14526_v38 }
 0xc01   : > { %v11618_v58 = vld [vmem:[#allocation1] sm:$0xf] }
 0xc02   : > { %14683 = vst [vmem:[#allocation273_spill] sm:$0xff] %v11618_v58  ;;  %v14736_v58 = vld [vmem:[#allocation42_spill] sm:$0xff] }
 0xc03   : > { %5068 = vst [vmem:[#allocation1] ss:$9 sm:$0xff] %v14684_v24 }
 0xc0a   : > { %v11621_v22 = vld [vmem:[#allocation1] sm:$0xf] }
 0xc0b   : > { %14685 = vst [vmem:[#allocation275_spill] sm:$0xff] %v11621_v22 }
 0xc0c   : > { %5071 = vst [vmem:[#allocation1] ss:$9 sm:$0xff] %v14686_v40 }
 0xc13   : > { %v11624_v52 = vld [vmem:[#allocation1] sm:$0xf] }
 0xc14   : > { %14687 = vst [vmem:[#allocation152_spill] sm:$0xff] %v11624_v52  ;;  %v14698_v52 = vld [vmem:[#allocation270_spill] sm:$0xff] }
 0xc15   : > { %5074 = vst [vmem:[#allocation1] ss:$9 sm:$0xff] %v14688_v62 }
 0xc1c   : > { %v11627_v1 = vld [vmem:[#allocation1] sm:$0xf] }
 0xc1d   : > { %14689 = vst [vmem:[#allocation153_spill] sm:$0xff] %v11627_v1  ;;  %v14700_v1 = vld [vmem:[#allocation272_spill] sm:$0xff] }
 0xc1e   : > { %5077 = vst [vmem:[#allocation1] ss:$9 sm:$0xff] %v14690_v23 }
 0xc25   : > { %v11630_v32 = vld [vmem:[#allocation1] sm:$0xf] }
 0xc26   : > { %14691 = vst [vmem:[#allocation154_spill] sm:$0xff] %v11630_v32  ;;  %v14702_v32 = vld [vmem:[#allocation11_spill] sm:$0xff] }
 0xc27   : > { %5080 = vst [vmem:[#allocation1] ss:$9 sm:$0xff] %v14692_v11 }
 0xc2e   : > { %v11633_v38 = vld [vmem:[#allocation1] sm:$0xf] }
 0xc2f   : > { %14693 = vst [vmem:[#allocation155_spill] sm:$0xff] %v11633_v38  ;;  %v14735_v38 = vld [vmem:[#allocation41_spill] sm:$0xff] }
 0xc30   : > { %5083 = vst [vmem:[#allocation1] ss:$9 sm:$0xff] %v14694_v12 }
 0xc37   : > { %v11636_v24 = vld [vmem:[#allocation1] sm:$0xf] }
 0xc38   : > { %14695 = vst [vmem:[#allocation156_spill] sm:$0xff] %v11636_v24 }
 0xc39   : > { %5086 = vst [vmem:[#allocation1] ss:$9 sm:$0xff] %v14696_v18 }
 0xc40   : > { %v11639_v40 = vld [vmem:[#allocation1] sm:$0xf] }
 0xc41   : > { %14697 = vst [vmem:[#allocation157_spill] sm:$0xff] %v11639_v40  ;;  %v14734_v40 = vld [vmem:[#allocation38_spill] sm:$0xff] }
 0xc42   : > { %5089 = vst [vmem:[#allocation1] ss:$9 sm:$0xff] %v14698_v52 }
 0xc49   : > { %v11642_v62 = vld [vmem:[#allocation1] sm:$0xf] }
 0xc4a   : > { %14699 = vst [vmem:[#allocation158_spill] sm:$0xff] %v11642_v62 }
 0xc4b   : > { %5092 = vst [vmem:[#allocation1] ss:$9 sm:$0xff] %v14700_v1 }
 0xc52   : > { %v11645_v23 = vld [vmem:[#allocation1] sm:$0xf] }
 0xc53   : > { %14701 = vst [vmem:[#allocation159_spill] sm:$0xff] %v11645_v23  ;;  %v14733_v23 = vld [vmem:[#allocation36_spill] sm:$0xff] }
 0xc54   : > { %5095 = vst [vmem:[#allocation1] ss:$9 sm:$0xff] %v14702_v32 }
 0xc5b   : > { %v11648_v11 = vld [vmem:[#allocation1] sm:$0xf] }
 0xc5c   : > { %14703 = vst [vmem:[#allocation161_spill] sm:$0xff] %v11648_v11 }
 0xc5d   : > { %5098 = vst [vmem:[#allocation1] ss:$9 sm:$0xff] %v14550_v3 }
 0xc64   : > { %v11651_v12 = vld [vmem:[#allocation1] sm:$0xf] }
 0xc65   : > { %14704 = vst [vmem:[#allocation162_spill] sm:$0xff] %v11651_v12  ;;  %v14732_v12 = vld [vmem:[#allocation33_spill] sm:$0xff] }
 0xc66   : > { %5101 = vst [vmem:[#allocation1] ss:$9 sm:$0xff] %v14556_v28 }
 0xc6d   : > { %v11654_v18 = vld [vmem:[#allocation1] sm:$0xf] }
 0xc6e   : > { %14705 = vst [vmem:[#allocation163_spill] sm:$0xff] %v11654_v18 }
 0xc6f   : > { %5104 = vst [vmem:[#allocation1] ss:$9 sm:$0xff] %v14613_v13 }
 0xc76   : > { %v11657_v52 = vld [vmem:[#allocation1] sm:$0xf] }
 0xc77   : > { %14706 = vst [vmem:[#allocation164_spill] sm:$0xff] %v11657_v52  ;;  %v14731_v52 = vld [vmem:[#allocation35_spill] sm:$0xff] }
 0xc78   : > { %5107 = vst [vmem:[#allocation1] ss:$9 sm:$0xff] %v14616_v37 }
 0xc7f   : > { %v11660_v1 = vld [vmem:[#allocation1] sm:$0xf] }
 0xc80   : > { %14707 = vst [vmem:[#allocation160_spill] sm:$0xff] %v11660_v1 }
 0xc81   : > { %5110 = vst [vmem:[#allocation1] ss:$9 sm:$0xff] %v14618_v61 }
 0xc88   : > { %v11663_v32 = vld [vmem:[#allocation1] sm:$0xf] }
 0xc89   : > { %14708 = vst [vmem:[#allocation165_spill] sm:$0xff] %v11663_v32  ;;  %v14729_v32 = vld [vmem:[#allocation27_spill] sm:$0xff] }
 0xc8a   : > { %5113 = vst [vmem:[#allocation1] ss:$9 sm:$0xff] %v14620_v43 }
 0xc91   : > { %v11666_v3 = vld [vmem:[#allocation1] sm:$0xf] }
 0xc92   : > { %14709 = vst [vmem:[#allocation166_spill] sm:$0xff] %v11666_v3  ;;  %v14715_v3 = vld [vmem:[#allocation298_spill] sm:$0xff] }
 0xc93   : > { %5116 = vst [vmem:[#allocation1] ss:$9 sm:$0xff] %v14622_v7 }
 0xc9a   : > { %v11669_v28 = vld [vmem:[#allocation1] sm:$0xf] }
 0xc9b   : > { %14710 = vst [vmem:[#allocation167_spill] sm:$0xff] %v11669_v28  ;;  %v14717_v28 = vld [vmem:[#allocation300_spill] sm:$0xff] }
 0xc9c   : > { %5119 = vst [vmem:[#allocation1] ss:$9 sm:$0xff] %v11400_v4 }
 0xca3   : > { %v11672_v13 = vld [vmem:[#allocation1] sm:$0xf] }
 0xca4   : > { %14711 = vst [vmem:[#allocation5_spill] sm:$0xff] %v11672_v13  ;;  %v14719_v13 = vld [vmem:[#allocation302_spill] sm:$0xff] }
 0xca5   : > { %5122 = vst [vmem:[#allocation1] ss:$9 sm:$0xff] %v14627_v27 }
 0xcac   : > { %v11675_v37 = vld [vmem:[#allocation1] sm:$0xf] }
 0xcad   : > { %14712 = vst [vmem:[#allocation248_spill] sm:$0xff] %v11675_v37  ;;  %v14723_v37 = vld [vmem:[#allocation18_spill] sm:$0xff] }
 0xcae   : > { %5125 = vst [vmem:[#allocation1] ss:$9 sm:$0xff] %v14629_v21 }
 0xcb5   : > { %v11678_v61 = vld [vmem:[#allocation1] sm:$0xf] }
 0xcb6   : > { %14713 = vst [vmem:[#allocation232_spill] sm:$0xff] %v11678_v61  ;;  %v14727_v61 = vld [vmem:[#allocation24_spill] sm:$0xff] }
 0xcb7   : > { %5128 = vst [vmem:[#allocation1] ss:$9 sm:$0xff] %v14631_v46 }
 0xcbe   : > { %v11681_v43 = vld [vmem:[#allocation1] sm:$0xf] }
 0xcbf   : > { %14714 = vst [vmem:[#allocation250_spill] sm:$0xff] %v11681_v43  ;;  %v14725_v43 = vld [vmem:[#allocation19_spill] sm:$0xff] }
 0xcc0   : > { %5131 = vst [vmem:[#allocation1] ss:$9 sm:$0xff] %v14715_v3 }
 0xcc7   : > { %v11684_v7 = vld [vmem:[#allocation1] sm:$0xf] }
 0xcc8   : > { %14716 = vst [vmem:[#allocation252_spill] sm:$0xff] %v11684_v7  ;;  %v14724_v7 = vld [vmem:[#allocation17_spill] sm:$0xff] }
 0xcc9   : > { %5134 = vst [vmem:[#allocation1] ss:$9 sm:$0xff] %v14717_v28 }
 0xcd0   : > { %v11687_v4 = vld [vmem:[#allocation1] sm:$0xf] }
 0xcd1   : > { %14718 = vst [vmem:[#allocation254_spill] sm:$0xff] %v11687_v4 }
 0xcd2   : > { %5137 = vst [vmem:[#allocation1] ss:$9 sm:$0xff] %v14719_v13  ;;  %v14726_v13 = vld [vmem:[#allocation21_spill] sm:$0xff] }
 0xcd9   : > { %v11690_v27 = vld [vmem:[#allocation1] sm:$0xf] }
 0xcda   : > { %14720 = vst [vmem:[#allocation258_spill] sm:$0xff] %v11690_v27 }
 0xcdb   : > { %5140 = vst [vmem:[#allocation1] ss:$9 sm:$0xff] %v14639_v30 }
 0xce2   : > { %v11693_v21 = vld [vmem:[#allocation1] sm:$0xf] }
 0xce3   : > { %14721 = vst [vmem:[#allocation274_spill] sm:$0xff] %v11693_v21  ;;  %v14728_v21 = vld [vmem:[#allocation25_spill] sm:$0xff] }
 0xce4   : > { %5143 = vst [vmem:[#allocation1] ss:$9 sm:$0xff] %v11476_v39 }
 0xceb   : > { %v11696_v46 = vld [vmem:[#allocation1] sm:$0xf] }
 0xcec   : > { %14722 = vst [vmem:[#allocation276_spill] sm:$0xff] %v11696_v46 }
 0xced   : > { %5380 = vst [vmem:[#allocation1] ss:$9 sm:$0xff] %v14723_v37  ;;  %v14730_v37 = vld [vmem:[#allocation29_spill] sm:$0xff] }
 0xcf4   : > { %v5381_v3 = vld [vmem:[#allocation1] sm:$0xf] }
 0xcf5   : > { %5383 = vst [vmem:[#allocation1] ss:$9 sm:$0xff] %v14724_v7  ;;  %v5572_v50 = vunpack.c.l.b16 %v5381_v3 }
 0xcfc   : > { %v5384_v28 = vld [vmem:[#allocation1] sm:$0xf] }
 0xcfd   : > { %5386 = vst [vmem:[#allocation1] ss:$9 sm:$0xff] %v14725_v43  ;;  %v5573_v42 = vunpack.c.l.b16 %v5384_v28 }
 0xcff   : > { %v5636_v26 = vrot.slane %v5573_v42, 7 }
 0xd04   : > { %v5387_v4 = vld [vmem:[#allocation1] sm:$0xf] }
 0xd05   : > { %5389 = vst [vmem:[#allocation1] ss:$9 sm:$0xff] %v14726_v13  ;;  %v5574_v60 = vunpack.c.l.b16 %v5387_v4 }
 0xd07   : > { %v5638_v57 = vrot.slane %v5574_v60, 6 }
 0xd0c   : > { %v5390_v27 = vld [vmem:[#allocation1] sm:$0xf] }
 0xd0d   : > { %5392 = vst [vmem:[#allocation1] ss:$9 sm:$0xff] %v14727_v61  ;;  %v5575_v41 = vunpack.c.l.b16 %v5390_v27 }
 0xd0f   : > { %v5640_v51 = vrot.slane %v5575_v41, 5 }
 0xd14   : > { %v5393_v30 = vld [vmem:[#allocation1] sm:$0xf] }
 0xd15   : > { %5395 = vst [vmem:[#allocation1] ss:$9 sm:$0xff] %v14728_v21  ;;  %v5576_v15 = vunpack.c.l.b16 %v5393_v30 }
 0xd1c   : > { %v5396_v39 = vld [vmem:[#allocation1] sm:$0xf] }
 0xd1d   : > { %5398 = vst [vmem:[#allocation1] ss:$9 sm:$0xff] %v14729_v32  ;;  %v5577_v3 = vunpack.c.l.b16 %v5396_v39 }
 0xd24   : > { %v5399_v46 = vld [vmem:[#allocation1] sm:$0xf] }
 0xd25   : > { %5401 = vst [vmem:[#allocation1] ss:$9 sm:$0xff] %v14730_v37 }
 0xd2c   : > { %v5402_v1 = vld [vmem:[#allocation1] sm:$0xf] }
 0xd2d   : > { %5404 = vst [vmem:[#allocation1] ss:$9 sm:$0xff] %v14731_v52  ;;  %v8277_v52 = vld [vmem:[%s13451_s5 + $0xa] sm:$0x3] }
 0xd2e   : > { %v5339_v9 = vsel %vm14737_vm8, %v8277_v52, 0  ;;  %vm14854_vm8 = vmmov %vm14394_vm2 }
 0xd2f   : > { %5348 = vmatpush.bf16.msrb.mxu1 %v5339_v9 }
 0xd34   : > { %v5405_v18 = vld [vmem:[#allocation1] sm:$0xf] }
 0xd35   : > { %5407 = vst [vmem:[#allocation1] ss:$9 sm:$0xff] %v14732_v12  ;;  %v5580_v44 = vunpack.c.l.b16 %v5405_v18  ;;  %v5642_v18 = vrot.slane %v5576_v15, 4 }
 0xd3c   : > { %v5408_v11 = vld [vmem:[#allocation1] sm:$0xf] }
 0xd3d   : > { %5410 = vst [vmem:[#allocation1] ss:$9 sm:$0xff] %v14733_v23  ;;  %v5581_v10 = vunpack.c.l.b16 %v5408_v11  ;;  %v5637_v11 = vsel %vm14739_vm6, %v5636_v26, %v5572_v50  ;;  %v14741_v26 = vld [vmem:[#allocation46_spill] sm:$0xff]  ;;  %vm14855_vm6 = vmmov %vm14394_vm2 }
 0xd3f   : > { %v5650_v17 = vrot.slane %v5581_v10, 7 }
 0xd41   : > { %v5651_v4 = vsel %vm14740_vm14, %v5650_v17, %v5580_v44  ;;  %vm14857_vm14 = vmmov %vm14394_vm2 }
 0xd44   : > { %v5411_v62 = vld [vmem:[#allocation1] sm:$0xf] }
 0xd45   : > { %5413 = vst [vmem:[#allocation1] ss:$9 sm:$0xff] %v14734_v40  ;;  %v5582_v33 = vunpack.c.l.b16 %v5411_v62  ;;  %v5639_v62 = vsel %vm1135_vm12, %v5638_v57, %v5637_v11  ;;  %v5579_v57 = vunpack.c.l.b16 %v5402_v1 }
 0xd46   : > { %v5641_v60 = vsel %vm1139_vm13, %v5640_v51, %v5639_v62 }
 0xd47   : > { %v5652_v56 = vrot.slane %v5582_v33, 6  ;;  %v5644_v33 = vrot.slane %v5577_v3, 3  ;;  %v5643_v44 = vsel %vm3035_vm0, %v5642_v18, %v5641_v60  ;;  %v5648_v51 = vrot.slane %v5579_v57, 1  ;;  %v14748_v60 = vld [vmem:[#allocation55_spill] sm:$0xff] }
 0xd49   : > { %v5653_v9 = vsel %vm1135_vm12, %v5652_v56, %v5651_v4  ;;  %v5645_v56 = vsel %vm3038_vm1, %v5644_v33, %v5643_v44  ;;  %v14754_v44 = vld [vmem:[#allocation61_spill] sm:$0xff] }
 0xd4c   : > { %v5414_v24 = vld [vmem:[#allocation1] sm:$0xf] }
 0xd4d   : > { %5416 = vst [vmem:[#allocation1] ss:$9 sm:$0xff] %v14735_v38  ;;  %v5583_v28 = vunpack.c.l.b16 %v5414_v24  ;;  %v5578_v24 = vunpack.c.l.b16 %v5399_v46 }
 0xd4f   : > { %v5654_v27 = vrot.slane %v5583_v28, 5  ;;  %v14742_v28 = vld [vmem:[#allocation52_spill] sm:$0xff] }
 0xd51   : > { %v5655_v41 = vsel %vm1139_vm13, %v5654_v27, %v5653_v9  ;;  %v14744_v27 = vld [vmem:[#allocation50_spill] sm:$0xff]  ;;  %v14746_v9 = vld [vmem:[#allocation53_spill] sm:$0xff] }
 0xd54   : > { %v5417_v22 = vld [vmem:[#allocation1] sm:$0xf] }
 0xd55   : > { %5419 = vst [vmem:[#allocation1] ss:$9 sm:$0xff] %v14736_v58  ;;  %v5584_v42 = vunpack.c.l.b16 %v5417_v22  ;;  %v5646_v22 = vrot.slane %v5578_v24, 2  ;;  %v14750_v24 = vld [vmem:[#allocation58_spill] sm:$0xff] }
 0xd57   : > { %v5656_v36 = vrot.slane %v5584_v42, 4  ;;  %v5647_v39 = vsel %vm3041_vm5, %v5646_v22, %v5645_v56 }
 0xd58   : > { %v5649_v1 = vsel %vm3044_vm7, %v5648_v51, %v5647_v39  ;;  %v14764_v39 = vld [vmem:[#allocation72_spill] sm:$0xff] }
 0xd59   : > { %v5657_v15 = vsel %vm3035_vm0, %v5656_v36, %v5655_v41  ;;  %v14752_v41 = vld [vmem:[#allocation59_spill] sm:$0xff] }
 0xd5c   : > { %v5420_v48 = vld [vmem:[#allocation1] sm:$0xf] }
 0xd5d   : > { %5422 = vst [vmem:[#allocation1] ss:$9 sm:$0xff] %v14738_v25  ;;  %v5585_v10 = vunpack.c.l.b16 %v5420_v48 }
 0xd5f   : > { %v5658_v50 = vrot.slane %v5585_v10, 3 }
 0xd61   : > { %v5659_v46 = vsel %vm3038_vm1, %v5658_v50, %v5657_v15  ;;  %v14756_v50 = vld [vmem:[#allocation62_spill] sm:$0xff]  ;;  %v14758_v15 = vld [vmem:[#allocation67_spill] sm:$0xff] }
 0xd64   : > { %v5423_v52 = vld [vmem:[#allocation1] sm:$0xf] }
 0xd65   : > { %5425 = vst [vmem:[#allocation1] ss:$9 sm:$0xff] %v14741_v26  ;;  %v5586_v17 = vunpack.c.l.b16 %v5423_v52  ;;  %v14841_v26 = vld [vmem:[#allocation22_spill] sm:$0xff] }
 0xd67   : > { %v5660_v48 = vrot.slane %v5586_v17, 2 }
 0xd69   : > { %v5661_v4 = vsel %vm3041_vm5, %v5660_v48, %v5659_v46  ;;  %v14760_v48 = vld [vmem:[#allocation68_spill] sm:$0xff]  ;;  %v14762_v46 = vld [vmem:[#allocation70_spill] sm:$0xff] }
 0xd6c   : > { %v5426_v30 = vld [vmem:[#allocation1] sm:$0xf] }
 0xd6d   : > { %5428 = vst [vmem:[#allocation1] ss:$9 sm:$0xff] %v14742_v28  ;;  %v5587_v11 = vunpack.c.l.b16 %v5426_v30 }
 0xd6f   : > { %v5662_v42 = vrot.slane %v5587_v11, 1  ;;  %v14766_v11 = vld [vmem:[#allocation75_spill] sm:$0xff] }
 0xd71   : > { %v5663_v62 = vsel %vm3044_vm7, %v5662_v42, %v5661_v4 }
 0xd72   : > { %v5748_v36 = vpack.c.b16 %v5663_v62, %v5649_v1  ;;  %v14768_v1 = vld [vmem:[#allocation76_spill] sm:$0xff]  ;;  %v14770_v62 = vld [vmem:[#allocation78_spill] sm:$0xff] }
 0xd74   : > { %v11733_v3 = vld [vmem:[#allocation1] sm:$0xf]  ;;  %8283 = vmatmul.msk.bf16.vlgmr.msrb.gmra.mxu2 %vm13860_vm10, %v5748_v36 }
 0xd75   : > { %14743 = vst [vmem:[#allocation202_spill] sm:$0xff] %v11733_v3 }
 0xd76   : > { %5431 = vst [vmem:[#allocation1] ss:$9 sm:$0xff] %v14744_v27 }
 0xd7d   : > { %v11737_v18 = vld [vmem:[#allocation1] sm:$0xf] }
 0xd7e   : > { %14745 = vst [vmem:[#allocation278_spill] sm:$0xff] %v11737_v18 }
 0xd7f   : > { %5434 = vst [vmem:[#allocation1] ss:$9 sm:$0xff] %v14746_v9  ;;  %v1071_v9 = vld [vmem:[#allocation2 + $0xc4] sm:$0xf] }
 0xd86   : > { %v11740_v10 = vld [vmem:[#allocation1] sm:$0xf] }
 0xd87   : > { %14747 = vst [vmem:[#allocation203_spill] sm:$0xff] %v11740_v10 }
 0xd88   : > { %5437 = vst [vmem:[#allocation1] ss:$9 sm:$0xff] %v14748_v60  ;;  %v14784_v60 = vld [vmem:[#allocation93_spill] sm:$0xff] }
 0xd8f   : > { %v11743_v52 = vld [vmem:[#allocation1] sm:$0xf] }
 0xd90   : > { %14749 = vst [vmem:[#allocation204_spill] sm:$0xff] %v11743_v52 }
 0xd91   : > { %5440 = vst [vmem:[#allocation1] ss:$9 sm:$0xff] %v14750_v24  ;;  %v14782_v24 = vld [vmem:[#allocation92_spill] sm:$0xff] }
 0xd98   : > { %v11746_v33 = vld [vmem:[#allocation1] sm:$0xf] }
 0xd99   : > { %14751 = vst [vmem:[#allocation205_spill] sm:$0xff] %v11746_v33  ;;  %v14853_v33 = vld [vmem:[#allocation47_spill] sm:$0xff] }
 0xd9a   : > { %5443 = vst [vmem:[#allocation1] ss:$9 sm:$0xff] %v14752_v41  ;;  %v14780_v41 = vld [vmem:[#allocation89_spill] sm:$0xff] }
 0xda1   : > { %v11749_v17 = vld [vmem:[#allocation1] sm:$0xf] }
 0xda2   : > { %14753 = vst [vmem:[#allocation206_spill] sm:$0xff] %v11749_v17 }
 0xda3   : > { %5446 = vst [vmem:[#allocation1] ss:$9 sm:$0xff] %v14754_v44  ;;  %v14778_v44 = vld [vmem:[#allocation87_spill] sm:$0xff] }
 0xdaa   : > { %v11752_v57 = vld [vmem:[#allocation1] sm:$0xf] }
 0xdab   : > { %14755 = vst [vmem:[#allocation207_spill] sm:$0xff] %v11752_v57 }
 0xdac   : > { %5449 = vst [vmem:[#allocation1] ss:$9 sm:$0xff] %v14756_v50  ;;  %v14776_v50 = vld [vmem:[#allocation84_spill] sm:$0xff] }
 0xdb3   : > { %v11755_v22 = vld [vmem:[#allocation1] sm:$0xf] }
 0xdb4   : > { %14757 = vst [vmem:[#allocation208_spill] sm:$0xff] %v11755_v22  ;;  %v14852_v22 = vld [vmem:[#allocation45_spill] sm:$0xff] }
 0xdb5   : > { %5452 = vst [vmem:[#allocation1] ss:$9 sm:$0xff] %v14758_v15  ;;  %v14772_v15 = vld [vmem:[#allocation80_spill] sm:$0xff] }
 0xdbc   : > { %v11758_v56 = vld [vmem:[#allocation1] sm:$0xf] }
 0xdbd   : > { %14759 = vst [vmem:[#allocation209_spill] sm:$0xff] %v11758_v56  ;;  %v14846_v56 = vld [vmem:[#allocation31_spill] sm:$0xff] }
 0xdbe   : > { %5455 = vst [vmem:[#allocation1] ss:$9 sm:$0xff] %v14760_v48  ;;  %v14774_v48 = vld [vmem:[#allocation86_spill] sm:$0xff] }
 0xdc5   : > { %v11761_v51 = vld [vmem:[#allocation1] sm:$0xf] }
 0xdc6   : > { %14761 = vst [vmem:[#allocation211_spill] sm:$0xff] %v11761_v51  ;;  %v14851_v51 = vld [vmem:[#allocation43_spill] sm:$0xff] }
 0xdc7   : > { %5458 = vst [vmem:[#allocation1] ss:$9 sm:$0xff] %v14762_v46 }
 0xdce   : > { %v11764_v30 = vld [vmem:[#allocation1] sm:$0xf] }
 0xdcf   : > { %14763 = vst [vmem:[#allocation212_spill] sm:$0xff] %v11764_v30  ;;  %v14850_v30 = vld [vmem:[#allocation40_spill] sm:$0xff] }
 0xdd0   : > { %5461 = vst [vmem:[#allocation1] ss:$9 sm:$0xff] %v14764_v39 }
 0xdd7   : > { %v11767_v28 = vld [vmem:[#allocation1] sm:$0xf] }
 0xdd8   : > { %14765 = vst [vmem:[#allocation213_spill] sm:$0xff] %v11767_v28  ;;  %v14849_v28 = vld [vmem:[#allocation39_spill] sm:$0xff] }
 0xdd9   : > { %5464 = vst [vmem:[#allocation1] ss:$9 sm:$0xff] %v14766_v11 }
 0xde0   : > { %v11770_v4 = vld [vmem:[#allocation1] sm:$0xf] }
 0xde1   : > { %14767 = vst [vmem:[#allocation214_spill] sm:$0xff] %v11770_v4  ;;  %v14848_v4 = vld [vmem:[#allocation37_spill] sm:$0xff] }
 0xde2   : > { %5467 = vst [vmem:[#allocation1] ss:$9 sm:$0xff] %v14768_v1 }
 0xde9   : > { %v11773_v42 = vld [vmem:[#allocation1] sm:$0xf] }
 0xdea   : > { %14769 = vst [vmem:[#allocation210_spill] sm:$0xff] %v11773_v42 }
 0xdeb   : > { %5470 = vst [vmem:[#allocation1] ss:$9 sm:$0xff] %v14770_v62 }
 0xdf2   : > { %v11776_v36 = vld [vmem:[#allocation1] sm:$0xf] }
 0xdf3   : > { %14771 = vst [vmem:[#allocation215_spill] sm:$0xff] %v11776_v36  ;;  %v14843_v36 = vld [vmem:[#allocation26_spill] sm:$0xff] }
 0xdf4   : > { %5473 = vst [vmem:[#allocation1] ss:$9 sm:$0xff] %v14772_v15 }
 0xdfb   : > { %v11779_v46 = vld [vmem:[#allocation1] sm:$0xf] }
 0xdfc   : > { %14773 = vst [vmem:[#allocation216_spill] sm:$0xff] %v11779_v46  ;;  %v14842_v46 = vld [vmem:[#allocation23_spill] sm:$0xff] }
 0xdfd   : > { %5476 = vst [vmem:[#allocation1] ss:$9 sm:$0xff] %v14774_v48 }
 0xe04   : > { %v11782_v39 = vld [vmem:[#allocation1] sm:$0xf] }
 0xe05   : > { %14775 = vst [vmem:[#allocation217_spill] sm:$0xff] %v11782_v39  ;;  %v14786_v39 = vld [vmem:[#allocation95_spill] sm:$0xff] }
 0xe06   : > { %5479 = vst [vmem:[#allocation1] ss:$9 sm:$0xff] %v14776_v50 }
 0xe0d   : > { %v11785_v11 = vld [vmem:[#allocation1] sm:$0xf] }
 0xe0e   : > { %14777 = vst [vmem:[#allocation277_spill] sm:$0xff] %v11785_v11  ;;  %v14788_v11 = vld [vmem:[#allocation97_spill] sm:$0xff] }
 0xe0f   : > { %5482 = vst [vmem:[#allocation1] ss:$9 sm:$0xff] %v14778_v44 }
 0xe16   : > { %v11788_v1 = vld [vmem:[#allocation1] sm:$0xf] }
 0xe17   : > { %14779 = vst [vmem:[#allocation279_spill] sm:$0xff] %v11788_v1  ;;  %v14790_v1 = vld [vmem:[#allocation103_spill] sm:$0xff] }
 0xe18   : > { %5485 = vst [vmem:[#allocation1] ss:$9 sm:$0xff] %v14780_v41 }
 0xe1f   : > { %v11791_v62 = vld [vmem:[#allocation1] sm:$0xf] }
 0xe20   : > { %14781 = vst [vmem:[#allocation281_spill] sm:$0xff] %v11791_v62  ;;  %v14792_v62 = vld [vmem:[#allocation102_spill] sm:$0xff] }
 0xe21   : > { %5488 = vst [vmem:[#allocation1] ss:$9 sm:$0xff] %v14782_v24 }
 0xe28   : > { %v11794_v15 = vld [vmem:[#allocation1] sm:$0xf] }
 0xe29   : > { %14783 = vst [vmem:[#allocation283_spill] sm:$0xff] %v11794_v15  ;;  %v14794_v15 = vld [vmem:[#allocation104_spill] sm:$0xff] }
 0xe2a   : > { %5491 = vst [vmem:[#allocation1] ss:$9 sm:$0xff] %v14784_v60 }
 0xe31   : > { %v11797_v48 = vld [vmem:[#allocation1] sm:$0xf] }
 0xe32   : > { %14785 = vst [vmem:[#allocation285_spill] sm:$0xff] %v11797_v48  ;;  %v14796_v48 = vld [vmem:[#allocation106_spill] sm:$0xff] }
 0xe33   : > { %5494 = vst [vmem:[#allocation1] ss:$9 sm:$0xff] %v14786_v39 }
 0xe3a   : > { %v11800_v50 = vld [vmem:[#allocation1] sm:$0xf] }
 0xe3b   : > { %14787 = vst [vmem:[#allocation287_spill] sm:$0xff] %v11800_v50  ;;  %v14798_v50 = vld [vmem:[#allocation109_spill] sm:$0xff] }
 0xe3c   : > { %5497 = vst [vmem:[#allocation1] ss:$9 sm:$0xff] %v14788_v11 }
 0xe43   : > { %v11803_v44 = vld [vmem:[#allocation1] sm:$0xf] }
 0xe44   : > { %14789 = vst [vmem:[#allocation289_spill] sm:$0xff] %v11803_v44  ;;  %v14800_v44 = vld [vmem:[#allocation110_spill] sm:$0xff] }
 0xe45   : > { %5500 = vst [vmem:[#allocation1] ss:$9 sm:$0xff] %v14790_v1 }
 0xe4c   : > { %v11806_v41 = vld [vmem:[#allocation1] sm:$0xf] }
 0xe4d   : > { %14791 = vst [vmem:[#allocation291_spill] sm:$0xff] %v11806_v41  ;;  %v14802_v41 = vld [vmem:[#allocation112_spill] sm:$0xff] }
 0xe4e   : > { %5503 = vst [vmem:[#allocation1] ss:$9 sm:$0xff] %v14792_v62 }
 0xe55   : > { %v11809_v24 = vld [vmem:[#allocation1] sm:$0xf] }
 0xe56   : > { %14793 = vst [vmem:[#allocation293_spill] sm:$0xff] %v11809_v24  ;;  %v14804_v24 = vld [vmem:[#allocation114_spill] sm:$0xff] }
 0xe57   : > { %5506 = vst [vmem:[#allocation1] ss:$9 sm:$0xff] %v14794_v15 }
 0xe5e   : > { %v11812_v60 = vld [vmem:[#allocation1] sm:$0xf] }
 0xe5f   : > { %14795 = vst [vmem:[#allocation295_spill] sm:$0xff] %v11812_v60  ;;  %v14806_v60 = vld [vmem:[#allocation120_spill] sm:$0xff] }
 0xe60   : > { %5509 = vst [vmem:[#allocation1] ss:$9 sm:$0xff] %v14796_v48 }
 0xe67   : > { %v11815_v39 = vld [vmem:[#allocation1] sm:$0xf] }
 0xe68   : > { %14797 = vst [vmem:[#allocation297_spill] sm:$0xff] %v11815_v39  ;;  %v14808_v39 = vld [vmem:[#allocation118_spill] sm:$0xff] }
 0xe69   : > { %5512 = vst [vmem:[#allocation1] ss:$9 sm:$0xff] %v14798_v50 }
 0xe70   : > { %v11818_v11 = vld [vmem:[#allocation1] sm:$0xf] }
 0xe71   : > { %14799 = vst [vmem:[#allocation299_spill] sm:$0xff] %v11818_v11  ;;  %v14810_v11 = vld [vmem:[#allocation121_spill] sm:$0xff] }
 0xe72   : > { %5515 = vst [vmem:[#allocation1] ss:$9 sm:$0xff] %v14800_v44 }
 0xe79   : > { %v11821_v1 = vld [vmem:[#allocation1] sm:$0xf] }
 0xe7a   : > { %14801 = vst [vmem:[#allocation301_spill] sm:$0xff] %v11821_v1  ;;  %v14812_v1 = vld [vmem:[#allocation123_spill] sm:$0xff] }
 0xe7b   : > { %5518 = vst [vmem:[#allocation1] ss:$9 sm:$0xff] %v14802_v41 }
 0xe82   : > { %v11824_v62 = vld [vmem:[#allocation1] sm:$0xf] }
 0xe83   : > { %14803 = vst [vmem:[#allocation303_spill] sm:$0xff] %v11824_v62  ;;  %v14814_v62 = vld [vmem:[#allocation126_spill] sm:$0xff] }
 0xe84   : > { %5521 = vst [vmem:[#allocation1] ss:$9 sm:$0xff] %v14804_v24 }
 0xe8b   : > { %v11827_v15 = vld [vmem:[#allocation1] sm:$0xf] }
 0xe8c   : > { %14805 = vst [vmem:[#allocation305_spill] sm:$0xff] %v11827_v15  ;;  %v14816_v15 = vld [vmem:[#allocation127_spill] sm:$0xff] }
 0xe8d   : > { %5524 = vst [vmem:[#allocation1] ss:$9 sm:$0xff] %v14806_v60 }
 0xe94   : > { %v11830_v48 = vld [vmem:[#allocation1] sm:$0xf] }
 0xe95   : > { %14807 = vst [vmem:[#allocation306_spill] sm:$0xff] %v11830_v48  ;;  %v14818_v48 = vld [vmem:[#allocation129_spill] sm:$0xff] }
 0xe96   : > { %5527 = vst [vmem:[#allocation1] ss:$9 sm:$0xff] %v14808_v39  ;;  %v1070_v39 = vld [vmem:[#allocation2 + $0xc0] sm:$0xf] }
 0xe9d   : > { %v11833_v50 = vld [vmem:[#allocation1] sm:$0xf] }
 0xe9e   : > { %14809 = vst [vmem:[#allocation168_spill] sm:$0xff] %v11833_v50 }
 0xe9f   : > { %5530 = vst [vmem:[#allocation1] ss:$9 sm:$0xff] %v14810_v11  ;;  %v14820_v11 = vld [vmem:[#allocation131_spill] sm:$0xff] }
 0xea6   : > { %v11836_v44 = vld [vmem:[#allocation1] sm:$0xf] }
 0xea7   : > { %14811 = vst [vmem:[#allocation169_spill] sm:$0xff] %v11836_v44  ;;  %v1124_v44 = vrot.slane %v1070_v39, 3 }
 0xea8   : > { %5533 = vst [vmem:[#allocation1] ss:$9 sm:$0xff] %v14812_v1 }
 0xea9   : > { %v11852_v1 = vsel %vm14821_vm15, %v1070_v39, %v1124_v44  ;;  %vm14859_vm15 = vmmov %vm14394_vm2 }
 0xeaf   : > { %v11839_v41 = vld [vmem:[#allocation1] sm:$0xf] }
 0xeb0   : > { %14813 = vst [vmem:[#allocation170_spill] sm:$0xff] %v11839_v41 }
 0xeb1   : > { %5536 = vst [vmem:[#allocation1] ss:$9 sm:$0xff] %v14814_v62  ;;  %v1350_v62 = vsel %vm14823_vm9, %v1070_v39, %v1124_v44  ;;  %vm14860_vm9 = vcmask 1041408  }
 0xeb8   : > { %v11842_v24 = vld [vmem:[#allocation1] sm:$0xf] }
 0xeb9   : > { %14815 = vst [vmem:[#allocation171_spill] sm:$0xff] %v11842_v24 }
 0xeba   : > { %5539 = vst [vmem:[#allocation1] ss:$9 sm:$0xff] %v14816_v15  ;;  %v11858_v15 = vrot.slane %v1350_v62, 1  ;;  %v1125_v62 = vrot.slane %v1071_v9, 3 }
 0xebc   : > { %14824 = vst [vmem:[#allocation175_spill] sm:$0xff] %v11858_v15 }
 0xec1   : > { %v11845_v60 = vld [vmem:[#allocation1] sm:$0xf] }
 0xec2   : > { %14817 = vst [vmem:[#allocation172_spill] sm:$0xff] %v11845_v60 }
 0xec3   : > { %5542 = vst [vmem:[#allocation1] ss:$9 sm:$0xff] %v14818_v48  ;;  %v1353_v48 = vsel %vm1135_vm12, %v1070_v39, %v1124_v44 }
 0xeca   : > { %v11848_v50 = vld [vmem:[#allocation1] sm:$0xf] }
 0xecb   : > { %14819 = vst [vmem:[#allocation173_spill] sm:$0xff] %v11848_v50  ;;  %v11864_v50 = vrot.slane %v1353_v48, 2  ;;  %v1362_v48 = vsel %vm14394_vm2, %v1071_v9, %v1125_v62 }
 0xecc   : > { %5545 = vst [vmem:[#allocation1] ss:$9 sm:$0xff] %v14820_v11 }
 0xecd   : > { %14826 = vst [vmem:[#allocation178_spill] sm:$0xff] %v11864_v50 }
 0xed3   : > { %v11854_v41 = vld [vmem:[#allocation1] sm:$0xf] }
 0xed4   : > { %14822 = vst [vmem:[#allocation174_spill] sm:$0xff] %v11854_v41  ;;  %v1356_v41 = vsel %vm1139_vm13, %v1070_v39, %v1124_v44 }
 0xed5   : > { %5548 = vst [vmem:[#allocation1] ss:$9 sm:$0xff] %v11852_v1  ;;  %v11870_v24 = vrot.slane %v1356_v41, 3  ;;  %v1365_v41 = vsel %vm1135_vm12, %v1071_v9, %v1125_v62 }
 0xed6   : > { %v11888_v39 = vrot.slane %v1365_v41, 2 }
 0xed7   : > { %14828 = vst [vmem:[#allocation180_spill] sm:$0xff] %v11870_v24 }
 0xed8   : > { %14835 = vst [vmem:[#allocation280_spill] sm:$0xff] %v11888_v39 }
 0xedc   : > { %v11860_v60 = vld [vmem:[#allocation1] sm:$0xf] }
 0xedd   : > { %14825 = vst [vmem:[#allocation177_spill] sm:$0xff] %v11860_v60  ;;  %v11876_v60 = vsel %vm14830_vm11, %v1071_v9, %v1125_v62 }
 0xede   : > { %5551 = vst [vmem:[#allocation1] ss:$9 sm:$0xff] %v11858_v15 }
 0xedf   : > { %14831 = vst [vmem:[#allocation181_spill] sm:$0xff] %v11876_v60 }
 0xee5   : > { %v11866_v11 = vld [vmem:[#allocation1] sm:$0xf] }
 0xee6   : > { %14827 = vst [vmem:[#allocation179_spill] sm:$0xff] %v11866_v11  ;;  %v11882_v11 = vrot.slane %v1362_v48, 1 }
 0xee7   : > { %5554 = vst [vmem:[#allocation1] ss:$9 sm:$0xff] %v11864_v50 }
 0xee8   : > { %14833 = vst [vmem:[#allocation183_spill] sm:$0xff] %v11882_v11 }
 0xeee   : > { %v11872_v14 = vld [vmem:[#allocation1] sm:$0xf] }
 0xeef   : > { %14829 = vst [vmem:[#allocation176_spill] sm:$0xff] %v11872_v14 }
 0xef0   : > { %5557 = vst [vmem:[#allocation1] ss:$9 sm:$0xff] %v11870_v24 }
 0xef7   : > { %v11878_v6 = vld [vmem:[#allocation1] sm:$0xf] }
 0xef8   : > { %14832 = vst [vmem:[#allocation182_spill] sm:$0xff] %v11878_v6  ;;  %v1368_v6 = vsel %vm1139_vm13, %v1071_v9, %v1125_v62 }
 0xef9   : > { %5560 = vst [vmem:[#allocation1] ss:$9 sm:$0xff] %v11876_v60  ;;  %v11894_v34 = vrot.slane %v1368_v6, 3  ;;  %v14844_v6 = vld [vmem:[#allocation28_spill] sm:$0xff] }
 0xefb   : > { %14837 = vst [vmem:[#allocation282_spill] sm:$0xff] %v11894_v34 }
 0xf00   : > { %v11884_v44 = vld [vmem:[#allocation1] sm:$0xf] }
 0xf01   : > { %14834 = vst [vmem:[#allocation233_spill] sm:$0xff] %v11884_v44  ;;  %v14840_v44 = vld [vmem:[#allocation20_spill] sm:$0xff] }
 0xf02   : > { %5563 = vst [vmem:[#allocation1] ss:$9 sm:$0xff] %v11882_v11 }
 0xf09   : > { %v11890_v14 = vld [vmem:[#allocation1] sm:$0xf] }
 0xf0a   : > { %14836 = vst [vmem:[#allocation234_spill] sm:$0xff] %v11890_v14 }
 0xf0b   : > { %5566 = vst [vmem:[#allocation1] ss:$9 sm:$0xff] %v11888_v39 }
 0xf12   : > { %v11896_v27 = vld [vmem:[#allocation1] sm:$0xf] }
 0xf13   : > { %14838 = vst [vmem:[#allocation284_spill] sm:$0xff] %v11896_v27  ;;  %v14845_v27 = vld [vmem:[#allocation30_spill] sm:$0xff] }
 0xf14   : > { %5569 = vst [vmem:[#allocation1] ss:$9 sm:$0xff] %v11894_v34 }
 0xf1b   : > { %v11899_v48 = vld [vmem:[#allocation1] sm:$0xf] }
 0xf1c   : > { %14839 = vst [vmem:[#allocation286_spill] sm:$0xff] %v11899_v48 }
 0xf1d   : > { %5806 = vst [vmem:[#allocation1] ss:$9 sm:$0xff] %v14840_v44  ;;  %v14847_v44 = vld [vmem:[#allocation34_spill] sm:$0xff] }
 0xf24   : > { %v5807_v53 = vld [vmem:[#allocation1] sm:$0xf] }
 0xf25   : > { %5809 = vst [vmem:[#allocation1] ss:$9 sm:$0xff] %v14841_v26  ;;  %v6006_v52 = vunpack.c.l.b16 %v5807_v53 }
 0xf2c   : > { %v5810_v41 = vld [vmem:[#allocation1] sm:$0xf] }
 0xf2d   : > { %5812 = vst [vmem:[#allocation1] ss:$9 sm:$0xff] %v14842_v46  ;;  %v6007_v57 = vunpack.c.l.b16 %v5810_v41 }
 0xf2f   : > { %v6070_v25 = vrot.slane %v6007_v57, 7 }
 0xf31   : > { %v6071_v40 = vsel %vm14854_vm8, %v6070_v25, %v6006_v52  ;;  %v14856_v25 = vld [vmem:[#allocation48_spill] sm:$0xff]  ;;  %v5148_v52 = vunpack.c.l.b16 %v11513_v63  ;;  %v5154_v63 = vunpack.c.l.b16 %v11531_v45  ;;  %vm14944_vm8 = vmmov %vm14394_vm2 }
 0xf34   : > { %v5813_v14 = vld [vmem:[#allocation1] sm:$0xf] }
 0xf35   : > { %5815 = vst [vmem:[#allocation1] ss:$9 sm:$0xff] %v14843_v36  ;;  %v6008_v17 = vunpack.c.l.b16 %v5813_v14 }
 0xf3c   : > { %v5816_v9 = vld [vmem:[#allocation1] sm:$0xf] }
 0xf3d   : > { %5818 = vst [vmem:[#allocation1] ss:$9 sm:$0xff] %v14844_v6 }
 0xf44   : > { %v5819_v62 = vld [vmem:[#allocation1] sm:$0xf] }
 0xf45   : > { %5821 = vst [vmem:[#allocation1] ss:$9 sm:$0xff] %v14845_v27 }
 0xf4c   : > { %v5822_v42 = vld [vmem:[#allocation1] sm:$0xf] }
 0xf4d   : > { %5824 = vst [vmem:[#allocation1] ss:$9 sm:$0xff] %v14846_v56  ;;  %v6011_v38 = vunpack.c.l.b16 %v5822_v42 }
 0xf4f   : > { %v6078_v57 = vrot.slane %v6011_v38, 3  ;;  %v5151_v38 = vunpack.c.l.b16 %v11522_v55  ;;  %v5160_v55 = vunpack.c.l.b16 %v11549_v0 }
 0xf54   : > { %v11908_v48 = vld [vmem:[#allocation1] sm:$0xf] }
 0xf55   : > { %5827 = vst [vmem:[#allocation1] ss:$9 sm:$0xff] %v14847_v44  ;;  %v6009_v44 = vunpack.c.l.b16 %v5816_v9 }
 0xf57   : > { %v6074_v58 = vrot.slane %v6009_v44, 5 }
 0xf5c   : > { %v11911_v26 = vld [vmem:[#allocation1] sm:$0xf] }
 0xf5d   : > { %5830 = vst [vmem:[#allocation1] ss:$9 sm:$0xff] %v14848_v4  ;;  %v6010_v4 = vunpack.c.l.b16 %v5819_v62 }
 0xf5f   : > { %v6076_v41 = vrot.slane %v6010_v4, 4  ;;  %v5212_v4 = vrot.slane %v5148_v52, 6 }
 0xf64   : > { %v5831_v46 = vld [vmem:[#allocation1] sm:$0xf] }
 0xf65   : > { %5833 = vst [vmem:[#allocation1] ss:$9 sm:$0xff] %v14849_v28  ;;  %v6014_v10 = vunpack.c.l.b16 %v5831_v46 }
 0xf6c   : > { %v5834_v36 = vld [vmem:[#allocation1] sm:$0xf] }
 0xf6d   : > { %5836 = vst [vmem:[#allocation1] ss:$9 sm:$0xff] %v14850_v30  ;;  %v6015_v18 = vunpack.c.l.b16 %v5834_v36  ;;  %v6072_v30 = vrot.slane %v6008_v17, 6  ;;  %v6013_v17 = vunpack.c.l.b16 %v11911_v26 }
 0xf6f   : > { %v6073_v14 = vsel %vm1135_vm12, %v6072_v30, %v6071_v40  ;;  %v5147_v40 = vunpack.c.l.b16 %v11510_v31  ;;  %v5153_v31 = vunpack.c.l.b16 %v11528_v2  ;;  %v5218_v30 = vrot.slane %v5151_v38, 3 }
 0xf70   : > { %v6075_v53 = vsel %vm1139_vm13, %v6074_v58, %v6073_v14  ;;  %v5149_v58 = vunpack.c.l.b16 %v11516_v35  ;;  %v5157_v35 = vunpack.c.l.b16 %v11540_v49  ;;  %v8292_v49 = vld [vmem:[%s13451_s5 + $0x10] sm:$0x3] }
 0xf71   : > { %v5210_v44 = vrot.slane %v5147_v40, 7  ;;  %v5222_v0 = vrot.slane %v5153_v31, 1 }
 0xf74   : > { %v5837_v6 = vld [vmem:[#allocation1] sm:$0xf] }
 0xf75   : > { %5839 = vst [vmem:[#allocation1] ss:$9 sm:$0xff] %v14851_v51  ;;  %v6016_v28 = vunpack.c.l.b16 %v5837_v6  ;;  %v5152_v6 = vunpack.c.l.b16 %v11525_v47  ;;  %v5161_v47 = vunpack.c.l.b16 %v11552_v29 }
 0xf77   : > { %v6086_v23 = vrot.slane %v6016_v28, 6  ;;  %v5214_v28 = vrot.slane %v5149_v58, 5  ;;  %v5220_v2 = vrot.slane %v5152_v6, 2 }
 0xf7c   : > { %v5840_v27 = vld [vmem:[#allocation1] sm:$0xf] }
 0xf7d   : > { %5842 = vst [vmem:[#allocation1] ss:$9 sm:$0xff] %v14852_v22  ;;  %v6017_v3 = vunpack.c.l.b16 %v5840_v27  ;;  %v6084_v22 = vrot.slane %v6015_v18, 7  ;;  %v5146_v18 = vunpack.c.l.b16 %v11507_v59  ;;  %v5155_v27 = vunpack.c.l.b16 %v11534_v8 }
 0xf7e   : > { %v5156_v59 = vunpack.c.l.b16 %v11537_v54 }
 0xf7f   : > { %v6085_v9 = vsel %vm14855_vm6, %v6084_v22, %v6014_v10  ;;  %v6088_v62 = vrot.slane %v6017_v3, 5  ;;  %v6077_v3 = vsel %vm3035_vm0, %v6076_v41, %v6075_v53  ;;  %v5150_v10 = vunpack.c.l.b16 %v11519_v19  ;;  %v14858_v41 = vld [vmem:[#allocation51_spill] sm:$0xff]  ;;  %vm14946_vm6 = vmmov %vm14394_vm2 }
 0xf80   : > { %v6087_v42 = vsel %vm1135_vm12, %v6086_v23, %v6085_v9  ;;  %v5159_v19 = vunpack.c.l.b16 %v11546_v16  ;;  %v5211_v54 = vsel %vm14857_vm14, %v5210_v44, %v5146_v18  ;;  %v5226_v45 = vrot.slane %v5156_v59, 6  ;;  %vm14948_vm14 = vmmov %vm14394_vm2 }
 0xf81   : > { %v6089_v23 = vsel %vm1139_vm13, %v6088_v62, %v6087_v42  ;;  %v5216_v8 = vrot.slane %v5150_v10, 4  ;;  %v5213_v16 = vsel %vm1135_vm12, %v5212_v4, %v5211_v54  ;;  %v5228_v22 = vrot.slane %v5157_v35, 5  ;;  %v14861_v4 = vld [vmem:[#allocation54_spill] sm:$0xff] }
 0xf82   : > { %v5215_v53 = vsel %vm1139_vm13, %v5214_v28, %v5213_v16  ;;  %v5232_v62 = vrot.slane %v5159_v19, 3  ;;  %v6625_v18 = vsel %vm14860_vm9, %v8292_v49, 0  ;;  %v5236_v10 = vrot.slane %v5161_v47, 1  ;;  %vm14967_vm9 = vmmov %vm14394_vm2 }
 0xf83   : > { %6634 = vmatpush.bf16.msra.mxu0 %v6625_v18  ;;  %v6079_v31 = vsel %vm3038_vm1, %v6078_v57, %v6077_v3  ;;  %v6082_v19 = vrot.slane %v6013_v17, 1 }
 0xf84   : > { %v5843_v56 = vld [vmem:[#allocation1] sm:$0xf] }
 0xf85   : > { %5845 = vst [vmem:[#allocation1] ss:$9 sm:$0xff] %v14853_v33  ;;  %v6018_v51 = vunpack.c.l.b16 %v5843_v56  ;;  %v6012_v33 = vunpack.c.l.b16 %v11908_v48  ;;  %v5158_v56 = vunpack.c.l.b16 %v11543_v5 }
 0xf87   : > { %v6090_v36 = vrot.slane %v6018_v51, 4  ;;  %v5224_v51 = vrot.slane %v5155_v27, 7  ;;  %v5230_v14 = vrot.slane %v5158_v56, 4  ;;  %v6080_v38 = vrot.slane %v6012_v33, 2 }
 0xf89   : > { %v5225_v9 = vsel %vm14859_vm15, %v5224_v51, %v5154_v63  ;;  %v6091_v6 = vsel %vm3035_vm0, %v6090_v36, %v6089_v23  ;;  %vm14949_vm15 = vmmov %vm14394_vm2 }
 0xf8a   : > { %v5227_v42 = vsel %vm1135_vm12, %v5226_v45, %v5225_v9  ;;  %v14864_v45 = vld [vmem:[#allocation60_spill] sm:$0xff]  ;;  %v14869_v9 = vld [vmem:[#allocation71_spill] sm:$0xff] }
 0xf8b   : > { %v5229_v58 = vsel %vm1139_vm13, %v5228_v22, %v5227_v42 }
 0xf8c   : > { %v5846_v46 = vld [vmem:[#allocation1] sm:$0xf]  ;;  %v5231_v59 = vsel %vm3035_vm0, %v5230_v14, %v5229_v58  ;;  %v14873_v58 = vld [vmem:[#allocation79_spill] sm:$0xff] }
 0xf8d   : > { %5848 = vst [vmem:[#allocation1] ss:$9 sm:$0xff] %v14856_v25  ;;  %v6019_v48 = vunpack.c.l.b16 %v5846_v46  ;;  %v5217_v46 = vsel %vm3035_vm0, %v5216_v8, %v5215_v53  ;;  %v5234_v25 = vrot.slane %v5160_v55, 2  ;;  %v5233_v35 = vsel %vm3038_vm1, %v5232_v62, %v5231_v59  ;;  %v14867_v14 = vld [vmem:[#allocation66_spill] sm:$0xff] }
 0xf8e   : > { %v5219_v52 = vsel %vm3038_vm1, %v5218_v30, %v5217_v46  ;;  %v6081_v55 = vsel %vm3041_vm5, %v6080_v38, %v6079_v31  ;;  %v14862_v30 = vld [vmem:[#allocation56_spill] sm:$0xff]  ;;  %v14870_v46 = vld [vmem:[#allocation73_spill] sm:$0xff] }
 0xf8f   : > { %v6092_v40 = vrot.slane %v6019_v48, 3  ;;  %v5221_v27 = vsel %vm3041_vm5, %v5220_v2, %v5219_v52  ;;  %v5235_v56 = vsel %vm3041_vm5, %v5234_v25, %v5233_v35  ;;  %v6083_v47 = vsel %vm3044_vm7, %v6082_v19, %v6081_v55  ;;  %v14863_v2 = vld [vmem:[#allocation57_spill] sm:$0xff]  ;;  %v14871_v25 = vld [vmem:[#allocation74_spill] sm:$0xff]  ;;  %v14877_v35 = vld [vmem:[#allocation88_spill] sm:$0xff] }
 0xf90   : > { %v5223_v63 = vsel %vm3044_vm7, %v5222_v0, %v5221_v27  ;;  %v5237_v36 = vsel %vm3044_vm7, %v5236_v10, %v5235_v56  ;;  %v14866_v0 = vld [vmem:[#allocation65_spill] sm:$0xff]  ;;  %v14875_v27 = vld [vmem:[#allocation82_spill] sm:$0xff] }
 0xf91   : > { %v6093_v33 = vsel %vm3038_vm1, %v6092_v40, %v6091_v6  ;;  %v5322_v44 = vpack.c.b16 %v5237_v36, %v5223_v63  ;;  %v14872_v40 = vld [vmem:[#allocation77_spill] sm:$0xff]  ;;  %v14878_v56 = vld [vmem:[#allocation90_spill] sm:$0xff] }
 0xf92   : > { %v14874_v38 = vld [vmem:[#allocation81_spill] sm:$0xff] }
 0xf93   : > { %8278 = vmatmul.msk.bf16.vlgmr.msrb.gmra.mxu1 %vm13860_vm10, %v5322_v44  ;;  %v14876_v31 = vld [vmem:[#allocation85_spill] sm:$0xff]  ;;  %v14881_v44 = vld [vmem:[#allocation96_spill] sm:$0xff] }
 0xf94   : > { %v5849_v5 = vld [vmem:[#allocation1] sm:$0xf] }
 0xf95   : > { %5851 = vst [vmem:[#allocation1] ss:$9 sm:$0xff] %v14858_v41  ;;  %v6020_v29 = vunpack.c.l.b16 %v5849_v5  ;;  %v14865_v5 = vld [vmem:[#allocation63_spill] sm:$0xff] }
 0xf97   : > { %v6094_v48 = vrot.slane %v6020_v29, 2  ;;  %v14868_v29 = vld [vmem:[#allocation69_spill] sm:$0xff] }
 0xf99   : > { %v6095_v3 = vsel %vm3041_vm5, %v6094_v48, %v6093_v33  ;;  %v14879_v33 = vld [vmem:[#allocation91_spill] sm:$0xff] }
 0xf9c   : > { %v5852_v23 = vld [vmem:[#allocation1] sm:$0xf] }
 0xf9d   : > { %5854 = vst [vmem:[#allocation1] ss:$9 sm:$0xff] %v14861_v4  ;;  %v6021_v57 = vunpack.c.l.b16 %v5852_v23  ;;  %v14880_v23 = vld [vmem:[#allocation94_spill] sm:$0xff] }
 0xf9f   : > { %v6096_v28 = vrot.slane %v6021_v57, 1  ;;  %v14882_v57 = vld [vmem:[#allocation99_spill] sm:$0xff] }
 0xfa1   : > { %v6097_v26 = vsel %vm3044_vm7, %v6096_v28, %v6095_v3 }
 0xfa2   : > { %v6182_v17 = vpack.c.b16 %v6097_v26, %v6083_v47  ;;  %v14883_v47 = vld [vmem:[#allocation100_spill] sm:$0xff]  ;;  %v14884_v26 = vld [vmem:[#allocation101_spill] sm:$0xff] }
 0xfa4   : > { %v11975_v8 = vld [vmem:[#allocation1] sm:$0xf]  ;;  %8288 = vmatmul.msk.bf16.vlgmr.msra.gmra.mxu3 %vm13860_vm10, %v6182_v17 }
 0xfa5   : > { %5857 = vst [vmem:[#allocation1] ss:$9 sm:$0xff] %v14862_v30  ;;  %v14885_v30 = vld [vmem:[#allocation105_spill] sm:$0xff] }
 0xfac   : > { %v11979_v54 = vld [vmem:[#allocation1] sm:$0xf] }
 0xfad   : > { %5860 = vst [vmem:[#allocation1] ss:$9 sm:$0xff] %v14863_v2 }
 0xfb4   : > { %v11982_v51 = vld [vmem:[#allocation1] sm:$0xf] }
 0xfb5   : > { %5863 = vst [vmem:[#allocation1] ss:$9 sm:$0xff] %v14864_v45  ;;  %v14886_v45 = vld [vmem:[#allocation107_spill] sm:$0xff] }
 0xfbc   : > { %v11985_v49 = vld [vmem:[#allocation1] sm:$0xf] }
 0xfbd   : > { %5866 = vst [vmem:[#allocation1] ss:$9 sm:$0xff] %v14865_v5 }
 0xfc4   : > { %v11988_v16 = vld [vmem:[#allocation1] sm:$0xf] }
 0xfc5   : > { %5869 = vst [vmem:[#allocation1] ss:$9 sm:$0xff] %v14866_v0  ;;  %v14887_v0 = vld [vmem:[#allocation108_spill] sm:$0xff] }
 0xfcc   : > { %v11991_v22 = vld [vmem:[#allocation1] sm:$0xf] }
 0xfcd   : > { %5872 = vst [vmem:[#allocation1] ss:$9 sm:$0xff] %v14867_v14 }
 0xfd4   : > { %v11994_v41 = vld [vmem:[#allocation1] sm:$0xf] }
 0xfd5   : > { %5875 = vst [vmem:[#allocation1] ss:$9 sm:$0xff] %v14868_v29  ;;  %v14888_v29 = vld [vmem:[#allocation111_spill] sm:$0xff] }
 0xfdc   : > { %v11997_v53 = vld [vmem:[#allocation1] sm:$0xf] }
 0xfdd   : > { %5878 = vst [vmem:[#allocation1] ss:$9 sm:$0xff] %v14869_v9 }
 0xfe4   : > { %v12000_v62 = vld [vmem:[#allocation1] sm:$0xf] }
 0xfe5   : > { %5881 = vst [vmem:[#allocation1] ss:$9 sm:$0xff] %v14870_v46  ;;  %v14889_v46 = vld [vmem:[#allocation113_spill] sm:$0xff] }
 0xfec   : > { %v12003_v42 = vld [vmem:[#allocation1] sm:$0xf] }
 0xfed   : > { %5884 = vst [vmem:[#allocation1] ss:$9 sm:$0xff] %v14871_v25 }
 0xff4   : > { %v12006_v18 = vld [vmem:[#allocation1] sm:$0xf] }
 0xff5   : > { %5887 = vst [vmem:[#allocation1] ss:$9 sm:$0xff] %v14872_v40  ;;  %v14890_v40 = vld [vmem:[#allocation115_spill] sm:$0xff] }
 0xffc   : > { %v12009_v52 = vld [vmem:[#allocation1] sm:$0xf] }
 0xffd   : > { %5890 = vst [vmem:[#allocation1] ss:$9 sm:$0xff] %v14873_v58 }
0x1004   : > { %v12012_v10 = vld [vmem:[#allocation1] sm:$0xf] }
0x1005   : > { %5893 = vst [vmem:[#allocation1] ss:$9 sm:$0xff] %v14874_v38  ;;  %v14892_v38 = vld [vmem:[#allocation116_spill] sm:$0xff] }
0x100c   : > { %v12015_v6 = vld [vmem:[#allocation1] sm:$0xf] }
0x100d   : > { %5896 = vst [vmem:[#allocation1] ss:$9 sm:$0xff] %v14875_v27 }
0x1014   : > { %v12018_v59 = vld [vmem:[#allocation1] sm:$0xf] }
0x1015   : > { %5899 = vst [vmem:[#allocation1] ss:$9 sm:$0xff] %v14876_v31  ;;  %v14894_v31 = vld [vmem:[#allocation119_spill] sm:$0xff] }
0x101c   : > { %v12021_v63 = vld [vmem:[#allocation1] sm:$0xf] }
0x101d   : > { %5902 = vst [vmem:[#allocation1] ss:$9 sm:$0xff] %v14877_v35 }
0x1024   : > { %v12024_v48 = vld [vmem:[#allocation1] sm:$0xf] }
0x1025   : > { %5905 = vst [vmem:[#allocation1] ss:$9 sm:$0xff] %v14878_v56  ;;  %v14896_v56 = vld [vmem:[#allocation122_spill] sm:$0xff] }
0x102c   : > { %v12027_v19 = vld [vmem:[#allocation1] sm:$0xf] }
0x102d   : > { %5908 = vst [vmem:[#allocation1] ss:$9 sm:$0xff] %v14879_v33 }
0x1034   : > { %v12030_v36 = vld [vmem:[#allocation1] sm:$0xf] }
0x1035   : > { %5911 = vst [vmem:[#allocation1] ss:$9 sm:$0xff] %v14880_v23  ;;  %v14898_v23 = vld [vmem:[#allocation124_spill] sm:$0xff] }
0x103c   : > { %v12033_v55 = vld [vmem:[#allocation1] sm:$0xf] }
0x103d   : > { %5914 = vst [vmem:[#allocation1] ss:$9 sm:$0xff] %v14881_v44 }
0x1044   : > { %v12036_v4 = vld [vmem:[#allocation1] sm:$0xf] }
0x1045   : > { %5917 = vst [vmem:[#allocation1] ss:$9 sm:$0xff] %v14882_v57  ;;  %v14900_v57 = vld [vmem:[#allocation125_spill] sm:$0xff] }
0x104c   : > { %v12039_v3 = vld [vmem:[#allocation1] sm:$0xf] }
0x104d   : > { %5920 = vst [vmem:[#allocation1] ss:$9 sm:$0xff] %v14883_v47 }
0x1054   : > { %v12042_v28 = vld [vmem:[#allocation1] sm:$0xf] }
0x1055   : > { %5923 = vst [vmem:[#allocation1] ss:$9 sm:$0xff] %v14884_v26  ;;  %v14902_v26 = vld [vmem:[#allocation128_spill] sm:$0xff] }
0x105c   : > { %v12045_v17 = vld [vmem:[#allocation1] sm:$0xf] }
0x105d   : > { %5926 = vst [vmem:[#allocation1] ss:$9 sm:$0xff] %v14885_v30 }
0x1064   : > { %v12048_v2 = vld [vmem:[#allocation1] sm:$0xf] }
0x1065   : > { %5929 = vst [vmem:[#allocation1] ss:$9 sm:$0xff] %v14886_v45  ;;  %v14904_v45 = vld [vmem:[#allocation130_spill] sm:$0xff] }
0x106c   : > { %v12051_v5 = vld [vmem:[#allocation1] sm:$0xf] }
0x106d   : > { %5932 = vst [vmem:[#allocation1] ss:$9 sm:$0xff] %v14887_v0 }
0x1074   : > { %v12054_v14 = vld [vmem:[#allocation1] sm:$0xf] }
0x1075   : > { %5935 = vst [vmem:[#allocation1] ss:$9 sm:$0xff] %v14888_v29  ;;  %v14906_v29 = vld [vmem:[#allocation132_spill] sm:$0xff] }
0x107c   : > { %v12057_v9 = vld [vmem:[#allocation1] sm:$0xf] }
0x107d   : > { %5938 = vst [vmem:[#allocation1] ss:$9 sm:$0xff] %v14889_v46 }
0x1084   : > { %v12060_v25 = vld [vmem:[#allocation1] sm:$0xf] }
0x1085   : > { %5941 = vst [vmem:[#allocation1] ss:$9 sm:$0xff] %v14890_v40  ;;  %v14908_v40 = vld [vmem:[#allocation133_spill] sm:$0xff] }
0x108c   : > { %v12063_v58 = vld [vmem:[#allocation1] sm:$0xf] }
0x108d   : > { %14891 = vst [vmem:[#allocation288_spill] sm:$0xff] %v12063_v58 }
0x108e   : > { %5944 = vst [vmem:[#allocation1] ss:$9 sm:$0xff] %v14892_v38 }
0x1095   : > { %v12066_v27 = vld [vmem:[#allocation1] sm:$0xf] }
0x1096   : > { %14893 = vst [vmem:[#allocation290_spill] sm:$0xff] %v12066_v27 }
0x1097   : > { %5947 = vst [vmem:[#allocation1] ss:$9 sm:$0xff] %v14894_v31  ;;  %v14910_v31 = vld [vmem:[#allocation135_spill] sm:$0xff] }
0x109e   : > { %v12069_v35 = vld [vmem:[#allocation1] sm:$0xf] }
0x109f   : > { %14895 = vst [vmem:[#allocation292_spill] sm:$0xff] %v12069_v35 }
0x10a0   : > { %5950 = vst [vmem:[#allocation1] ss:$9 sm:$0xff] %v14896_v56  ;;  %v1883_v56 = vshrl.u32 %v11852_v1, 16  ;;  %v1899_v1 = vshrl.u32 %v11864_v50, 16 }
0x10a7   : > { %v12072_v33 = vld [vmem:[#allocation1] sm:$0xf] }
0x10a8   : > { %14897 = vst [vmem:[#allocation294_spill] sm:$0xff] %v12072_v33 }
0x10a9   : > { %5953 = vst [vmem:[#allocation1] ss:$9 sm:$0xff] %v14898_v23  ;;  %v1888_v23 = vshll.u32 %v11858_v15, 16 }
0x10b0   : > { %v12075_v44 = vld [vmem:[#allocation1] sm:$0xf] }
0x10b1   : > { %14899 = vst [vmem:[#allocation296_spill] sm:$0xff] %v12075_v44 }
0x10b2   : > { %5956 = vst [vmem:[#allocation1] ss:$9 sm:$0xff] %v14900_v57  ;;  %v1890_v57 = vsel %vm8578_vm4, %v1883_v56, %v1888_v23 }
0x10b9   : > { %v12078_v47 = vld [vmem:[#allocation1] sm:$0xf] }
0x10ba   : > { %14901 = vst [vmem:[#allocation304_spill] sm:$0xff] %v12078_v47 }
0x10bb   : > { %5959 = vst [vmem:[#allocation1] ss:$9 sm:$0xff] %v14902_v26 }
0x10c2   : > { %v12081_v30 = vld [vmem:[#allocation1] sm:$0xf] }
0x10c3   : > { %14903 = vst [vmem:[#allocation218_spill] sm:$0xff] %v12081_v30 }
0x10c4   : > { %5962 = vst [vmem:[#allocation1] ss:$9 sm:$0xff] %v14904_v45  ;;  %v1891_v45 = vshrl.u32 %v11858_v15, 16  ;;  %v1911_v15 = vshll.u32 %v11876_v60, 16 }
0x10cb   : > { %v12084_v0 = vld [vmem:[#allocation1] sm:$0xf] }
0x10cc   : > { %14905 = vst [vmem:[#allocation219_spill] sm:$0xff] %v12084_v0 }
0x10cd   : > { %5965 = vst [vmem:[#allocation1] ss:$9 sm:$0xff] %v14906_v29  ;;  %v1896_v29 = vshll.u32 %v11864_v50, 16  ;;  %v1919_v50 = vshll.u32 %v11882_v11, 16 }
0x10d4   : > { %v12087_v46 = vld [vmem:[#allocation1] sm:$0xf] }
0x10d5   : > { %14907 = vst [vmem:[#allocation220_spill] sm:$0xff] %v12087_v46 }
0x10d6   : > { %5968 = vst [vmem:[#allocation1] ss:$9 sm:$0xff] %v14908_v40  ;;  %v1898_v40 = vsel %vm8578_vm4, %v1891_v45, %v1896_v29 }
0x10dd   : > { %v12090_v38 = vld [vmem:[#allocation1] sm:$0xf] }
0x10de   : > { %14909 = vst [vmem:[#allocation221_spill] sm:$0xff] %v12090_v38 }
0x10df   : > { %5971 = vst [vmem:[#allocation1] ss:$9 sm:$0xff] %v14910_v31  ;;  %v1904_v31 = vshll.u32 %v11870_v24, 16 }
0x10e1   : > { %v1906_v56 = vsel %vm8578_vm4, %v1899_v1, %v1904_v31 }
0x10e6   : > { %v12097_v26 = vld [vmem:[#allocation1] sm:$0xf] }
0x10e7   : > { %14911 = vst [vmem:[#allocation222_spill] sm:$0xff] %v12097_v26 }
0x10e8   : > { %5975 = vst [vmem:[#allocation1] ss:$9 sm:$0xff] %v1890_v57  ;;  %v1907_v57 = vshrl.u32 %v11870_v24, 16  ;;  %v1927_v24 = vshll.u32 %v11888_v39, 16 }
0x10ea   : > { %v1913_v45 = vsel %vm8578_vm4, %v1907_v57, %v1911_v15  ;;  %v1072_v57 = vld [vmem:[#allocation2 + $0xc8] sm:$0x1] }
0x10ef   : > { %v12103_v38 = vld [vmem:[#allocation1] sm:$0xf] }
0x10f0   : > { %14912 = vst [vmem:[#allocation223_spill] sm:$0xff] %v12103_v38 }
0x10f1   : > { %5979 = vst [vmem:[#allocation1] ss:$9 sm:$0xff] %v1898_v40  ;;  %v1914_v40 = vshrl.u32 %v11876_v60, 16  ;;  %v1935_v60 = vshll.u32 %v11894_v34, 16 }
0x10f3   : > { %v1921_v1 = vsel %vm8578_vm4, %v1914_v40, %v1919_v50 }
0x10f8   : > { %v12109_v23 = vld [vmem:[#allocation1] sm:$0xf] }
0x10f9   : > { %14913 = vst [vmem:[#allocation224_spill] sm:$0xff] %v12109_v23  ;;  %v1126_v23 = vrot.slane %v1072_v57, 3 }
0x10fa   : > { %5983 = vst [vmem:[#allocation1] ss:$9 sm:$0xff] %v1906_v56  ;;  %v1922_v56 = vshrl.u32 %v11882_v11, 16 }
0x10fb   : > { %v12134_v40 = vsel %vm14830_vm11, %v1072_v57, %v1126_v23  ;;  %vm14969_vm11 = vmmov %vm14394_vm2 }
0x10fc   : > { %v1929_v15 = vsel %vm8578_vm4, %v1922_v56, %v1927_v24  ;;  %14917 = vst [vmem:[#allocation227_spill] sm:$0xff] %v12134_v40  ;;  %v1938_v24 = vshrl.u32 %v11894_v34, 16  ;;  %v1942_v56 = vshll.u32 %v12134_v40, 16 }
0x1101   : > { %v12115_v29 = vld [vmem:[#allocation1] sm:$0xf] }
0x1102   : > { %14914 = vst [vmem:[#allocation313_spill] sm:$0xff] %v12115_v29 }
0x1103   : > { %5987 = vst [vmem:[#allocation1] ss:$9 sm:$0xff] %v1913_v45  ;;  %v1930_v45 = vshrl.u32 %v11888_v39, 16 }
0x1105   : > { %v1937_v50 = vsel %vm8578_vm4, %v1930_v45, %v1935_v60 }
0x110a   : > { %v12121_v31 = vld [vmem:[#allocation1] sm:$0xf] }
0x110b   : > { %14915 = vst [vmem:[#allocation225_spill] sm:$0xff] %v12121_v31 }
0x110c   : > { %5991 = vst [vmem:[#allocation1] ss:$9 sm:$0xff] %v1921_v1 }
0x1113   : > { %v12127_v29 = vld [vmem:[#allocation1] sm:$0xf] }
0x1114   : > { %14916 = vst [vmem:[#allocation226_spill] sm:$0xff] %v12127_v29 }
0x1115   : > { %5995 = vst [vmem:[#allocation1] ss:$9 sm:$0xff] %v1929_v15  ;;  %v1944_v15 = vsel %vm8578_vm4, %v1938_v24, %v1942_v56  ;;  %vm14926_vm4 = vmmov %vm14394_vm2 }
0x111c   : > { %v12136_v1 = vld [vmem:[#allocation1] sm:$0xf] }
0x111d   : > { %14918 = vst [vmem:[#allocation228_spill] sm:$0xff] %v12136_v1 }
0x111e   : > { %5999 = vst [vmem:[#allocation1] ss:$9 sm:$0xff] %v1937_v50 }
0x1125   : > { %v12142_v39 = vld [vmem:[#allocation1] sm:$0xf] }
0x1126   : > { %14919 = vst [vmem:[#allocation229_spill] sm:$0xff] %v12142_v39 }
0x1127   : > { %6003 = vst [vmem:[#allocation1] ss:$9 sm:$0xff] %v1944_v15 }
0x112e   : > { %v12144_v11 = vld [vmem:[#allocation1] sm:$0xf] }
0x112f   : > { %14920 = vst [vmem:[#allocation230_spill] sm:$0xff] %v12144_v11 }
0x1130   : > { %6240 = vst [vmem:[#allocation1] ss:$9 sm:$0xff] %v14724_v7  ;;  %v14921_v7 = vld [vmem:[#allocation32_spill] sm:$0xff] }
0x1137   : > { %v6241_v60 = vld [vmem:[#allocation1] sm:$0xf] }
0x1138   : > { %6243 = vst [vmem:[#allocation1] ss:$9 sm:$0xff] %v14725_v43  ;;  %v6432_v1 = vunpack.c.l.b16 %v6241_v60 }
0x113f   : > { %v6244_v23 = vld [vmem:[#allocation1] sm:$0xf] }
0x1140   : > { %6246 = vst [vmem:[#allocation1] ss:$9 sm:$0xff] %v14726_v13  ;;  %v14922_v13 = vld [vmem:[#allocation36_spill] sm:$0xff] }
0x1147   : > { %v6247_v57 = vld [vmem:[#allocation1] sm:$0xf] }
0x1148   : > { %6249 = vst [vmem:[#allocation1] ss:$9 sm:$0xff] %v14727_v61  ;;  %v14923_v61 = vld [vmem:[#allocation38_spill] sm:$0xff]  ;;  %v6434_v11 = vunpack.c.l.b16 %v6247_v57 }
0x114a   : > { %v6498_v0 = vrot.slane %v6434_v11, 6 }
0x114f   : > { %v6250_v45 = vld [vmem:[#allocation1] sm:$0xf] }
0x1150   : > { %6252 = vst [vmem:[#allocation1] ss:$9 sm:$0xff] %v14728_v21  ;;  %v14924_v21 = vld [vmem:[#allocation41_spill] sm:$0xff]  ;;  %v6435_v39 = vunpack.c.l.b16 %v6250_v45 }
0x1157   : > { %v6253_v20 = vld [vmem:[#allocation1] sm:$0xf] }
0x1158   : > { %6255 = vst [vmem:[#allocation1] ss:$9 sm:$0xff] %v14729_v32  ;;  %v6433_v32 = vunpack.c.l.b16 %v6244_v23 }
0x115a   : > { %v6496_v46 = vrot.slane %v6433_v32, 7 }
0x115c   : > { %v6497_v23 = vsel %vm14926_vm4, %v6496_v46, %v6432_v1  ;;  %vm14981_vm4 = vmmov %vm14394_vm2 }
0x115d   : > { %v6499_v60 = vsel %vm1135_vm12, %v6498_v0, %v6497_v23  ;;  %v14935_v23 = vld [vmem:[#allocation208_spill] sm:$0xff] }
0x115f   : > { %v6256_v50 = vld [vmem:[#allocation1] sm:$0xf] }
0x1160   : > { %6258 = vst [vmem:[#allocation1] ss:$9 sm:$0xff] %v14730_v37  ;;  %v14925_v37 = vld [vmem:[#allocation42_spill] sm:$0xff]  ;;  %v6437_v29 = vunpack.c.l.b16 %v6256_v50 }
0x1162   : > { %v6504_v57 = vrot.slane %v6437_v29, 3  ;;  %v14928_v29 = vld [vmem:[#allocation202_spill] sm:$0xff] }
0x1163   : > { %v5588_v0 = vunpack.c.l.b16 %v14928_v29 }
0x1167   : > { %v6259_v24 = vld [vmem:[#allocation1] sm:$0xf] }
0x1168   : > { %6261 = vst [vmem:[#allocation1] ss:$9 sm:$0xff] %v14921_v7  ;;  %v6436_v7 = vunpack.c.l.b16 %v6253_v20  ;;  %v6438_v31 = vunpack.c.l.b16 %v6259_v24 }
0x116a   : > { %v6502_v47 = vrot.slane %v6436_v7, 4  ;;  %v6506_v20 = vrot.slane %v6438_v31, 2  ;;  %v14929_v31 = vld [vmem:[#allocation278_spill] sm:$0xff] }
0x116b   : > { %v5589_v1 = vunpack.c.l.b16 %v14929_v31  ;;  %v14941_v31 = vld [vmem:[#allocation210_spill] sm:$0xff] }
0x116f   : > { %v6262_v56 = vld [vmem:[#allocation1] sm:$0xf] }
0x1170   : > { %6264 = vst [vmem:[#allocation1] ss:$9 sm:$0xff] %v14732_v12  ;;  %v6439_v30 = vunpack.c.l.b16 %v6262_v56  ;;  %v14927_v56 = vld [vmem:[#allocation44_spill] sm:$0xff] }
0x1177   : > { %v6265_v43 = vld [vmem:[#allocation1] sm:$0xf] }
0x1178   : > { %6267 = vst [vmem:[#allocation1] ss:$9 sm:$0xff] %v14922_v13  ;;  %v6440_v12 = vunpack.c.l.b16 %v6265_v43 }
0x117f   : > { %v6268_v15 = vld [vmem:[#allocation1] sm:$0xf] }
0x1180   : > { %6270 = vst [vmem:[#allocation1] ss:$9 sm:$0xff] %v14923_v61  ;;  %v6441_v38 = vunpack.c.l.b16 %v6268_v15  ;;  %v6500_v61 = vrot.slane %v6435_v39, 5  ;;  %v6508_v39 = vrot.slane %v6439_v30, 1  ;;  %v14930_v15 = vld [vmem:[#allocation203_spill] sm:$0xff] }
0x1181   : > { %v5590_v32 = vunpack.c.l.b16 %v14930_v15  ;;  %v14942_v15 = vld [vmem:[#allocation215_spill] sm:$0xff] }
0x1182   : > { %v6501_v24 = vsel %vm1139_vm13, %v6500_v61, %v6499_v60  ;;  %v14934_v61 = vld [vmem:[#allocation207_spill] sm:$0xff] }
0x1183   : > { %v6503_v11 = vsel %vm3035_vm0, %v6502_v47, %v6501_v24 }
0x1187   : > { %v6271_v40 = vld [vmem:[#allocation1] sm:$0xf] }
0x1188   : > { %6273 = vst [vmem:[#allocation1] ss:$9 sm:$0xff] %v14924_v21  ;;  %v6442_v26 = vunpack.c.l.b16 %v6271_v40  ;;  %v6510_v21 = vrot.slane %v6441_v38, 7 }
0x118a   : > { %v6512_v45 = vrot.slane %v6442_v26, 6  ;;  %v6511_v50 = vsel %vm14394_vm2, %v6510_v21, %v6440_v12  ;;  %v6505_v26 = vsel %vm3038_vm1, %v6504_v57, %v6503_v11  ;;  %v14932_v12 = vld [vmem:[#allocation205_spill] sm:$0xff]  ;;  %v5594_v21 = vunpack.c.l.b16 %v14934_v61  ;;  %v14936_v57 = vld [vmem:[#allocation211_spill] sm:$0xff] }
0x118b   : > { %v6507_v43 = vsel %vm3041_vm5, %v6506_v20, %v6505_v26  ;;  %v5592_v47 = vunpack.c.l.b16 %v14932_v12  ;;  %v5597_v60 = vunpack.c.l.b16 %v14936_v57  ;;  %v14939_v20 = vld [vmem:[#allocation214_spill] sm:$0xff]  ;;  %v14940_v26 = vld [vmem:[#allocation209_spill] sm:$0xff]  ;;  %v14943_v12 = vld [vmem:[#allocation216_spill] sm:$0xff]  ;;  %v5664_v61 = vrot.slane %v5589_v1, 7 }
0x118c   : > { %v5600_v11 = vunpack.c.l.b16 %v14939_v20  ;;  %v5596_v29 = vunpack.c.l.b16 %v14940_v26  ;;  %v14945_v26 = vld [vmem:[#allocation46_spill] sm:$0xff] }
0x118d   : > { %v5670_v57 = vrot.slane %v5592_v47, 4  ;;  %v5678_v27 = vrot.slane %v5597_v60, 7  ;;  %v5665_v20 = vsel %vm14944_vm8, %v5664_v61, %v5588_v0  ;;  %v6027_v61 = vunpack.c.l.b16 %v11991_v22  ;;  %vm14999_vm8 = vmmov %vm14394_vm2 }
0x118e   : > { %v6035_v22 = vunpack.c.l.b16 %v12015_v6 }
0x118f   : > { %v6274_v34 = vld [vmem:[#allocation1] sm:$0xf] }
0x1190   : > { %6276 = vst [vmem:[#allocation1] ss:$9 sm:$0xff] %v14925_v37  ;;  %v6443_v13 = vunpack.c.l.b16 %v6274_v34  ;;  %v6513_v34 = vsel %vm1135_vm12, %v6512_v45, %v6511_v50  ;;  %v14931_v37 = vld [vmem:[#allocation204_spill] sm:$0xff]  ;;  %v5595_v45 = vunpack.c.l.b16 %v14935_v23  ;;  %v5666_v23 = vrot.slane %v5590_v32, 6 }
0x1191   : > { %v5591_v7 = vunpack.c.l.b16 %v14931_v37  ;;  %v14937_v50 = vld [vmem:[#allocation212_spill] sm:$0xff]  ;;  %v5602_v37 = vunpack.c.l.b16 %v14942_v15 }
0x1192   : > { %v6514_v44 = vrot.slane %v6443_v13, 5  ;;  %v14933_v13 = vld [vmem:[#allocation206_spill] sm:$0xff]  ;;  %v5598_v24 = vunpack.c.l.b16 %v14937_v50  ;;  %v5674_v50 = vrot.slane %v5594_v21, 2  ;;  %v5667_v15 = vsel %vm1135_vm12, %v5666_v23, %v5665_v20 }
0x1193   : > { %v5668_v33 = vrot.slane %v5591_v7, 5  ;;  %v5676_v7 = vrot.slane %v5595_v45, 1  ;;  %v6023_v45 = vunpack.c.l.b16 %v11979_v54  ;;  %v6028_v23 = vunpack.c.l.b16 %v11994_v41 }
0x1194   : > { %v6515_v38 = vsel %vm1139_vm13, %v6514_v44, %v6513_v34  ;;  %v5593_v44 = vunpack.c.l.b16 %v14933_v13  ;;  %v14938_v34 = vld [vmem:[#allocation213_spill] sm:$0xff]  ;;  %v5603_v13 = vunpack.c.l.b16 %v14943_v12  ;;  %v5680_v58 = vrot.slane %v5598_v24, 6 }
0x1195   : > { %v5679_v12 = vsel %vm14946_vm6, %v5678_v27, %v5596_v29  ;;  %v5669_v32 = vsel %vm1139_vm13, %v5668_v33, %v5667_v15  ;;  %v6022_v29 = vunpack.c.l.b16 %v11975_v8  ;;  %v6026_v8 = vunpack.c.l.b16 %v11988_v16  ;;  %vm15001_vm6 = vmmov %vm14394_vm2 }
0x1196   : > { %v5672_v35 = vrot.slane %v5593_v44, 3  ;;  %v5681_v47 = vsel %vm1135_vm12, %v5680_v58, %v5679_v12  ;;  %v5688_v44 = vrot.slane %v5602_v37, 2  ;;  %v5671_v0 = vsel %vm3035_vm0, %v5670_v57, %v5669_v32 }
0x1197   : > { %v6277_v40 = vld [vmem:[#allocation1] sm:$0xf]  ;;  %v5690_v24 = vrot.slane %v5603_v13, 1  ;;  %v6034_v16 = vunpack.c.l.b16 %v12012_v10  ;;  %v6098_v41 = vrot.slane %v6023_v45, 7 }
0x1198   : > { %6279 = vst [vmem:[#allocation1] ss:$9 sm:$0xff] %v14927_v56  ;;  %v6444_v46 = vunpack.c.l.b16 %v6277_v40  ;;  %v5599_v40 = vunpack.c.l.b16 %v14938_v34 }
0x1199   : > { %v6099_v15 = vsel %vm14948_vm14, %v6098_v41, %v6022_v29  ;;  %v14958_v41 = vld [vmem:[#allocation249_spill] sm:$0xff]  ;;  %vm15006_vm14 = vmmov %vm14394_vm2 }
0x119a   : > { %v6516_v30 = vrot.slane %v6444_v46, 4  ;;  %v5601_v46 = vunpack.c.l.b16 %v14941_v31 }
0x119c   : > { %v6517_v56 = vsel %vm3035_vm0, %v6516_v30, %v6515_v38  ;;  %v5682_v38 = vrot.slane %v5599_v40, 5  ;;  %v5684_v30 = vrot.slane %v5600_v11, 4  ;;  %v5686_v1 = vrot.slane %v5601_v46, 3 }
0x119d   : > { %v12195_v40 = vsel %vm3044_vm7, %v6508_v39, %v6507_v43  ;;  %v5673_v11 = vsel %vm3038_vm1, %v5672_v35, %v5671_v0  ;;  %v6024_v46 = vunpack.c.l.b16 %v11982_v51  ;;  %v6025_v35 = vunpack.c.l.b16 %v11985_v49 }
0x119e   : > { %v5683_v60 = vsel %vm1139_vm13, %v5682_v38, %v5681_v47  ;;  %v5675_v33 = vsel %vm3041_vm5, %v5674_v50, %v5673_v11  ;;  %v6029_v51 = vunpack.c.l.b16 %v11997_v53  ;;  %v6032_v50 = vunpack.c.l.b16 %v12006_v18 }
0x119f   : > { %v6280_v34 = vld [vmem:[#allocation1] sm:$0xf]  ;;  %v5685_v27 = vsel %vm3035_vm0, %v5684_v30, %v5683_v60  ;;  %v5677_v13 = vsel %vm3044_vm7, %v5676_v7, %v5675_v33  ;;  %v6030_v49 = vunpack.c.l.b16 %v12000_v62  ;;  %v6033_v38 = vunpack.c.l.b16 %v12009_v52  ;;  %v14950_v33 = vld [vmem:[#allocation196_spill] sm:$0xff] }
0x11a0   : > { %6282 = vst [vmem:[#allocation1] ss:$9 sm:$0xff] %v14945_v26  ;;  %v6445_v31 = vunpack.c.l.b16 %v6280_v34  ;;  %v5687_v58 = vsel %vm3038_vm1, %v5686_v1, %v5685_v27  ;;  %v14947_v34 = vld [vmem:[#allocation49_spill] sm:$0xff]  ;;  %v6100_v30 = vrot.slane %v6024_v46, 6  ;;  %v6102_v53 = vrot.slane %v6025_v35, 5  ;;  %v14951_v46 = vld [vmem:[#allocation50_spill] sm:$0xff] }
0x11a1   : > { %v5689_v39 = vsel %vm3041_vm5, %v5688_v44, %v5687_v58  ;;  %v6037_v18 = vunpack.c.l.b16 %v12021_v63  ;;  %v6106_v62 = vrot.slane %v6027_v61, 3  ;;  %v6114_v52 = vrot.slane %v6032_v50, 6  ;;  %v14953_v61 = vld [vmem:[#allocation198_spill] sm:$0xff]  ;;  %v14955_v50 = vld [vmem:[#allocation199_spill] sm:$0xff] }
0x11a2   : > { %v6518_v21 = vrot.slane %v6445_v31, 3  ;;  %v5691_v43 = vsel %vm3044_vm7, %v5690_v24, %v5689_v39  ;;  %v6104_v31 = vrot.slane %v6026_v8, 4  ;;  %v6101_v10 = vsel %vm1135_vm12, %v6100_v30, %v6099_v15  ;;  %v14952_v39 = vld [vmem:[#allocation197_spill] sm:$0xff] }
0x11a3   : > { %v5749_v54 = vpack.c.b16 %v5691_v43, %v5677_v13  ;;  %v6108_v1 = vrot.slane %v6028_v23, 2  ;;  %v6116_v32 = vrot.slane %v6033_v38, 5  ;;  %v6118_v7 = vrot.slane %v6034_v16, 4  ;;  %v14957_v16 = vld [vmem:[#allocation201_spill] sm:$0xff] }
0x11a4   : > { %v6519_v37 = vsel %vm3038_vm1, %v6518_v21, %v6517_v56  ;;  %v6031_v56 = vunpack.c.l.b16 %v12003_v42  ;;  %v6036_v42 = vunpack.c.l.b16 %v12018_v59  ;;  %v6103_v6 = vsel %vm1139_vm13, %v6102_v53, %v6101_v10  ;;  %v14959_v53 = vld [vmem:[#allocation251_spill] sm:$0xff]  ;;  %v14962_v10 = vld [vmem:[#allocation245_spill] sm:$0xff] }
0x11a5   : > { %8284 = vmatmul.msk.bf16.gmra.mxu2 %vm13860_vm10, %v5749_v54  ;;  %v6110_v47 = vrot.slane %v6029_v51, 1  ;;  %v6120_v21 = vrot.slane %v6035_v22, 3  ;;  %v6105_v63 = vsel %vm3035_vm0, %v6104_v31, %v6103_v6  ;;  %v6124_v29 = vrot.slane %v6037_v18, 1  ;;  %v14960_v31 = vld [vmem:[#allocation253_spill] sm:$0xff] }
0x11a6   : > { %v6112_v12 = vrot.slane %v6031_v56, 7  ;;  %v6122_v60 = vrot.slane %v6036_v42, 2  ;;  %v6107_v11 = vsel %vm3038_vm1, %v6106_v62, %v6105_v63  ;;  %v5162_v58 = vunpack.c.l.b16 %v14950_v33  ;;  %v14961_v62 = vld [vmem:[#allocation255_spill] sm:$0xff]  ;;  %v14964_v6 = vld [vmem:[#allocation257_spill] sm:$0xff] }
0x11a7   : > { %v6283_v57 = vld [vmem:[#allocation1] sm:$0xf]  ;;  %v6109_v13 = vsel %vm3041_vm5, %v6108_v1, %v6107_v11  ;;  %v5163_v35 = vunpack.c.l.b16 %v14952_v39  ;;  %v5164_v23 = vunpack.c.l.b16 %v14953_v61  ;;  %v5168_v22 = vunpack.c.l.b16 %v14957_v16 }
0x11a8   : > { %6285 = vst [vmem:[#allocation1] ss:$9 sm:$0xff] %v14947_v34  ;;  %v6446_v20 = vunpack.c.l.b16 %v6283_v57  ;;  %v6113_v44 = vsel %vm14949_vm15, %v6112_v12, %v6030_v49  ;;  %v6111_v43 = vsel %vm3044_vm7, %v6110_v47, %v6109_v13  ;;  %v14954_v57 = vld [vmem:[#allocation194_spill] sm:$0xff]  ;;  %v5166_v34 = vunpack.c.l.b16 %v14955_v50  ;;  %vm15007_vm15 = vmmov %vm14394_vm2 }
0x11a9   : > { %v6115_v0 = vsel %vm1135_vm12, %v6114_v52, %v6113_v44  ;;  %v5165_v54 = vunpack.c.l.b16 %v14954_v57  ;;  %v5171_v30 = vunpack.c.l.b16 %v14958_v41  ;;  %v5173_v15 = vunpack.c.l.b16 %v14960_v31  ;;  %v14965_v44 = vld [vmem:[#allocation259_spill] sm:$0xff] }
0x11aa   : > { %v6520_v26 = vrot.slane %v6446_v20, 2  ;;  %v6117_v27 = vsel %vm1139_vm13, %v6116_v32, %v6115_v0  ;;  %v14956_v20 = vld [vmem:[#allocation200_spill] sm:$0xff]  ;;  %v5174_v12 = vunpack.c.l.b16 %v14961_v62  ;;  %v5169_v1 = vunpack.c.l.b16 %v14962_v10  ;;  %v14963_v32 = vld [vmem:[#allocation247_spill] sm:$0xff]  ;;  %v14973_v62 = vld [vmem:[#allocation61_spill] sm:$0xff] }
0x11ab   : > { %v5167_v49 = vunpack.c.l.b16 %v14956_v20  ;;  %v5175_v47 = vunpack.c.l.b16 %v14964_v6  ;;  %v5238_v63 = vrot.slane %v5163_v35, 7  ;;  %v5240_v0 = vrot.slane %v5164_v23, 6  ;;  %v14972_v31 = vld [vmem:[#allocation59_spill] sm:$0xff] }
0x11ac   : > { %v6521_v59 = vsel %vm3041_vm5, %v6520_v26, %v6519_v37  ;;  %v6119_v37 = vsel %vm3035_vm0, %v6118_v7, %v6117_v27  ;;  %v5172_v26 = vunpack.c.l.b16 %v14959_v53  ;;  %v5170_v7 = vunpack.c.l.b16 %v14963_v32  ;;  %v14970_v53 = vld [vmem:[#allocation55_spill] sm:$0xff] }
0x11ad   : > { %v6121_v8 = vsel %vm3038_vm1, %v6120_v21, %v6119_v37  ;;  %v5176_v21 = vunpack.c.l.b16 %v14965_v44  ;;  %v5244_v11 = vrot.slane %v5166_v34, 4  ;;  %v5246_v27 = vrot.slane %v5167_v49, 3  ;;  %v14968_v37 = vld [vmem:[#allocation53_spill] sm:$0xff] }
0x11ae   : > { %v6123_v56 = vsel %vm3041_vm5, %v6122_v60, %v6121_v8  ;;  %v14966_v60 = vld [vmem:[#allocation261_spill] sm:$0xff]  ;;  %v5239_v33 = vsel %vm14967_vm9, %v5238_v63, %v5162_v58  ;;  %v5258_v13 = vrot.slane %v5174_v12, 4  ;;  %v5248_v35 = vrot.slane %v5168_v22, 2  ;;  %vm15025_vm9 = vmmov %vm14394_vm2 }
0x11af   : > { %v6286_v24 = vld [vmem:[#allocation1] sm:$0xf]  ;;  %v6125_v38 = vsel %vm3044_vm7, %v6124_v29, %v6123_v56  ;;  %v5241_v39 = vsel %vm1135_vm12, %v5240_v0, %v5239_v33  ;;  %v5260_v8 = vrot.slane %v5175_v47, 3  ;;  %v5250_v23 = vrot.slane %v5169_v1, 1  ;;  %v14975_v1 = vld [vmem:[#allocation64_spill] sm:$0xff]  ;;  %v14979_v0 = vld [vmem:[#allocation75_spill] sm:$0xff] }
0x11b0   : > { %v6447_v45 = vunpack.c.l.b16 %v6286_v24  ;;  %6288 = vst [vmem:[#allocation1] ss:$9 sm:$0xff] %v14951_v46  ;;  %v6183_v18 = vpack.c.b16 %v6125_v38, %v6111_v43  ;;  %v5177_v24 = vunpack.c.l.b16 %v14966_v60  ;;  %v5256_v46 = vrot.slane %v5173_v15, 5  ;;  %v14977_v47 = vld [vmem:[#allocation70_spill] sm:$0xff] }
0x11b2   : > { %v6522_v51 = vrot.slane %v6447_v45, 1  ;;  %8289 = vmatmul.msk.bf16.gmra.mxu3 %vm13860_vm10, %v6183_v18  ;;  %v5254_v45 = vrot.slane %v5172_v26, 6  ;;  %v5264_v56 = vrot.slane %v5177_v24, 1 }
0x11b4   : > { %v6523_v42 = vsel %vm3044_vm7, %v6522_v51, %v6521_v59  ;;  %v5242_v59 = vrot.slane %v5165_v54, 5  ;;  %v5262_v54 = vrot.slane %v5176_v21, 2  ;;  %v14978_v21 = vld [vmem:[#allocation72_spill] sm:$0xff] }
0x11b5   : > { %v6608_v52 = vpack.c.b16 %v6523_v42, %v12195_v40  ;;  %v5252_v40 = vrot.slane %v5171_v30, 7  ;;  %v14971_v42 = vld [vmem:[#allocation58_spill] sm:$0xff] }
0x11b6   : > { %v5243_v61 = vsel %vm1139_vm13, %v5242_v59, %v5241_v39 }
0x11b7   : > { %8293 = vmatmul.msk.bf16.vlgmr.msra.gmra.mxu0 %vm13860_vm10, %v6608_v52  ;;  %v12259_v29 = vld [vmem:[#allocation1] sm:$0xf]  ;;  %v5253_v43 = vsel %vm14969_vm11, %v5252_v40, %v5170_v7  ;;  %v5245_v51 = vsel %vm3035_vm0, %v5244_v11, %v5243_v61  ;;  %v14976_v7 = vld [vmem:[#allocation68_spill] sm:$0xff]  ;;  %vm15027_vm11 = vmmov %vm14394_vm2 }
0x11b8   : > { %6291 = vst [vmem:[#allocation1] ss:$9 sm:$0xff] %v14968_v37  ;;  %v5255_v57 = vsel %vm1135_vm12, %v5254_v45, %v5253_v43  ;;  %v5247_v50 = vsel %vm3038_vm1, %v5246_v27, %v5245_v51  ;;  %v14974_v52 = vld [vmem:[#allocation62_spill] sm:$0xff]  ;;  %v14980_v27 = vld [vmem:[#allocation76_spill] sm:$0xff]  ;;  %v6448_v40 = vunpack.c.l.b16 %v12259_v29 }
0x11b9   : > { %v5257_v58 = vsel %vm1139_vm13, %v5256_v46, %v5255_v57  ;;  %v5249_v20 = vsel %vm3041_vm5, %v5248_v35, %v5247_v50 }
0x11ba   : > { %v5259_v34 = vsel %vm3035_vm0, %v5258_v13, %v5257_v58  ;;  %v5251_v38 = vsel %vm3044_vm7, %v5250_v23, %v5249_v20 }
0x11bb   : > { %v5261_v49 = vsel %vm3038_vm1, %v5260_v8, %v5259_v34 }
0x11bc   : > { %v5263_v16 = vsel %vm3041_vm5, %v5262_v54, %v5261_v49 }
0x11bd   : > { %v5265_v22 = vsel %vm3044_vm7, %v5264_v56, %v5263_v16 }
0x11be   : > { %v5323_v30 = vpack.c.b16 %v5265_v22, %v5251_v38 }
0x11bf   : > { %v6292_v41 = vld [vmem:[#allocation1] sm:$0xf] }
0x11c0   : > { %6294 = vst [vmem:[#allocation1] ss:$9 sm:$0xff] %v14970_v53  ;;  %8279 = vmatmul.msk.bf16.gmra.mxu1 %vm13860_vm10, %v5323_v30  ;;  %v6449_v60 = vunpack.c.l.b16 %v6292_v41  ;;  %v14982_v53 = vld [vmem:[#allocation78_spill] sm:$0xff] }
0x11c2   : > { %v6524_v43 = vrot.slane %v6449_v60, 7 }
0x11c4   : > { %v6525_v51 = vsel %vm14981_vm4, %v6524_v43, %v6448_v40  ;;  %v14996_v43 = vld [vmem:[#allocation301_spill] sm:$0xff]  ;;  %vm15039_vm4 = vmmov %vm14394_vm2 }
0x11c7   : > { %v6295_v26 = vld [vmem:[#allocation1] sm:$0xf] }
0x11c8   : > { %6297 = vst [vmem:[#allocation1] ss:$9 sm:$0xff] %v14971_v42  ;;  %v6450_v24 = vunpack.c.l.b16 %v6295_v26 }
0x11ca   : > { %v6526_v8 = vrot.slane %v6450_v24, 6  ;;  %v14991_v24 = vld [vmem:[#allocation293_spill] sm:$0xff] }
0x11cc   : > { %v6527_v29 = vsel %vm1135_vm12, %v6526_v8, %v6525_v51  ;;  %v5617_v8 = vunpack.c.l.b16 %v14996_v43  ;;  %v6049_v43 = vunpack.c.l.b16 %v12057_v9 }
0x11cf   : > { %v6298_v18 = vld [vmem:[#allocation1] sm:$0xf] }
0x11d0   : > { %6300 = vst [vmem:[#allocation1] ss:$9 sm:$0xff] %v14972_v31  ;;  %v6451_v11 = vunpack.c.l.b16 %v6298_v18  ;;  %v14983_v18 = vld [vmem:[#allocation217_spill] sm:$0xff] }
0x11d1   : > { %v5604_v31 = vunpack.c.l.b16 %v14983_v18 }
0x11d2   : > { %v6528_v61 = vrot.slane %v6451_v11, 5  ;;  %v5613_v11 = vunpack.c.l.b16 %v14991_v24  ;;  %v6040_v24 = vunpack.c.l.b16 %v12030_v36  ;;  %v6045_v36 = vunpack.c.l.b16 %v12045_v17 }
0x11d4   : > { %v6529_v49 = vsel %vm1139_vm13, %v6528_v61, %v6527_v29  ;;  %v14997_v61 = vld [vmem:[#allocation303_spill] sm:$0xff] }
0x11d7   : > { %v6301_v15 = vld [vmem:[#allocation1] sm:$0xf] }
0x11d8   : > { %6303 = vst [vmem:[#allocation1] ss:$9 sm:$0xff] %v14973_v62  ;;  %v6452_v33 = vunpack.c.l.b16 %v6301_v15  ;;  %v14984_v15 = vld [vmem:[#allocation277_spill] sm:$0xff] }
0x11d9   : > { %v5605_v62 = vunpack.c.l.b16 %v14984_v15  ;;  %v5714_v15 = vrot.slane %v5617_v8, 3 }
0x11da   : > { %v6530_v57 = vrot.slane %v6452_v33, 4  ;;  %v14993_v33 = vld [vmem:[#allocation297_spill] sm:$0xff] }
0x11db   : > { %v5692_v51 = vrot.slane %v5605_v62, 7 }
0x11dc   : > { %v6531_v22 = vsel %vm3035_vm0, %v6530_v57, %v6529_v49  ;;  %v14998_v57 = vld [vmem:[#allocation305_spill] sm:$0xff] }
0x11df   : > { %v6304_v12 = vld [vmem:[#allocation1] sm:$0xf] }
0x11e0   : > { %6306 = vst [vmem:[#allocation1] ss:$9 sm:$0xff] %v14974_v52  ;;  %v6453_v45 = vunpack.c.l.b16 %v6304_v12  ;;  %v14985_v52 = vld [vmem:[#allocation279_spill] sm:$0xff] }
0x11e2   : > { %v6532_v58 = vrot.slane %v6453_v45, 3  ;;  %v5615_v45 = vunpack.c.l.b16 %v14993_v33  ;;  %v6043_v33 = vunpack.c.l.b16 %v12039_v3  ;;  %v15003_v3 = vld [vmem:[#allocation288_spill] sm:$0xff] }
0x11e4   : > { %v6533_v42 = vsel %vm3038_vm1, %v6532_v58, %v6531_v22  ;;  %v5710_v22 = vrot.slane %v5615_v45, 5  ;;  %v6044_v45 = vunpack.c.l.b16 %v12042_v28  ;;  %v6051_v28 = vunpack.c.l.b16 %v15003_v3 }
0x11e7   : > { %v6307_v10 = vld [vmem:[#allocation1] sm:$0xf] }
0x11e8   : > { %6309 = vst [vmem:[#allocation1] ss:$9 sm:$0xff] %v14975_v1  ;;  %v6454_v46 = vunpack.c.l.b16 %v6307_v10  ;;  %v5606_v10 = vunpack.c.l.b16 %v14985_v52  ;;  %v14986_v1 = vld [vmem:[#allocation281_spill] sm:$0xff] }
0x11ea   : > { %v6534_v34 = vrot.slane %v6454_v46, 2  ;;  %v14994_v46 = vld [vmem:[#allocation299_spill] sm:$0xff]  ;;  %v5694_v58 = vrot.slane %v5606_v10, 6 }
0x11ec   : > { %v6535_v12 = vsel %vm3041_vm5, %v6534_v34, %v6533_v42 }
0x11ef   : > { %v6310_v32 = vld [vmem:[#allocation1] sm:$0xf] }
0x11f0   : > { %6312 = vst [vmem:[#allocation1] ss:$9 sm:$0xff] %v14976_v7  ;;  %v6455_v23 = vunpack.c.l.b16 %v6310_v32  ;;  %v5607_v32 = vunpack.c.l.b16 %v14986_v1  ;;  %v14987_v7 = vld [vmem:[#allocation283_spill] sm:$0xff] }
0x11f2   : > { %v6536_v41 = vrot.slane %v6455_v23, 1  ;;  %v5618_v23 = vunpack.c.l.b16 %v14997_v61  ;;  %v6128_v61 = vrot.slane %v6040_v24, 6 }
0x11f4   : > { %v5716_v1 = vrot.slane %v5618_v23, 2 }
0x11f7   : > { %v6313_v6 = vld [vmem:[#allocation1] sm:$0xf] }
0x11f8   : > { %6315 = vst [vmem:[#allocation1] ss:$9 sm:$0xff] %v14977_v47  ;;  %v6456_v13 = vunpack.c.l.b16 %v6313_v6  ;;  %v5608_v6 = vunpack.c.l.b16 %v14987_v7 }
0x11ff   : > { %v6316_v44 = vld [vmem:[#allocation1] sm:$0xf] }
0x1200   : > { %6318 = vst [vmem:[#allocation1] ss:$9 sm:$0xff] %v14978_v21  ;;  %v6457_v37 = vunpack.c.l.b16 %v6316_v44  ;;  %v14988_v44 = vld [vmem:[#allocation285_spill] sm:$0xff] }
0x1201   : > { %v5609_v21 = vunpack.c.l.b16 %v14988_v44 }
0x1202   : > { %v6538_v54 = vrot.slane %v6457_v37, 7 }
0x1203   : > { %v5700_v29 = vrot.slane %v5609_v21, 3 }
0x1204   : > { %v6539_v20 = vsel %vm14394_vm2, %v6538_v54, %v6456_v13  ;;  %v5616_v13 = vunpack.c.l.b16 %v14994_v46  ;;  %v5619_v54 = vunpack.c.l.b16 %v14998_v57 }
0x1207   : > { %v6319_v63 = vld [vmem:[#allocation1] sm:$0xf] }
0x1208   : > { %6321 = vst [vmem:[#allocation1] ss:$9 sm:$0xff] %v14979_v0  ;;  %v6458_v39 = vunpack.c.l.b16 %v6319_v63  ;;  %v14989_v63 = vld [vmem:[#allocation287_spill] sm:$0xff] }
0x1209   : > { %v5610_v0 = vunpack.c.l.b16 %v14989_v63  ;;  %v6038_v63 = vunpack.c.l.b16 %v12024_v48  ;;  %v6042_v48 = vunpack.c.l.b16 %v12036_v4  ;;  %v6050_v4 = vunpack.c.l.b16 %v12060_v25 }
0x120a   : > { %v6540_v56 = vrot.slane %v6458_v39, 6  ;;  %v14995_v39 = vld [vmem:[#allocation291_spill] sm:$0xff] }
0x120b   : > { %v5702_v34 = vrot.slane %v5610_v0, 2 }
0x120c   : > { %v6541_v38 = vsel %vm1135_vm12, %v6540_v56, %v6539_v20  ;;  %v5696_v56 = vrot.slane %v5607_v32, 5  ;;  %v5706_v20 = vrot.slane %v5613_v11, 7 }
0x120f   : > { %v6322_v59 = vld [vmem:[#allocation1] sm:$0xf] }
0x1210   : > { %6324 = vst [vmem:[#allocation1] ss:$9 sm:$0xff] %v14980_v27  ;;  %v6459_v35 = vunpack.c.l.b16 %v6322_v59  ;;  %v14990_v59 = vld [vmem:[#allocation289_spill] sm:$0xff]  ;;  %v14992_v27 = vld [vmem:[#allocation295_spill] sm:$0xff] }
0x1211   : > { %v5611_v60 = vunpack.c.l.b16 %v14990_v59  ;;  %v5614_v40 = vunpack.c.l.b16 %v14992_v27 }
0x1212   : > { %v6542_v50 = vrot.slane %v6459_v35, 5  ;;  %v5612_v35 = vunpack.c.l.b16 %v14995_v39  ;;  %v15002_v39 = vld [vmem:[#allocation83_spill] sm:$0xff] }
0x1213   : > { %v5704_v52 = vrot.slane %v5611_v60, 1  ;;  %v6039_v60 = vunpack.c.l.b16 %v12027_v19 }
0x1214   : > { %v6543_v30 = vsel %vm1139_vm13, %v6542_v50, %v6541_v38  ;;  %v5698_v50 = vrot.slane %v5608_v6, 4  ;;  %v5693_v38 = vsel %vm14999_vm8, %v5692_v51, %v5604_v31  ;;  %v5707_v18 = vsel %vm15001_vm6, %v5706_v20, %v5612_v35  ;;  %vm15057_vm8 = vmmov %vm14394_vm2 }
0x1215   : > { %v5695_v42 = vsel %vm1135_vm12, %v5694_v58, %v5693_v38  ;;  %v5718_v6 = vrot.slane %v5619_v54, 1  ;;  %v6126_v8 = vrot.slane %v6039_v60, 7  ;;  %v6132_v51 = vrot.slane %v6042_v48, 4  ;;  %v15012_v60 = vld [vmem:[#allocation269_spill] sm:$0xff]  ;;  %vm15059_vm6 = vmmov %vm14394_vm2 }
0x1216   : > { %v5697_v62 = vsel %vm1139_vm13, %v5696_v56, %v5695_v42  ;;  %v5181_v24 = vunpack.c.l.b16 %v15012_v60  ;;  %v15028_v60 = vld [vmem:[#allocation89_spill] sm:$0xff] }
0x1217   : > { %v6325_v16 = vld [vmem:[#allocation1] sm:$0xf]  ;;  %v5699_v31 = vsel %vm3035_vm0, %v5698_v50, %v5697_v62  ;;  %v6127_v58 = vsel %vm15006_vm14, %v6126_v8, %v6038_v63  ;;  %v6136_v50 = vrot.slane %v6044_v45, 2  ;;  %v15015_v45 = vld [vmem:[#allocation275_spill] sm:$0xff]  ;;  %v15020_v8 = vld [vmem:[#allocation152_spill] sm:$0xff] }
0x1218   : > { %6327 = vst [vmem:[#allocation1] ss:$9 sm:$0xff] %v14982_v53  ;;  %v6460_v26 = vunpack.c.l.b16 %v6325_v16  ;;  %v5708_v16 = vrot.slane %v5614_v40, 6  ;;  %v15000_v53 = vld [vmem:[#allocation80_spill] sm:$0xff]  ;;  %v5701_v44 = vsel %vm3038_vm1, %v5700_v29, %v5699_v31  ;;  %v6129_v25 = vsel %vm1135_vm12, %v6128_v61, %v6127_v58  ;;  %vm15077_vm14 = vmmov %vm14394_vm2 }
0x1219   : > { %v5703_v0 = vsel %vm3041_vm5, %v5702_v34, %v5701_v44  ;;  %v6144_v29 = vrot.slane %v6049_v43, 5  ;;  %v6146_v34 = vrot.slane %v6050_v4, 4  ;;  %v15019_v4 = vld [vmem:[#allocation157_spill] sm:$0xff]  ;;  %v5185_v61 = vunpack.c.l.b16 %v15020_v8 }
0x121a   : > { %v6544_v47 = vrot.slane %v6460_v26, 4  ;;  %v5709_v10 = vsel %vm1135_vm12, %v5708_v16, %v5707_v18  ;;  %v5705_v27 = vsel %vm3044_vm7, %v5704_v52, %v5703_v0  ;;  %v6148_v16 = vrot.slane %v6051_v28, 3  ;;  %v15008_v52 = vld [vmem:[#allocation263_spill] sm:$0xff] }
0x121b   : > { %v5711_v7 = vsel %vm1139_vm13, %v5710_v22, %v5709_v10  ;;  %v5178_v10 = vunpack.c.l.b16 %v15008_v52  ;;  %v15011_v0 = vld [vmem:[#allocation267_spill] sm:$0xff]  ;;  %v5190_v3 = vunpack.c.l.b16 %v15019_v4  ;;  %v15037_v4 = vld [vmem:[#allocation109_spill] sm:$0xff] }
0x121c   : > { %v6545_v37 = vsel %vm3035_vm0, %v6544_v47, %v6543_v30  ;;  %v5712_v30 = vrot.slane %v5616_v13, 4  ;;  %v12325_v47 = vsel %vm3044_vm7, %v6536_v41, %v6535_v12  ;;  %v6041_v12 = vunpack.c.l.b16 %v12033_v55 }
0x121d   : > { %v6047_v13 = vunpack.c.l.b16 %v12051_v5  ;;  %v6046_v55 = vunpack.c.l.b16 %v12048_v2  ;;  %v15004_v5 = vld [vmem:[#allocation290_spill] sm:$0xff]  ;;  %v6134_v2 = vrot.slane %v6043_v33, 3 }
0x121e   : > { %v5713_v21 = vsel %vm3035_vm0, %v5712_v30, %v5711_v7  ;;  %v6130_v17 = vrot.slane %v6041_v12, 5  ;;  %v6052_v57 = vunpack.c.l.b16 %v15004_v5  ;;  %v15022_v5 = vld [vmem:[#allocation158_spill] sm:$0xff] }
0x121f   : > { %v6328_v49 = vld [vmem:[#allocation1] sm:$0xf]  ;;  %v5715_v59 = vsel %vm3038_vm1, %v5714_v15, %v5713_v21  ;;  %v6140_v56 = vrot.slane %v6047_v13, 7  ;;  %v15017_v13 = vld [vmem:[#allocation155_spill] sm:$0xff] }
0x1220   : > { %6330 = vst [vmem:[#allocation1] ss:$9 sm:$0xff] %v15000_v53  ;;  %v6461_v26 = vunpack.c.l.b16 %v6328_v49  ;;  %v5717_v41 = vsel %vm3041_vm5, %v5716_v1, %v5715_v59  ;;  %v6131_v20 = vsel %vm1139_vm13, %v6130_v17, %v6129_v25  ;;  %v6138_v49 = vrot.slane %v6045_v36, 1  ;;  %v15021_v17 = vld [vmem:[#allocation153_spill] sm:$0xff] }
0x1221   : > { %v5719_v40 = vsel %vm3044_vm7, %v5718_v6, %v5717_v41  ;;  %v6141_v38 = vsel %vm15007_vm15, %v6140_v56, %v6046_v55  ;;  %v6133_v30 = vsel %vm3035_vm0, %v6132_v51, %v6131_v20  ;;  %v15010_v6 = vld [vmem:[#allocation265_spill] sm:$0xff]  ;;  %v5180_v59 = vunpack.c.l.b16 %v15011_v0  ;;  %v15013_v41 = vld [vmem:[#allocation271_spill] sm:$0xff]  ;;  %v15018_v55 = vld [vmem:[#allocation156_spill] sm:$0xff] }
0x1222   : > { %v6546_v32 = vrot.slane %v6461_v26, 3  ;;  %v5750_v19 = vpack.c.b16 %v5719_v40, %v5705_v27  ;;  %v6150_v26 = vrot.slane %v6052_v57, 2  ;;  %v6135_v18 = vsel %vm3038_vm1, %v6134_v2, %v6133_v30  ;;  %v15014_v40 = vld [vmem:[#allocation273_spill] sm:$0xff]  ;;  %vm15078_vm15 = vmmov %vm14394_vm2 }
0x1223   : > { %v6137_v31 = vsel %vm3041_vm5, %v6136_v50, %v6135_v18  ;;  %v5179_v44 = vunpack.c.l.b16 %v15010_v6  ;;  %v5182_v12 = vunpack.c.l.b16 %v15013_v41  ;;  %v5183_v48 = vunpack.c.l.b16 %v15014_v40  ;;  %v15024_v56 = vld [vmem:[#allocation161_spill] sm:$0xff]  ;;  %v15031_v40 = vld [vmem:[#allocation95_spill] sm:$0xff] }
0x1224   : > { %v6547_v11 = vsel %vm3038_vm1, %v6546_v32, %v6545_v37  ;;  %v6048_v37 = vunpack.c.l.b16 %v12054_v14  ;;  %8285 = vmatmul.msk.bf16.gmra.mxu2 %vm13860_vm10, %v5750_v19  ;;  %v15005_v14 = vld [vmem:[#allocation292_spill] sm:$0xff]  ;;  %v6139_v21 = vsel %vm3044_vm7, %v6138_v49, %v6137_v31  ;;  %v15016_v19 = vld [vmem:[#allocation154_spill] sm:$0xff]  ;;  %v5189_v43 = vunpack.c.l.b16 %v15018_v55  ;;  %v15030_v41 = vld [vmem:[#allocation93_spill] sm:$0xff]  ;;  %v3174_v55 = vpop.f32.mrf.mxu0 }
0x1225   : > { %v6053_v54 = vunpack.c.l.b16 %v15005_v14  ;;  %v15009_v32 = vld [vmem:[#allocation84_spill] sm:$0xff]  ;;  %v5187_v36 = vunpack.c.l.b16 %v15016_v19  ;;  %v5191_v57 = vunpack.c.l.b16 %v15022_v5  ;;  %v15023_v14 = vld [vmem:[#allocation159_spill] sm:$0xff]  ;;  %v5266_v51 = vrot.slane %v5179_v44, 7 }
0x1226   : > { %v6142_v9 = vrot.slane %v6048_v37, 6  ;;  %v5188_v37 = vunpack.c.l.b16 %v15017_v13  ;;  %v5268_v58 = vrot.slane %v5180_v59, 6  ;;  %v5270_v2 = vrot.slane %v5181_v24, 5 }
0x1227   : > { %v6331_v46 = vld [vmem:[#allocation1] sm:$0xf]  ;;  %v6152_v62 = vrot.slane %v6053_v54, 1  ;;  %v5192_v54 = vunpack.c.l.b16 %v15023_v14  ;;  %v5272_v25 = vrot.slane %v5182_v12, 4  ;;  %v5274_v50 = vrot.slane %v5183_v48, 3 }
0x1228   : > { %6333 = vst [vmem:[#allocation1] ss:$9 sm:$0xff] %v15002_v39  ;;  %v6462_v35 = vunpack.c.l.b16 %v6331_v46  ;;  %v6143_v53 = vsel %vm1135_vm12, %v6142_v9, %v6141_v38  ;;  %v5184_v46 = vunpack.c.l.b16 %v15015_v45  ;;  %v5193_v9 = vunpack.c.l.b16 %v15024_v56 }
0x1229   : > { %v6145_v15 = vsel %vm1139_vm13, %v6144_v29, %v6143_v53  ;;  %v5282_v20 = vrot.slane %v5188_v37, 6  ;;  %v5284_v49 = vrot.slane %v5189_v43, 5  ;;  %v5286_v38 = vrot.slane %v5190_v3, 4  ;;  %v15035_v37 = vld [vmem:[#allocation104_spill] sm:$0xff] }
0x122a   : > { %v6548_v23 = vrot.slane %v6462_v35, 2  ;;  %v6147_v7 = vsel %vm3035_vm0, %v6146_v34, %v6145_v15  ;;  %v5267_v34 = vsel %vm15025_vm9, %v5266_v51, %v5178_v10  ;;  %v5276_v30 = vrot.slane %v5184_v46, 2  ;;  %v15033_v46 = vld [vmem:[#allocation98_spill] sm:$0xff]  ;;  %vm15096_vm9 = vmmov %vm14394_vm2 }
0x122b   : > { %v6149_v63 = vsel %vm3038_vm1, %v6148_v16, %v6147_v7  ;;  %v15026_v16 = vld [vmem:[#allocation87_spill] sm:$0xff]  ;;  %v5278_v18 = vrot.slane %v5185_v61, 1 }
0x122c   : > { %v6549_v22 = vsel %vm3041_vm5, %v6548_v23, %v6547_v11  ;;  %v6151_v27 = vsel %vm3041_vm5, %v6150_v26, %v6149_v63  ;;  %v5186_v23 = vunpack.c.l.b16 %v15021_v17  ;;  %v5288_v26 = vrot.slane %v5191_v57, 3  ;;  %v12417_v3 = vpop.f32.mrf.mxu0 }
0x122d   : > { %v6153_v33 = vsel %vm3044_vm7, %v6152_v62, %v6151_v27  ;;  %v5290_v62 = vrot.slane %v5192_v54, 2 }
0x122e   : > { %v6184_v35 = vpack.c.b16 %v6153_v33, %v6139_v21  ;;  %v15032_v33 = vld [vmem:[#allocation97_spill] sm:$0xff] }
0x122f   : > { %v6334_v42 = vld [vmem:[#allocation1] sm:$0xf] }
0x1230   : > { %v6463_v1 = vunpack.c.l.b16 %v6334_v42  ;;  %6336 = vst [vmem:[#allocation1] ss:$9 sm:$0xff] %v15009_v32  ;;  %8290 = vmatmul.msk.bf16.gmra.mxu3 %vm13860_vm10, %v6184_v35  ;;  %v15036_v35 = vld [vmem:[#allocation106_spill] sm:$0xff] }
0x1232   : > { %v6550_v11 = vrot.slane %v6463_v1, 1  ;;  %v5292_v1 = vrot.slane %v5193_v9, 1 }
0x1234   : > { %v6551_v39 = vsel %vm3044_vm7, %v6550_v11, %v6549_v22  ;;  %v5269_v22 = vsel %vm1135_vm12, %v5268_v58, %v5267_v34  ;;  %v15029_v11 = vld [vmem:[#allocation92_spill] sm:$0xff] }
0x1235   : > { %v6609_v28 = vpack.c.b16 %v6551_v39, %v12325_v47  ;;  %v5280_v47 = vrot.slane %v5187_v36, 7  ;;  %v5271_v42 = vsel %vm1139_vm13, %v5270_v2, %v5269_v22  ;;  %v15034_v36 = vld [vmem:[#allocation102_spill] sm:$0xff] }
0x1236   : > { %v5273_v52 = vsel %vm3035_vm0, %v5272_v25, %v5271_v42 }
0x1237   : > { %8294 = vmatmul.msk.bf16.gmra.mxu0 %vm13860_vm10, %v6609_v28  ;;  %v12389_v29 = vld [vmem:[#allocation1] sm:$0xf]  ;;  %v5281_v53 = vsel %vm15027_vm11, %v5280_v47, %v5186_v23  ;;  %v5275_v32 = vsel %vm3038_vm1, %v5274_v50, %v5273_v52  ;;  %vm15098_vm11 = vmmov %vm14394_vm2 }
0x1238   : > { %6339 = vst [vmem:[#allocation1] ss:$9 sm:$0xff] %v15026_v16  ;;  %v5283_v15 = vsel %vm1135_vm12, %v5282_v20, %v5281_v53  ;;  %v5277_v7 = vsel %vm3041_vm5, %v5276_v30, %v5275_v32  ;;  %v15038_v23 = vld [vmem:[#allocation110_spill] sm:$0xff]  ;;  %v6464_v5 = vunpack.c.l.b16 %v12389_v29 }
0x1239   : > { %v5285_v10 = vsel %vm1139_vm13, %v5284_v49, %v5283_v15  ;;  %v5279_v44 = vsel %vm3044_vm7, %v5278_v18, %v5277_v7 }
0x123a   : > { %v5287_v31 = vsel %vm3035_vm0, %v5286_v38, %v5285_v10 }
0x123b   : > { %v5289_v6 = vsel %vm3038_vm1, %v5288_v26, %v5287_v31  ;;  %v3590_v26 = vpop.f32.mrf.mxu0 }
0x123c   : > { %v5291_v21 = vsel %vm3041_vm5, %v5290_v62, %v5289_v6  ;;  %v12426_v15 = vadd.f32 %v3590_v26, %v3174_v55  ;;  %v15041_v6 = vld [vmem:[#allocation306_spill] sm:$0xff] }
0x123d   : > { %v5293_v63 = vsel %vm3044_vm7, %v5292_v1, %v5291_v21  ;;  %v15040_v1 = vld [vmem:[#allocation112_spill] sm:$0xff] }
0x123e   : > { %v5324_v59 = vpack.c.b16 %v5293_v63, %v5279_v44  ;;  %v5620_v44 = vunpack.c.l.b16 %v15041_v6  ;;  %v15042_v63 = vld [vmem:[#allocation168_spill] sm:$0xff]  ;;  %v15060_v6 = vld [vmem:[#allocation294_spill] sm:$0xff] }
0x123f   : > { %v6340_v0 = vld [vmem:[#allocation1] sm:$0xf] }
0x1240   : > { %6342 = vst [vmem:[#allocation1] ss:$9 sm:$0xff] %v15028_v60  ;;  %8280 = vmatmul.msk.bf16.gmra.mxu1 %vm13860_vm10, %v5324_v59  ;;  %v6465_v8 = vunpack.c.l.b16 %v6340_v0  ;;  %v5621_v0 = vunpack.c.l.b16 %v15042_v63  ;;  %v15043_v59 = vld [vmem:[#allocation169_spill] sm:$0xff]  ;;  %v15061_v63 = vld [vmem:[#allocation296_spill] sm:$0xff] }
0x1241   : > { %v5622_v60 = vunpack.c.l.b16 %v15043_v59 }
0x1242   : > { %v6552_v9 = vrot.slane %v6465_v8, 7  ;;  %v15053_v8 = vld [vmem:[#allocation233_spill] sm:$0xff] }
0x1244   : > { %v6553_v49 = vsel %vm15039_vm4, %v6552_v9, %v6464_v5  ;;  %v15055_v5 = vld [vmem:[#allocation284_spill] sm:$0xff]  ;;  %vm15112_vm4 = vmmov %vm14394_vm2 }
0x1247   : > { %v6343_v24 = vld [vmem:[#allocation1] sm:$0xf] }
0x1248   : > { %6345 = vst [vmem:[#allocation1] ss:$9 sm:$0xff] %v15029_v11  ;;  %v6466_v61 = vunpack.c.l.b16 %v6343_v24  ;;  %v15044_v24 = vld [vmem:[#allocation170_spill] sm:$0xff] }
0x1249   : > { %v5623_v11 = vunpack.c.l.b16 %v15044_v24 }
0x124a   : > { %v6554_v25 = vrot.slane %v6466_v61, 6  ;;  %v5632_v61 = vunpack.c.l.b16 %v15053_v8  ;;  %v15069_v8 = vld [vmem:[#allocation224_spill] sm:$0xff] }
0x124c   : > { %v6555_v29 = vsel %vm1135_vm12, %v6554_v25, %v6553_v49 }
0x124f   : > { %v6346_v27 = vld [vmem:[#allocation1] sm:$0xf] }
0x1250   : > { %6348 = vst [vmem:[#allocation1] ss:$9 sm:$0xff] %v15030_v41  ;;  %v6467_v17 = vunpack.c.l.b16 %v6346_v27  ;;  %v15045_v41 = vld [vmem:[#allocation171_spill] sm:$0xff] }
0x1252   : > { %v6556_v50 = vrot.slane %v6467_v17, 5  ;;  %v15054_v17 = vld [vmem:[#allocation234_spill] sm:$0xff] }
0x1254   : > { %v6557_v42 = vsel %vm1139_vm13, %v6556_v50, %v6555_v29 }
0x1257   : > { %v6349_v12 = vld [vmem:[#allocation1] sm:$0xf] }
0x1258   : > { %6351 = vst [vmem:[#allocation1] ss:$9 sm:$0xff] %v15031_v40  ;;  %v6468_v57 = vunpack.c.l.b16 %v6349_v12  ;;  %v5624_v12 = vunpack.c.l.b16 %v15045_v41  ;;  %v15046_v40 = vld [vmem:[#allocation172_spill] sm:$0xff] }
0x125a   : > { %v6558_v34 = vrot.slane %v6468_v57, 4  ;;  %v5634_v57 = vunpack.c.l.b16 %v15055_v5  ;;  %v15071_v5 = vld [vmem:[#allocation117_spill] sm:$0xff] }
0x125c   : > { %v6559_v52 = vsel %vm3035_vm0, %v6558_v34, %v6557_v42 }
0x125f   : > { %v6352_v48 = vld [vmem:[#allocation1] sm:$0xf] }
0x1260   : > { %6354 = vst [vmem:[#allocation1] ss:$9 sm:$0xff] %v15032_v33  ;;  %v6469_v14 = vunpack.c.l.b16 %v6352_v48  ;;  %v5625_v48 = vunpack.c.l.b16 %v15046_v40  ;;  %v15047_v33 = vld [vmem:[#allocation173_spill] sm:$0xff]  ;;  %v15063_v40 = vld [vmem:[#allocation218_spill] sm:$0xff] }
0x1262   : > { %v6560_v38 = vrot.slane %v6469_v14, 3  ;;  %v5720_v14 = vrot.slane %v5621_v0, 7  ;;  %v5728_v9 = vrot.slane %v5625_v48, 3  ;;  %v6055_v0 = vunpack.c.l.b16 %v15061_v63 }
0x1263   : > { %v6057_v48 = vunpack.c.l.b16 %v15063_v40 }
0x1264   : > { %v6561_v31 = vsel %vm3038_vm1, %v6560_v38, %v6559_v52  ;;  %v15058_v38 = vld [vmem:[#allocation114_spill] sm:$0xff] }
0x1267   : > { %v6355_v45 = vld [vmem:[#allocation1] sm:$0xf] }
0x1268   : > { %6357 = vst [vmem:[#allocation1] ss:$9 sm:$0xff] %v15033_v46  ;;  %v6470_v54 = vunpack.c.l.b16 %v6355_v45  ;;  %v5626_v45 = vunpack.c.l.b16 %v15047_v33  ;;  %v15048_v46 = vld [vmem:[#allocation174_spill] sm:$0xff]  ;;  %v15064_v33 = vld [vmem:[#allocation219_spill] sm:$0xff] }
0x126a   : > { %v6562_v30 = vrot.slane %v6470_v54, 2  ;;  %v5722_v54 = vrot.slane %v5622_v60, 6  ;;  %v5730_v25 = vrot.slane %v5626_v45, 2  ;;  %v6058_v45 = vunpack.c.l.b16 %v15064_v33  ;;  %v15080_v33 = vld [vmem:[#allocation162_spill] sm:$0xff] }
0x126c   : > { %v12436_v21 = vsel %vm3041_vm5, %v6562_v30, %v6561_v31  ;;  %v5740_v30 = vrot.slane %v5632_v61, 4  ;;  %v6063_v61 = vunpack.c.l.b16 %v15069_v8 }
0x126f   : > { %v6358_v19 = vld [vmem:[#allocation1] sm:$0xf] }
0x1270   : > { %6360 = vst [vmem:[#allocation1] ss:$9 sm:$0xff] %v15034_v36  ;;  %v6471_v47 = vunpack.c.l.b16 %v6358_v19  ;;  %v5627_v19 = vunpack.c.l.b16 %v15048_v46  ;;  %v15049_v36 = vld [vmem:[#allocation179_spill] sm:$0xff] }
0x1272   : > { %v12429_v10 = vrot.slane %v6471_v47, 1  ;;  %v5721_v47 = vsel %vm15057_vm8, %v5720_v14, %v5620_v44  ;;  %v5732_v29 = vrot.slane %v5627_v19, 1  ;;  %v6054_v44 = vunpack.c.l.b16 %v15060_v6  ;;  %v15065_v19 = vld [vmem:[#allocation220_spill] sm:$0xff] }
0x1273   : > { %vm6697_vm8 = vcmask 60416  }
0x1274   : > { %v6565_v6 = vsel %vm3044_vm7, %v12429_v10, %v12436_v21 }
0x1277   : > { %v6361_v13 = vld [vmem:[#allocation1] sm:$0xf] }
0x1278   : > { %6363 = vst [vmem:[#allocation1] ss:$9 sm:$0xff] %v15035_v37  ;;  %v6472_v51 = vunpack.c.l.b16 %v6361_v13  ;;  %v5629_v13 = vunpack.c.l.b16 %v15049_v36  ;;  %v15050_v37 = vld [vmem:[#allocation176_spill] sm:$0xff]  ;;  %v6059_v36 = vunpack.c.l.b16 %v15065_v19  ;;  %v15081_v19 = vld [vmem:[#allocation163_spill] sm:$0xff] }
0x127a   : > { %v5734_v34 = vrot.slane %v5629_v13, 7  ;;  %v15066_v13 = vld [vmem:[#allocation221_spill] sm:$0xff] }
0x127f   : > { %v6364_v39 = vld [vmem:[#allocation1] sm:$0xf] }
0x1280   : > { %6366 = vst [vmem:[#allocation1] ss:$9 sm:$0xff] %v15036_v35  ;;  %v6473_v58 = vunpack.c.l.b16 %v6364_v39  ;;  %v5630_v39 = vunpack.c.l.b16 %v15050_v37  ;;  %v15051_v35 = vld [vmem:[#allocation182_spill] sm:$0xff]  ;;  %v6060_v37 = vunpack.c.l.b16 %v15066_v13  ;;  %v15082_v13 = vld [vmem:[#allocation164_spill] sm:$0xff] }
0x1281   : > { %v5631_v55 = vunpack.c.l.b16 %v15051_v35 }
0x1282   : > { %v6566_v20 = vrot.slane %v6473_v58, 7  ;;  %v15056_v58 = vld [vmem:[#allocation286_spill] sm:$0xff] }
0x1283   : > { %v5738_v49 = vrot.slane %v5631_v55, 5 }
0x1284   : > { %v6567_v53 = vsel %vm14394_vm2, %v6566_v20, %v6472_v51  ;;  %v5724_v51 = vrot.slane %v5623_v11, 5  ;;  %v5736_v20 = vrot.slane %v5630_v39, 6  ;;  %v15062_v11 = vld [vmem:[#allocation304_spill] sm:$0xff]  ;;  %v15067_v39 = vld [vmem:[#allocation222_spill] sm:$0xff] }
0x1285   : > { %v6061_v35 = vunpack.c.l.b16 %v15067_v39 }
0x1287   : > { %v6367_v43 = vld [vmem:[#allocation1] sm:$0xf] }
0x1288   : > { %6369 = vst [vmem:[#allocation1] ss:$9 sm:$0xff] %v15037_v4  ;;  %v6474_v2 = vunpack.c.l.b16 %v6367_v43  ;;  %v15052_v4 = vld [vmem:[#allocation177_spill] sm:$0xff] }
0x128a   : > { %v6568_v16 = vrot.slane %v6474_v2, 6  ;;  %v5635_v2 = vunpack.c.l.b16 %v15056_v58  ;;  %v15073_v58 = vld [vmem:[#allocation226_spill] sm:$0xff] }
0x128c   : > { %v6569_v18 = vsel %vm1135_vm12, %v6568_v16, %v6567_v53 }
0x128f   : > { %v6370_v28 = vld [vmem:[#allocation1] sm:$0xf] }
0x1290   : > { %6372 = vst [vmem:[#allocation1] ss:$9 sm:$0xff] %v15038_v23  ;;  %v6475_v56 = vunpack.c.l.b16 %v6370_v28  ;;  %v5628_v28 = vunpack.c.l.b16 %v15052_v4  ;;  %v5633_v23 = vunpack.c.l.b16 %v15054_v17  ;;  %v15068_v4 = vld [vmem:[#allocation223_spill] sm:$0xff]  ;;  %v15070_v17 = vld [vmem:[#allocation313_spill] sm:$0xff] }
0x1292   : > { %v6570_v22 = vrot.slane %v6475_v56, 5  ;;  %v5726_v56 = vrot.slane %v5624_v12, 4  ;;  %v5735_v26 = vsel %vm15059_vm6, %v5734_v34, %v5628_v28  ;;  %v5742_v42 = vrot.slane %v5633_v23, 3 }
0x1293   : > { %v6062_v28 = vunpack.c.l.b16 %v15068_v4  ;;  %v6064_v23 = vunpack.c.l.b16 %v15070_v17  ;;  %v15084_v4 = vld [vmem:[#allocation165_spill] sm:$0xff]  ;;  %vm6699_vm6 = vcmask 57344  }
0x1294   : > { %v6571_v7 = vsel %vm1139_vm13, %v6570_v22, %v6569_v18  ;;  %v5723_v22 = vsel %vm1135_vm12, %v5722_v54, %v5721_v47  ;;  %v5744_v18 = vrot.slane %v5634_v57, 2  ;;  %v15072_v54 = vld [vmem:[#allocation225_spill] sm:$0xff]  ;;  %v6154_v47 = vrot.slane %v6055_v0, 7 }
0x1295   : > { %v5725_v53 = vsel %vm1139_vm13, %v5724_v51, %v5723_v22  ;;  %v6065_v51 = vunpack.c.l.b16 %v15072_v54  ;;  %v6160_v22 = vrot.slane %v6058_v45, 4  ;;  %v5194_v45 = vunpack.c.l.b16 %v15080_v33 }
0x1296   : > { %v5727_v52 = vsel %vm3035_vm0, %v5726_v56, %v5725_v53  ;;  %v15074_v56 = vld [vmem:[#allocation228_spill] sm:$0xff]  ;;  %v6164_v53 = vrot.slane %v6060_v37, 2  ;;  %v5196_v37 = vunpack.c.l.b16 %v15082_v13 }
0x1297   : > { %v6373_v62 = vld [vmem:[#allocation1] sm:$0xf]  ;;  %v5729_v31 = vsel %vm3038_vm1, %v5728_v9, %v5727_v52  ;;  %v6067_v9 = vunpack.c.l.b16 %v15074_v56  ;;  %v6172_v52 = vrot.slane %v6065_v51, 5  ;;  %v15089_v56 = vld [vmem:[#allocation252_spill] sm:$0xff] }
0x1298   : > { %6375 = vst [vmem:[#allocation1] ss:$9 sm:$0xff] %v15040_v1  ;;  %v6476_v32 = vunpack.c.l.b16 %v6373_v62  ;;  %v5737_v1 = vsel %vm1135_vm12, %v5736_v20, %v5735_v26  ;;  %v5731_v60 = vsel %vm3041_vm5, %v5730_v25, %v5729_v31  ;;  %v15075_v25 = vld [vmem:[#allocation229_spill] sm:$0xff]  ;;  %v6168_v26 = vrot.slane %v6063_v61, 7  ;;  %v15085_v61 = vld [vmem:[#allocation166_spill] sm:$0xff] }
0x1299   : > { %v5733_v41 = vsel %vm3044_vm7, %v5732_v29, %v5731_v60  ;;  %v6155_v29 = vsel %vm15077_vm14, %v6154_v47, %v6054_v44  ;;  %v5199_v17 = vunpack.c.l.b16 %v15085_v61  ;;  %vm12654_vm14 = vmand %vm6699_vm6, %vm454_vm3  ;;  %vm6948_vm3 = vcmask 1043456  }
0x129a   : > { %v6572_v27 = vrot.slane %v6476_v32, 4  ;;  %v5746_v32 = vrot.slane %v5635_v2, 1  ;;  %v6066_v2 = vunpack.c.l.b16 %v15073_v58  ;;  %v15088_v58 = vld [vmem:[#allocation250_spill] sm:$0xff] }
0x129c   : > { %v6573_v43 = vsel %vm3035_vm0, %v6572_v27, %v6571_v7  ;;  %v5739_v7 = vsel %vm1139_vm13, %v5738_v49, %v5737_v1  ;;  %v6056_v27 = vunpack.c.l.b16 %v15062_v11  ;;  %v15076_v49 = vld [vmem:[#allocation230_spill] sm:$0xff]  ;;  %v6174_v31 = vrot.slane %v6066_v2, 4  ;;  %v12498_v11 = vpop.f32.mrf.mxu0 }
0x129d   : > { %v5741_v24 = vsel %vm3035_vm0, %v5740_v30, %v5739_v7  ;;  %v6162_v30 = vrot.slane %v6059_v36, 3  ;;  %v6176_v7 = vrot.slane %v6067_v9, 3  ;;  %v5195_v36 = vunpack.c.l.b16 %v15081_v19 }
0x129e   : > { %v5743_v12 = vsel %vm3038_vm1, %v5742_v42, %v5741_v24  ;;  %v6156_v34 = vrot.slane %v6056_v27, 6  ;;  %v5204_v2 = vunpack.c.l.b16 %v15088_v58  ;;  %v5205_v9 = vunpack.c.l.b16 %v15089_v56  ;;  %v15104_v58 = vld [vmem:[#allocation134_spill] sm:$0xff] }
0x129f   : > { %v6376_v50 = vld [vmem:[#allocation1] sm:$0xf]  ;;  %v5745_v46 = vsel %vm3041_vm5, %v5744_v18, %v5743_v12  ;;  %v6166_v18 = vrot.slane %v6061_v35, 1 }
0x12a0   : > { %6378 = vst [vmem:[#allocation1] ss:$9 sm:$0xff] %v15058_v38  ;;  %v6477_v16 = vunpack.c.l.b16 %v6376_v50  ;;  %v6068_v50 = vunpack.c.l.b16 %v15075_v25  ;;  %v6069_v38 = vunpack.c.l.b16 %v15076_v49  ;;  %v6157_v42 = vsel %vm1135_vm12, %v6156_v34, %v6155_v29  ;;  %v15091_v34 = vld [vmem:[#allocation248_spill] sm:$0xff]  ;;  %v15092_v49 = vld [vmem:[#allocation254_spill] sm:$0xff] }
0x12a1   : > { %v5294_v29 = vrot.slane %v5195_v36, 7 }
0x12a2   : > { %v6574_v62 = vrot.slane %v6477_v16, 3  ;;  %v6158_v16 = vrot.slane %v6057_v48, 5  ;;  %v6178_v0 = vrot.slane %v6068_v50, 2  ;;  %v6180_v12 = vrot.slane %v6069_v38, 1  ;;  %v15079_v48 = vld [vmem:[#allocation118_spill] sm:$0xff]  ;;  %v15090_v50 = vld [vmem:[#allocation5_spill] sm:$0xff] }
0x12a3   : > { %v5201_v47 = vunpack.c.l.b16 %v15090_v50  ;;  %v5206_v38 = vunpack.c.l.b16 %v15092_v49  ;;  %v15106_v50 = vld [vmem:[#allocation178_spill] sm:$0xff] }
0x12a4   : > { %v6575_v59 = vsel %vm3038_vm1, %v6574_v62, %v6573_v43  ;;  %v5747_v43 = vsel %vm3044_vm7, %v5746_v32, %v5745_v46  ;;  %v6170_v62 = vrot.slane %v6064_v23, 6  ;;  %v6159_v1 = vsel %vm1139_vm13, %v6158_v16, %v6157_v42  ;;  %v15086_v23 = vld [vmem:[#allocation167_spill] sm:$0xff]  ;;  %v15093_v16 = vld [vmem:[#allocation258_spill] sm:$0xff] }
0x12a5   : > { %v5751_v14 = vpack.c.b16 %v5747_v43, %v5733_v41  ;;  %v6169_v32 = vsel %vm15078_vm15, %v6168_v26, %v6062_v28  ;;  %v6161_v44 = vsel %vm3035_vm0, %v6160_v22, %v6159_v1  ;;  %v5198_v28 = vunpack.c.l.b16 %v15084_v4  ;;  %v15094_v26 = vld [vmem:[#allocation274_spill] sm:$0xff] }
0x12a6   : > { %v6171_v63 = vsel %vm1135_vm12, %v6170_v62, %v6169_v32  ;;  %v6163_v27 = vsel %vm3038_vm1, %v6162_v30, %v6161_v44  ;;  %v5207_v22 = vunpack.c.l.b16 %v15093_v16  ;;  %v5296_v30 = vrot.slane %v5196_v37, 6  ;;  %v15108_v16 = vld [vmem:[#allocation181_spill] sm:$0xff] }
0x12a7   : > { %v6379_v55 = vld [vmem:[#allocation1] sm:$0xf]  ;;  %8286 = vmatmul.msk.bf16.gmra.mxu2 %vm13860_vm10, %v5751_v14  ;;  %v6173_v41 = vsel %vm1139_vm13, %v6172_v52, %v6171_v63  ;;  %v6165_v10 = vsel %vm3041_vm5, %v6164_v53, %v6163_v27  ;;  %v5208_v42 = vunpack.c.l.b16 %v15094_v26  ;;  %v5300_v52 = vrot.slane %v5198_v28, 4  ;;  %v15097_v63 = vld [vmem:[#allocation121_spill] sm:$0xff] }
0x12a8   : > { %6381 = vst [vmem:[#allocation1] ss:$9 sm:$0xff] %v15071_v5  ;;  %v6478_v57 = vunpack.c.l.b16 %v6379_v55  ;;  %v6175_v21 = vsel %vm3035_vm0, %v6174_v31, %v6173_v41  ;;  %v6167_v46 = vsel %vm3044_vm7, %v6166_v18, %v6165_v10  ;;  %v15083_v55 = vld [vmem:[#allocation160_spill] sm:$0xff]  ;;  %v5200_v5 = vunpack.c.l.b16 %v15086_v23  ;;  %v4008_v41 = vpop.f32.mrf.mxu0 }
0x12a9   : > { %v5197_v43 = vunpack.c.l.b16 %v15083_v55  ;;  %v15095_v18 = vld [vmem:[#allocation276_spill] sm:$0xff]  ;;  %v5302_v1 = vrot.slane %v5199_v17, 3  ;;  %v5295_v31 = vsel %vm15096_vm9, %v5294_v29, %v5194_v45  ;;  %v5312_v44 = vrot.slane %v5205_v9, 5  ;;  %v15101_v17 = vld [vmem:[#allocation127_spill] sm:$0xff] }
0x12aa   : > { %v6576_v20 = vrot.slane %v6478_v57, 2  ;;  %v15087_v57 = vld [vmem:[#allocation232_spill] sm:$0xff]  ;;  %v5209_v62 = vunpack.c.l.b16 %v15095_v18  ;;  %v5314_v27 = vrot.slane %v5206_v38, 4  ;;  %v12536_v10 = vadd.f32 %v4008_v41, %v12426_v15  ;;  %v15105_v9 = vld [vmem:[#allocation175_spill] sm:$0xff] }
0x12ab   : > { %v5203_v14 = vunpack.c.l.b16 %v15087_v57  ;;  %v5298_v53 = vrot.slane %v5197_v43, 5  ;;  %v5318_v45 = vrot.slane %v5208_v42, 2  ;;  %v15099_v43 = vld [vmem:[#allocation123_spill] sm:$0xff]  ;;  %v15110_v18 = vld [vmem:[#allocation280_spill] sm:$0xff]  ;;  %vm15120_vm15 = vsmask.f32 7938 }
0x12ac   : > { %v6577_v24 = vsel %vm3041_vm5, %v6576_v20, %v6575_v59  ;;  %v6177_v59 = vsel %vm3038_vm1, %v6176_v7, %v6175_v21  ;;  %v5202_v20 = vunpack.c.l.b16 %v15091_v34  ;;  %v5320_v19 = vrot.slane %v5209_v62, 1  ;;  %vm12662_vm9 = vmand %vm6699_vm6, %vm15120_vm15 }
0x12ad   : > { %v6179_v35 = vsel %vm3041_vm5, %v6178_v0, %v6177_v59  ;;  %v5308_v7 = vrot.slane %v5203_v14, 7  ;;  %v5297_v0 = vsel %vm1135_vm12, %v5296_v30, %v5295_v31  ;;  %v15103_v14 = vld [vmem:[#allocation131_spill] sm:$0xff] }
0x12ae   : > { %v6181_v8 = vsel %vm3044_vm7, %v6180_v12, %v6179_v35  ;;  %v5299_v12 = vsel %vm1139_vm13, %v5298_v53, %v5297_v0  ;;  %v15109_v30 = vld [vmem:[#allocation183_spill] sm:$0xff] }
0x12af   : > { %v6382_v60 = vld [vmem:[#allocation1] sm:$0xf]  ;;  %v6185_v51 = vpack.c.b16 %v6181_v8, %v6167_v46  ;;  %v5301_v21 = vsel %vm3035_vm0, %v5300_v52, %v5299_v12  ;;  %v12579_v52 = vpop.f32.mrf.mxu1 }
0x12b0   : > { %v6479_v40 = vunpack.c.l.b16 %v6382_v60  ;;  %6384 = vst [vmem:[#allocation1] ss:$9 sm:$0xff] %v15079_v48  ;;  %v5304_v60 = vrot.slane %v5200_v5, 2  ;;  %v5316_v48 = vrot.slane %v5207_v22, 3  ;;  %v5303_v46 = vsel %vm3038_vm1, %v5302_v1, %v5301_v21  ;;  %v15100_v8 = vld [vmem:[#allocation126_spill] sm:$0xff]  ;;  %v15102_v5 = vld [vmem:[#allocation129_spill] sm:$0xff]  ;;  %v12576_v42 = vpop.f32.mrf.mxu0  ;;  %v12581_v1 = vpop.f32.mrf.mxu2 }
0x12b1   : > { %8291 = vmatmul.msk.bf16.gmra.mxu3 %vm13860_vm10, %v6185_v51 }
0x12b2   : > { %v6578_v39 = vrot.slane %v6479_v40, 1  ;;  %v5309_v40 = vsel %vm15098_vm11, %v5308_v7, %v5202_v20  ;;  %v5305_v36 = vsel %vm3041_vm5, %v5304_v60, %v5303_v46  ;;  %v15107_v20 = vld [vmem:[#allocation180_spill] sm:$0xff]  ;;  %vm15127_vm11 = vmmov %vm15120_vm15 }
0x12b4   : > { %v6579_v54 = vsel %vm3044_vm7, %v6578_v39, %v6577_v24  ;;  %v5306_v24 = vrot.slane %v5201_v47, 1 }
0x12b5   : > { %v6610_v25 = vpack.c.b16 %v6579_v54, %v6565_v6  ;;  %v5310_v6 = vrot.slane %v5204_v2, 6  ;;  %v12554_v54 = vpop.f32.mrf.mxu3 }
0x12b6   : > { %v5307_v37 = vsel %vm3044_vm7, %v5306_v24, %v5305_v36 }
0x12b7   : > { %8295 = vmatmul.msk.bf16.gmra.mxu0 %vm13860_vm10, %v6610_v25  ;;  %v12528_v32 = vld [vmem:[#allocation1] sm:$0xf]  ;;  %v5311_v33 = vsel %vm1135_vm12, %v5310_v6, %v5309_v40 }
0x12b8   : > { %6387 = vst [vmem:[#allocation1] ss:$9 sm:$0xff] %v15097_v63  ;;  %v5313_v59 = vsel %vm1139_vm13, %v5312_v44, %v5311_v33  ;;  %v6480_v6 = vunpack.c.l.b16 %v12528_v32  ;;  %v12586_v40 = vpop.f32.mrf.mxu0  ;;  %v12592_v46 = vpop.f32.mrf.mxu2 }
0x12b9   : > { %v5315_v13 = vsel %vm3035_vm0, %v5314_v27, %v5313_v59 }
0x12ba   : > { %v5317_v39 = vsel %vm3038_vm1, %v5316_v48, %v5315_v13  ;;  %v15111_v48 = vld [vmem:[#allocation282_spill] sm:$0xff] }
0x12bb   : > { %v5319_v15 = vsel %vm3041_vm5, %v5318_v45, %v5317_v39  ;;  %v12590_v45 = vpop.f32.mrf.mxu1 }
0x12bc   : > { %v5321_v55 = vsel %vm3044_vm7, %v5320_v19, %v5319_v15 }
0x12bd   : > { %v5325_v4 = vpack.c.b16 %v5321_v55, %v5307_v37  ;;  %v12559_v2 = vpop.f32.mrf.mxu3 }
0x12bf   : > { %v6388_v35 = vld [vmem:[#allocation1] sm:$0xf]  ;;  %8281 = vmatmul.msk.bf16.gmra.mxu1 %vm13860_vm10, %v5325_v4 }
0x12c0   : > { %6390 = vst [vmem:[#allocation1] ss:$9 sm:$0xff] %v15099_v43  ;;  %v6481_v62 = vunpack.c.l.b16 %v6388_v35 }
0x12c2   : > { %v6580_v44 = vrot.slane %v6481_v62, 7 }
0x12c4   : > { %v6581_v33 = vsel %vm15112_vm4, %v6580_v44, %v6480_v6  ;;  %v15114_v44 = vld [vmem:[#allocation10_spill] sm:$0xff]  ;;  %vm12745_vm4 = vmand %vm6697_vm8, %vm15127_vm11  ;;  %vm7397_vm11 = vsmask.f32 3328 }
0x12c5   : > { %v12565_v47 = vpop.f32.mrf.mxu3 }
0x12c7   : > { %v6391_v28 = vld [vmem:[#allocation1] sm:$0xf] }
0x12c8   : > { %6393 = vst [vmem:[#allocation1] ss:$9 sm:$0xff] %v15100_v8  ;;  %v6482_v7 = vunpack.c.l.b16 %v6391_v28 }
0x12ca   : > { %v6582_v41 = vrot.slane %v6482_v7, 6 }
0x12cc   : > { %v6583_v37 = vsel %vm1135_vm12, %v6582_v41, %v6581_v33 }
0x12cd   : > { %v12568_v49 = vpop.f32.mrf.mxu3 }
0x12cf   : > { %v6394_v61 = vld [vmem:[#allocation1] sm:$0xf] }
0x12d0   : > { %6396 = vst [vmem:[#allocation1] ss:$9 sm:$0xff] %v15101_v17  ;;  %v6483_v0 = vunpack.c.l.b16 %v6394_v61 }
0x12d2   : > { %v6584_v19 = vrot.slane %v6483_v0, 5 }
0x12d4   : > { %v6585_v4 = vsel %vm1139_vm13, %v6584_v19, %v6583_v37 }
0x12d5   : > { %v12571_v22 = vpop.f32.mrf.mxu3 }
0x12d7   : > { %v6397_v23 = vld [vmem:[#allocation1] sm:$0xf] }
0x12d8   : > { %6399 = vst [vmem:[#allocation1] ss:$9 sm:$0xff] %v15102_v5  ;;  %v6484_v32 = vunpack.c.l.b16 %v6397_v23  ;;  %v12601_v23 = vpop.f32.mrf.mxu0  ;;  %v15113_v5 = vld [vmem:[#allocation227_spill] sm:$0xff] }
0x12da   : > { %v6586_v35 = vrot.slane %v6484_v32, 4 }
0x12dd   : > { %v12574_v26 = vpop.f32.mrf.mxu3 }
0x12df   : > { %v6400_v57 = vld [vmem:[#allocation1] sm:$0xf] }
0x12e0   : > { %6402 = vst [vmem:[#allocation1] ss:$9 sm:$0xff] %v15103_v14  ;;  %v6485_v39 = vunpack.c.l.b16 %v6400_v57  ;;  %v12617_v7 = vpop.f32.mrf.mxu0 }
0x12e2   : > { %v6588_v14 = vrot.slane %v6485_v39, 3 }
0x12e5   : > { %v12584_v12 = vpop.f32.mrf.mxu3 }
0x12e7   : > { %v12556_v51 = vld [vmem:[#allocation1] sm:$0xf] }
0x12e8   : > { %6405 = vst [vmem:[#allocation1] ss:$9 sm:$0xff] %v15104_v58  ;;  %v6486_v8 = vunpack.c.l.b16 %v12556_v51  ;;  %v12605_v58 = vpop.f32.mrf.mxu1 }
0x12ed   : > { %v12599_v17 = vpop.f32.mrf.mxu3 }
0x12ef   : > { %v12561_v56 = vld [vmem:[#allocation1] sm:$0xf] }
0x12f0   : > { %6408 = vst [vmem:[#allocation1] ss:$9 sm:$0xff] %v15105_v9  ;;  %v12607_v9 = vpop.f32.mrf.mxu2 }
0x12f7   : > { %v6409_v25 = vld [vmem:[#allocation1] sm:$0xf] }
0x12f8   : > { %6411 = vst [vmem:[#allocation1] ss:$9 sm:$0xff] %v15106_v50  ;;  %v6488_v60 = vunpack.c.l.b16 %v6409_v25  ;;  %v6587_v50 = vsel %vm3035_vm0, %v6586_v35, %v6585_v4  ;;  %v15116_v35 = vld [vmem:[#allocation308_spill] sm:$0xff] }
0x12ff   : > { %v6412_v34 = vld [vmem:[#allocation1] sm:$0xf] }
0x1300   : > { %6414 = vst [vmem:[#allocation1] ss:$9 sm:$0xff] %v15107_v20  ;;  %v6489_v31 = vunpack.c.l.b16 %v6412_v34  ;;  %v6487_v34 = vunpack.c.l.b16 %v12561_v56  ;;  %v6590_v20 = vrot.slane %v6486_v8, 2  ;;  %v12620_v56 = vpop.f32.mrf.mxu1  ;;  %v6732_v8 = vld [vmem:[#allocation3 + $0xc] sm:$0x1] }
0x1302   : > { %v6594_v24 = vrot.slane %v6489_v31, 7  ;;  %v12615_v31 = vpop.f32.mrf.mxu3 }
0x1304   : > { %v6595_v36 = vsel %vm14394_vm2, %v6594_v24, %v6488_v60  ;;  %vm6935_vm2 = vcmask 64512  }
0x1307   : > { %v6415_v38 = vld [vmem:[#allocation1] sm:$0xf] }
0x1308   : > { %6417 = vst [vmem:[#allocation1] ss:$9 sm:$0xff] %v15108_v16  ;;  %v6490_v63 = vunpack.c.l.b16 %v6415_v38  ;;  %v6589_v16 = vsel %vm3038_vm1, %v6588_v14, %v6587_v50  ;;  %v3605_v32 = vpop.f32.mrf.mxu1 }
0x1309   : > { %v6591_v62 = vsel %vm3041_vm5, %v6590_v20, %v6589_v16  ;;  %v3606_v19 = vadd.f32 %v3605_v32, %v12571_v22  ;;  %v6707_v22 = vld [vmem:[#allocation3 + $0x8] sm:$0x1]  ;;  %v3593_v16 = vadd.f32 %v12498_v11, %v12417_v3 }
0x130a   : > { %v6596_v59 = vrot.slane %v6490_v63, 6  ;;  %v12622_v63 = vpop.f32.mrf.mxu2  ;;  %v6708_v14 = vsel %vm12654_vm14, 0, %v6707_v22  ;;  %v3598_v22 = vadd.f32 %v12590_v45, %v12559_v2  ;;  %v12716_v2 = vld [vmem:[%s13450_s4] ss:$0 sm:$0xff] }
0x130b   : > { %6709 = vst [vmem:[#allocation3 + $0x8] sm:$0x1] %v6708_v14  ;;  %v12710_v14 = vld [vmem:[%s13449_s3] ss:$0 sm:$0xff] }
0x130c   : > { %v6597_v55 = vsel %vm1135_vm12, %v6596_v59, %v6595_v36  ;;  %v15115_v59 = vld [vmem:[#allocation307_spill] sm:$0xff] }
0x130f   : > { %v6418_v29 = vld [vmem:[#allocation1] sm:$0xf] }
0x1310   : > { %6420 = vst [vmem:[#allocation1] ss:$9 sm:$0xff] %v15109_v30  ;;  %v6491_v21 = vunpack.c.l.b16 %v6418_v29  ;;  %v6592_v30 = vrot.slane %v6487_v34, 1 }
0x1312   : > { %v6598_v15 = vrot.slane %v6491_v21, 5  ;;  %v6593_v60 = vsel %vm3044_vm7, %v6592_v30, %v6591_v62  ;;  %v12630_v21 = vpop.f32.mrf.mxu0  ;;  %v4023_v36 = vpop.f32.mrf.mxu2  ;;  %v4029_v62 = vadd.f32 %v12576_v42, %v3593_v16 }
0x1314   : > { %v6599_v57 = vsel %vm1139_vm13, %v6598_v15, %v6597_v55  ;;  %v12643_v55 = vpop.f32.mrf.mxu1 }
0x1317   : > { %v6421_v53 = vld [vmem:[#allocation1] sm:$0xf] }
0x1318   : > { %6423 = vst [vmem:[#allocation1] ss:$9 sm:$0xff] %v15110_v18  ;;  %v6492_v13 = vunpack.c.l.b16 %v6421_v53 }
0x131a   : > { %v6600_v61 = vrot.slane %v6492_v13, 4  ;;  %v4034_v13 = vadd.f32 %v4023_v36, %v3606_v19  ;;  %v12638_v39 = vpop.f32.mrf.mxu0 }
0x131c   : > { %v6601_v38 = vsel %vm3035_vm0, %v6600_v61, %v6599_v57  ;;  %v15117_v61 = vmov 0   ;;  %v5350_v50 = vpop.f32.mrf.mxu1 }
0x131d   : > { %6698 = vst.msk [vmem:[#allocation3] sm:$0xf] %vm6697_vm8, %v15117_v61 }
0x131e   : > { %6700 = vst.msk [vmem:[#allocation3 + $0x4] sm:$0x1] %vm6699_vm6, %v15117_v61 }
0x131f   : > { %v6424_v27 = vld [vmem:[#allocation1] sm:$0xf]  ;;  %6702 = vst.msk [vmem:[#allocation3 + $0x48] sm:$0xf] %vm6697_vm8, %v15117_v61  ;;  %vm7586_vm8 = vcmask 1042432  }
0x1320   : > { %6426 = vst [vmem:[#allocation1] ss:$9 sm:$0xff] %v15111_v48  ;;  %v6493_v43 = vunpack.c.l.b16 %v6424_v27  ;;  %v12628_v48 = vpop.f32.mrf.mxu3 }
0x1321   : > { %6703 = vst.msk [vmem:[#allocation3 + $0x4c] sm:$0x1] %vm6699_vm6, %v15117_v61  ;;  %vm7587_vm6 = vcmask 1046532  }
0x1322   : > { %v6602_v51 = vrot.slane %v6493_v43, 3  ;;  %v12645_v43 = vpop.f32.mrf.mxu2  ;;  %vm12875_vm15 = vmor %vm7586_vm8, %vm7587_vm6 }
0x1324   : > { %v6603_v53 = vsel %vm3038_vm1, %v6602_v51, %v6601_v38  ;;  %v15123_v38 = vld [vmem:[#allocation309_spill] sm:$0xff]  ;;  %v5352_v3 = vpop.f32.mrf.mxu1 }
0x1327   : > { %v6427_v28 = vld [vmem:[#allocation1] sm:$0xf] }
0x1328   : > { %6429 = vst [vmem:[#allocation1] ss:$9 sm:$0xff] %v15113_v5  ;;  %v6494_v25 = vunpack.c.l.b16 %v6427_v28  ;;  %v12636_v37 = vpop.f32.mrf.mxu3  ;;  %v12649_v28 = vpop.f32.mrf.mxu0 }
0x132a   : > { %v6604_v29 = vrot.slane %v6494_v25, 2  ;;  %v6733_v25 = vsel %vm12662_vm9, 0, %v6732_v8 }
0x132b   : > { %6734 = vst [vmem:[#allocation3 + $0xc] sm:$0x1] %v6733_v25 }
0x132c   : > { %v6605_v0 = vsel %vm3041_vm5, %v6604_v29, %v6603_v53  ;;  %v4454_v29 = vadd.f32 %v12584_v12, %v12536_v10  ;;  %v5776_v53 = vpop.f32.mrf.mxu2  ;;  %v3596_v10 = vadd.f32 %v12579_v52, %v12554_v54 }
0x132f   : > { %v6430_v18 = vld [vmem:[#allocation1] sm:$0xf] }
0x1330   : > { %v6495_v6 = vunpack.c.l.b16 %v6430_v18  ;;  %6981 = vst [vmem:[#allocation1] ss:$9 sm:$0xff] %v15114_v44  ;;  %v12647_v4 = vpop.f32.mrf.mxu3  ;;  %v4939_v20 = vpop.f32.mrf.mxu0  ;;  %v6710_v44 = vld [vmem:[#allocation3 + $0x10] sm:$0x1] }
0x1332   : > { %v6606_v24 = vrot.slane %v6495_v6, 1  ;;  %v4944_v6 = vadd.f32 %v12586_v40, %v4454_v29  ;;  %v4455_v40 = vadd.f32 %v12599_v17, %v4029_v62 }
0x1334   : > { %v6607_v27 = vsel %vm3044_vm7, %v6606_v24, %v6605_v0  ;;  %v6735_v0 = vld [vmem:[#allocation3 + $0x14] sm:$0x1]  ;;  %v5778_v32 = vpop.f32.mrf.mxu2  ;;  %v4945_v19 = vadd.f32 %v12601_v23, %v4455_v40 }
0x1335   : > { %v6611_v41 = vpack.c.b16 %v6607_v27, %v6593_v60  ;;  %v6711_v60 = vsel %vm12654_vm14, 0, %v6710_v44  ;;  %v6736_v24 = vsel %vm12662_vm9, 0, %v6735_v0  ;;  %v5370_v27 = vadd.f32 %v5350_v50, %v4944_v6  ;;  %v5355_v50 = vpop.f32.mrf.mxu1 }
0x1336   : > { %6712 = vst [vmem:[#allocation3 + $0x10] sm:$0x1] %v6711_v60  ;;  %v5371_v25 = vadd.f32 %v5352_v3, %v4945_v19 }
0x1337   : > { %8296 = vmatmul.msk.bf16.gmra.mxu0 %vm13860_vm10, %v6611_v41  ;;  %v12632_v33 = vld [vmem:[#allocation1] sm:$0xf]  ;;  %6737 = vst [vmem:[#allocation3 + $0x14] sm:$0x1] %v6736_v24  ;;  %v5796_v36 = vadd.f32 %v5776_v53, %v5370_v27  ;;  %v6741_v53 = vld [vmem:[#allocation3 + $0x24] sm:$0x1] }
0x1338   : > { %6984 = vst [vmem:[#allocation1] ss:$9 sm:$0xff] %v15115_v59  ;;  %v4449_v51 = vpop.f32.mrf.mxu3  ;;  %v12692_v42 = vpop.f32.mrf.mxu0  ;;  %v15124_v41 = vld [vmem:[#allocation310_spill] sm:$0xff]  ;;  %v4030_v59 = vadd.f32 %v12581_v1, %v3596_v10  ;;  %v5797_v16 = vadd.f32 %v5778_v32, %v5371_v25  ;;  %v6742_v6 = vsel %vm12662_vm9, 0, %v6741_v53  ;;  %v15126_v27 = vld [vmem:[#allocation312_spill] sm:$0xff] }
0x1339   : > { %v4460_v30 = vadd.f32 %v4449_v51, %v4034_v13  ;;  %v6713_v13 = vld [vmem:[#allocation3 + $0x18] sm:$0x1]  ;;  %v15125_v51 = vld [vmem:[#allocation311_spill] sm:$0xff]  ;;  %6743 = vst [vmem:[#allocation3 + $0x24] sm:$0x1] %v6742_v6 }
0x133a   : > { %v6714_v54 = vsel %vm12654_vm14, 0, %v6713_v13  ;;  %v4456_v17 = vadd.f32 %v12615_v31, %v4030_v59  ;;  %v4031_v31 = vadd.f32 %v12592_v46, %v3598_v22  ;;  %v3601_v46 = vadd.f32 %v12605_v58, %v12565_v47  ;;  %v6849_v22 = vld [vmem:[#allocation3 + $0xc] sm:$0x1] }
0x133b   : > { %v12678_v18 = vadd.f32 %v4939_v20, %v4460_v30  ;;  %6715 = vst [vmem:[#allocation3 + $0x18] sm:$0x1] %v6714_v54  ;;  %v6716_v30 = vld [vmem:[#allocation3 + $0x20] sm:$0x1]  ;;  %v6846_v54 = vld [vmem:[#allocation3 + $0x8] sm:$0xf] }
0x133c   : > { %v4946_v45 = vadd.f32 %v12617_v7, %v4456_v17  ;;  %v5781_v29 = vpop.f32.mrf.mxu2  ;;  %v6717_v62 = vsel %vm12654_vm14, 0, %v6716_v30  ;;  %v4457_v0 = vadd.f32 %v12628_v48, %v4031_v31  ;;  %v4032_v48 = vadd.f32 %v12607_v9, %v3601_v46  ;;  %v6719_v9 = vld [vmem:[#allocation3 + $0x28] sm:$0x1]  ;;  %v6744_v31 = vld [vmem:[#allocation3 + $0x2c] sm:$0x1] }
0x133d   : > { %6718 = vst [vmem:[#allocation3 + $0x20] sm:$0x1] %v6717_v62  ;;  %v5357_v59 = vpop.f32.mrf.mxu1  ;;  %vm7398_vm10 = vsmask.f32 7440 }
0x133e   : > { %v5372_v24 = vadd.f32 %v5355_v50, %v4946_v45  ;;  %v4947_v19 = vadd.f32 %v12630_v21, %v4457_v0  ;;  %v6720_v45 = vsel %vm12654_vm14, 0, %v6719_v9  ;;  %vm12905_vm8 = vmor %vm7397_vm11, %vm7398_vm10  ;;  %vm15154_vm10 = vcmask 1041408  }
0x133f   : > { %v12640_v15 = vld [vmem:[#allocation1] sm:$0xf]  ;;  %6721 = vst [vmem:[#allocation3 + $0x28] sm:$0x1] %v6720_v45 }
0x1340   : > { %6987 = vst [vmem:[#allocation1] ss:$9 sm:$0xff] %v15116_v35  ;;  %v12690_v12 = vpop.f32.mrf.mxu3  ;;  %v6738_v35 = vld [vmem:[#allocation3 + $0x1c] sm:$0x1]  ;;  %v6636_v61 = vpop.f32.mrf.mxu0 }
0x1341   : > { %v6739_v52 = vsel %vm12662_vm9, 0, %v6738_v35  ;;  %v6914_v35 = vld [vmem:[%s13452_s6] sm:$0xf] }
0x1342   : > { %6740 = vst [vmem:[#allocation3 + $0x1c] sm:$0x1] %v6739_v52  ;;  %v6950_v52 = vsel %vm6948_vm3, %v6914_v35, 0 }
0x1343   : > { %6959 = vmatpush.bf16.msra.mxu1 %v6950_v52 }
0x1344   : > { %v5783_v21 = vpop.f32.mrf.mxu2 }
0x1347   : > { %v12671_v34 = vld [vmem:[#allocation1] sm:$0xf] }
0x1348   : > { %6990 = vst [vmem:[#allocation1] ss:$9 sm:$0xff] %v15123_v38  ;;  %v6210_v8 = vpop.f32.mrf.mxu3  ;;  %v6638_v60 = vpop.f32.mrf.mxu0 }
0x1349   : > { %v6230_v23 = vadd.f32 %v6210_v8, %v5796_v36  ;;  %v5798_v36 = vadd.f32 %v5781_v29, %v5372_v24 }
0x134b   : > { %v6656_v20 = vadd.f32 %v6636_v61, %v6230_v23  ;;  %v4458_v61 = vadd.f32 %v12636_v37, %v4032_v48  ;;  %v3603_v23 = vadd.f32 %v12620_v56, %v12568_v49  ;;  %v6745_v49 = vsel %vm12662_vm9, 0, %v6744_v31  ;;  %v15130_v56 = vld [vmem:[#allocation314_spill] sm:$0xff] }
0x134c   : > { %6746 = vst [vmem:[#allocation3 + $0x2c] sm:$0x1] %v6745_v49  ;;  %v12766_v48 = vld [vmem:[#allocation3] sm:$0xf] }
0x134d   : > { %v6669_v38 = vmul.f32 %v12710_v14, %v6656_v20  ;;  %v5373_v20 = vadd.f32 %v5357_v59, %v4947_v19  ;;  %v4948_v0 = vadd.f32 %v12638_v39, %v4458_v61  ;;  %v4033_v46 = vadd.f32 %v12622_v63, %v3603_v23  ;;  %v15131_v61 = vld [vmem:[#allocation315_spill] sm:$0xff] }
0x134e   : > { %v6923_v9 = vunpack.c.l.b16 %v12766_v48 }
0x134f   : > { %v12686_v11 = vld [vmem:[#allocation1] sm:$0xf]  ;;  %v6681_v44 = vadd.f32 %v12716_v2, %v6669_v38  ;;  %v4459_v39 = vadd.f32 %v12647_v4, %v4033_v46 }
0x1350   : > { %6993 = vst [vmem:[#allocation1] ss:$9 sm:$0xff] %v15124_v41  ;;  %v6212_v7 = vpop.f32.mrf.mxu3 }
0x1351   : > { %v6689_v10 = vmax.f32 %v6681_v44, 0.0  ;;  %v6231_v40 = vadd.f32 %v6212_v7, %v5797_v16  ;;  %v4949_v45 = vadd.f32 %v12649_v28, %v4459_v39 }
0x1353   : > { %v6756_v41 = vpack.c.bf16 %v6689_v10, %v6689_v10  ;;  %v6657_v32 = vadd.f32 %v6638_v60, %v6231_v40  ;;  %v5799_v10 = vadd.f32 %v5783_v21, %v5373_v20  ;;  %v5360_v40 = vpop.f32.mrf.mxu1  ;;  %v5786_v21 = vpop.f32.mrf.mxu2 }
0x1354   : > { %v5374_v35 = vadd.f32 %v5360_v40, %v4948_v0 }
0x1355   : > { %v6765_v13 = vshrl.u32 %v6756_v41, 16  ;;  %v6768_v47 = vshll.u32 %v6756_v41, 16  ;;  %v6670_v58 = vmul.f32 %v12710_v14, %v6657_v32  ;;  %v6747_v32 = vld [vmem:[#allocation3 + $0x34] sm:$0x1] }
0x1356   : > { %v6748_v63 = vsel %vm12662_vm9, 0, %v6747_v32 }
0x1357   : > { %v12705_v1 = vld [vmem:[#allocation1] sm:$0xf]  ;;  %v6767_v17 = vrot.slane %v6765_v13, 7  ;;  %v6682_v8 = vadd.f32 %v12716_v2, %v6670_v58  ;;  %v6855_v13 = vld [vmem:[#allocation3 + $0x14] sm:$0x1] }
0x1358   : > { %6996 = vst [vmem:[#allocation1] ss:$9 sm:$0xff] %v15125_v51  ;;  %v6215_v50 = vpop.f32.mrf.mxu3  ;;  %v6641_v51 = vpop.f32.mrf.mxu0 }
0x1359   : > { %v6770_v16 = vor.u32 %v6768_v47, %v6767_v17  ;;  %v6771_v37 = vrot.slane %v6767_v17, 4  ;;  %v6690_v29 = vmax.f32 %v6682_v8, 0.0  ;;  %v6232_v30 = vadd.f32 %v6215_v50, %v5798_v36  ;;  %v6852_v36 = vld [vmem:[#allocation3 + $0x10] sm:$0xf]  ;;  %6749 = vst [vmem:[#allocation3 + $0x34] sm:$0x1] %v6748_v63 }
0x135b   : > { %v6847_v53 = vsel %vm12745_vm4, %v6770_v16, %v6846_v54  ;;  %v6850_v62 = vsel %vm12654_vm14, %v6771_v37, %v6849_v22  ;;  %v6757_v6 = vpack.c.bf16 %v6690_v29, %v6690_v29  ;;  %v6658_v44 = vadd.f32 %v6641_v51, %v6232_v30  ;;  %v5788_v39 = vpop.f32.mrf.mxu2 }
0x135c   : > { %6848 = vst [vmem:[#allocation3 + $0x8] sm:$0xf] %v6847_v53  ;;  %v5800_v30 = vadd.f32 %v5786_v21, %v5374_v35  ;;  %v6867_v21 = vld [vmem:[#allocation3 + $0x24] sm:$0x1] }
0x135d   : > { %6851 = vst [vmem:[#allocation3 + $0xc] sm:$0x1] %v6850_v62  ;;  %v6773_v7 = vshrl.u32 %v6757_v6, 16  ;;  %v6776_v60 = vshll.u32 %v6757_v6, 16  ;;  %v6671_v24 = vmul.f32 %v12710_v14, %v6658_v44  ;;  %v5362_v62 = vpop.f32.mrf.mxu1  ;;  %v6858_v6 = vld [vmem:[#allocation3 + $0x18] sm:$0xf] }
0x135e   : > { %v6861_v44 = vld [vmem:[#allocation3 + $0x1c] sm:$0x1]  ;;  %v5375_v46 = vadd.f32 %v5362_v62, %v4949_v45 }
0x135f   : > { %v12729_v3 = vld [vmem:[#allocation1] sm:$0xf]  ;;  %v6775_v59 = vrot.slane %v6773_v7, 7  ;;  %v6683_v19 = vadd.f32 %v12716_v2, %v6671_v24 }
0x1360   : > { %6999 = vst [vmem:[#allocation1] ss:$9 sm:$0xff] %v15126_v27  ;;  %v6722_v27 = vld [vmem:[#allocation3 + $0x30] sm:$0x1]  ;;  %v6217_v47 = vpop.f32.mrf.mxu3  ;;  %v6643_v58 = vpop.f32.mrf.mxu0  ;;  %v5801_v35 = vadd.f32 %v5788_v39, %v5375_v46  ;;  %v6870_v46 = vld [vmem:[#allocation3 + $0x28] sm:$0xf] }
0x1361   : > { %v6723_v41 = vsel %vm12654_vm14, 0, %v6722_v27  ;;  %v6778_v54 = vor.u32 %v6776_v60, %v6775_v59  ;;  %v6779_v52 = vrot.slane %v6775_v59, 4  ;;  %v6691_v17 = vmax.f32 %v6683_v19, 0.0  ;;  %v15132_v27 = vld [vmem:[#allocation316_spill] sm:$0xff] }
0x1362   : > { %6724 = vst [vmem:[#allocation3 + $0x30] sm:$0x1] %v6723_v41  ;;  %v6233_v22 = vadd.f32 %v6217_v47, %v5799_v10 }
0x1363   : > { %v6853_v4 = vsel %vm12745_vm4, %v6778_v54, %v6852_v36  ;;  %v6856_v23 = vsel %vm12654_vm14, %v6779_v52, %v6855_v13  ;;  %v6758_v50 = vpack.c.bf16 %v6691_v17, %v6691_v17  ;;  %v12779_v20 = vld [vmem:[#allocation3 + $0x8] sm:$0xf] }
0x1364   : > { %v6659_v51 = vadd.f32 %v6643_v58, %v6233_v22  ;;  %6854 = vst [vmem:[#allocation3 + $0x10] sm:$0xf] %v6853_v4  ;;  %v6924_v31 = vunpack.c.l.b16 %v12779_v20  ;;  %v6864_v22 = vld [vmem:[#allocation3 + $0x20] sm:$0xf] }
0x1365   : > { %6857 = vst [vmem:[#allocation3 + $0x14] sm:$0x1] %v6856_v23  ;;  %v6781_v16 = vshrl.u32 %v6758_v50, 16  ;;  %v6784_v37 = vshll.u32 %v6758_v50, 16 }
0x1366   : > { %v6672_v29 = vmul.f32 %v12710_v14, %v6659_v51  ;;  %v6931_v49 = vpack.c.b16 %v6924_v31, %v6923_v9 }
0x1367   : > { %v12751_v38 = vld [vmem:[#allocation1] sm:$0xf] }
0x1368   : > { %7002 = vst [vmem:[#allocation1] ss:$9 sm:$0xff] %v15130_v56  ;;  %v6783_v56 = vrot.slane %v6781_v16, 7  ;;  %v6684_v53 = vadd.f32 %v12716_v2, %v6672_v29  ;;  %v6220_v0 = vpop.f32.mrf.mxu3  ;;  %8297 = vmatmul.msk.bf16.vlgmr.msra.gmra.mxu1 %vm6935_vm2, %v6931_v49  ;;  %v6646_v28 = vpop.f32.mrf.mxu0  ;;  %v15133_v16 = vld [vmem:[#allocation317_spill] sm:$0xff] }
0x1369   : > { %v6234_v10 = vadd.f32 %v6220_v0, %v5800_v30 }
0x136a   : > { %v6786_v7 = vor.u32 %v6784_v37, %v6783_v56  ;;  %v6787_v60 = vrot.slane %v6783_v56, 4  ;;  %v6692_v24 = vmax.f32 %v6684_v53, 0.0 }
0x136b   : > { %v6660_v19 = vadd.f32 %v6646_v28, %v6234_v10  ;;  %v12793_v63 = vld [vmem:[#allocation3 + $0x10] sm:$0xf] }
0x136c   : > { %v6859_v41 = vsel %vm12745_vm4, %v6786_v7, %v6858_v6  ;;  %v6862_v32 = vsel %vm12654_vm14, %v6787_v60, %v6861_v44  ;;  %v6759_v59 = vpack.c.bf16 %v6692_v24, %v6692_v24  ;;  %v6925_v36 = vunpack.c.l.b16 %v12793_v63  ;;  %v6873_v7 = vld [vmem:[#allocation3 + $0x2c] sm:$0x1] }
0x136d   : > { %6860 = vst [vmem:[#allocation3 + $0x18] sm:$0xf] %v6859_v41  ;;  %v6673_v58 = vmul.f32 %v12710_v14, %v6660_v19  ;;  %v15134_v41 = vld [vmem:[#allocation318_spill] sm:$0xff] }
0x136e   : > { %6863 = vst [vmem:[#allocation3 + $0x1c] sm:$0x1] %v6862_v32  ;;  %v6789_v13 = vshrl.u32 %v6759_v59, 16  ;;  %v6792_v47 = vshll.u32 %v6759_v59, 16  ;;  %v12797_v54 = vpack.c.b16 %v6925_v36, %v6924_v31 }
0x136f   : > { %v12771_v8 = vld [vmem:[#allocation1] sm:$0xf]  ;;  %v6685_v17 = vadd.f32 %v12716_v2, %v6673_v58  ;;  %v6879_v58 = vld [vmem:[#allocation3 + $0x34] sm:$0x1] }
0x1370   : > { %7005 = vst [vmem:[#allocation1] ss:$9 sm:$0xff] %v15131_v61  ;;  %v6791_v52 = vrot.slane %v6789_v13, 7  ;;  %v6222_v9 = vpop.f32.mrf.mxu3  ;;  %v6648_v45 = vpop.f32.mrf.mxu0 }
0x1371   : > { %v6693_v23 = vmax.f32 %v6685_v17, 0.0  ;;  %v6235_v50 = vadd.f32 %v6222_v9, %v5801_v35 }
0x1372   : > { %v6794_v61 = vor.u32 %v6792_v47, %v6791_v52  ;;  %v6795_v4 = vrot.slane %v6791_v52, 4  ;;  %v6876_v47 = vld [vmem:[#allocation3 + $0x30] sm:$0xf] }
0x1373   : > { %v6760_v29 = vpack.c.bf16 %v6693_v23, %v6693_v23  ;;  %v6661_v30 = vadd.f32 %v6648_v45, %v6235_v50 }
0x1374   : > { %v6865_v37 = vsel %vm12745_vm4, %v6794_v61, %v6864_v22  ;;  %v6868_v31 = vsel %vm12654_vm14, %v6795_v4, %v6867_v21  ;;  %v12807_v49 = vld [vmem:[#allocation3 + $0x18] sm:$0xf]  ;;  %v15135_v22 = vld [vmem:[#allocation320_spill] sm:$0xff]  ;;  %v6750_v4 = vld [vmem:[#allocation3 + $0x3c] sm:$0x1] }
0x1375   : > { %6866 = vst [vmem:[#allocation3 + $0x20] sm:$0xf] %v6865_v37  ;;  %v6926_v56 = vunpack.c.l.b16 %v12807_v49  ;;  %v6797_v53 = vshrl.u32 %v6760_v29, 16  ;;  %v6800_v62 = vshll.u32 %v6760_v29, 16  ;;  %v6674_v6 = vmul.f32 %v12710_v14, %v6661_v30  ;;  %v6725_v61 = vld [vmem:[#allocation3 + $0x38] sm:$0x1]  ;;  %v5365_v37 = vpop.f32.mrf.mxu1 }
0x1376   : > { %6869 = vst [vmem:[#allocation3 + $0x24] sm:$0x1] %v6868_v31  ;;  %v6726_v23 = vsel %vm12654_vm14, 0, %v6725_v61  ;;  %v6751_v50 = vsel %vm12662_vm9, 0, %v6750_v4  ;;  %v8311_v61 = vrot.slane %v12779_v20, 9 }
0x1377   : > { %v12786_v40 = vld [vmem:[#allocation1] sm:$0xf]  ;;  %v12813_v44 = vpack.c.b16 %v6926_v56, %v6925_v36  ;;  %v6799_v0 = vrot.slane %v6797_v53, 7  ;;  %v6686_v28 = vadd.f32 %v12716_v2, %v6674_v6  ;;  %6727 = vst [vmem:[#allocation3 + $0x38] sm:$0x1] %v6726_v23  ;;  %v5376_v6 = vadd.f32 %v5365_v37, %v12678_v18 }
0x1378   : > { %7008 = vst [vmem:[#allocation1] ss:$9 sm:$0xff] %v15132_v27  ;;  %v7401_v23 = vshrl.u32 %v12766_v48, 16 }
0x1379   : > { %8298 = vmatmul.msk.bf16.gmra.mxu1 %vm6935_vm2, %v12813_v44  ;;  %v6802_v60 = vor.u32 %v6800_v62, %v6799_v0  ;;  %v6803_v24 = vrot.slane %v6799_v0, 4  ;;  %v6694_v10 = vmax.f32 %v6686_v28, 0.0  ;;  %6752 = vst [vmem:[#allocation3 + $0x3c] sm:$0x1] %v6751_v50  ;;  %v15137_v0 = vld [vmem:[#allocation322_spill] sm:$0xff]  ;;  %v5791_v28 = vpop.f32.mrf.mxu2  ;;  %v7404_v50 = vshll.u32 %v12766_v48, 16 }
0x137b   : > { %v6871_v32 = vsel %vm12745_vm4, %v6802_v60, %v6870_v46  ;;  %v6874_v59 = vsel %vm12654_vm14, %v6803_v24, %v6873_v7  ;;  %v6761_v19 = vpack.c.bf16 %v6694_v10, %v6694_v10  ;;  %v5802_v7 = vadd.f32 %v5791_v28, %v5376_v6  ;;  %v6225_v60 = vpop.f32.mrf.mxu3  ;;  %v8323_v28 = vld [vmem:[%s13452_s6 + $0xc] sm:$0xf] }
0x137c   : > { %6872 = vst [vmem:[#allocation3 + $0x28] sm:$0xf] %v6871_v32  ;;  %v12839_v31 = vld [vmem:[#allocation3 + $0x20] sm:$0xf]  ;;  %v3608_v24 = vadd.f32 %v12643_v55, %v12574_v26  ;;  %v7429_v32 = vshrl.u32 %v12793_v63, 16 }
0x137d   : > { %6875 = vst [vmem:[#allocation3 + $0x2c] sm:$0x1] %v6874_v59  ;;  %v6805_v39 = vshrl.u32 %v6761_v19, 16  ;;  %v6808_v36 = vshll.u32 %v6761_v19, 16  ;;  %v6927_v30 = vunpack.c.l.b16 %v12839_v31  ;;  %v6236_v18 = vadd.f32 %v6225_v60, %v5802_v7  ;;  %v8318_v19 = vld [vmem:[%s13452_s6 + $0x8] sm:$0xf] }
0x137e   : > { %v7432_v59 = vshll.u32 %v12793_v63, 16  ;;  %v8305_v26 = vld [vmem:[%s13452_s6 + $0x4] sm:$0xf] }
0x137f   : > { %v12800_v51 = vld [vmem:[#allocation1] sm:$0xf]  ;;  %v6807_v13 = vrot.slane %v6805_v39, 7  ;;  %v4035_v39 = vadd.f32 %v12645_v43, %v3608_v24  ;;  %v6895_v55 = vld [vmem:[#allocation3 + $0x4] sm:$0x1]  ;;  %v8310_v43 = vrot.slane %v12766_v48, 9 }
0x1380   : > { %7011 = vst [vmem:[#allocation1] ss:$9 sm:$0xff] %v15133_v16  ;;  %v15136_v16 = vld [vmem:[#allocation321_spill] sm:$0xff]  ;;  %v7403_v24 = vrot.slane %v7401_v23, 4 }
0x1381   : > { %v6810_v35 = vor.u32 %v6808_v36, %v6807_v13  ;;  %v6811_v52 = vrot.slane %v6807_v13, 4  ;;  %v7648_v36 = vsel %vm6948_vm3, %v8318_v19, 0  ;;  %v7443_v13 = vshrl.u32 %v12807_v49, 16 }
0x1382   : > { %7657 = vmatpush.bf16.msrb.mxu0 %v7648_v36  ;;  %v7415_v36 = vshrl.u32 %v12779_v20, 16 }
0x1383   : > { %v6877_v21 = vsel %vm12745_vm4, %v6810_v35, %v6876_v47  ;;  %v6880_v9 = vsel %vm12654_vm14, %v6811_v52, %v6879_v58  ;;  %v12841_v29 = vld [vmem:[#allocation3 + $0x28] sm:$0xf]  ;;  %v7446_v47 = vshll.u32 %v12807_v49, 16  ;;  %v7539_v35 = vsel %vm6948_vm3, %v8305_v26, 0  ;;  %v6897_v52 = vld [vmem:[#allocation3 + $0xc] sm:$0x1] }
0x1384   : > { %6878 = vst [vmem:[#allocation3 + $0x30] sm:$0xf] %v6877_v21  ;;  %v13866_v53 = vunpack.c.l.b16 %v12841_v29  ;;  %7548 = vmatpush.bf16.msrb.mxu3 %v7539_v35  ;;  %v7595_v4 = vrot.slane %v6897_v52, 5  ;;  %v7418_v26 = vshll.u32 %v12779_v20, 16  ;;  %v4461_v20 = vadd.f32 %v12690_v12, %v4035_v39 }
0x1385   : > { %6881 = vst [vmem:[#allocation3 + $0x34] sm:$0x1] %v6880_v9  ;;  %v7591_v9 = vrot.slane %v6895_v55, 5 }
0x1386   : > { %v12853_v46 = vpack.c.b16 %v13866_v53, %v6927_v30  ;;  %v12888_v6 = vsel %vm12875_vm15, %v8311_v61, %v7595_v4  ;;  %v7417_v4 = vrot.slane %v7415_v36, 4  ;;  %v7420_v23 = vrot.slane %v7418_v26, 5 }
0x1387   : > { %v12818_v27 = vld [vmem:[#allocation1] sm:$0xf]  ;;  %v7592_v37 = vsel %vm12875_vm15, %v8310_v43, %v7591_v9  ;;  %v13864_v60 = vunpack.c.l.b16 %v12888_v6  ;;  %v7424_v43 = vshll.u32 %v6897_v52, 16  ;;  %v8312_v26 = vrot.slane %v12793_v63, 9 }
0x1388   : > { %7014 = vst [vmem:[#allocation1] ss:$9 sm:$0xff] %v15134_v41  ;;  %v15138_v41 = vld [vmem:[#allocation323_spill] sm:$0xff]  ;;  %v7623_v7 = vunpack.c.l.b16 %v7592_v37  ;;  %v7421_v52 = vor.u32 %v7420_v23, %v7417_v4  ;;  %v4951_v39 = vadd.f32 %v12692_v42, %v4461_v20  ;;  %v12927_v42 = vpack.c.b16 %v6927_v30, %v6926_v56 }
0x1389   : > { %8299 = vmatmul.msk.bf16.gmra.mxu1 %vm6935_vm2, %v12853_v46 }
0x138a   : > { %v7422_v36 = vrot.slane %v7421_v52, 4 }
0x138f   : > { %v12825_v17 = vld [vmem:[#allocation1] sm:$0xf] }
0x1390   : > { %7017 = vst [vmem:[#allocation1] ss:$9 sm:$0xff] %v15135_v22  ;;  %v15196_v22 = vld [vmem:[#allocation238_spill] sm:$0xff] }
0x1397   : > { %v12836_v45 = vld [vmem:[#allocation1] sm:$0xf] }
0x1398   : > { %7020 = vst [vmem:[#allocation1] ss:$9 sm:$0xff] %v15136_v16 }
0x139f   : > { %v12845_v62 = vld [vmem:[#allocation1] sm:$0xf] }
0x13a0   : > { %7023 = vst [vmem:[#allocation1] ss:$9 sm:$0xff] %v15137_v0  ;;  %v7410_v0 = vshll.u32 %v6895_v55, 16  ;;  %v7631_v55 = vpack.c.b16 %v13864_v60, %v7623_v7  ;;  %v7445_v7 = vrot.slane %v7443_v13, 4  ;;  %v15144_v13 = vld [vmem:[#allocation8_spill] sm:$0xff] }
0x13a2   : > { %v7412_v19 = vrot.slane %v7410_v0, 5  ;;  %8319 = vmatmul.msk.bf16.vlgmr.msrb.gmra.mxu0 %vm6935_vm2, %v7631_v55  ;;  %v7426_v0 = vrot.slane %v7424_v43, 5  ;;  %v6899_v43 = vld [vmem:[#allocation3 + $0x14] sm:$0x1] }
0x13a7   : > { %v12859_v10 = vld [vmem:[#allocation1] sm:$0xf] }
0x13a8   : > { %7026 = vst [vmem:[#allocation1] ss:$9 sm:$0xff] %v15138_v41 }
0x13af   : > { %v12894_v48 = vld [vmem:[#allocation1] sm:$0xf] }
0x13b4   : > { %v6651_v58 = vpop.f32.mrf.mxu0 }
0x13b5   : > { %v6662_v21 = vadd.f32 %v6651_v58, %v6236_v18  ;;  %v7406_v18 = vrot.slane %v7404_v50, 5  ;;  %v15141_v58 = vld [vmem:[#allocation324_spill] sm:$0xff] }
0x13b6   : > { %7029 = vst [vmem:[#allocation1] ss:$9 sm:$0xff] %v15141_v58 }
0x13b7   : > { %v6675_v16 = vmul.f32 %v12710_v14, %v6662_v21  ;;  %v7407_v35 = vor.u32 %v7406_v18, %v7403_v24  ;;  %v7708_v21 = vsel %vm6948_vm3, %v8323_v28, 0  ;;  %v7434_v28 = vrot.slane %v7432_v59, 5 }
0x13b8   : > { %7717 = vmatpush.bf16.msrb.mxu1 %v7708_v21  ;;  %v7448_v24 = vrot.slane %v7446_v47, 5  ;;  %v7427_v59 = vsel %vm12905_vm8, %v7422_v36, %v7426_v0  ;;  %v6885_v47 = vld [vmem:[#allocation3 + $0x3c] sm:$0x1]  ;;  %v5367_v0 = vpop.f32.mrf.mxu1 }
0x13b9   : > { %v6687_v41 = vadd.f32 %v12716_v2, %v6675_v16  ;;  %v7408_v50 = vrot.slane %v7407_v35, 4  ;;  %v7431_v16 = vrot.slane %v7429_v32, 4  ;;  %v8313_v32 = vrot.slane %v12807_v49, 9  ;;  %v6882_v35 = vld [vmem:[#allocation3 + $0x38] sm:$0xf] }
0x13ba   : > { %v7449_v4 = vor.u32 %v7448_v24, %v7445_v7  ;;  %v5377_v24 = vadd.f32 %v5367_v0, %v4951_v39  ;;  %v7460_v39 = vshll.u32 %v12839_v31, 16 }
0x13bb   : > { %v6695_v9 = vmax.f32 %v6687_v41, 0.0  ;;  %v7413_v18 = vsel %vm12905_vm8, %v7408_v50, %v7412_v19  ;;  %v12921_v19 = vunpack.c.l.b16 %v7427_v59  ;;  %v7435_v63 = vor.u32 %v7434_v28, %v7431_v16 }
0x13bc   : > { %v7514_v21 = vunpack.c.l.b16 %v7413_v18  ;;  %v7599_v50 = vrot.slane %v6899_v43, 5 }
0x13bd   : > { %v6762_v37 = vpack.c.bf16 %v6695_v9, %v6695_v9  ;;  %v12914_v12 = vld [vmem:[#allocation1] sm:$0xf]  ;;  %v6901_v9 = vld [vmem:[#allocation3 + $0x1c] sm:$0x1]  ;;  %v7436_v18 = vrot.slane %v7435_v63, 4  ;;  %v7471_v63 = vshrl.u32 %v12841_v29, 16 }
0x13be   : > { %7032 = vst [vmem:[#allocation1] ss:$9 sm:$0xff] %v15144_v13  ;;  %v7522_v52 = vpack.c.b16 %v12921_v19, %v7514_v21  ;;  %v12936_v49 = vsel %vm12875_vm15, %v8312_v26, %v7599_v50  ;;  %v7452_v21 = vshll.u32 %v6901_v9, 16  ;;  %v7457_v13 = vshrl.u32 %v12839_v31, 16 }
0x13bf   : > { %v6813_v41 = vshrl.u32 %v6762_v37, 16  ;;  %v6816_v58 = vshll.u32 %v6762_v37, 16  ;;  %v7603_v37 = vrot.slane %v6901_v9, 5  ;;  %v13863_v30 = vunpack.c.l.b16 %v12936_v49  ;;  %v15146_v9 = vld [vmem:[#allocation9_spill] sm:$0xff] }
0x13c0   : > { %8306 = vmatmul.msk.bf16.vlgmr.msrb.gmra.mxu3 %vm6935_vm2, %v7522_v52  ;;  %v6227_v52 = vpop.f32.mrf.mxu3  ;;  %v7459_v0 = vrot.slane %v7457_v13, 4  ;;  %v8315_v13 = vrot.slane %v12841_v29, 9 }
0x13c1   : > { %v6815_v55 = vrot.slane %v6813_v41, 7  ;;  %v7438_v41 = vshll.u32 %v6899_v43, 16  ;;  %v12940_v56 = vsel %vm12875_vm15, %v8313_v32, %v7603_v37 }
0x13c2   : > { %v13861_v28 = vunpack.c.l.b16 %v12940_v56 }
0x13c3   : > { %v6818_v23 = vor.u32 %v6816_v58, %v6815_v55  ;;  %v6819_v20 = vrot.slane %v6815_v55, 4  ;;  %v7440_v7 = vrot.slane %v7438_v41, 5  ;;  %v7450_v58 = vrot.slane %v7449_v4, 4  ;;  %v12945_v55 = vld [vmem:[#allocation3 + $0x30] sm:$0xf] }
0x13c4   : > { %v12951_v26 = vpack.c.b16 %v13861_v28, %v13863_v30  ;;  %v7474_v4 = vshll.u32 %v12841_v29, 16  ;;  %v13865_v37 = vunpack.c.l.b16 %v12945_v55  ;;  %v6905_v28 = vld [vmem:[#allocation3 + $0x2c] sm:$0x1] }
0x13c5   : > { %v6883_v36 = vsel %vm12745_vm4, %v6818_v23, %v6882_v35  ;;  %v6886_v16 = vsel %vm12654_vm14, %v6819_v20, %v6885_v47  ;;  %v7441_v32 = vsel %vm12905_vm8, %v7436_v18, %v7440_v7  ;;  %v5793_v35 = vpop.f32.mrf.mxu2  ;;  %v12955_v59 = vld [vmem:[#allocation1] sm:$0xf]  ;;  %v7454_v47 = vrot.slane %v7452_v21, 5 }
0x13c6   : > { %6884 = vst [vmem:[#allocation3 + $0x38] sm:$0xf] %v6883_v36  ;;  %v12959_v43 = vunpack.c.l.b16 %v7441_v32  ;;  %v5803_v50 = vadd.f32 %v5793_v35, %v5377_v24  ;;  %8320 = vmatmul.msk.bf16.gmra.mxu0 %vm6935_vm2, %v12951_v26  ;;  %v7462_v18 = vrot.slane %v7460_v39, 5  ;;  %v7473_v36 = vrot.slane %v7471_v63, 4  ;;  %v15148_v39 = vld [vmem:[#allocation12_spill] sm:$0xff] }
0x13c7   : > { %6887 = vst [vmem:[#allocation3 + $0x3c] sm:$0x1] %v6886_v16  ;;  %v7455_v23 = vsel %vm12905_vm8, %v7450_v58, %v7454_v47  ;;  %v7476_v16 = vrot.slane %v7474_v4, 5  ;;  %v8314_v35 = vrot.slane %v12839_v31, 9  ;;  %v6728_v63 = vld [vmem:[#allocation3 + $0x40] sm:$0x1] }
0x13c8   : > { %15145 = vst [vmem:[#allocation231_spill] sm:$0xff] %v12951_v26  ;;  %v12974_v21 = vunpack.c.l.b16 %v7455_v23  ;;  %v6237_v58 = vadd.f32 %v6227_v52, %v5803_v50  ;;  %v6753_v4 = vld [vmem:[#allocation3 + $0x44] sm:$0x1]  ;;  %v7463_v50 = vor.u32 %v7462_v18, %v7459_v0  ;;  %v6729_v31 = vsel %vm12654_vm14, 0, %v6728_v63 }
0x13c9   : > { %7035 = vst [vmem:[#allocation1] ss:$9 sm:$0xff] %v15146_v9  ;;  %v6653_v9 = vpop.f32.mrf.mxu0  ;;  %v6903_v23 = vld [vmem:[#allocation3 + $0x24] sm:$0x1]  ;;  %v7477_v52 = vor.u32 %v7476_v16, %v7473_v36  ;;  %v7611_v30 = vrot.slane %v6905_v28, 5  ;;  %v7480_v0 = vshll.u32 %v6905_v28, 16 }
0x13ca   : > { %15147 = vst [vmem:[#allocation319_spill] sm:$0xff] %v12974_v21  ;;  %v12991_v47 = vpack.c.b16 %v12974_v21, %v12959_v43  ;;  %v6663_v20 = vadd.f32 %v6653_v9, %v6237_v58  ;;  %v7466_v60 = vshll.u32 %v6903_v23, 16  ;;  %v7464_v36 = vrot.slane %v7463_v50, 4 }
0x13cb   : > { %6730 = vst [vmem:[#allocation3 + $0x40] sm:$0x1] %v6729_v31  ;;  %v13006_v57 = vsel %vm12875_vm15, %v8315_v13, %v7611_v30  ;;  %v7478_v16 = vrot.slane %v7477_v52, 4  ;;  %v7482_v9 = vrot.slane %v7480_v0, 5  ;;  %v7485_v28 = vshrl.u32 %v12945_v55, 16  ;;  %v15150_v13 = vld [vmem:[#allocation13_spill] sm:$0xff] }
0x13cc   : > { %v7173_v21 = vunpack.c.l.b16 %v12632_v33 }
0x13cd   : > { %v12971_v41 = vld [vmem:[#allocation3 + $0x38] sm:$0xf]  ;;  %v7487_v50 = vrot.slane %v7485_v28, 4 }
0x13ce   : > { %v13862_v7 = vunpack.c.l.b16 %v12971_v41 }
0x13d0   : > { %v12980_v24 = vpack.c.b16 %v13862_v7, %v13865_v37  ;;  %v12982_v32 = vld [vmem:[#allocation1] sm:$0xf]  ;;  %v7607_v7 = vrot.slane %v6903_v23, 5  ;;  %v6676_v37 = vmul.f32 %v12710_v14, %v6663_v20  ;;  %8307 = vmatmul.msk.bf16.gmra.mxu3 %vm6935_vm2, %v12991_v47  ;;  %v13867_v14 = vunpack.c.l.b16 %v13006_v57 }
0x13d1   : > { %7038 = vst [vmem:[#allocation1] ss:$9 sm:$0xff] %v15148_v39  ;;  %v6754_v39 = vsel %vm12662_vm9, 0, %v6753_v4  ;;  %v7468_v20 = vrot.slane %v7466_v60, 5  ;;  %v7502_v60 = vshll.u32 %v12971_v41, 16  ;;  %v7483_v23 = vsel %vm12905_vm8, %v7478_v16, %v7482_v9 }
0x13d2   : > { %8300 = vmatmul.msk.bf16.gmra.mxu1 %vm6935_vm2, %v12980_v24  ;;  %6755 = vst [vmem:[#allocation3 + $0x44] sm:$0x1] %v6754_v39  ;;  %v13000_v53 = vsel %vm12875_vm15, %v8314_v35, %v7607_v7  ;;  %v6688_v58 = vadd.f32 %v12716_v2, %v6676_v37  ;;  %v7488_v35 = vshll.u32 %v12945_v55, 16  ;;  %v7499_v2 = vshrl.u32 %v12971_v41, 16 }
0x13d3   : > { %v13868_v18 = vunpack.c.l.b16 %v13000_v53  ;;  %v7469_v4 = vsel %vm12905_vm8, %v7464_v36, %v7468_v20  ;;  %v8316_v16 = vrot.slane %v12945_v55, 9  ;;  %v8317_v20 = vrot.slane %v12971_v41, 9 }
0x13d4   : > { %v6696_v63 = vmax.f32 %v6688_v58, 0.0  ;;  %v7490_v52 = vrot.slane %v7488_v35, 5  ;;  %v7501_v0 = vrot.slane %v7499_v2, 4  ;;  %v7504_v58 = vrot.slane %v7502_v60, 5  ;;  %v15153_v35 = vld [vmem:[#allocation15_spill] sm:$0xff] }
0x13d5   : > { %v13019_v30 = vpack.c.b16 %v13867_v14, %v13868_v18  ;;  %v13032_v14 = vunpack.c.l.b16 %v7483_v23  ;;  %v6888_v18 = vld [vmem:[#allocation3 + $0x40] sm:$0xf]  ;;  %v6907_v60 = vld [vmem:[#allocation3 + $0x34] sm:$0x1] }
0x13d6   : > { %v6763_v37 = vpack.c.bf16 %v6696_v63, %v6696_v63  ;;  %v7491_v23 = vor.u32 %v7490_v52, %v7487_v50 }
0x13d7   : > { %15149 = vst [vmem:[#allocation256_spill] sm:$0xff] %v13019_v30  ;;  %8321 = vmatmul.msk.bf16.gmra.mxu0 %vm6935_vm2, %v13019_v30 }
0x13d8   : > { %v13011_v7 = vld [vmem:[#allocation1] sm:$0xf]  ;;  %v6821_v31 = vshrl.u32 %v6763_v37, 16  ;;  %v6824_v39 = vshll.u32 %v6763_v37, 16  ;;  %15152 = vst [vmem:[#allocation260_spill] sm:$0xff] %v13032_v14 }
0x13d9   : > { %7041 = vst [vmem:[#allocation1] ss:$9 sm:$0xff] %v15150_v13  ;;  %v13030_v13 = vunpack.c.l.b16 %v7469_v4  ;;  %v6891_v26 = vld [vmem:[#allocation3 + $0x44] sm:$0x1]  ;;  %v6909_v37 = vld [vmem:[#allocation3 + $0x3c] sm:$0x1] }
0x13da   : > { %v6823_v63 = vrot.slane %v6821_v31, 7  ;;  %v6664_v4 = vld [vmem:[%s13453_s7] sm:$0x3]  ;;  %v7505_v31 = vor.u32 %v7504_v58, %v7501_v0  ;;  %v7174_v0 = vunpack.c.l.b16 %v12640_v15  ;;  %v7179_v15 = vunpack.c.l.b16 %v12751_v38 }
0x13db   : > { %15151 = vst [vmem:[#allocation147_spill] sm:$0xff] %v13030_v13  ;;  %v13043_v2 = vpack.c.b16 %v13032_v14, %v13030_v13  ;;  %v7366_v30 = vsel %vm15154_vm10, %v6664_v4, 0  ;;  %v7492_v14 = vrot.slane %v7491_v23, 4  ;;  %v7494_v13 = vshll.u32 %v6907_v60, 16  ;;  %v15155_v4 = vld [vmem:[#allocation16_spill] sm:$0xff] }
0x13dc   : > { %v6826_v9 = vor.u32 %v6824_v39, %v6823_v63  ;;  %v6827_v28 = vrot.slane %v6823_v63, 4  ;;  %7375 = vmatpush.bf16.msra.mxu2 %v7366_v30  ;;  %v7506_v5 = vrot.slane %v7505_v31, 4  ;;  %v7185_v38 = vunpack.c.l.b16 %v12836_v45 }
0x13dd   : > { %v7496_v33 = vrot.slane %v7494_v13, 5  ;;  %v7178_v13 = vunpack.c.l.b16 %v12729_v3  ;;  %v7184_v3 = vunpack.c.l.b16 %v12825_v17 }
0x13de   : > { %v6889_v39 = vsel %vm12745_vm4, %v6826_v9, %v6888_v18  ;;  %v6892_v63 = vsel %vm12654_vm14, %v6827_v28, %v6891_v26  ;;  %v7508_v26 = vshll.u32 %v6909_v37, 16  ;;  %v7176_v9 = vunpack.c.l.b16 %v12686_v11 }
0x13df   : > { %6890 = vst [vmem:[#allocation3 + $0x40] sm:$0xf] %v6889_v39  ;;  %v7497_v28 = vsel %vm12905_vm8, %v7492_v14, %v7496_v33  ;;  %v7180_v11 = vunpack.c.l.b16 %v12771_v8  ;;  %v7183_v14 = vunpack.c.l.b16 %v12818_v27  ;;  %v7186_v39 = vunpack.c.l.b16 %v12845_v62 }
0x13e0   : > { %v13034_v36 = vld [vmem:[#allocation1] sm:$0xf]  ;;  %6893 = vst [vmem:[#allocation3 + $0x44] sm:$0x1] %v6892_v63  ;;  %8308 = vmatmul.msk.bf16.gmra.mxu3 %vm6935_vm2, %v13043_v2  ;;  %v7510_v58 = vrot.slane %v7508_v26, 5  ;;  %v13088_v23 = vunpack.c.l.b16 %v7497_v28  ;;  %v7237_v63 = vrot.slane %v7174_v0, 7 }
0x13e1   : > { %7044 = vst [vmem:[#allocation1] ss:$9 sm:$0xff] %v15153_v35  ;;  %v7615_v35 = vrot.slane %v6907_v60, 5  ;;  %vm15156_vm14 = vcmask 1041409   ;;  %v7245_v17 = vrot.slane %v7178_v13, 3  ;;  %v7253_v33 = vrot.slane %v7183_v14, 6 }
0x13e2   : > { %8324 = vmatmul.msk.bf16.vlgmr.msrb.gmra.mxu1 %vm6935_vm2, %v12797_v54  ;;  %v7619_v54 = vrot.slane %v6909_v37, 5  ;;  %v7182_v37 = vunpack.c.l.b16 %v12800_v51  ;;  %v7188_v51 = vunpack.c.l.b16 %v12894_v48  ;;  %v7238_v27 = vsel %vm15156_vm14, %v7237_v63, %v7173_v21  ;;  %vm15157_vm9 = vmmov %vm15156_vm14  ;;  %v8339_v14 = vld [vmem:[%s13452_s6 + $0x18] sm:$0xf] }
0x13e3   : > { %v13056_v50 = vsel %vm12875_vm15, %v8316_v16, %v7615_v35  ;;  %v7175_v16 = vunpack.c.l.b16 %v12671_v34  ;;  %v7511_v34 = vsel %vm12905_vm8, %v7506_v5, %v7510_v58  ;;  %v7241_v35 = vrot.slane %v7176_v9, 5  ;;  %vm15174_vm6 = vmmov %vm15157_vm9 }
0x13e4   : > { %v13060_v25 = vsel %vm12875_vm15, %v8317_v20, %v7619_v54  ;;  %v7629_v18 = vunpack.c.l.b16 %v13056_v50  ;;  %v7177_v20 = vunpack.c.l.b16 %v12705_v1  ;;  %v7181_v1 = vunpack.c.l.b16 %v12786_v40  ;;  %vm15175_vm11 = vmmov %vm15174_vm6 }
0x13e5   : > { %v7630_v52 = vunpack.c.l.b16 %v13060_v25  ;;  %v13093_v31 = vunpack.c.l.b16 %v7511_v34  ;;  %v7239_v8 = vrot.slane %v7175_v16, 6  ;;  %v7187_v40 = vunpack.c.l.b16 %v12859_v10  ;;  %vm15194_vm14 = vmmov %vm15174_vm6 }
0x13e6   : > { %v7243_v54 = vrot.slane %v7177_v20, 4  ;;  %v7247_v5 = vrot.slane %v7179_v15, 2  ;;  %v7251_v45 = vrot.slane %v7182_v37, 7  ;;  %v7255_v62 = vrot.slane %v7184_v3, 5  ;;  %v15158_v37 = vld [vmem:[#allocation4_spill] sm:$0xff] }
0x13e7   : > { %v13074_v30 = vpack.c.b16 %v7630_v52, %v7629_v18  ;;  %v7240_v26 = vsel %vm1135_vm12, %v7239_v8, %v7238_v27  ;;  %v7257_v0 = vrot.slane %v7185_v38, 4  ;;  %v7249_v16 = vrot.slane %v7180_v11, 1  ;;  %v8334_v3 = vld [vmem:[%s13452_s6 + $0x14] sm:$0xf] }
0x13e8   : > { %v13080_v60 = vld [vmem:[#allocation1] sm:$0xf]  ;;  %v7242_v58 = vsel %vm1139_vm13, %v7241_v35, %v7240_v26  ;;  %v7252_v28 = vsel %vm15157_vm9, %v7251_v45, %v7181_v1  ;;  %v7259_v10 = vrot.slane %v7186_v39, 3  ;;  %v7261_v20 = vrot.slane %v7187_v40, 2  ;;  %vm15195_vm9 = vmmov %vm15174_vm6 }
0x13e9   : > { %7047 = vst [vmem:[#allocation1] ss:$9 sm:$0xff] %v15155_v4  ;;  %8322 = vmatmul.msk.bf16.gmra.mxu0 %vm6935_vm2, %v13074_v30  ;;  %v7244_v48 = vsel %vm3035_vm0, %v7243_v54, %v7242_v58  ;;  %v7254_v9 = vsel %vm1135_vm12, %v7253_v33, %v7252_v28  ;;  %v7263_v34 = vrot.slane %v7188_v51, 1  ;;  %v13115_v11 = vpack.c.b16 %v13093_v31, %v13088_v23  ;;  %v15160_v54 = vld [vmem:[#allocation6_spill] sm:$0xff]  ;;  %v15168_v28 = vld [vmem:[#allocation184_spill] sm:$0xff] }
0x13ea   : > { %v7246_v13 = vsel %vm3038_vm1, %v7245_v17, %v7244_v48  ;;  %v7256_v15 = vsel %vm1139_vm13, %v7255_v62, %v7254_v9  ;;  %v7893_v39 = vsel %vm6948_vm3, %v8339_v14, 0  ;;  %v7845_v63 = vsel %vm6948_vm3, %v8334_v3, 0  ;;  %v15163_v26 = vld [vmem:[#allocation14_spill] sm:$0xff]  ;;  %v15169_v48 = vld [vmem:[#allocation185_spill] sm:$0xff] }
0x13eb   : > { %v7248_v1 = vsel %vm3041_vm5, %v7247_v5, %v7246_v13  ;;  %v7258_v4 = vsel %vm3035_vm0, %v7257_v0, %v7256_v15  ;;  %7902 = vmatpush.bf16.msra.mxu0 %v7893_v39  ;;  %7854 = vmatpush.bf16.msra.mxu3 %v7845_v63  ;;  %vm15159_vm4 = vcmask 31744   ;;  %v15161_v27 = vunpack.c.l.b16 %v12841_v29  ;;  %v13150_v58 = vld [vmem:[#allocation3 + $0x40] sm:$0xf]  ;;  %v15172_v15 = vld [vmem:[#allocation136_spill] sm:$0xff]  ;;  %v15173_v39 = vld [vmem:[#allocation137_spill] sm:$0xff] }
0x13ec   : > { %v7250_v38 = vsel %vm3044_vm7, %v7249_v16, %v7248_v1  ;;  %v15162_v17 = vunpack.c.l.b16 %v12945_v55  ;;  %v15164_v33 = vunpack.c.l.b16 %v12888_v6  ;;  %v15165_v62 = vunpack.c.l.b16 %v12936_v49  ;;  %v15166_v16 = vld [vmem:[#allocation7_spill] sm:$0xff]  ;;  %vm15179_vm10 = vmmov %vm15159_vm4 }
0x13ed   : > { %v7690_v29 = vunpack.c.l.b16 %v13150_v58  ;;  %v15167_v55 = vunpack.c.l.b16 %v12971_v41  ;;  %v15170_v41 = vunpack.c.l.b16 %v12940_v56  ;;  %v7191_v1 = vunpack.c.l.b16 %v12982_v32 }
0x13ee   : > { %v7693_v5 = vpack.c.b16 %v15162_v17, %v15161_v27  ;;  %v7828_v0 = vpack.c.b16 %v15165_v62, %v15164_v33  ;;  %v7192_v56 = vunpack.c.l.b16 %v13011_v7  ;;  %v7193_v32 = vunpack.c.l.b16 %v13034_v36 }
0x13ef   : > { %v7694_v6 = vpack.c.b16 %v7690_v29, %v15167_v55  ;;  %v7194_v7 = vunpack.c.l.b16 %v13080_v60 }
0x13f0   : > { %v13106_v21 = vld [vmem:[#allocation1] sm:$0xf]  ;;  %8309 = vmatmul.msk.bf16.gmra.mxu3 %vm6935_vm2, %v13115_v11  ;;  %v7271_v17 = vrot.slane %v7193_v32, 4 }
0x13f1   : > { %7050 = vst [vmem:[#allocation1] ss:$9 sm:$0xff] %v15158_v37  ;;  %v7273_v55 = vrot.slane %v7194_v7, 3 }
0x13f2   : > { %8325 = vmatmul.msk.bf16.gmra.mxu1 %vm6935_vm2, %v12927_v42  ;;  %v7260_v42 = vsel %vm3038_vm1, %v7259_v10, %v7258_v4  ;;  %v7189_v4 = vunpack.c.l.b16 %v12914_v12  ;;  %v7269_v12 = vrot.slane %v7192_v56, 5  ;;  %v15182_v56 = vld [vmem:[#allocation142_spill] sm:$0xff] }
0x13f3   : > { %v7262_v8 = vsel %vm3041_vm5, %v7261_v20, %v7260_v42  ;;  %v15171_v20 = vunpack.c.l.b16 %v13000_v53  ;;  %v7267_v42 = vrot.slane %v7191_v1, 6  ;;  %v15180_v1 = vld [vmem:[#allocation140_spill] sm:$0xff] }
0x13f4   : > { %v7264_v40 = vsel %vm3044_vm7, %v7263_v34, %v7262_v8  ;;  %v7190_v34 = vunpack.c.l.b16 %v12955_v59 }
0x13f5   : > { %v7349_v51 = vpack.c.b16 %v7264_v40, %v7250_v38  ;;  %v7829_v13 = vpack.c.b16 %v15171_v20, %v15170_v41 }
0x13f6   : > { %v7265_v14 = vrot.slane %v7190_v34, 7 }
0x13f7   : > { %8301 = vmatmul.msk.bf16.vlgmr.msra.gmra.mxu2 %vm15159_vm4, %v7349_v51 }
0x13f8   : > { %v13134_v35 = vld [vmem:[#allocation1] sm:$0xf]  ;;  %v7266_v8 = vsel %vm15174_vm6, %v7265_v14, %v7189_v4  ;;  %v15181_v14 = vld [vmem:[#allocation141_spill] sm:$0xff] }
0x13f9   : > { %7053 = vst [vmem:[#allocation1] ss:$9 sm:$0xff] %v15160_v54  ;;  %8340 = vmatmul.msk.bf16.vlgmr.msra.gmra.mxu0 %vm6935_vm2, %v12813_v44 }
0x1400   : > { %v7054_v45 = vld [vmem:[#allocation1] sm:$0xf]  ;;  %8335 = vmatmul.msk.bf16.vlgmr.msra.gmra.mxu3 %vm6935_vm2, %v7828_v0  ;;  %v7195_v0 = vunpack.c.l.b16 %v13106_v21 }
0x1401   : > { %7056 = vst [vmem:[#allocation1] ss:$9 sm:$0xff] %v15163_v26  ;;  %v7197_v3 = vunpack.c.l.b16 %v7054_v45  ;;  %v15176_v45 = vunpack.c.l.b16 %v13006_v57  ;;  %v7196_v57 = vunpack.c.l.b16 %v13134_v35 }
0x1402   : > { %8326 = vmatmul.msk.bf16.gmra.mxu1 %vm6935_vm2, %v7693_v5 }
0x1403   : > { %v7830_v26 = vpack.c.b16 %v7629_v18, %v15176_v45  ;;  %v7275_v18 = vrot.slane %v7195_v0, 2  ;;  %v6912_v45 = vld [vmem:[#allocation3 + $0x48] sm:$0xf]  ;;  %v7748_v0 = vshrl.u32 %v13150_v58, 16 }
0x1408   : > { %v7057_v44 = vld [vmem:[#allocation1] sm:$0xf] }
0x1409   : > { %7059 = vst [vmem:[#allocation1] ss:$9 sm:$0xff] %v15166_v16  ;;  %8341 = vmatmul.msk.bf16.gmra.mxu0 %vm6935_vm2, %v12853_v46  ;;  %v8344_v46 = vld [vmem:[%s13452_s6 + $0x1c] sm:$0xf]  ;;  %v15177_v16 = vld [vmem:[#allocation138_spill] sm:$0xff] }
0x140a   : > { %v7954_v37 = vsel %vm6948_vm3, %v8344_v46, 0 }
0x140b   : > { %7963 = vmatpush.bf16.msra.mxu1 %v7954_v37 }
0x1410   : > { %v7060_v49 = vld [vmem:[#allocation1] sm:$0xf]  ;;  %8336 = vmatmul.msk.bf16.gmra.mxu3 %vm6935_vm2, %v7829_v13  ;;  %v15178_v13 = vld [vmem:[#allocation139_spill] sm:$0xff] }
0x1411   : > { %7062 = vst [vmem:[#allocation1] ss:$9 sm:$0xff] %v15168_v28  ;;  %v7199_v53 = vunpack.c.l.b16 %v7060_v49 }
0x1412   : > { %8327 = vmatmul.msk.bf16.gmra.mxu1 %vm6935_vm2, %v7694_v6 }
0x1413   : > { %v7281_v40 = vrot.slane %v7199_v53, 6 }
0x1418   : > { %v7063_v10 = vld [vmem:[#allocation1] sm:$0xf] }
0x1419   : > { %7065 = vst [vmem:[#allocation1] ss:$9 sm:$0xff] %v15169_v48  ;;  %8342 = vmatmul.msk.bf16.gmra.mxu0 %vm6935_vm2, %v12980_v24  ;;  %v7198_v24 = vunpack.c.l.b16 %v7057_v44  ;;  %v7200_v63 = vunpack.c.l.b16 %v7063_v10  ;;  %v7277_v48 = vrot.slane %v7196_v57, 1 }
0x141b   : > { %v7279_v38 = vrot.slane %v7198_v24, 7  ;;  %v7283_v27 = vrot.slane %v7200_v63, 5  ;;  %v15185_v63 = vld [vmem:[#allocation146_spill] sm:$0xff] }
0x141d   : > { %v7280_v51 = vsel %vm15175_vm11, %v7279_v38, %v7197_v3  ;;  %v15183_v38 = vld [vmem:[#allocation143_spill] sm:$0xff] }
0x141e   : > { %v7282_v5 = vsel %vm1135_vm12, %v7281_v40, %v7280_v51  ;;  %v15187_v40 = vld [vmem:[#allocation144_spill] sm:$0xff]  ;;  %v15188_v51 = vld [vmem:[#allocation149_spill] sm:$0xff] }
0x141f   : > { %v7284_v60 = vsel %vm1139_vm13, %v7283_v27, %v7282_v5  ;;  %v15190_v27 = vld [vmem:[#allocation151_spill] sm:$0xff] }
0x1420   : > { %v7066_v9 = vld [vmem:[#allocation1] sm:$0xf]  ;;  %8337 = vmatmul.msk.bf16.gmra.mxu3 %vm6935_vm2, %v7830_v26  ;;  %v15191_v5 = vld [vmem:[#allocation235_spill] sm:$0xff] }
0x1421   : > { %7068 = vst [vmem:[#allocation1] ss:$9 sm:$0xff] %v15172_v15  ;;  %v7201_v54 = vunpack.c.l.b16 %v7066_v9 }
0x1422   : > { %8345 = vmatmul.msk.bf16.vlgmr.msra.gmra.mxu1 %vm6935_vm2, %v12991_v47  ;;  %v7268_v47 = vsel %vm1135_vm12, %v7267_v42, %v7266_v8  ;;  %v15184_v42 = vld [vmem:[#allocation145_spill] sm:$0xff] }
0x1423   : > { %v7270_v36 = vsel %vm1139_vm13, %v7269_v12, %v7268_v47  ;;  %v7285_v44 = vrot.slane %v7201_v54, 4  ;;  %v15189_v47 = vld [vmem:[#allocation150_spill] sm:$0xff] }
0x1424   : > { %v7272_v49 = vsel %vm3035_vm0, %v7271_v17, %v7270_v36  ;;  %v6911_v36 = vld [vmem:[#allocation3 + $0x44] sm:$0x1] }
0x1425   : > { %v7286_v28 = vsel %vm3035_vm0, %v7285_v44, %v7284_v60  ;;  %v7274_v10 = vsel %vm3038_vm1, %v7273_v55, %v7272_v49  ;;  %v15192_v44 = vld [vmem:[#allocation236_spill] sm:$0xff]  ;;  %v7823_v60 = vrot.slane %v6911_v36, 5  ;;  %v7751_v49 = vshll.u32 %v13150_v58, 16 }
0x1426   : > { %v7276_v41 = vsel %vm3041_vm5, %v7275_v18, %v7274_v10  ;;  %v7757_v18 = vshll.u32 %v6911_v36, 16 }
0x1427   : > { %v7278_v15 = vsel %vm3044_vm7, %v7277_v48, %v7276_v41  ;;  %v7753_v48 = vrot.slane %v7751_v49, 5 }
0x1428   : > { %v7069_v59 = vld [vmem:[#allocation1] sm:$0xf] }
0x1429   : > { %7071 = vst [vmem:[#allocation1] ss:$9 sm:$0xff] %v15173_v39  ;;  %v7202_v33 = vunpack.c.l.b16 %v7069_v59 }
0x142b   : > { %v7287_v50 = vrot.slane %v7202_v33, 3  ;;  %v7887_v33 = vunpack.c.l.b16 %v6912_v45 }
0x142d   : > { %v7288_v9 = vsel %vm3038_vm1, %v7287_v50, %v7286_v28  ;;  %v7888_v57 = vpack.c.b16 %v7887_v33, %v7690_v29  ;;  %v7750_v50 = vrot.slane %v7748_v0, 4  ;;  %v7933_v28 = vshrl.u32 %v6912_v45, 16 }
0x142f   : > { %8343 = vmatmul.msk.bf16.gmra.mxu0 %vm6935_vm2, %v7888_v57 }
0x1430   : > { %v7072_v62 = vld [vmem:[#allocation1] sm:$0xf] }
0x1431   : > { %7074 = vst [vmem:[#allocation1] ss:$9 sm:$0xff] %v15177_v16  ;;  %v7203_v6 = vunpack.c.l.b16 %v7072_v62  ;;  %v8333_v62 = vrot.slane %v13150_v58, 9  ;;  %v7759_v58 = vrot.slane %v7757_v18, 5 }
0x1432   : > { %8346 = vmatmul.msk.bf16.gmra.mxu1 %vm6935_vm2, %v13043_v2 }
0x1433   : > { %v7289_v21 = vrot.slane %v7203_v6, 2  ;;  %v6913_v6 = vld [vmem:[#allocation3 + $0x4c] sm:$0x1] }
0x1435   : > { %v7290_v35 = vsel %vm3041_vm5, %v7289_v21, %v7288_v9  ;;  %v7824_v21 = vsel %vm12875_vm15, %v8333_v62, %v7823_v60  ;;  %v7936_v9 = vshll.u32 %v6912_v45, 16 }
0x1436   : > { %v7827_v41 = vunpack.c.l.b16 %v7824_v21 }
0x1437   : > { %v7938_v29 = vrot.slane %v7936_v9, 5 }
0x1438   : > { %v7075_v46 = vld [vmem:[#allocation1] sm:$0xf] }
0x1439   : > { %v7204_v20 = vunpack.c.l.b16 %v7075_v46  ;;  %7077 = vst [vmem:[#allocation1] ss:$9 sm:$0xff] %v15178_v13  ;;  %v7942_v13 = vshll.u32 %v6913_v6, 16 }
0x143b   : > { %v7291_v34 = vrot.slane %v7204_v20, 1  ;;  %v7935_v20 = vrot.slane %v7933_v28, 4 }
0x143d   : > { %v7292_v37 = vsel %vm3044_vm7, %v7291_v34, %v7290_v35 }
0x143e   : > { %v7350_v24 = vpack.c.b16 %v7292_v37, %v7278_v15  ;;  %v7754_v15 = vor.u32 %v7753_v48, %v7750_v50 }
0x1440   : > { %8302 = vmatmul.msk.bf16.gmra.mxu2 %vm15179_vm10, %v7350_v24  ;;  %v13210_v2 = vld [vmem:[#allocation1] sm:$0xf] }
0x1441   : > { %7080 = vst [vmem:[#allocation1] ss:$9 sm:$0xff] %v15180_v1  ;;  %v7205_v46 = vunpack.c.l.b16 %v13210_v2  ;;  %v7831_v1 = vpack.c.b16 %v7827_v41, %v7630_v52  ;;  %v7944_v2 = vrot.slane %v7942_v13, 5 }
0x1442   : > { %8347 = vmatmul.msk.bf16.gmra.mxu1 %vm6935_vm2, %v13115_v11  ;;  %v15186_v11 = vld [vmem:[#allocation148_spill] sm:$0xff] }
0x1443   : > { %8338 = vmatmul.msk.bf16.gmra.mxu3 %vm6935_vm2, %v7831_v1  ;;  %v15199_v1 = vld [vmem:[#allocation240_spill] sm:$0xff] }
0x1448   : > { %v7081_v4 = vld [vmem:[#allocation1] sm:$0xf] }
0x1449   : > { %7083 = vst [vmem:[#allocation1] ss:$9 sm:$0xff] %v15181_v14  ;;  %v7206_v16 = vunpack.c.l.b16 %v7081_v4  ;;  %v7755_v14 = vrot.slane %v7754_v15, 4  ;;  %v15197_v15 = vld [vmem:[#allocation239_spill] sm:$0xff] }
0x144b   : > { %v7293_v35 = vrot.slane %v7206_v16, 7 }
0x1450   : > { %v7084_v53 = vld [vmem:[#allocation1] sm:$0xf] }
0x1451   : > { %7086 = vst [vmem:[#allocation1] ss:$9 sm:$0xff] %v15182_v56  ;;  %v7207_v10 = vunpack.c.l.b16 %v7084_v53  ;;  %v7939_v53 = vor.u32 %v7938_v29, %v7935_v20 }
0x1453   : > { %v7940_v25 = vrot.slane %v7939_v53, 4 }
0x1458   : > { %v13217_v3 = vld [vmem:[#allocation1] sm:$0xf] }
0x1459   : > { %7089 = vst [vmem:[#allocation1] ss:$9 sm:$0xff] %v15183_v38  ;;  %v7208_v34 = vunpack.c.l.b16 %v13217_v3  ;;  %v7294_v3 = vsel %vm15194_vm14, %v7293_v35, %v7205_v46 }
0x1460   : > { %v13220_v59 = vld [vmem:[#allocation1] sm:$0xf] }
0x1461   : > { %7092 = vst [vmem:[#allocation1] ss:$9 sm:$0xff] %v15184_v42  ;;  %v7209_v38 = vunpack.c.l.b16 %v13220_v59  ;;  %v7295_v42 = vrot.slane %v7207_v10, 6 }
0x1468   : > { %v13223_v39 = vld [vmem:[#allocation1] sm:$0xf] }
0x1469   : > { %7095 = vst [vmem:[#allocation1] ss:$9 sm:$0xff] %v15185_v63  ;;  %v15193_v63 = vld [vmem:[#allocation237_spill] sm:$0xff]  ;;  %v7210_v36 = vunpack.c.l.b16 %v13223_v39 }
0x146b   : > { %v7301_v39 = vrot.slane %v7210_v36, 3 }
0x1470   : > { %v13226_v8 = vld [vmem:[#allocation1] sm:$0xf] }
0x1471   : > { %7098 = vst [vmem:[#allocation1] ss:$9 sm:$0xff] %v15186_v11 }
0x1478   : > { %v13229_v32 = vld [vmem:[#allocation1] sm:$0xf] }
0x1479   : > { %7101 = vst [vmem:[#allocation1] ss:$9 sm:$0xff] %v15187_v40  ;;  %v7760_v40 = vsel %vm12905_vm8, %v7755_v14, %v7759_v58  ;;  %v7212_v28 = vunpack.c.l.b16 %v13229_v32 }
0x147b   : > { %v7305_v46 = vrot.slane %v7212_v28, 1 }
0x1480   : > { %v7102_v12 = vld [vmem:[#allocation1] sm:$0xf] }
0x1481   : > { %7104 = vst [vmem:[#allocation1] ss:$9 sm:$0xff] %v15188_v51  ;;  %v7213_v37 = vunpack.c.l.b16 %v7102_v12  ;;  %v13257_v12 = vunpack.c.l.b16 %v7760_v40  ;;  %v8349_v51 = vrot.slane %v6912_v45, 9  ;;  %v7299_v45 = vrot.slane %v7209_v38, 4  ;;  %v15201_v38 = vld [vmem:[#allocation242_spill] sm:$0xff] }
0x1488   : > { %v7105_v54 = vld [vmem:[#allocation1] sm:$0xf] }
0x1489   : > { %7107 = vst [vmem:[#allocation1] ss:$9 sm:$0xff] %v15189_v47  ;;  %v7214_v55 = vunpack.c.l.b16 %v7105_v54  ;;  %v7996_v54 = vrot.slane %v6913_v6, 5  ;;  %v7297_v47 = vrot.slane %v7208_v34, 5  ;;  %v7211_v6 = vunpack.c.l.b16 %v13226_v8 }
0x148b   : > { %v7307_v4 = vrot.slane %v7214_v55, 7  ;;  %v7997_v33 = vsel %vm12875_vm15, %v8349_v51, %v7996_v54  ;;  %v7303_v21 = vrot.slane %v7211_v6, 2  ;;  %vm15198_vm15 = vmmov %vm15159_vm4  ;;  %v15205_v51 = vld [vmem:[#allocation246_spill] sm:$0xff] }
0x148c   : > { %v8000_v0 = vunpack.c.l.b16 %v7997_v33  ;;  %v15209_v33 = vld [vmem:[#allocation190_spill] sm:$0xff]  ;;  %vm15214_vm4 = vmmov %vm15174_vm6 }
0x148d   : > { %v7308_v59 = vsel %vm15195_vm9, %v7307_v4, %v7213_v37  ;;  %v8328_v4 = vld [vmem:[%s13452_s6 + $0x10] sm:$0xf] }
0x148e   : > { %v13270_v60 = vpack.c.b16 %v8000_v0, %v7827_v41  ;;  %v7781_v53 = vsel %vm6948_vm3, %v8328_v4, 0 }
0x148f   : > { %7790 = vmatpush.bf16.msrb.mxu2 %v7781_v53 }
0x1490   : > { %v7108_v7 = vld [vmem:[#allocation1] sm:$0xf] }
0x1491   : > { %7110 = vst [vmem:[#allocation1] ss:$9 sm:$0xff] %v15190_v27  ;;  %v7215_v24 = vunpack.c.l.b16 %v7108_v7  ;;  %v7945_v7 = vsel %vm12905_vm8, %v7940_v25, %v7944_v2  ;;  %v15200_v2 = vld [vmem:[#allocation241_spill] sm:$0xff]  ;;  %v15204_v25 = vld [vmem:[#allocation186_spill] sm:$0xff]  ;;  %vm15210_vm8 = vmmov %vm15174_vm6 }
0x1493   : > { %v7309_v52 = vrot.slane %v7215_v24, 6 }
0x1498   : > { %v7111_v17 = vld [vmem:[#allocation1] sm:$0xf] }
0x1499   : > { %7113 = vst [vmem:[#allocation1] ss:$9 sm:$0xff] %v15191_v5  ;;  %v7216_v11 = vunpack.c.l.b16 %v7111_v17  ;;  %v7296_v17 = vsel %vm1135_vm12, %v7295_v42, %v7294_v3  ;;  %v7948_v5 = vunpack.c.l.b16 %v7945_v7  ;;  %v15203_v3 = vld [vmem:[#allocation244_spill] sm:$0xff] }
0x149a   : > { %v7298_v61 = vsel %vm1139_vm13, %v7297_v47, %v7296_v17  ;;  %v15206_v47 = vld [vmem:[#allocation187_spill] sm:$0xff]  ;;  %v15207_v7 = vld [vmem:[#allocation188_spill] sm:$0xff]  ;;  %v15208_v17 = vld [vmem:[#allocation189_spill] sm:$0xff] }
0x149b   : > { %v7311_v62 = vrot.slane %v7216_v11, 5  ;;  %v7949_v16 = vpack.c.b16 %v7948_v5, %v13257_v12  ;;  %v7300_v18 = vsel %vm3035_vm0, %v7299_v45, %v7298_v61 }
0x149c   : > { %v7302_v9 = vsel %vm3038_vm1, %v7301_v39, %v7300_v18  ;;  %v15211_v18 = vld [vmem:[#allocation191_spill] sm:$0xff] }
0x149d   : > { %8348 = vmatmul.msk.bf16.gmra.mxu1 %vm6935_vm2, %v7949_v16  ;;  %v7304_v13 = vsel %vm3041_vm5, %v7303_v21, %v7302_v9 }
0x149e   : > { %v7306_v32 = vsel %vm3044_vm7, %v7305_v46, %v7304_v13  ;;  %v15212_v13 = vld [vmem:[#allocation192_spill] sm:$0xff] }
0x14a0   : > { %v13236_v26 = vld [vmem:[#allocation1] sm:$0xf] }
0x14a1   : > { %7116 = vst [vmem:[#allocation1] ss:$9 sm:$0xff] %v15192_v44  ;;  %v7217_v27 = vunpack.c.l.b16 %v13236_v26  ;;  %v7310_v44 = vsel %vm1135_vm12, %v7309_v52, %v7308_v59 }
0x14a2   : > { %v7312_v57 = vsel %vm1139_vm13, %v7311_v62, %v7310_v44 }
0x14a3   : > { %v7313_v49 = vrot.slane %v7217_v27, 4 }
0x14a5   : > { %v7314_v48 = vsel %vm3035_vm0, %v7313_v49, %v7312_v57 }
0x14a8   : > { %v7117_v56 = vld [vmem:[#allocation1] sm:$0xf] }
0x14a9   : > { %7119 = vst [vmem:[#allocation1] ss:$9 sm:$0xff] %v15193_v63  ;;  %v7218_v55 = vunpack.c.l.b16 %v7117_v56  ;;  %v15202_v63 = vld [vmem:[#allocation243_spill] sm:$0xff] }
0x14ab   : > { %v7315_v10 = vrot.slane %v7218_v55, 3 }
0x14ad   : > { %v7316_v41 = vsel %vm3038_vm1, %v7315_v10, %v7314_v48 }
0x14b0   : > { %v7120_v26 = vld [vmem:[#allocation1] sm:$0xf] }
0x14b1   : > { %7122 = vst [vmem:[#allocation1] ss:$9 sm:$0xff] %v15196_v22  ;;  %v7219_v50 = vunpack.c.l.b16 %v7120_v26 }
0x14b3   : > { %v7317_v8 = vrot.slane %v7219_v50, 2 }
0x14b5   : > { %v7318_v58 = vsel %vm3041_vm5, %v7317_v8, %v7316_v41 }
0x14b8   : > { %v7123_v20 = vld [vmem:[#allocation1] sm:$0xf] }
0x14b9   : > { %v7220_v35 = vunpack.c.l.b16 %v7123_v20  ;;  %7125 = vst [vmem:[#allocation1] ss:$9 sm:$0xff] %v15197_v15 }
0x14bb   : > { %v7319_v29 = vrot.slane %v7220_v35, 1 }
0x14bd   : > { %v7320_v34 = vsel %vm3044_vm7, %v7319_v29, %v7318_v58 }
0x14be   : > { %v7351_v37 = vpack.c.b16 %v7320_v34, %v7306_v32  ;;  %v15213_v34 = vld [vmem:[#allocation193_spill] sm:$0xff] }
0x14c0   : > { %8303 = vmatmul.msk.bf16.gmra.mxu2 %vm15198_vm15, %v7351_v37  ;;  %v7126_v24 = vld [vmem:[#allocation1] sm:$0xf] }
0x14c1   : > { %7128 = vst [vmem:[#allocation1] ss:$9 sm:$0xff] %v15199_v1  ;;  %v7221_v0 = vunpack.c.l.b16 %v7126_v24 }
0x14c8   : > { %v7129_v14 = vld [vmem:[#allocation1] sm:$0xf] }
0x14c9   : > { %7131 = vst [vmem:[#allocation1] ss:$9 sm:$0xff] %v15200_v2  ;;  %v7222_v36 = vunpack.c.l.b16 %v7129_v14 }
0x14cb   : > { %v7321_v44 = vrot.slane %v7222_v36, 7  ;;  %v15218_v36 = vld [vmem:[#allocation319_spill] sm:$0xff] }
0x14cd   : > { %v7322_v26 = vsel %vm15210_vm8, %v7321_v44, %v7221_v0 }
0x14d0   : > { %v7132_v56 = vld [vmem:[#allocation1] sm:$0xf] }
0x14d1   : > { %7134 = vst [vmem:[#allocation1] ss:$9 sm:$0xff] %v15201_v38  ;;  %v7223_v62 = vunpack.c.l.b16 %v7132_v56 }
0x14d3   : > { %v7323_v55 = vrot.slane %v7223_v62, 6  ;;  %v15219_v62 = vld [vmem:[#allocation147_spill] sm:$0xff] }
0x14d4   : > { %v7765_v0 = vpack.c.b16 %v15219_v62, %v15218_v36 }
0x14d5   : > { %v7324_v57 = vsel %vm1135_vm12, %v7323_v55, %v7322_v26  ;;  %v7767_v26 = vpack.c.b16 %v13257_v12, %v13093_v31 }
0x14d8   : > { %v7135_v42 = vld [vmem:[#allocation1] sm:$0xf] }
0x14d9   : > { %7137 = vst [vmem:[#allocation1] ss:$9 sm:$0xff] %v15202_v63  ;;  %v7224_v45 = vunpack.c.l.b16 %v7135_v42  ;;  %v8350_v42 = vld [vmem:[%s13452_s6 + $0x20] sm:$0xf]  ;;  %v15215_v63 = vld [vmem:[#allocation195_spill] sm:$0xff] }
0x14db   : > { %v7325_v6 = vrot.slane %v7224_v45, 5  ;;  %v6961_v45 = vpop.f32.mrf.mxu1 }
0x14dd   : > { %v7326_v28 = vsel %vm1139_vm13, %v7325_v6, %v7324_v57  ;;  %v7377_v6 = vpop.f32.mrf.mxu2 }
0x14e0   : > { %v7138_v11 = vld [vmem:[#allocation1] sm:$0xf] }
0x14e1   : > { %7140 = vst [vmem:[#allocation1] ss:$9 sm:$0xff] %v15203_v3  ;;  %v7225_v16 = vunpack.c.l.b16 %v7138_v11  ;;  %v8006_v3 = vsel %vm6948_vm3, %v8350_v42, 0 }
0x14e2   : > { %8015 = vmatpush.bf16.msra.mxu2 %v8006_v3 }
0x14e3   : > { %v7327_v50 = vrot.slane %v7225_v16, 4  ;;  %v6963_v44 = vpop.f32.mrf.mxu1  ;;  %v15220_v16 = vld [vmem:[#allocation260_spill] sm:$0xff] }
0x14e4   : > { %v7766_v55 = vpack.c.b16 %v13088_v23, %v15220_v16 }
0x14e5   : > { %v7328_v21 = vsel %vm3035_vm0, %v7327_v50, %v7326_v28  ;;  %v15222_v50 = vld [vmem:[#allocation256_spill] sm:$0xff]  ;;  %v7659_v28 = vpop.f32.mrf.mxu0 }
0x14e8   : > { %v7141_v40 = vld [vmem:[#allocation1] sm:$0xf] }
0x14e9   : > { %7143 = vst [vmem:[#allocation1] ss:$9 sm:$0xff] %v15204_v25  ;;  %v7226_v61 = vunpack.c.l.b16 %v7141_v40 }
0x14eb   : > { %v7329_v10 = vrot.slane %v7226_v61, 3  ;;  %v6966_v61 = vpop.f32.mrf.mxu1 }
0x14ed   : > { %v7330_v8 = vsel %vm3038_vm1, %v7329_v10, %v7328_v21 }
0x14f0   : > { %v7144_v52 = vld [vmem:[#allocation1] sm:$0xf] }
0x14f1   : > { %7146 = vst [vmem:[#allocation1] ss:$9 sm:$0xff] %v15205_v51  ;;  %v7227_v22 = vunpack.c.l.b16 %v7144_v52 }
0x14f3   : > { %v7331_v48 = vrot.slane %v7227_v22, 2 }
0x14f5   : > { %v7332_v46 = vsel %vm3041_vm5, %v7331_v48, %v7330_v8 }
0x14f8   : > { %v7147_v54 = vld [vmem:[#allocation1] sm:$0xf] }
0x14f9   : > { %7149 = vst [vmem:[#allocation1] ss:$9 sm:$0xff] %v15206_v47  ;;  %v7228_v39 = vunpack.c.l.b16 %v7147_v54 }
0x14fb   : > { %v7333_v9 = vrot.slane %v7228_v39, 1  ;;  %v7379_v39 = vpop.f32.mrf.mxu2 }
0x14fd   : > { %v7334_v41 = vsel %vm3044_vm7, %v7333_v9, %v7332_v46  ;;  %v7661_v9 = vpop.f32.mrf.mxu0 }
0x1500   : > { %v7150_v59 = vld [vmem:[#allocation1] sm:$0xf] }
0x1501   : > { %7152 = vst [vmem:[#allocation1] ss:$9 sm:$0xff] %v15207_v7  ;;  %v7229_v58 = vunpack.c.l.b16 %v7150_v59 }
0x1503   : > { %v7382_v57 = vpop.f32.mrf.mxu2 }
0x1508   : > { %v7153_v27 = vld [vmem:[#allocation1] sm:$0xf] }
0x1509   : > { %7155 = vst [vmem:[#allocation1] ss:$9 sm:$0xff] %v15208_v17  ;;  %v7230_v35 = vunpack.c.l.b16 %v7153_v27 }
0x150b   : > { %v7335_v32 = vrot.slane %v7230_v35, 7  ;;  %v7384_v12 = vpop.f32.mrf.mxu2 }
0x150d   : > { %v7336_v1 = vsel %vm15214_vm4, %v7335_v32, %v7229_v58 }
0x1510   : > { %v7156_v5 = vld [vmem:[#allocation1] sm:$0xf] }
0x1511   : > { %7158 = vst [vmem:[#allocation1] ss:$9 sm:$0xff] %v15209_v33  ;;  %v7231_v15 = vunpack.c.l.b16 %v7156_v5  ;;  %v15217_v33 = vpack.c.b16 %v12959_v43, %v12921_v19  ;;  %v13338_v19 = vpop.f32.mrf.mxu1 }
0x1513   : > { %v7337_v24 = vrot.slane %v7231_v15, 6 }
0x1515   : > { %v7338_v53 = vsel %vm1135_vm12, %v7337_v24, %v7336_v1  ;;  %vm15216_vm12 = vmmov %vm15179_vm10 }
0x1518   : > { %v7159_v49 = vld [vmem:[#allocation1] sm:$0xf] }
0x1519   : > { %7161 = vst [vmem:[#allocation1] ss:$9 sm:$0xff] %v15211_v18  ;;  %v7232_v37 = vunpack.c.l.b16 %v7159_v49  ;;  %v13340_v43 = vpop.f32.mrf.mxu1  ;;  %v15221_v49 = vld [vmem:[#allocation231_spill] sm:$0xff]  ;;  %v7550_v18 = vpop.f32.mrf.mxu3 }
0x151b   : > { %v7339_v14 = vrot.slane %v7232_v37, 5 }
0x151d   : > { %v7340_v11 = vsel %vm1139_vm13, %v7339_v14, %v7338_v53 }
0x1520   : > { %v7162_v20 = vld [vmem:[#allocation1] sm:$0xf] }
0x1521   : > { %7164 = vst [vmem:[#allocation1] ss:$9 sm:$0xff] %v15212_v13  ;;  %v7233_v4 = vunpack.c.l.b16 %v7162_v20  ;;  %v13344_v22 = vpop.f32.mrf.mxu1  ;;  %v7552_v48 = vpop.f32.mrf.mxu3 }
0x1522   : > { %v7664_v20 = vpop.f32.mrf.mxu0 }
0x1523   : > { %v7341_v38 = vrot.slane %v7233_v4, 4 }
0x1525   : > { %v7342_v52 = vsel %vm3035_vm0, %v7341_v38, %v7340_v11 }
0x1528   : > { %v7165_v29 = vld [vmem:[#allocation1] sm:$0xf] }
0x1529   : > { %7167 = vst [vmem:[#allocation1] ss:$9 sm:$0xff] %v15213_v34  ;;  %v7234_v2 = vunpack.c.l.b16 %v7165_v29  ;;  %v13346_v23 = vpop.f32.mrf.mxu1 }
0x152b   : > { %v7343_v25 = vrot.slane %v7234_v2, 3 }
0x152d   : > { %v7344_v54 = vsel %vm3038_vm1, %v7343_v25, %v7342_v52 }
0x1530   : > { %v7168_v56 = vld [vmem:[#allocation1] sm:$0xf] }
0x1531   : > { %7170 = vst [vmem:[#allocation1] ss:$9 sm:$0xff] %v15215_v63  ;;  %v7235_v40 = vunpack.c.l.b16 %v7168_v56  ;;  %v13350_v31 = vpop.f32.mrf.mxu1 }
0x1533   : > { %v7345_v51 = vrot.slane %v7235_v40, 2  ;;  %v7378_v40 = vadd.f32 %v7377_v6, %v6961_v45 }
0x1535   : > { %v7346_v7 = vsel %vm3041_vm5, %v7345_v51, %v7344_v54  ;;  %v7570_v54 = vadd.f32 %v7550_v18, %v7378_v40 }
0x1538   : > { %v7171_v47 = vld [vmem:[#allocation1] sm:$0xf] }
0x1539   : > { %v7236_v59 = vunpack.c.l.b16 %v7171_v47  ;;  %v7719_v21 = vpop.f32.mrf.mxu1 }
0x153b   : > { %v7347_v27 = vrot.slane %v7236_v59, 1  ;;  %v7380_v59 = vadd.f32 %v7379_v39, %v6963_v44 }
0x153d   : > { %v7348_v17 = vsel %vm3044_vm7, %v7347_v27, %v7346_v7  ;;  %v7679_v7 = vadd.f32 %v7659_v28, %v7570_v54  ;;  %v7385_v28 = vadd.f32 %v7384_v12, %v13338_v19 }
0x153e   : > { %v7352_v5 = vpack.c.b16 %v7348_v17, %v7334_v41  ;;  %v7555_v41 = vpop.f32.mrf.mxu3 }
0x1540   : > { %8304 = vmatmul.msk.bf16.gmra.mxu2 %vm15216_vm12, %v7352_v5  ;;  %v7571_v5 = vadd.f32 %v7552_v48, %v7380_v59 }
0x1541   : > { %v7721_v46 = vpop.f32.mrf.mxu1 }
0x1542   : > { %v7680_v16 = vadd.f32 %v7661_v9, %v7571_v5 }
0x1543   : > { %v13354_v10 = vpop.f32.mrf.mxu2 }
0x1546   : > { %v7557_v15 = vpop.f32.mrf.mxu3 }
0x1549   : > { %v7724_v35 = vpop.f32.mrf.mxu1 }
0x154b   : > { %v13356_v8 = vpop.f32.mrf.mxu2 }
0x154e   : > { %v7560_v29 = vpop.f32.mrf.mxu3 }
0x1550   : > { %8329 = vmatmul.msk.bf16.vlgmr.msrb.gmra.mxu2 %vm6935_vm2, %v15217_v33  ;;  %v7739_v33 = vadd.f32 %v7719_v21, %v7679_v7 }
0x1551   : > { %v13364_v32 = vpop.f32.mrf.mxu1 }
0x1556   : > { %v13370_v4 = vpop.f32.mrf.mxu3 }
0x1559   : > { %v13368_v24 = vpop.f32.mrf.mxu1 }
0x155e   : > { %v13376_v2 = vpop.f32.mrf.mxu3 }
0x1560   : > { %8330 = vmatmul.msk.bf16.gmra.mxu2 %vm6935_vm2, %v7765_v0  ;;  %v7383_v0 = vadd.f32 %v7382_v57, %v6966_v61  ;;  %v7573_v57 = vadd.f32 %v7557_v15, %v7385_v28 }
0x1561   : > { %v13374_v53 = vpop.f32.mrf.mxu1 }
0x1562   : > { %v7572_v6 = vadd.f32 %v7555_v41, %v7383_v0 }
0x1564   : > { %v7681_v40 = vadd.f32 %v7664_v20, %v7572_v6  ;;  %v7388_v20 = vadd.f32 %v13354_v10, %v13340_v43 }
0x1566   : > { %v13382_v63 = vpop.f32.mrf.mxu3  ;;  %v7741_v9 = vadd.f32 %v7724_v35, %v7681_v40  ;;  %v7574_v7 = vadd.f32 %v7560_v29, %v7388_v20 }
0x1569   : > { %v13380_v42 = vpop.f32.mrf.mxu1 }
0x156e   : > { %v7856_v52 = vpop.f32.mrf.mxu3 }
0x1570   : > { %8331 = vmatmul.msk.bf16.gmra.mxu2 %vm6935_vm2, %v7766_v55 }
0x1571   : > { %v13388_v25 = vpop.f32.mrf.mxu1 }
0x1576   : > { %v7858_v36 = vpop.f32.mrf.mxu3 }
0x1579   : > { %v7965_v27 = vpop.f32.mrf.mxu1 }
0x157e   : > { %v7861_v39 = vpop.f32.mrf.mxu3 }
0x1580   : > { %8332 = vmatmul.msk.bf16.gmra.mxu2 %vm6935_vm2, %v7767_v26 }
0x1590   : > { %8351 = vmatmul.msk.bf16.vlgmr.msra.gmra.mxu2 %vm6935_vm2, %v15221_v49  ;;  %v7740_v49 = vadd.f32 %v7721_v46, %v7680_v16 }
0x15a0   : > { %8352 = vmatmul.msk.bf16.gmra.mxu2 %vm6935_vm2, %v15222_v50  ;;  %v7967_v50 = vpop.f32.mrf.mxu1 }
0x15a8   : > { %v7970_v12 = vpop.f32.mrf.mxu1 }
0x15b0   : > { %8353 = vmatmul.msk.bf16.gmra.mxu2 %vm6935_vm2, %v13074_v30  ;;  %v7666_v30 = vpop.f32.mrf.mxu0  ;;  %v7972_v10 = vpop.f32.mrf.mxu1 }
0x15b8   : > { %v13366_v37 = vpop.f32.mrf.mxu0 }
0x15b9   : > { %v7683_v43 = vadd.f32 %v13366_v37, %v7574_v7 }
0x15c0   : > { %8354 = vmatmul.msk.bf16.gmra.mxu2 %vm6935_vm2, %v13270_v60  ;;  %v13372_v60 = vpop.f32.mrf.mxu0 }
0x15c3   : > { %v13360_v13 = vpop.f32.mrf.mxu2 }
0x15c8   : > { %v13378_v56 = vpop.f32.mrf.mxu0 }
0x15cb   : > { %v13362_v58 = vpop.f32.mrf.mxu2 }
0x15d0   : > { %v13386_v3 = vpop.f32.mrf.mxu0 }
0x15d3   : > { %v7792_v34 = vpop.f32.mrf.mxu2 }
0x15d4   : > { %v7812_v62 = vadd.f32 %v7792_v34, %v7739_v33  ;;  %v7682_v34 = vadd.f32 %v7666_v30, %v7573_v57  ;;  %v7390_v33 = vadd.f32 %v13356_v8, %v13344_v22  ;;  %v7393_v22 = vadd.f32 %v13360_v13, %v13346_v23 }
0x15d5   : > { %v7395_v23 = vadd.f32 %v13362_v58, %v13350_v31 }
0x15d6   : > { %v7876_v55 = vadd.f32 %v7856_v52, %v7812_v62  ;;  %v7575_v29 = vadd.f32 %v13370_v4, %v7390_v33  ;;  %v7576_v4 = vadd.f32 %v13376_v2, %v7393_v22 }
0x15d7   : > { %v7577_v2 = vadd.f32 %v13382_v63, %v7395_v23 }
0x15d8   : > { %v7904_v47 = vpop.f32.mrf.mxu0  ;;  %v7684_v8 = vadd.f32 %v13372_v60, %v7575_v29  ;;  %v7685_v13 = vadd.f32 %v13378_v56, %v7576_v4 }
0x15d9   : > { %v7924_v44 = vadd.f32 %v7904_v47, %v7876_v55  ;;  %v7686_v31 = vadd.f32 %v13386_v3, %v7577_v2 }
0x15db   : > { %v7794_v1 = vpop.f32.mrf.mxu2  ;;  %v7985_v48 = vadd.f32 %v7965_v27, %v7924_v44  ;;  %v7742_v27 = vadd.f32 %v13364_v32, %v7682_v34  ;;  %v7743_v32 = vadd.f32 %v13368_v24, %v7683_v43  ;;  %v7744_v24 = vadd.f32 %v13374_v53, %v7684_v8 }
0x15dc   : > { %v7813_v18 = vadd.f32 %v7794_v1, %v7740_v49  ;;  %v7863_v1 = vpop.f32.mrf.mxu3  ;;  %v7975_v49 = vpop.f32.mrf.mxu1  ;;  %v7745_v53 = vadd.f32 %v13380_v42, %v7685_v13  ;;  %v7746_v63 = vadd.f32 %v13388_v25, %v7686_v31 }
0x15de   : > { %v7877_v21 = vadd.f32 %v7858_v36, %v7813_v18 }
0x15e0   : > { %v7906_v45 = vpop.f32.mrf.mxu0 }
0x15e1   : > { %v7925_v19 = vadd.f32 %v7906_v45, %v7877_v21 }
0x15e3   : > { %v7797_v14 = vpop.f32.mrf.mxu2  ;;  %v7986_v47 = vadd.f32 %v7967_v50, %v7925_v19 }
0x15e4   : > { %v7814_v41 = vadd.f32 %v7797_v14, %v7741_v9  ;;  %v7866_v62 = vpop.f32.mrf.mxu3 }
0x15e6   : > { %v7878_v52 = vadd.f32 %v7861_v39, %v7814_v41 }
0x15e8   : > { %v7909_v54 = vpop.f32.mrf.mxu0 }
0x15e9   : > { %v7926_v14 = vadd.f32 %v7909_v54, %v7878_v52  ;;  %v7977_v54 = vpop.f32.mrf.mxu1 }
0x15eb   : > { %v7799_v38 = vpop.f32.mrf.mxu2  ;;  %v7987_v36 = vadd.f32 %v7970_v12, %v7926_v14 }
0x15ec   : > { %v7815_v5 = vadd.f32 %v7799_v38, %v7742_v27 }
0x15ee   : > { %v7879_v30 = vadd.f32 %v7863_v1, %v7815_v5 }
0x15f0   : > { %v7911_v35 = vpop.f32.mrf.mxu0 }
0x15f1   : > { %v7927_v45 = vadd.f32 %v7911_v35, %v7879_v30  ;;  %v7980_v19 = vpop.f32.mrf.mxu1 }
0x15f3   : > { %v13384_v11 = vpop.f32.mrf.mxu2  ;;  %v7988_v6 = vadd.f32 %v7972_v10, %v7927_v45 }
0x15f4   : > { %v7816_v38 = vadd.f32 %v13384_v11, %v7743_v32  ;;  %v7868_v11 = vpop.f32.mrf.mxu3 }
0x15f6   : > { %v7880_v37 = vadd.f32 %v7866_v62, %v7816_v38 }
0x15f8   : > { %v7914_v55 = vpop.f32.mrf.mxu0 }
0x15f9   : > { %v7928_v39 = vadd.f32 %v7914_v55, %v7880_v37 }
0x15fb   : > { %v13390_v51 = vpop.f32.mrf.mxu2  ;;  %v7989_v40 = vadd.f32 %v7975_v49, %v7928_v39 }
0x15fc   : > { %v7817_v44 = vadd.f32 %v13390_v51, %v7744_v24  ;;  %v7871_v57 = vpop.f32.mrf.mxu3 }
0x15fe   : > { %v7881_v28 = vadd.f32 %v7868_v11, %v7817_v44 }
0x1600   : > { %v7916_v60 = vpop.f32.mrf.mxu0 }
0x1603   : > { %v13392_v17 = vpop.f32.mrf.mxu2 }
0x1604   : > { %v7818_v51 = vadd.f32 %v13392_v17, %v7745_v53  ;;  %v7873_v12 = vpop.f32.mrf.mxu3 }
0x1606   : > { %v7882_v58 = vadd.f32 %v7871_v57, %v7818_v51 }
0x1608   : > { %v7919_v9 = vpop.f32.mrf.mxu0 }
0x1609   : > { %v7930_v17 = vadd.f32 %v7919_v9, %v7882_v58 }
0x160b   : > { %v13394_v26 = vpop.f32.mrf.mxu2  ;;  %v7991_v34 = vadd.f32 %v7980_v19, %v7930_v17 }
0x160c   : > { %v7819_v42 = vadd.f32 %v13394_v26, %v7746_v63 }
0x160e   : > { %v7883_v20 = vadd.f32 %v7873_v12, %v7819_v42 }
0x1610   : > { %v7921_v52 = vpop.f32.mrf.mxu0 }
0x1613   : > { %v8017_v61 = vpop.f32.mrf.mxu2 }
0x1614   : > { %v8037_v46 = vadd.f32 %v8017_v61, %v7985_v48  ;;  %v7929_v61 = vadd.f32 %v7916_v60, %v7881_v28 }
0x1616   : > { %8045 = vst.msk [vmem:[%s13401_s30] sm:$0xff] %vm6935_vm2, %v8037_v46  ;;  %v7990_v56 = vadd.f32 %v7977_v54, %v7929_v61 }
0x161b   : > { %v8019_v59 = vpop.f32.mrf.mxu2 }
0x161c   : > { %v8038_v15 = vadd.f32 %v8019_v59, %v7986_v47  ;;  %v7931_v47 = vadd.f32 %v7921_v52, %v7883_v20  ;;  %v7982_v59 = vpop.f32.mrf.mxu1 }
0x161e   : > { %8046 = vst.msk [vmem:[%s13401_s30 + $0x8] sm:$0xff] %vm6935_vm2, %v8038_v15  ;;  %v7992_v7 = vadd.f32 %v7982_v59, %v7931_v47 }
0x1623   : > { %v8022_v0 = vpop.f32.mrf.mxu2 }
0x1624   : > { %v8039_v16 = vadd.f32 %v8022_v0, %v7987_v36 }
0x1626   : > { %8047 = vst.msk [vmem:[%s13401_s30 + $0x10] sm:$0xff] %vm6935_vm2, %v8039_v16 }
0x162b   : > { %v8024_v50 = vpop.f32.mrf.mxu2 }
0x162c   : > { %v8040_v18 = vadd.f32 %v8024_v50, %v7988_v6 }
0x162e   : > { %8048 = vst.msk [vmem:[%s13401_s30 + $0x18] sm:$0xff] %vm6935_vm2, %v8040_v18 }
0x1633   : > { %v8027_v21 = vpop.f32.mrf.mxu2 }
0x1634   : > { %v8041_v48 = vadd.f32 %v8027_v21, %v7989_v40 }
0x1636   : > { %8049 = vst.msk [vmem:[%s13401_s30 + $0x20] sm:$0xff] %vm6935_vm2, %v8041_v48 }
0x163b   : > { %v8029_v46 = vpop.f32.mrf.mxu2 }
0x163c   : > { %v8042_v41 = vadd.f32 %v8029_v46, %v7990_v56 }
0x163e   : > { %8050 = vst.msk [vmem:[%s13401_s30 + $0x28] sm:$0xff] %vm6935_vm2, %v8042_v41 }
0x1643   : > { %v8032_v1 = vpop.f32.mrf.mxu2 }
0x1644   : > { %v8043_v3 = vadd.f32 %v8032_v1, %v7991_v34 }
0x1646   : > { %8051 = vst.msk [vmem:[%s13401_s30 + $0x30] sm:$0xff] %vm6935_vm2, %v8043_v3 }
0x164b   : > { %v8034_v25 = vpop.f32.mrf.mxu2 }
0x164c   : > { %v8044_v27 = vadd.f32 %v8034_v25, %v7992_v7 }
0x164e   : > { %8052 = vst.msk [vmem:[%s13401_s30 + $0x38] sm:$0xff] %vm6935_vm2, %v8044_v27 }
0x164f PF: > { %s18_s27 = sadd.s32 1, %s8385_s27  }
0x1650   : > { %p15_p4 = scmp.ge.s32.totalorder %s18_s27, 4  }
0x1652   :  { %17 = sbr.rel (!%p15_p4) target bundleno = 1 (0x1), region = 102 }

</bundles_post_ra>
